<compile_context>
chip_gen: v5e
topology: v5e:2x2
jax: 0.10.0
libtpu: 0.0.40
codegen_flags: <defaults>
</compile_context>

<pallas_src>
import jax
import jax.numpy as jnp
from jax.experimental import pallas as pl
from jax.experimental.pallas import tpu as pltpu

NBASE = [2, 32, 64, 128, 256]
KSIZE = 3
BN_EPS = 1e-5


def _const_spec(arr):
    """BlockSpec for a parameter that is identical for every grid step."""
    nd = arr.ndim
    return pl.BlockSpec(arr.shape, lambda n, _nd=nd: (0,) * _nd)


# ---------------------------------------------------------------------------
# One fused resdown stage:
#   [optional 2x2 maxpool] -> x1 = proj(x) + conv1(conv0(x))
#                          -> out = x1 + conv3(conv2(x1))
# One grid step per batch element; everything stays in VMEM.
# ---------------------------------------------------------------------------
def resdown_stage(x, sp, *, pool):
    N, Hin, Win, Cin = x.shape
    H, W = (Hin // 2, Win // 2) if pool else (Hin, Win)
    Cout = sp["proj"]["w"].shape[-1]

    conv_names = ("proj", "conv0", "conv1", "conv2", "conv3")
    param_arrays = []
    for name in conv_names:
        p = sp[name]
        for key in ("scale", "shift", "w", "b"):
            param_arrays.append(p[key])
    param_specs = [_const_spec(a) for a in param_arrays]

    def kernel(*refs):
        x_ref = refs[0]
        (pj_s, pj_h, pj_w, pj_b,
         c0_s, c0_h, c0_w, c0_b,
         c1_s, c1_h, c1_w, c1_b,
         c2_s, c2_h, c2_w, c2_b,
         c3_s, c3_h, c3_w, c3_b) = refs[1:21]
        o_ref = refs[21]
        pad0, pad1 = refs[22], refs[23]

        # ----- load input; 2x2 maxpool fused as a prologue on the tile -----
        if pool:
            a = x_ref[pl.ds(0, H, stride=2), pl.ds(0, W, stride=2), :]
            b = x_ref[pl.ds(0, H, stride=2), pl.ds(1, W, stride=2), :]
            c = x_ref[pl.ds(1, H, stride=2), pl.ds(0, W, stride=2), :]
            d = x_ref[pl.ds(1, H, stride=2), pl.ds(1, W, stride=2), :]
            xin = jnp.maximum(jnp.maximum(a, b), jnp.maximum(c, d))
        else:
            xin = x_ref[...]

        # Zero padded scratches once per grid step (halo must stay zero; the
        # interior is fully overwritten before each use).  Not gated on
        # program_id==0 so it is correct under megacore-parallel sharding.
        pad0[...] = jnp.zeros_like(pad0)
        pad1[...] = jnp.zeros_like(pad1)

        def bn(v, s_ref, h_ref, relu):
            y = v * s_ref[...] + h_ref[...]
            return jnp.maximum(y, 0.0) if relu else y

        def conv3x3(y, pref, w_ref, b_ref):
            # y: (H, W, C) f32 -> zero-padded 3x3 conv -> (H, W, Cout) f32
            C = y.shape[-1]
            pref[1:1 + H, 1:1 + W, :] = y
            taps = [pref[kh:kh + H, kw:kw + W, :].reshape(H * W, C)
                    for kh in range(3) for kw in range(3)]
            bias = b_ref[...].reshape(1, Cout)
            if len(w_ref.shape) == 2:
                # im2col: one bf16 MXU matmul with K = 9*C (lane-aligned
                # concat; only used when C % 128 == 0, i.e. deep stages).
                col = jnp.concatenate(taps, axis=-1).astype(jnp.bfloat16)
                acc = jnp.dot(col, w_ref[...],
                              preferred_element_type=jnp.float32) + bias
            else:
                # Small C: accumulate 9 bf16 taps (f32 accumulation),
                # accumulator initialised with the broadcast bias.
                acc = jnp.broadcast_to(bias, (H * W, Cout))
                for k, tap in enumerate(taps):
                    acc = acc + jnp.dot(tap.astype(jnp.bfloat16), w_ref[k],
                                        preferred_element_type=jnp.float32)
            return acc.reshape(H, W, Cout)

        # proj: BN -> 1x1 conv (no ReLU), fused into the same kernel.
        yp = bn(xin, pj_s, pj_h, relu=False).reshape(H * W, Cin)
        proj = (jnp.dot(yp.astype(jnp.bfloat16), pj_w[...],
                        preferred_element_type=jnp.float32)
                + pj_b[...].reshape(1, Cout)).reshape(H, W, Cout)

        # x1 = proj(x) + conv1(conv0(x))
        t = conv3x3(bn(xin, c0_s, c0_h, relu=True), pad0, c0_w, c0_b)
        x1 = conv3x3(bn(t, c1_s, c1_h, relu=True), pad1, c1_w, c1_b) + proj
        # out = x1 + conv3(conv2(x1))
        t2 = conv3x3(bn(x1, c2_s, c2_h, relu=True), pad1, c2_w, c2_b)
        out = conv3x3(bn(t2, c3_s, c3_h, relu=True), pad1, c3_w, c3_b) + x1

        o_ref[...] = out.astype(o_ref.dtype)

    flops = 2 * N * H * W * (Cin * Cout          # proj (1x1)
                             + 9 * Cin * Cout    # conv0 (3x3)
                             + 3 * 9 * Cout * Cout)  # conv1..conv3 (3x3)
    bytes_accessed = (int(x.size) * x.dtype.itemsize
                      + sum(int(a.size) * a.dtype.itemsize
                            for a in param_arrays)
                      + N * H * W * Cout * 4)

    return pl.pallas_call(
        kernel,
        out_shape=jax.ShapeDtypeStruct((N, H, W, Cout), jnp.float32),
        grid=(N,),
        in_specs=[pl.BlockSpec((None, Hin, Win, Cin),
                               lambda n: (n, 0, 0, 0))] + param_specs,
        out_specs=pl.BlockSpec((None, H, W, Cout), lambda n: (n, 0, 0, 0)),
        scratch_shapes=[
            pltpu.VMEM((H + 2, W + 2, Cin), jnp.float32),    # conv0 pad
            pltpu.VMEM((H + 2, W + 2, Cout), jnp.float32),   # conv1/2/3 pad
        ],
        compiler_params=pltpu.CompilerParams(
            dimension_semantics=("parallel",)),   # batch-independent -> v7x megacore
        cost_estimate=pl.CostEstimate(flops=int(flops), transcendentals=0,
                                      bytes_accessed=int(bytes_accessed)),
    )(x, *param_arrays)


# ---------------------------------------------------------------------------
# Module composition: 4 fused stages (maxpool is inside stages 1..3).
# ---------------------------------------------------------------------------
def downsample_apply(x_nhwc, params):
    outs = []
    for n in range(len(NBASE) - 1):
        stage_in = outs[-1] if n > 0 else x_nhwc
        outs.append(resdown_stage(stage_in, params[n], pool=(n > 0)))
    return outs


# ---------------------------------------------------------------------------
# Deterministic synthetic parameters (shapes match the PyTorch module).
# Weights are pre-cast to bf16; the 3x3 weights are packed either as
# (9*Cin, Cout) for the im2col path (Cin % 128 == 0) or (9, Cin, Cout).
# ---------------------------------------------------------------------------
def _init_batchconv(key, cin, cout, ksize):
    ks = jax.random.split(key, 6)
    gamma = 1.0 + 0.1 * jax.random.normal(ks[0], (cin,), jnp.float32)
    beta = 0.1 * jax.random.normal(ks[1], (cin,), jnp.float32)
    rmean = 0.1 * jax.random.normal(ks[2], (cin,), jnp.float32)
    rvar = jax.random.uniform(ks[3], (cin,), jnp.float32, 0.5, 1.5)
    fan_in = cin * ksize * ksize
    w = (1.0 / jnp.sqrt(fan_in)) * jax.random.normal(
        ks[4], (ksize, ksize, cin, cout), jnp.float32)       # HWIO
    b = 0.01 * jax.random.normal(ks[5], (cout,), jnp.float32)
    scale = gamma / jnp.sqrt(rvar + BN_EPS)
    shift = beta - rmean * scale
    if ksize == 1:
        w_packed = w.reshape(cin, cout)
    elif cin % 128 == 0:
        w_packed = w.reshape(ksize * ksize * cin, cout)      # im2col layout
    else:
        w_packed = w.reshape(ksize * ksize, cin, cout)       # per-tap layout
    return dict(scale=scale.reshape(1, 1, cin),
                shift=shift.reshape(1, 1, cin),
                w=w_packed.astype(jnp.bfloat16),
                b=b.reshape(1, 1, cout))


def init_downsample_params(key):
    level_keys = jax.random.split(key, len(NBASE) - 1)
    params = []
    for n in range(len(NBASE) - 1):
        cin, cout = NBASE[n], NBASE[n + 1]
        ks = jax.random.split(level_keys[n], 5)
        params.append(dict(
            proj=_init_batchconv(ks[0], cin, cout, 1),
            conv0=_init_batchconv(ks[1], cin, cout, KSIZE),
            conv1=_init_batchconv(ks[2], cout, cout, KSIZE),
            conv2=_init_batchconv(ks[3], cout, cout, KSIZE),
            conv3=_init_batchconv(ks[4], cout, cout, KSIZE),
        ))
    return params


# ---------------------------------------------------------------------------
def cyto3_encoder_forward(x_nchw, params):
    """x_nchw: (N, 2, H, W) float32 -> list of 4 NCHW feature maps."""
    x = jnp.transpose(x_nchw, (0, 2, 3, 1))            # NCHW -> NHWC
    outs_nhwc = downsample_apply(x, params)
    return [jnp.transpose(o, (0, 3, 1, 2)) for o in outs_nhwc]  # back to NCHW


if __name__ == "__main__":
    key = jax.random.PRNGKey(0)
    kx, kp = jax.random.split(key)

    params = init_downsample_params(kp)
    x = jax.random.normal(kx, (2, NBASE[0], 16, 16), jnp.float32)  # NCHW

    outs = cyto3_encoder_forward(x, params)
    outs = [jax.block_until_ready(o) for o in outs]

    expected = [(2, 32, 16, 16), (2, 64, 8, 8), (2, 128, 4, 4), (2, 256, 2, 2)]
    assert [tuple(o.shape) for o in outs] == expected, \
        [tuple(o.shape) for o in outs]
    assert all(bool(jnp.all(jnp.isfinite(o))) for o in outs)
    print("KERNEL_OK")
</pallas_src>

<mosaic_0001>
module attributes {stable_mosaic.version = 11 : i64} {
  func.func @kernel(%arg0: i32, %arg1: memref<1x16x16x2xf32, #tpu.memory_space<vmem>>, %arg2: memref<1x1x2xf32, #tpu.memory_space<vmem>>, %arg3: memref<1x1x2xf32, #tpu.memory_space<vmem>>, %arg4: memref<2x32xbf16, #tpu.memory_space<vmem>>, %arg5: memref<1x1x32xf32, #tpu.memory_space<vmem>>, %arg6: memref<1x1x2xf32, #tpu.memory_space<vmem>>, %arg7: memref<1x1x2xf32, #tpu.memory_space<vmem>>, %arg8: memref<9x2x32xbf16, #tpu.memory_space<vmem>>, %arg9: memref<1x1x32xf32, #tpu.memory_space<vmem>>, %arg10: memref<1x1x32xf32, #tpu.memory_space<vmem>>, %arg11: memref<1x1x32xf32, #tpu.memory_space<vmem>>, %arg12: memref<9x32x32xbf16, #tpu.memory_space<vmem>>, %arg13: memref<1x1x32xf32, #tpu.memory_space<vmem>>, %arg14: memref<1x1x32xf32, #tpu.memory_space<vmem>>, %arg15: memref<1x1x32xf32, #tpu.memory_space<vmem>>, %arg16: memref<9x32x32xbf16, #tpu.memory_space<vmem>>, %arg17: memref<1x1x32xf32, #tpu.memory_space<vmem>>, %arg18: memref<1x1x32xf32, #tpu.memory_space<vmem>>, %arg19: memref<1x1x32xf32, #tpu.memory_space<vmem>>, %arg20: memref<9x32x32xbf16, #tpu.memory_space<vmem>>, %arg21: memref<1x1x32xf32, #tpu.memory_space<vmem>>, %arg22: memref<1x16x16x32xf32, #tpu.memory_space<vmem>>, %arg23: memref<18x18x2xf32, #tpu.memory_space<vmem>>, %arg24: memref<18x18x32xf32, #tpu.memory_space<vmem>>) attributes {dimension_semantics = [#tpu.dimension_semantics<parallel>], iteration_bounds = array<i64: 2>, scalar_prefetch = 0 : i64, scratch_operands = 2 : i64, tpu.core_type = #tpu.core_type<tc>, window_params = [{transform_indices = @transform_0, window_bounds = array<i64: 1, 16, 16, 2>}, {pipeline_mode = #tpu.pipeline_mode<synchronous>, transform_indices = @transform_1, window_bounds = array<i64: 1, 1, 2>}, {pipeline_mode = #tpu.pipeline_mode<synchronous>, transform_indices = @transform_2, window_bounds = array<i64: 1, 1, 2>}, {pipeline_mode = #tpu.pipeline_mode<synchronous>, transform_indices = @transform_3, window_bounds = array<i64: 2, 32>}, {pipeline_mode = #tpu.pipeline_mode<synchronous>, transform_indices = @transform_4, window_bounds = array<i64: 1, 1, 32>}, {pipeline_mode = #tpu.pipeline_mode<synchronous>, transform_indices = @transform_5, window_bounds = array<i64: 1, 1, 2>}, {pipeline_mode = #tpu.pipeline_mode<synchronous>, transform_indices = @transform_6, window_bounds = array<i64: 1, 1, 2>}, {pipeline_mode = #tpu.pipeline_mode<synchronous>, transform_indices = @transform_7, window_bounds = array<i64: 9, 2, 32>}, {pipeline_mode = #tpu.pipeline_mode<synchronous>, transform_indices = @transform_8, window_bounds = array<i64: 1, 1, 32>}, {pipeline_mode = #tpu.pipeline_mode<synchronous>, transform_indices = @transform_9, window_bounds = array<i64: 1, 1, 32>}, {pipeline_mode = #tpu.pipeline_mode<synchronous>, transform_indices = @transform_10, window_bounds = array<i64: 1, 1, 32>}, {pipeline_mode = #tpu.pipeline_mode<synchronous>, transform_indices = @transform_11, window_bounds = array<i64: 9, 32, 32>}, {pipeline_mode = #tpu.pipeline_mode<synchronous>, transform_indices = @transform_12, window_bounds = array<i64: 1, 1, 32>}, {pipeline_mode = #tpu.pipeline_mode<synchronous>, transform_indices = @transform_13, window_bounds = array<i64: 1, 1, 32>}, {pipeline_mode = #tpu.pipeline_mode<synchronous>, transform_indices = @transform_14, window_bounds = array<i64: 1, 1, 32>}, {pipeline_mode = #tpu.pipeline_mode<synchronous>, transform_indices = @transform_15, window_bounds = array<i64: 9, 32, 32>}, {pipeline_mode = #tpu.pipeline_mode<synchronous>, transform_indices = @transform_16, window_bounds = array<i64: 1, 1, 32>}, {pipeline_mode = #tpu.pipeline_mode<synchronous>, transform_indices = @transform_17, window_bounds = array<i64: 1, 1, 32>}, {pipeline_mode = #tpu.pipeline_mode<synchronous>, transform_indices = @transform_18, window_bounds = array<i64: 1, 1, 32>}, {pipeline_mode = #tpu.pipeline_mode<synchronous>, transform_indices = @transform_19, window_bounds = array<i64: 9, 32, 32>}, {pipeline_mode = #tpu.pipeline_mode<synchronous>, transform_indices = @transform_20, window_bounds = array<i64: 1, 1, 32>}, {transform_indices = @transform_21, window_bounds = array<i64: 1, 16, 16, 32>}]} {
    %c0 = arith.constant 0 : index
    %c0_0 = arith.constant 0 : index
    %c0_1 = arith.constant 0 : index
    %c0_2 = arith.constant 0 : index
    %0 = vector.load %arg1[%c0, %c0_0, %c0_1, %c0_2] : memref<1x16x16x2xf32, #tpu.memory_space<vmem>>, vector<1x16x16x2xf32>
    %1 = vector.shape_cast %0 : vector<1x16x16x2xf32> to vector<16x16x2xf32>
    %cst = arith.constant 0.000000e+00 : f32
    %2 = vector.broadcast %cst : f32 to vector<18x18x2xf32>
    %c0_3 = arith.constant 0 : index
    %c0_4 = arith.constant 0 : index
    %c0_5 = arith.constant 0 : index
    %3 = vector.load %arg23[%c0_3, %c0_4, %c0_5] : memref<18x18x2xf32, #tpu.memory_space<vmem>>, vector<18x18x2xf32>
    tpu.vector_store %arg23[%c0_3, %c0_4, %c0_5], %2 {strides = array<i32>} : memref<18x18x2xf32, #tpu.memory_space<vmem>>, vector<18x18x2xf32>,
    %cst_6 = arith.constant 0.000000e+00 : f32
    %4 = vector.broadcast %cst_6 : f32 to vector<18x18x32xf32>
    %c0_7 = arith.constant 0 : index
    %c0_8 = arith.constant 0 : index
    %c0_9 = arith.constant 0 : index
    %5 = vector.load %arg24[%c0_7, %c0_8, %c0_9] : memref<18x18x32xf32, #tpu.memory_space<vmem>>, vector<18x18x32xf32>
    tpu.vector_store %arg24[%c0_7, %c0_8, %c0_9], %4 {strides = array<i32>} : memref<18x18x32xf32, #tpu.memory_space<vmem>>, vector<18x18x32xf32>,
    %c0_10 = arith.constant 0 : index
    %c0_11 = arith.constant 0 : index
    %c0_12 = arith.constant 0 : index
    %6 = vector.load %arg2[%c0_10, %c0_11, %c0_12] : memref<1x1x2xf32, #tpu.memory_space<vmem>>, vector<1x1x2xf32>
    %7 = vector.broadcast %6 : vector<1x1x2xf32> to vector<16x16x2xf32>
    %8 = arith.mulf %1, %7 : vector<16x16x2xf32>
    %c0_13 = arith.constant 0 : index
    %c0_14 = arith.constant 0 : index
    %c0_15 = arith.constant 0 : index
    %9 = vector.load %arg3[%c0_13, %c0_14, %c0_15] : memref<1x1x2xf32, #tpu.memory_space<vmem>>, vector<1x1x2xf32>
    %10 = vector.broadcast %9 : vector<1x1x2xf32> to vector<16x16x2xf32>
    %11 = arith.addf %8, %10 : vector<16x16x2xf32>
    %12 = vector.shape_cast %11 : vector<16x16x2xf32> to vector<256x2xf32>
    %13 = arith.truncf %12 : vector<256x2xf32> to vector<256x2xbf16>
    %c0_16 = arith.constant 0 : index
    %c0_17 = arith.constant 0 : index
    %14 = vector.load %arg4[%c0_16, %c0_17] : memref<2x32xbf16, #tpu.memory_space<vmem>>, vector<2x32xbf16>
    %cst_18 = arith.constant dense<0.000000e+00> : vector<256x32xf32>
    %15 = tpu.matmul %13, %14, %cst_18 {dimension_numbers = #tpu.dot_dimension_numbers<[1], [0], [0], [1], [0, 0, 1, 1], [], []>} : vector<256x2xbf16>, vector<2x32xbf16>, vector<256x32xf32> -> vector<256x32xf32>
    %c0_19 = arith.constant 0 : index
    %c0_20 = arith.constant 0 : index
    %c0_21 = arith.constant 0 : index
    %16 = vector.load %arg5[%c0_19, %c0_20, %c0_21] : memref<1x1x32xf32, #tpu.memory_space<vmem>>, vector<1x1x32xf32>
    %17 = vector.shape_cast %16 : vector<1x1x32xf32> to vector<1x32xf32>
    %18 = vector.broadcast %17 : vector<1x32xf32> to vector<256x32xf32>
    %19 = arith.addf %15, %18 : vector<256x32xf32>
    %20 = vector.shape_cast %19 : vector<256x32xf32> to vector<16x16x32xf32>
    %c0_22 = arith.constant 0 : index
    %c0_23 = arith.constant 0 : index
    %c0_24 = arith.constant 0 : index
    %21 = vector.load %arg6[%c0_22, %c0_23, %c0_24] : memref<1x1x2xf32, #tpu.memory_space<vmem>>, vector<1x1x2xf32>
    %22 = vector.broadcast %21 : vector<1x1x2xf32> to vector<16x16x2xf32>
    %23 = arith.mulf %1, %22 : vector<16x16x2xf32>
    %c0_25 = arith.constant 0 : index
    %c0_26 = arith.constant 0 : index
    %c0_27 = arith.constant 0 : index
    %24 = vector.load %arg7[%c0_25, %c0_26, %c0_27] : memref<1x1x2xf32, #tpu.memory_space<vmem>>, vector<1x1x2xf32>
    %25 = vector.broadcast %24 : vector<1x1x2xf32> to vector<16x16x2xf32>
    %26 = arith.addf %23, %25 : vector<16x16x2xf32>
    %cst_28 = arith.constant 0.000000e+00 : f32
    %27 = vector.broadcast %cst_28 : f32 to vector<16x16x2xf32>
    %28 = arith.maximumf %26, %27 : vector<16x16x2xf32>
    %c1 = arith.constant 1 : index
    %c1_29 = arith.constant 1 : index
    %c0_30 = arith.constant 0 : index
    %29 = vector.load %arg23[%c1, %c1_29, %c0_30] : memref<18x18x2xf32, #tpu.memory_space<vmem>>, vector<16x16x2xf32>
    tpu.vector_store %arg23[%c1, %c1_29, %c0_30], %28 {strides = array<i32>} : memref<18x18x2xf32, #tpu.memory_space<vmem>>, vector<16x16x2xf32>,
    %c0_31 = arith.constant 0 : index
    %c0_32 = arith.constant 0 : index
    %c0_33 = arith.constant 0 : index
    %30 = vector.load %arg23[%c0_31, %c0_32, %c0_33] : memref<18x18x2xf32, #tpu.memory_space<vmem>>, vector<16x16x2xf32>
    %31 = vector.shape_cast %30 : vector<16x16x2xf32> to vector<256x2xf32>
    %c0_34 = arith.constant 0 : index
    %c1_35 = arith.constant 1 : index
    %c0_36 = arith.constant 0 : index
    %32 = vector.load %arg23[%c0_34, %c1_35, %c0_36] : memref<18x18x2xf32, #tpu.memory_space<vmem>>, vector<16x16x2xf32>
    %33 = vector.shape_cast %32 : vector<16x16x2xf32> to vector<256x2xf32>
    %c0_37 = arith.constant 0 : index
    %c2 = arith.constant 2 : index
    %c0_38 = arith.constant 0 : index
    %34 = vector.load %arg23[%c0_37, %c2, %c0_38] : memref<18x18x2xf32, #tpu.memory_space<vmem>>, vector<16x16x2xf32>
    %35 = vector.shape_cast %34 : vector<16x16x2xf32> to vector<256x2xf32>
    %c1_39 = arith.constant 1 : index
    %c0_40 = arith.constant 0 : index
    %c0_41 = arith.constant 0 : index
    %36 = vector.load %arg23[%c1_39, %c0_40, %c0_41] : memref<18x18x2xf32, #tpu.memory_space<vmem>>, vector<16x16x2xf32>
    %37 = vector.shape_cast %36 : vector<16x16x2xf32> to vector<256x2xf32>
    %c1_42 = arith.constant 1 : index
    %c1_43 = arith.constant 1 : index
    %c0_44 = arith.constant 0 : index
    %38 = vector.load %arg23[%c1_42, %c1_43, %c0_44] : memref<18x18x2xf32, #tpu.memory_space<vmem>>, vector<16x16x2xf32>
    %39 = vector.shape_cast %38 : vector<16x16x2xf32> to vector<256x2xf32>
    %c1_45 = arith.constant 1 : index
    %c2_46 = arith.constant 2 : index
    %c0_47 = arith.constant 0 : index
    %40 = vector.load %arg23[%c1_45, %c2_46, %c0_47] : memref<18x18x2xf32, #tpu.memory_space<vmem>>, vector<16x16x2xf32>
    %41 = vector.shape_cast %40 : vector<16x16x2xf32> to vector<256x2xf32>
    %c2_48 = arith.constant 2 : index
    %c0_49 = arith.constant 0 : index
    %c0_50 = arith.constant 0 : index
    %42 = vector.load %arg23[%c2_48, %c0_49, %c0_50] : memref<18x18x2xf32, #tpu.memory_space<vmem>>, vector<16x16x2xf32>
    %43 = vector.shape_cast %42 : vector<16x16x2xf32> to vector<256x2xf32>
    %c2_51 = arith.constant 2 : index
    %c1_52 = arith.constant 1 : index
    %c0_53 = arith.constant 0 : index
    %44 = vector.load %arg23[%c2_51, %c1_52, %c0_53] : memref<18x18x2xf32, #tpu.memory_space<vmem>>, vector<16x16x2xf32>
    %45 = vector.shape_cast %44 : vector<16x16x2xf32> to vector<256x2xf32>
    %c2_54 = arith.constant 2 : index
    %c2_55 = arith.constant 2 : index
    %c0_56 = arith.constant 0 : index
    %46 = vector.load %arg23[%c2_54, %c2_55, %c0_56] : memref<18x18x2xf32, #tpu.memory_space<vmem>>, vector<16x16x2xf32>
    %47 = vector.shape_cast %46 : vector<16x16x2xf32> to vector<256x2xf32>
    %c0_57 = arith.constant 0 : index
    %c0_58 = arith.constant 0 : index
    %c0_59 = arith.constant 0 : index
    %48 = vector.load %arg9[%c0_57, %c0_58, %c0_59] : memref<1x1x32xf32, #tpu.memory_space<vmem>>, vector<1x1x32xf32>
    %49 = vector.shape_cast %48 : vector<1x1x32xf32> to vector<1x32xf32>
    %50 = vector.shape_cast %49 : vector<1x32xf32> to vector<1x32xf32>
    %51 = vector.broadcast %50 : vector<1x32xf32> to vector<256x32xf32>
    %52 = arith.truncf %31 : vector<256x2xf32> to vector<256x2xbf16>
    %c0_60 = arith.constant 0 : index
    %c0_61 = arith.constant 0 : index
    %c0_62 = arith.constant 0 : index
    %53 = vector.load %arg8[%c0_60, %c0_61, %c0_62] : memref<9x2x32xbf16, #tpu.memory_space<vmem>>, vector<1x2x32xbf16>
    %54 = vector.shape_cast %53 : vector<1x2x32xbf16> to vector<2x32xbf16>
    %cst_63 = arith.constant dense<0.000000e+00> : vector<256x32xf32>
    %55 = tpu.matmul %52, %54, %cst_63 {dimension_numbers = #tpu.dot_dimension_numbers<[1], [0], [0], [1], [0, 0, 1, 1], [], []>} : vector<256x2xbf16>, vector<2x32xbf16>, vector<256x32xf32> -> vector<256x32xf32>
    %56 = arith.addf %51, %55 : vector<256x32xf32>
    %57 = arith.truncf %33 : vector<256x2xf32> to vector<256x2xbf16>
    %c1_64 = arith.constant 1 : index
    %c0_65 = arith.constant 0 : index
    %c0_66 = arith.constant 0 : index
    %58 = vector.load %arg8[%c1_64, %c0_65, %c0_66] : memref<9x2x32xbf16, #tpu.memory_space<vmem>>, vector<1x2x32xbf16>
    %59 = vector.shape_cast %58 : vector<1x2x32xbf16> to vector<2x32xbf16>
    %cst_67 = arith.constant dense<0.000000e+00> : vector<256x32xf32>
    %60 = tpu.matmul %57, %59, %cst_67 {dimension_numbers = #tpu.dot_dimension_numbers<[1], [0], [0], [1], [0, 0, 1, 1], [], []>} : vector<256x2xbf16>, vector<2x32xbf16>, vector<256x32xf32> -> vector<256x32xf32>
    %61 = arith.addf %56, %60 : vector<256x32xf32>
    %62 = arith.truncf %35 : vector<256x2xf32> to vector<256x2xbf16>
    %c2_68 = arith.constant 2 : index
    %c0_69 = arith.constant 0 : index
    %c0_70 = arith.constant 0 : index
    %63 = vector.load %arg8[%c2_68, %c0_69, %c0_70] : memref<9x2x32xbf16, #tpu.memory_space<vmem>>, vector<1x2x32xbf16>
    %64 = vector.shape_cast %63 : vector<1x2x32xbf16> to vector<2x32xbf16>
    %cst_71 = arith.constant dense<0.000000e+00> : vector<256x32xf32>
    %65 = tpu.matmul %62, %64, %cst_71 {dimension_numbers = #tpu.dot_dimension_numbers<[1], [0], [0], [1], [0, 0, 1, 1], [], []>} : vector<256x2xbf16>, vector<2x32xbf16>, vector<256x32xf32> -> vector<256x32xf32>
    %66 = arith.addf %61, %65 : vector<256x32xf32>
    %67 = arith.truncf %37 : vector<256x2xf32> to vector<256x2xbf16>
    %c3 = arith.constant 3 : index
    %c0_72 = arith.constant 0 : index
    %c0_73 = arith.constant 0 : index
    %68 = vector.load %arg8[%c3, %c0_72, %c0_73] : memref<9x2x32xbf16, #tpu.memory_space<vmem>>, vector<1x2x32xbf16>
    %69 = vector.shape_cast %68 : vector<1x2x32xbf16> to vector<2x32xbf16>
    %cst_74 = arith.constant dense<0.000000e+00> : vector<256x32xf32>
    %70 = tpu.matmul %67, %69, %cst_74 {dimension_numbers = #tpu.dot_dimension_numbers<[1], [0], [0], [1], [0, 0, 1, 1], [], []>} : vector<256x2xbf16>, vector<2x32xbf16>, vector<256x32xf32> -> vector<256x32xf32>
    %71 = arith.addf %66, %70 : vector<256x32xf32>
    %72 = arith.truncf %39 : vector<256x2xf32> to vector<256x2xbf16>
    %c4 = arith.constant 4 : index
    %c0_75 = arith.constant 0 : index
    %c0_76 = arith.constant 0 : index
    %73 = vector.load %arg8[%c4, %c0_75, %c0_76] : memref<9x2x32xbf16, #tpu.memory_space<vmem>>, vector<1x2x32xbf16>
    %74 = vector.shape_cast %73 : vector<1x2x32xbf16> to vector<2x32xbf16>
    %cst_77 = arith.constant dense<0.000000e+00> : vector<256x32xf32>
    %75 = tpu.matmul %72, %74, %cst_77 {dimension_numbers = #tpu.dot_dimension_numbers<[1], [0], [0], [1], [0, 0, 1, 1], [], []>} : vector<256x2xbf16>, vector<2x32xbf16>, vector<256x32xf32> -> vector<256x32xf32>
    %76 = arith.addf %71, %75 : vector<256x32xf32>
    %77 = arith.truncf %41 : vector<256x2xf32> to vector<256x2xbf16>
    %c5 = arith.constant 5 : index
    %c0_78 = arith.constant 0 : index
    %c0_79 = arith.constant 0 : index
    %78 = vector.load %arg8[%c5, %c0_78, %c0_79] : memref<9x2x32xbf16, #tpu.memory_space<vmem>>, vector<1x2x32xbf16>
    %79 = vector.shape_cast %78 : vector<1x2x32xbf16> to vector<2x32xbf16>
    %cst_80 = arith.constant dense<0.000000e+00> : vector<256x32xf32>
    %80 = tpu.matmul %77, %79, %cst_80 {dimension_numbers = #tpu.dot_dimension_numbers<[1], [0], [0], [1], [0, 0, 1, 1], [], []>} : vector<256x2xbf16>, vector<2x32xbf16>, vector<256x32xf32> -> vector<256x32xf32>
    %81 = arith.addf %76, %80 : vector<256x32xf32>
    %82 = arith.truncf %43 : vector<256x2xf32> to vector<256x2xbf16>
    %c6 = arith.constant 6 : index
    %c0_81 = arith.constant 0 : index
    %c0_82 = arith.constant 0 : index
    %83 = vector.load %arg8[%c6, %c0_81, %c0_82] : memref<9x2x32xbf16, #tpu.memory_space<vmem>>, vector<1x2x32xbf16>
    %84 = vector.shape_cast %83 : vector<1x2x32xbf16> to vector<2x32xbf16>
    %cst_83 = arith.constant dense<0.000000e+00> : vector<256x32xf32>
    %85 = tpu.matmul %82, %84, %cst_83 {dimension_numbers = #tpu.dot_dimension_numbers<[1], [0], [0], [1], [0, 0, 1, 1], [], []>} : vector<256x2xbf16>, vector<2x32xbf16>, vector<256x32xf32> -> vector<256x32xf32>
    %86 = arith.addf %81, %85 : vector<256x32xf32>
    %87 = arith.truncf %45 : vector<256x2xf32> to vector<256x2xbf16>
    %c7 = arith.constant 7 : index
    %c0_84 = arith.constant 0 : index
    %c0_85 = arith.constant 0 : index
    %88 = vector.load %arg8[%c7, %c0_84, %c0_85] : memref<9x2x32xbf16, #tpu.memory_space<vmem>>, vector<1x2x32xbf16>
    %89 = vector.shape_cast %88 : vector<1x2x32xbf16> to vector<2x32xbf16>
    %cst_86 = arith.constant dense<0.000000e+00> : vector<256x32xf32>
    %90 = tpu.matmul %87, %89, %cst_86 {dimension_numbers = #tpu.dot_dimension_numbers<[1], [0], [0], [1], [0, 0, 1, 1], [], []>} : vector<256x2xbf16>, vector<2x32xbf16>, vector<256x32xf32> -> vector<256x32xf32>
    %91 = arith.addf %86, %90 : vector<256x32xf32>
    %92 = arith.truncf %47 : vector<256x2xf32> to vector<256x2xbf16>
    %c8 = arith.constant 8 : index
    %c0_87 = arith.constant 0 : index
    %c0_88 = arith.constant 0 : index
    %93 = vector.load %arg8[%c8, %c0_87, %c0_88] : memref<9x2x32xbf16, #tpu.memory_space<vmem>>, vector<1x2x32xbf16>
    %94 = vector.shape_cast %93 : vector<1x2x32xbf16> to vector<2x32xbf16>
    %cst_89 = arith.constant dense<0.000000e+00> : vector<256x32xf32>
    %95 = tpu.matmul %92, %94, %cst_89 {dimension_numbers = #tpu.dot_dimension_numbers<[1], [0], [0], [1], [0, 0, 1, 1], [], []>} : vector<256x2xbf16>, vector<2x32xbf16>, vector<256x32xf32> -> vector<256x32xf32>
    %96 = arith.addf %91, %95 : vector<256x32xf32>
    %97 = vector.shape_cast %96 : vector<256x32xf32> to vector<16x16x32xf32>
    %c0_90 = arith.constant 0 : index
    %c0_91 = arith.constant 0 : index
    %c0_92 = arith.constant 0 : index
    %98 = vector.load %arg10[%c0_90, %c0_91, %c0_92] : memref<1x1x32xf32, #tpu.memory_space<vmem>>, vector<1x1x32xf32>
    %99 = vector.broadcast %98 : vector<1x1x32xf32> to vector<16x16x32xf32>
    %100 = arith.mulf %97, %99 : vector<16x16x32xf32>
    %c0_93 = arith.constant 0 : index
    %c0_94 = arith.constant 0 : index
    %c0_95 = arith.constant 0 : index
    %101 = vector.load %arg11[%c0_93, %c0_94, %c0_95] : memref<1x1x32xf32, #tpu.memory_space<vmem>>, vector<1x1x32xf32>
    %102 = vector.broadcast %101 : vector<1x1x32xf32> to vector<16x16x32xf32>
    %103 = arith.addf %100, %102 : vector<16x16x32xf32>
    %cst_96 = arith.constant 0.000000e+00 : f32
    %104 = vector.broadcast %cst_96 : f32 to vector<16x16x32xf32>
    %105 = arith.maximumf %103, %104 : vector<16x16x32xf32>
    %c1_97 = arith.constant 1 : index
    %c1_98 = arith.constant 1 : index
    %c0_99 = arith.constant 0 : index
    %106 = vector.load %arg24[%c1_97, %c1_98, %c0_99] : memref<18x18x32xf32, #tpu.memory_space<vmem>>, vector<16x16x32xf32>
    tpu.vector_store %arg24[%c1_97, %c1_98, %c0_99], %105 {strides = array<i32>} : memref<18x18x32xf32, #tpu.memory_space<vmem>>, vector<16x16x32xf32>,
    %c0_100 = arith.constant 0 : index
    %c0_101 = arith.constant 0 : index
    %c0_102 = arith.constant 0 : index
    %107 = vector.load %arg24[%c0_100, %c0_101, %c0_102] : memref<18x18x32xf32, #tpu.memory_space<vmem>>, vector<16x16x32xf32>
    %108 = vector.shape_cast %107 : vector<16x16x32xf32> to vector<256x32xf32>
    %c0_103 = arith.constant 0 : index
    %c1_104 = arith.constant 1 : index
    %c0_105 = arith.constant 0 : index
    %109 = vector.load %arg24[%c0_103, %c1_104, %c0_105] : memref<18x18x32xf32, #tpu.memory_space<vmem>>, vector<16x16x32xf32>
    %110 = vector.shape_cast %109 : vector<16x16x32xf32> to vector<256x32xf32>
    %c0_106 = arith.constant 0 : index
    %c2_107 = arith.constant 2 : index
    %c0_108 = arith.constant 0 : index
    %111 = vector.load %arg24[%c0_106, %c2_107, %c0_108] : memref<18x18x32xf32, #tpu.memory_space<vmem>>, vector<16x16x32xf32>
    %112 = vector.shape_cast %111 : vector<16x16x32xf32> to vector<256x32xf32>
    %c1_109 = arith.constant 1 : index
    %c0_110 = arith.constant 0 : index
    %c0_111 = arith.constant 0 : index
    %113 = vector.load %arg24[%c1_109, %c0_110, %c0_111] : memref<18x18x32xf32, #tpu.memory_space<vmem>>, vector<16x16x32xf32>
    %114 = vector.shape_cast %113 : vector<16x16x32xf32> to vector<256x32xf32>
    %c1_112 = arith.constant 1 : index
    %c1_113 = arith.constant 1 : index
    %c0_114 = arith.constant 0 : index
    %115 = vector.load %arg24[%c1_112, %c1_113, %c0_114] : memref<18x18x32xf32, #tpu.memory_space<vmem>>, vector<16x16x32xf32>
    %116 = vector.shape_cast %115 : vector<16x16x32xf32> to vector<256x32xf32>
    %c1_115 = arith.constant 1 : index
    %c2_116 = arith.constant 2 : index
    %c0_117 = arith.constant 0 : index
    %117 = vector.load %arg24[%c1_115, %c2_116, %c0_117] : memref<18x18x32xf32, #tpu.memory_space<vmem>>, vector<16x16x32xf32>
    %118 = vector.shape_cast %117 : vector<16x16x32xf32> to vector<256x32xf32>
    %c2_118 = arith.constant 2 : index
    %c0_119 = arith.constant 0 : index
    %c0_120 = arith.constant 0 : index
    %119 = vector.load %arg24[%c2_118, %c0_119, %c0_120] : memref<18x18x32xf32, #tpu.memory_space<vmem>>, vector<16x16x32xf32>
    %120 = vector.shape_cast %119 : vector<16x16x32xf32> to vector<256x32xf32>
    %c2_121 = arith.constant 2 : index
    %c1_122 = arith.constant 1 : index
    %c0_123 = arith.constant 0 : index
    %121 = vector.load %arg24[%c2_121, %c1_122, %c0_123] : memref<18x18x32xf32, #tpu.memory_space<vmem>>, vector<16x16x32xf32>
    %122 = vector.shape_cast %121 : vector<16x16x32xf32> to vector<256x32xf32>
    %c2_124 = arith.constant 2 : index
    %c2_125 = arith.constant 2 : index
    %c0_126 = arith.constant 0 : index
    %123 = vector.load %arg24[%c2_124, %c2_125, %c0_126] : memref<18x18x32xf32, #tpu.memory_space<vmem>>, vector<16x16x32xf32>
    %124 = vector.shape_cast %123 : vector<16x16x32xf32> to vector<256x32xf32>
    %c0_127 = arith.constant 0 : index
    %c0_128 = arith.constant 0 : index
    %c0_129 = arith.constant 0 : index
    %125 = vector.load %arg13[%c0_127, %c0_128, %c0_129] : memref<1x1x32xf32, #tpu.memory_space<vmem>>, vector<1x1x32xf32>
    %126 = vector.shape_cast %125 : vector<1x1x32xf32> to vector<1x32xf32>
    %127 = vector.shape_cast %126 : vector<1x32xf32> to vector<1x32xf32>
    %128 = vector.broadcast %127 : vector<1x32xf32> to vector<256x32xf32>
    %129 = arith.truncf %108 : vector<256x32xf32> to vector<256x32xbf16>
    %c0_130 = arith.constant 0 : index
    %c0_131 = arith.constant 0 : index
    %c0_132 = arith.constant 0 : index
    %130 = vector.load %arg12[%c0_130, %c0_131, %c0_132] : memref<9x32x32xbf16, #tpu.memory_space<vmem>>, vector<1x32x32xbf16>
    %131 = vector.shape_cast %130 : vector<1x32x32xbf16> to vector<32x32xbf16>
    %cst_133 = arith.constant dense<0.000000e+00> : vector<256x32xf32>
    %132 = tpu.matmul %129, %131, %cst_133 {dimension_numbers = #tpu.dot_dimension_numbers<[1], [0], [0], [1], [0, 0, 1, 1], [], []>} : vector<256x32xbf16>, vector<32x32xbf16>, vector<256x32xf32> -> vector<256x32xf32>
    %133 = arith.addf %128, %132 : vector<256x32xf32>
    %134 = arith.truncf %110 : vector<256x32xf32> to vector<256x32xbf16>
    %c1_134 = arith.constant 1 : index
    %c0_135 = arith.constant 0 : index
    %c0_136 = arith.constant 0 : index
    %135 = vector.load %arg12[%c1_134, %c0_135, %c0_136] : memref<9x32x32xbf16, #tpu.memory_space<vmem>>, vector<1x32x32xbf16>
    %136 = vector.shape_cast %135 : vector<1x32x32xbf16> to vector<32x32xbf16>
    %cst_137 = arith.constant dense<0.000000e+00> : vector<256x32xf32>
    %137 = tpu.matmul %134, %136, %cst_137 {dimension_numbers = #tpu.dot_dimension_numbers<[1], [0], [0], [1], [0, 0, 1, 1], [], []>} : vector<256x32xbf16>, vector<32x32xbf16>, vector<256x32xf32> -> vector<256x32xf32>
    %138 = arith.addf %133, %137 : vector<256x32xf32>
    %139 = arith.truncf %112 : vector<256x32xf32> to vector<256x32xbf16>
    %c2_138 = arith.constant 2 : index
    %c0_139 = arith.constant 0 : index
    %c0_140 = arith.constant 0 : index
    %140 = vector.load %arg12[%c2_138, %c0_139, %c0_140] : memref<9x32x32xbf16, #tpu.memory_space<vmem>>, vector<1x32x32xbf16>
    %141 = vector.shape_cast %140 : vector<1x32x32xbf16> to vector<32x32xbf16>
    %cst_141 = arith.constant dense<0.000000e+00> : vector<256x32xf32>
    %142 = tpu.matmul %139, %141, %cst_141 {dimension_numbers = #tpu.dot_dimension_numbers<[1], [0], [0], [1], [0, 0, 1, 1], [], []>} : vector<256x32xbf16>, vector<32x32xbf16>, vector<256x32xf32> -> vector<256x32xf32>
    %143 = arith.addf %138, %142 : vector<256x32xf32>
    %144 = arith.truncf %114 : vector<256x32xf32> to vector<256x32xbf16>
    %c3_142 = arith.constant 3 : index
    %c0_143 = arith.constant 0 : index
    %c0_144 = arith.constant 0 : index
    %145 = vector.load %arg12[%c3_142, %c0_143, %c0_144] : memref<9x32x32xbf16, #tpu.memory_space<vmem>>, vector<1x32x32xbf16>
    %146 = vector.shape_cast %145 : vector<1x32x32xbf16> to vector<32x32xbf16>
    %cst_145 = arith.constant dense<0.000000e+00> : vector<256x32xf32>
    %147 = tpu.matmul %144, %146, %cst_145 {dimension_numbers = #tpu.dot_dimension_numbers<[1], [0], [0], [1], [0, 0, 1, 1], [], []>} : vector<256x32xbf16>, vector<32x32xbf16>, vector<256x32xf32> -> vector<256x32xf32>
    %148 = arith.addf %143, %147 : vector<256x32xf32>
    %149 = arith.truncf %116 : vector<256x32xf32> to vector<256x32xbf16>
    %c4_146 = arith.constant 4 : index
    %c0_147 = arith.constant 0 : index
    %c0_148 = arith.constant 0 : index
    %150 = vector.load %arg12[%c4_146, %c0_147, %c0_148] : memref<9x32x32xbf16, #tpu.memory_space<vmem>>, vector<1x32x32xbf16>
    %151 = vector.shape_cast %150 : vector<1x32x32xbf16> to vector<32x32xbf16>
    %cst_149 = arith.constant dense<0.000000e+00> : vector<256x32xf32>
    %152 = tpu.matmul %149, %151, %cst_149 {dimension_numbers = #tpu.dot_dimension_numbers<[1], [0], [0], [1], [0, 0, 1, 1], [], []>} : vector<256x32xbf16>, vector<32x32xbf16>, vector<256x32xf32> -> vector<256x32xf32>
    %153 = arith.addf %148, %152 : vector<256x32xf32>
    %154 = arith.truncf %118 : vector<256x32xf32> to vector<256x32xbf16>
    %c5_150 = arith.constant 5 : index
    %c0_151 = arith.constant 0 : index
    %c0_152 = arith.constant 0 : index
    %155 = vector.load %arg12[%c5_150, %c0_151, %c0_152] : memref<9x32x32xbf16, #tpu.memory_space<vmem>>, vector<1x32x32xbf16>
    %156 = vector.shape_cast %155 : vector<1x32x32xbf16> to vector<32x32xbf16>
    %cst_153 = arith.constant dense<0.000000e+00> : vector<256x32xf32>
    %157 = tpu.matmul %154, %156, %cst_153 {dimension_numbers = #tpu.dot_dimension_numbers<[1], [0], [0], [1], [0, 0, 1, 1], [], []>} : vector<256x32xbf16>, vector<32x32xbf16>, vector<256x32xf32> -> vector<256x32xf32>
    %158 = arith.addf %153, %157 : vector<256x32xf32>
    %159 = arith.truncf %120 : vector<256x32xf32> to vector<256x32xbf16>
    %c6_154 = arith.constant 6 : index
    %c0_155 = arith.constant 0 : index
    %c0_156 = arith.constant 0 : index
    %160 = vector.load %arg12[%c6_154, %c0_155, %c0_156] : memref<9x32x32xbf16, #tpu.memory_space<vmem>>, vector<1x32x32xbf16>
    %161 = vector.shape_cast %160 : vector<1x32x32xbf16> to vector<32x32xbf16>
    %cst_157 = arith.constant dense<0.000000e+00> : vector<256x32xf32>
    %162 = tpu.matmul %159, %161, %cst_157 {dimension_numbers = #tpu.dot_dimension_numbers<[1], [0], [0], [1], [0, 0, 1, 1], [], []>} : vector<256x32xbf16>, vector<32x32xbf16>, vector<256x32xf32> -> vector<256x32xf32>
    %163 = arith.addf %158, %162 : vector<256x32xf32>
    %164 = arith.truncf %122 : vector<256x32xf32> to vector<256x32xbf16>
    %c7_158 = arith.constant 7 : index
    %c0_159 = arith.constant 0 : index
    %c0_160 = arith.constant 0 : index
    %165 = vector.load %arg12[%c7_158, %c0_159, %c0_160] : memref<9x32x32xbf16, #tpu.memory_space<vmem>>, vector<1x32x32xbf16>
    %166 = vector.shape_cast %165 : vector<1x32x32xbf16> to vector<32x32xbf16>
    %cst_161 = arith.constant dense<0.000000e+00> : vector<256x32xf32>
    %167 = tpu.matmul %164, %166, %cst_161 {dimension_numbers = #tpu.dot_dimension_numbers<[1], [0], [0], [1], [0, 0, 1, 1], [], []>} : vector<256x32xbf16>, vector<32x32xbf16>, vector<256x32xf32> -> vector<256x32xf32>
    %168 = arith.addf %163, %167 : vector<256x32xf32>
    %169 = arith.truncf %124 : vector<256x32xf32> to vector<256x32xbf16>
    %c8_162 = arith.constant 8 : index
    %c0_163 = arith.constant 0 : index
    %c0_164 = arith.constant 0 : index
    %170 = vector.load %arg12[%c8_162, %c0_163, %c0_164] : memref<9x32x32xbf16, #tpu.memory_space<vmem>>, vector<1x32x32xbf16>
    %171 = vector.shape_cast %170 : vector<1x32x32xbf16> to vector<32x32xbf16>
    %cst_165 = arith.constant dense<0.000000e+00> : vector<256x32xf32>
    %172 = tpu.matmul %169, %171, %cst_165 {dimension_numbers = #tpu.dot_dimension_numbers<[1], [0], [0], [1], [0, 0, 1, 1], [], []>} : vector<256x32xbf16>, vector<32x32xbf16>, vector<256x32xf32> -> vector<256x32xf32>
    %173 = arith.addf %168, %172 : vector<256x32xf32>
    %174 = vector.shape_cast %173 : vector<256x32xf32> to vector<16x16x32xf32>
    %175 = arith.addf %174, %20 : vector<16x16x32xf32>
    %c0_166 = arith.constant 0 : index
    %c0_167 = arith.constant 0 : index
    %c0_168 = arith.constant 0 : index
    %176 = vector.load %arg14[%c0_166, %c0_167, %c0_168] : memref<1x1x32xf32, #tpu.memory_space<vmem>>, vector<1x1x32xf32>
    %177 = vector.broadcast %176 : vector<1x1x32xf32> to vector<16x16x32xf32>
    %178 = arith.mulf %175, %177 : vector<16x16x32xf32>
    %c0_169 = arith.constant 0 : index
    %c0_170 = arith.constant 0 : index
    %c0_171 = arith.constant 0 : index
    %179 = vector.load %arg15[%c0_169, %c0_170, %c0_171] : memref<1x1x32xf32, #tpu.memory_space<vmem>>, vector<1x1x32xf32>
    %180 = vector.broadcast %179 : vector<1x1x32xf32> to vector<16x16x32xf32>
    %181 = arith.addf %178, %180 : vector<16x16x32xf32>
    %cst_172 = arith.constant 0.000000e+00 : f32
    %182 = vector.broadcast %cst_172 : f32 to vector<16x16x32xf32>
    %183 = arith.maximumf %181, %182 : vector<16x16x32xf32>
    %c1_173 = arith.constant 1 : index
    %c1_174 = arith.constant 1 : index
    %c0_175 = arith.constant 0 : index
    %184 = vector.load %arg24[%c1_173, %c1_174, %c0_175] : memref<18x18x32xf32, #tpu.memory_space<vmem>>, vector<16x16x32xf32>
    tpu.vector_store %arg24[%c1_173, %c1_174, %c0_175], %183 {strides = array<i32>} : memref<18x18x32xf32, #tpu.memory_space<vmem>>, vector<16x16x32xf32>,
    %c0_176 = arith.constant 0 : index
    %c0_177 = arith.constant 0 : index
    %c0_178 = arith.constant 0 : index
    %185 = vector.load %arg24[%c0_176, %c0_177, %c0_178] : memref<18x18x32xf32, #tpu.memory_space<vmem>>, vector<16x16x32xf32>
    %186 = vector.shape_cast %185 : vector<16x16x32xf32> to vector<256x32xf32>
    %c0_179 = arith.constant 0 : index
    %c1_180 = arith.constant 1 : index
    %c0_181 = arith.constant 0 : index
    %187 = vector.load %arg24[%c0_179, %c1_180, %c0_181] : memref<18x18x32xf32, #tpu.memory_space<vmem>>, vector<16x16x32xf32>
    %188 = vector.shape_cast %187 : vector<16x16x32xf32> to vector<256x32xf32>
    %c0_182 = arith.constant 0 : index
    %c2_183 = arith.constant 2 : index
    %c0_184 = arith.constant 0 : index
    %189 = vector.load %arg24[%c0_182, %c2_183, %c0_184] : memref<18x18x32xf32, #tpu.memory_space<vmem>>, vector<16x16x32xf32>
    %190 = vector.shape_cast %189 : vector<16x16x32xf32> to vector<256x32xf32>
    %c1_185 = arith.constant 1 : index
    %c0_186 = arith.constant 0 : index
    %c0_187 = arith.constant 0 : index
    %191 = vector.load %arg24[%c1_185, %c0_186, %c0_187] : memref<18x18x32xf32, #tpu.memory_space<vmem>>, vector<16x16x32xf32>
    %192 = vector.shape_cast %191 : vector<16x16x32xf32> to vector<256x32xf32>
    %c1_188 = arith.constant 1 : index
    %c1_189 = arith.constant 1 : index
    %c0_190 = arith.constant 0 : index
    %193 = vector.load %arg24[%c1_188, %c1_189, %c0_190] : memref<18x18x32xf32, #tpu.memory_space<vmem>>, vector<16x16x32xf32>
    %194 = vector.shape_cast %193 : vector<16x16x32xf32> to vector<256x32xf32>
    %c1_191 = arith.constant 1 : index
    %c2_192 = arith.constant 2 : index
    %c0_193 = arith.constant 0 : index
    %195 = vector.load %arg24[%c1_191, %c2_192, %c0_193] : memref<18x18x32xf32, #tpu.memory_space<vmem>>, vector<16x16x32xf32>
    %196 = vector.shape_cast %195 : vector<16x16x32xf32> to vector<256x32xf32>
    %c2_194 = arith.constant 2 : index
    %c0_195 = arith.constant 0 : index
    %c0_196 = arith.constant 0 : index
    %197 = vector.load %arg24[%c2_194, %c0_195, %c0_196] : memref<18x18x32xf32, #tpu.memory_space<vmem>>, vector<16x16x32xf32>
    %198 = vector.shape_cast %197 : vector<16x16x32xf32> to vector<256x32xf32>
    %c2_197 = arith.constant 2 : index
    %c1_198 = arith.constant 1 : index
    %c0_199 = arith.constant 0 : index
    %199 = vector.load %arg24[%c2_197, %c1_198, %c0_199] : memref<18x18x32xf32, #tpu.memory_space<vmem>>, vector<16x16x32xf32>
    %200 = vector.shape_cast %199 : vector<16x16x32xf32> to vector<256x32xf32>
    %c2_200 = arith.constant 2 : index
    %c2_201 = arith.constant 2 : index
    %c0_202 = arith.constant 0 : index
    %201 = vector.load %arg24[%c2_200, %c2_201, %c0_202] : memref<18x18x32xf32, #tpu.memory_space<vmem>>, vector<16x16x32xf32>
    %202 = vector.shape_cast %201 : vector<16x16x32xf32> to vector<256x32xf32>
    %c0_203 = arith.constant 0 : index
    %c0_204 = arith.constant 0 : index
    %c0_205 = arith.constant 0 : index
    %203 = vector.load %arg17[%c0_203, %c0_204, %c0_205] : memref<1x1x32xf32, #tpu.memory_space<vmem>>, vector<1x1x32xf32>
    %204 = vector.shape_cast %203 : vector<1x1x32xf32> to vector<1x32xf32>
    %205 = vector.shape_cast %204 : vector<1x32xf32> to vector<1x32xf32>
    %206 = vector.broadcast %205 : vector<1x32xf32> to vector<256x32xf32>
    %207 = arith.truncf %186 : vector<256x32xf32> to vector<256x32xbf16>
    %c0_206 = arith.constant 0 : index
    %c0_207 = arith.constant 0 : index
    %c0_208 = arith.constant 0 : index
    %208 = vector.load %arg16[%c0_206, %c0_207, %c0_208] : memref<9x32x32xbf16, #tpu.memory_space<vmem>>, vector<1x32x32xbf16>
    %209 = vector.shape_cast %208 : vector<1x32x32xbf16> to vector<32x32xbf16>
    %cst_209 = arith.constant dense<0.000000e+00> : vector<256x32xf32>
    %210 = tpu.matmul %207, %209, %cst_209 {dimension_numbers = #tpu.dot_dimension_numbers<[1], [0], [0], [1], [0, 0, 1, 1], [], []>} : vector<256x32xbf16>, vector<32x32xbf16>, vector<256x32xf32> -> vector<256x32xf32>
    %211 = arith.addf %206, %210 : vector<256x32xf32>
    %212 = arith.truncf %188 : vector<256x32xf32> to vector<256x32xbf16>
    %c1_210 = arith.constant 1 : index
    %c0_211 = arith.constant 0 : index
    %c0_212 = arith.constant 0 : index
    %213 = vector.load %arg16[%c1_210, %c0_211, %c0_212] : memref<9x32x32xbf16, #tpu.memory_space<vmem>>, vector<1x32x32xbf16>
    %214 = vector.shape_cast %213 : vector<1x32x32xbf16> to vector<32x32xbf16>
    %cst_213 = arith.constant dense<0.000000e+00> : vector<256x32xf32>
    %215 = tpu.matmul %212, %214, %cst_213 {dimension_numbers = #tpu.dot_dimension_numbers<[1], [0], [0], [1], [0, 0, 1, 1], [], []>} : vector<256x32xbf16>, vector<32x32xbf16>, vector<256x32xf32> -> vector<256x32xf32>
    %216 = arith.addf %211, %215 : vector<256x32xf32>
    %217 = arith.truncf %190 : vector<256x32xf32> to vector<256x32xbf16>
    %c2_214 = arith.constant 2 : index
    %c0_215 = arith.constant 0 : index
    %c0_216 = arith.constant 0 : index
    %218 = vector.load %arg16[%c2_214, %c0_215, %c0_216] : memref<9x32x32xbf16, #tpu.memory_space<vmem>>, vector<1x32x32xbf16>
    %219 = vector.shape_cast %218 : vector<1x32x32xbf16> to vector<32x32xbf16>
    %cst_217 = arith.constant dense<0.000000e+00> : vector<256x32xf32>
    %220 = tpu.matmul %217, %219, %cst_217 {dimension_numbers = #tpu.dot_dimension_numbers<[1], [0], [0], [1], [0, 0, 1, 1], [], []>} : vector<256x32xbf16>, vector<32x32xbf16>, vector<256x32xf32> -> vector<256x32xf32>
    %221 = arith.addf %216, %220 : vector<256x32xf32>
    %222 = arith.truncf %192 : vector<256x32xf32> to vector<256x32xbf16>
    %c3_218 = arith.constant 3 : index
    %c0_219 = arith.constant 0 : index
    %c0_220 = arith.constant 0 : index
    %223 = vector.load %arg16[%c3_218, %c0_219, %c0_220] : memref<9x32x32xbf16, #tpu.memory_space<vmem>>, vector<1x32x32xbf16>
    %224 = vector.shape_cast %223 : vector<1x32x32xbf16> to vector<32x32xbf16>
    %cst_221 = arith.constant dense<0.000000e+00> : vector<256x32xf32>
    %225 = tpu.matmul %222, %224, %cst_221 {dimension_numbers = #tpu.dot_dimension_numbers<[1], [0], [0], [1], [0, 0, 1, 1], [], []>} : vector<256x32xbf16>, vector<32x32xbf16>, vector<256x32xf32> -> vector<256x32xf32>
    %226 = arith.addf %221, %225 : vector<256x32xf32>
    %227 = arith.truncf %194 : vector<256x32xf32> to vector<256x32xbf16>
    %c4_222 = arith.constant 4 : index
    %c0_223 = arith.constant 0 : index
    %c0_224 = arith.constant 0 : index
    %228 = vector.load %arg16[%c4_222, %c0_223, %c0_224] : memref<9x32x32xbf16, #tpu.memory_space<vmem>>, vector<1x32x32xbf16>
    %229 = vector.shape_cast %228 : vector<1x32x32xbf16> to vector<32x32xbf16>
    %cst_225 = arith.constant dense<0.000000e+00> : vector<256x32xf32>
    %230 = tpu.matmul %227, %229, %cst_225 {dimension_numbers = #tpu.dot_dimension_numbers<[1], [0], [0], [1], [0, 0, 1, 1], [], []>} : vector<256x32xbf16>, vector<32x32xbf16>, vector<256x32xf32> -> vector<256x32xf32>
    %231 = arith.addf %226, %230 : vector<256x32xf32>
    %232 = arith.truncf %196 : vector<256x32xf32> to vector<256x32xbf16>
    %c5_226 = arith.constant 5 : index
    %c0_227 = arith.constant 0 : index
    %c0_228 = arith.constant 0 : index
    %233 = vector.load %arg16[%c5_226, %c0_227, %c0_228] : memref<9x32x32xbf16, #tpu.memory_space<vmem>>, vector<1x32x32xbf16>
    %234 = vector.shape_cast %233 : vector<1x32x32xbf16> to vector<32x32xbf16>
    %cst_229 = arith.constant dense<0.000000e+00> : vector<256x32xf32>
    %235 = tpu.matmul %232, %234, %cst_229 {dimension_numbers = #tpu.dot_dimension_numbers<[1], [0], [0], [1], [0, 0, 1, 1], [], []>} : vector<256x32xbf16>, vector<32x32xbf16>, vector<256x32xf32> -> vector<256x32xf32>
    %236 = arith.addf %231, %235 : vector<256x32xf32>
    %237 = arith.truncf %198 : vector<256x32xf32> to vector<256x32xbf16>
    %c6_230 = arith.constant 6 : index
    %c0_231 = arith.constant 0 : index
    %c0_232 = arith.constant 0 : index
    %238 = vector.load %arg16[%c6_230, %c0_231, %c0_232] : memref<9x32x32xbf16, #tpu.memory_space<vmem>>, vector<1x32x32xbf16>
    %239 = vector.shape_cast %238 : vector<1x32x32xbf16> to vector<32x32xbf16>
    %cst_233 = arith.constant dense<0.000000e+00> : vector<256x32xf32>
    %240 = tpu.matmul %237, %239, %cst_233 {dimension_numbers = #tpu.dot_dimension_numbers<[1], [0], [0], [1], [0, 0, 1, 1], [], []>} : vector<256x32xbf16>, vector<32x32xbf16>, vector<256x32xf32> -> vector<256x32xf32>
    %241 = arith.addf %236, %240 : vector<256x32xf32>
    %242 = arith.truncf %200 : vector<256x32xf32> to vector<256x32xbf16>
    %c7_234 = arith.constant 7 : index
    %c0_235 = arith.constant 0 : index
    %c0_236 = arith.constant 0 : index
    %243 = vector.load %arg16[%c7_234, %c0_235, %c0_236] : memref<9x32x32xbf16, #tpu.memory_space<vmem>>, vector<1x32x32xbf16>
    %244 = vector.shape_cast %243 : vector<1x32x32xbf16> to vector<32x32xbf16>
    %cst_237 = arith.constant dense<0.000000e+00> : vector<256x32xf32>
    %245 = tpu.matmul %242, %244, %cst_237 {dimension_numbers = #tpu.dot_dimension_numbers<[1], [0], [0], [1], [0, 0, 1, 1], [], []>} : vector<256x32xbf16>, vector<32x32xbf16>, vector<256x32xf32> -> vector<256x32xf32>
    %246 = arith.addf %241, %245 : vector<256x32xf32>
    %247 = arith.truncf %202 : vector<256x32xf32> to vector<256x32xbf16>
    %c8_238 = arith.constant 8 : index
    %c0_239 = arith.constant 0 : index
    %c0_240 = arith.constant 0 : index
    %248 = vector.load %arg16[%c8_238, %c0_239, %c0_240] : memref<9x32x32xbf16, #tpu.memory_space<vmem>>, vector<1x32x32xbf16>
    %249 = vector.shape_cast %248 : vector<1x32x32xbf16> to vector<32x32xbf16>
    %cst_241 = arith.constant dense<0.000000e+00> : vector<256x32xf32>
    %250 = tpu.matmul %247, %249, %cst_241 {dimension_numbers = #tpu.dot_dimension_numbers<[1], [0], [0], [1], [0, 0, 1, 1], [], []>} : vector<256x32xbf16>, vector<32x32xbf16>, vector<256x32xf32> -> vector<256x32xf32>
    %251 = arith.addf %246, %250 : vector<256x32xf32>
    %252 = vector.shape_cast %251 : vector<256x32xf32> to vector<16x16x32xf32>
    %c0_242 = arith.constant 0 : index
    %c0_243 = arith.constant 0 : index
    %c0_244 = arith.constant 0 : index
    %253 = vector.load %arg18[%c0_242, %c0_243, %c0_244] : memref<1x1x32xf32, #tpu.memory_space<vmem>>, vector<1x1x32xf32>
    %254 = vector.broadcast %253 : vector<1x1x32xf32> to vector<16x16x32xf32>
    %255 = arith.mulf %252, %254 : vector<16x16x32xf32>
    %c0_245 = arith.constant 0 : index
    %c0_246 = arith.constant 0 : index
    %c0_247 = arith.constant 0 : index
    %256 = vector.load %arg19[%c0_245, %c0_246, %c0_247] : memref<1x1x32xf32, #tpu.memory_space<vmem>>, vector<1x1x32xf32>
    %257 = vector.broadcast %256 : vector<1x1x32xf32> to vector<16x16x32xf32>
    %258 = arith.addf %255, %257 : vector<16x16x32xf32>
    %cst_248 = arith.constant 0.000000e+00 : f32
    %259 = vector.broadcast %cst_248 : f32 to vector<16x16x32xf32>
    %260 = arith.maximumf %258, %259 : vector<16x16x32xf32>
    %c1_249 = arith.constant 1 : index
    %c1_250 = arith.constant 1 : index
    %c0_251 = arith.constant 0 : index
    %261 = vector.load %arg24[%c1_249, %c1_250, %c0_251] : memref<18x18x32xf32, #tpu.memory_space<vmem>>, vector<16x16x32xf32>
    tpu.vector_store %arg24[%c1_249, %c1_250, %c0_251], %260 {strides = array<i32>} : memref<18x18x32xf32, #tpu.memory_space<vmem>>, vector<16x16x32xf32>,
    %c0_252 = arith.constant 0 : index
    %c0_253 = arith.constant 0 : index
    %c0_254 = arith.constant 0 : index
    %262 = vector.load %arg24[%c0_252, %c0_253, %c0_254] : memref<18x18x32xf32, #tpu.memory_space<vmem>>, vector<16x16x32xf32>
    %263 = vector.shape_cast %262 : vector<16x16x32xf32> to vector<256x32xf32>
    %c0_255 = arith.constant 0 : index
    %c1_256 = arith.constant 1 : index
    %c0_257 = arith.constant 0 : index
    %264 = vector.load %arg24[%c0_255, %c1_256, %c0_257] : memref<18x18x32xf32, #tpu.memory_space<vmem>>, vector<16x16x32xf32>
    %265 = vector.shape_cast %264 : vector<16x16x32xf32> to vector<256x32xf32>
    %c0_258 = arith.constant 0 : index
    %c2_259 = arith.constant 2 : index
    %c0_260 = arith.constant 0 : index
    %266 = vector.load %arg24[%c0_258, %c2_259, %c0_260] : memref<18x18x32xf32, #tpu.memory_space<vmem>>, vector<16x16x32xf32>
    %267 = vector.shape_cast %266 : vector<16x16x32xf32> to vector<256x32xf32>
    %c1_261 = arith.constant 1 : index
    %c0_262 = arith.constant 0 : index
    %c0_263 = arith.constant 0 : index
    %268 = vector.load %arg24[%c1_261, %c0_262, %c0_263] : memref<18x18x32xf32, #tpu.memory_space<vmem>>, vector<16x16x32xf32>
    %269 = vector.shape_cast %268 : vector<16x16x32xf32> to vector<256x32xf32>
    %c1_264 = arith.constant 1 : index
    %c1_265 = arith.constant 1 : index
    %c0_266 = arith.constant 0 : index
    %270 = vector.load %arg24[%c1_264, %c1_265, %c0_266] : memref<18x18x32xf32, #tpu.memory_space<vmem>>, vector<16x16x32xf32>
    %271 = vector.shape_cast %270 : vector<16x16x32xf32> to vector<256x32xf32>
    %c1_267 = arith.constant 1 : index
    %c2_268 = arith.constant 2 : index
    %c0_269 = arith.constant 0 : index
    %272 = vector.load %arg24[%c1_267, %c2_268, %c0_269] : memref<18x18x32xf32, #tpu.memory_space<vmem>>, vector<16x16x32xf32>
    %273 = vector.shape_cast %272 : vector<16x16x32xf32> to vector<256x32xf32>
    %c2_270 = arith.constant 2 : index
    %c0_271 = arith.constant 0 : index
    %c0_272 = arith.constant 0 : index
    %274 = vector.load %arg24[%c2_270, %c0_271, %c0_272] : memref<18x18x32xf32, #tpu.memory_space<vmem>>, vector<16x16x32xf32>
    %275 = vector.shape_cast %274 : vector<16x16x32xf32> to vector<256x32xf32>
    %c2_273 = arith.constant 2 : index
    %c1_274 = arith.constant 1 : index
    %c0_275 = arith.constant 0 : index
    %276 = vector.load %arg24[%c2_273, %c1_274, %c0_275] : memref<18x18x32xf32, #tpu.memory_space<vmem>>, vector<16x16x32xf32>
    %277 = vector.shape_cast %276 : vector<16x16x32xf32> to vector<256x32xf32>
    %c2_276 = arith.constant 2 : index
    %c2_277 = arith.constant 2 : index
    %c0_278 = arith.constant 0 : index
    %278 = vector.load %arg24[%c2_276, %c2_277, %c0_278] : memref<18x18x32xf32, #tpu.memory_space<vmem>>, vector<16x16x32xf32>
    %279 = vector.shape_cast %278 : vector<16x16x32xf32> to vector<256x32xf32>
    %c0_279 = arith.constant 0 : index
    %c0_280 = arith.constant 0 : index
    %c0_281 = arith.constant 0 : index
    %280 = vector.load %arg21[%c0_279, %c0_280, %c0_281] : memref<1x1x32xf32, #tpu.memory_space<vmem>>, vector<1x1x32xf32>
    %281 = vector.shape_cast %280 : vector<1x1x32xf32> to vector<1x32xf32>
    %282 = vector.shape_cast %281 : vector<1x32xf32> to vector<1x32xf32>
    %283 = vector.broadcast %282 : vector<1x32xf32> to vector<256x32xf32>
    %284 = arith.truncf %263 : vector<256x32xf32> to vector<256x32xbf16>
    %c0_282 = arith.constant 0 : index
    %c0_283 = arith.constant 0 : index
    %c0_284 = arith.constant 0 : index
    %285 = vector.load %arg20[%c0_282, %c0_283, %c0_284] : memref<9x32x32xbf16, #tpu.memory_space<vmem>>, vector<1x32x32xbf16>
    %286 = vector.shape_cast %285 : vector<1x32x32xbf16> to vector<32x32xbf16>
    %cst_285 = arith.constant dense<0.000000e+00> : vector<256x32xf32>
    %287 = tpu.matmul %284, %286, %cst_285 {dimension_numbers = #tpu.dot_dimension_numbers<[1], [0], [0], [1], [0, 0, 1, 1], [], []>} : vector<256x32xbf16>, vector<32x32xbf16>, vector<256x32xf32> -> vector<256x32xf32>
    %288 = arith.addf %283, %287 : vector<256x32xf32>
    %289 = arith.truncf %265 : vector<256x32xf32> to vector<256x32xbf16>
    %c1_286 = arith.constant 1 : index
    %c0_287 = arith.constant 0 : index
    %c0_288 = arith.constant 0 : index
    %290 = vector.load %arg20[%c1_286, %c0_287, %c0_288] : memref<9x32x32xbf16, #tpu.memory_space<vmem>>, vector<1x32x32xbf16>
    %291 = vector.shape_cast %290 : vector<1x32x32xbf16> to vector<32x32xbf16>
    %cst_289 = arith.constant dense<0.000000e+00> : vector<256x32xf32>
    %292 = tpu.matmul %289, %291, %cst_289 {dimension_numbers = #tpu.dot_dimension_numbers<[1], [0], [0], [1], [0, 0, 1, 1], [], []>} : vector<256x32xbf16>, vector<32x32xbf16>, vector<256x32xf32> -> vector<256x32xf32>
    %293 = arith.addf %288, %292 : vector<256x32xf32>
    %294 = arith.truncf %267 : vector<256x32xf32> to vector<256x32xbf16>
    %c2_290 = arith.constant 2 : index
    %c0_291 = arith.constant 0 : index
    %c0_292 = arith.constant 0 : index
    %295 = vector.load %arg20[%c2_290, %c0_291, %c0_292] : memref<9x32x32xbf16, #tpu.memory_space<vmem>>, vector<1x32x32xbf16>
    %296 = vector.shape_cast %295 : vector<1x32x32xbf16> to vector<32x32xbf16>
    %cst_293 = arith.constant dense<0.000000e+00> : vector<256x32xf32>
    %297 = tpu.matmul %294, %296, %cst_293 {dimension_numbers = #tpu.dot_dimension_numbers<[1], [0], [0], [1], [0, 0, 1, 1], [], []>} : vector<256x32xbf16>, vector<32x32xbf16>, vector<256x32xf32> -> vector<256x32xf32>
    %298 = arith.addf %293, %297 : vector<256x32xf32>
    %299 = arith.truncf %269 : vector<256x32xf32> to vector<256x32xbf16>
    %c3_294 = arith.constant 3 : index
    %c0_295 = arith.constant 0 : index
    %c0_296 = arith.constant 0 : index
    %300 = vector.load %arg20[%c3_294, %c0_295, %c0_296] : memref<9x32x32xbf16, #tpu.memory_space<vmem>>, vector<1x32x32xbf16>
    %301 = vector.shape_cast %300 : vector<1x32x32xbf16> to vector<32x32xbf16>
    %cst_297 = arith.constant dense<0.000000e+00> : vector<256x32xf32>
    %302 = tpu.matmul %299, %301, %cst_297 {dimension_numbers = #tpu.dot_dimension_numbers<[1], [0], [0], [1], [0, 0, 1, 1], [], []>} : vector<256x32xbf16>, vector<32x32xbf16>, vector<256x32xf32> -> vector<256x32xf32>
    %303 = arith.addf %298, %302 : vector<256x32xf32>
    %304 = arith.truncf %271 : vector<256x32xf32> to vector<256x32xbf16>
    %c4_298 = arith.constant 4 : index
    %c0_299 = arith.constant 0 : index
    %c0_300 = arith.constant 0 : index
    %305 = vector.load %arg20[%c4_298, %c0_299, %c0_300] : memref<9x32x32xbf16, #tpu.memory_space<vmem>>, vector<1x32x32xbf16>
    %306 = vector.shape_cast %305 : vector<1x32x32xbf16> to vector<32x32xbf16>
    %cst_301 = arith.constant dense<0.000000e+00> : vector<256x32xf32>
    %307 = tpu.matmul %304, %306, %cst_301 {dimension_numbers = #tpu.dot_dimension_numbers<[1], [0], [0], [1], [0, 0, 1, 1], [], []>} : vector<256x32xbf16>, vector<32x32xbf16>, vector<256x32xf32> -> vector<256x32xf32>
    %308 = arith.addf %303, %307 : vector<256x32xf32>
    %309 = arith.truncf %273 : vector<256x32xf32> to vector<256x32xbf16>
    %c5_302 = arith.constant 5 : index
    %c0_303 = arith.constant 0 : index
    %c0_304 = arith.constant 0 : index
    %310 = vector.load %arg20[%c5_302, %c0_303, %c0_304] : memref<9x32x32xbf16, #tpu.memory_space<vmem>>, vector<1x32x32xbf16>
    %311 = vector.shape_cast %310 : vector<1x32x32xbf16> to vector<32x32xbf16>
    %cst_305 = arith.constant dense<0.000000e+00> : vector<256x32xf32>
    %312 = tpu.matmul %309, %311, %cst_305 {dimension_numbers = #tpu.dot_dimension_numbers<[1], [0], [0], [1], [0, 0, 1, 1], [], []>} : vector<256x32xbf16>, vector<32x32xbf16>, vector<256x32xf32> -> vector<256x32xf32>
    %313 = arith.addf %308, %312 : vector<256x32xf32>
    %314 = arith.truncf %275 : vector<256x32xf32> to vector<256x32xbf16>
    %c6_306 = arith.constant 6 : index
    %c0_307 = arith.constant 0 : index
    %c0_308 = arith.constant 0 : index
    %315 = vector.load %arg20[%c6_306, %c0_307, %c0_308] : memref<9x32x32xbf16, #tpu.memory_space<vmem>>, vector<1x32x32xbf16>
    %316 = vector.shape_cast %315 : vector<1x32x32xbf16> to vector<32x32xbf16>
    %cst_309 = arith.constant dense<0.000000e+00> : vector<256x32xf32>
    %317 = tpu.matmul %314, %316, %cst_309 {dimension_numbers = #tpu.dot_dimension_numbers<[1], [0], [0], [1], [0, 0, 1, 1], [], []>} : vector<256x32xbf16>, vector<32x32xbf16>, vector<256x32xf32> -> vector<256x32xf32>
    %318 = arith.addf %313, %317 : vector<256x32xf32>
    %319 = arith.truncf %277 : vector<256x32xf32> to vector<256x32xbf16>
    %c7_310 = arith.constant 7 : index
    %c0_311 = arith.constant 0 : index
    %c0_312 = arith.constant 0 : index
    %320 = vector.load %arg20[%c7_310, %c0_311, %c0_312] : memref<9x32x32xbf16, #tpu.memory_space<vmem>>, vector<1x32x32xbf16>
    %321 = vector.shape_cast %320 : vector<1x32x32xbf16> to vector<32x32xbf16>
    %cst_313 = arith.constant dense<0.000000e+00> : vector<256x32xf32>
    %322 = tpu.matmul %319, %321, %cst_313 {dimension_numbers = #tpu.dot_dimension_numbers<[1], [0], [0], [1], [0, 0, 1, 1], [], []>} : vector<256x32xbf16>, vector<32x32xbf16>, vector<256x32xf32> -> vector<256x32xf32>
    %323 = arith.addf %318, %322 : vector<256x32xf32>
    %324 = arith.truncf %279 : vector<256x32xf32> to vector<256x32xbf16>
    %c8_314 = arith.constant 8 : index
    %c0_315 = arith.constant 0 : index
    %c0_316 = arith.constant 0 : index
    %325 = vector.load %arg20[%c8_314, %c0_315, %c0_316] : memref<9x32x32xbf16, #tpu.memory_space<vmem>>, vector<1x32x32xbf16>
    %326 = vector.shape_cast %325 : vector<1x32x32xbf16> to vector<32x32xbf16>
    %cst_317 = arith.constant dense<0.000000e+00> : vector<256x32xf32>
    %327 = tpu.matmul %324, %326, %cst_317 {dimension_numbers = #tpu.dot_dimension_numbers<[1], [0], [0], [1], [0, 0, 1, 1], [], []>} : vector<256x32xbf16>, vector<32x32xbf16>, vector<256x32xf32> -> vector<256x32xf32>
    %328 = arith.addf %323, %327 : vector<256x32xf32>
    %329 = vector.shape_cast %328 : vector<256x32xf32> to vector<16x16x32xf32>
    %330 = arith.addf %329, %175 : vector<16x16x32xf32>
    %c0_318 = arith.constant 0 : index
    %c0_319 = arith.constant 0 : index
    %c0_320 = arith.constant 0 : index
    %c0_321 = arith.constant 0 : index
    %331 = vector.load %arg22[%c0_318, %c0_319, %c0_320, %c0_321] : memref<1x16x16x32xf32, #tpu.memory_space<vmem>>, vector<1x16x16x32xf32>
    %332 = vector.shape_cast %331 : vector<1x16x16x32xf32> to vector<16x16x32xf32>
    %333 = vector.shape_cast %330 : vector<16x16x32xf32> to vector<1x16x16x32xf32>
    tpu.vector_store %arg22[%c0_318, %c0_319, %c0_320, %c0_321], %333 {strides = array<i32>} : memref<1x16x16x32xf32, #tpu.memory_space<vmem>>, vector<1x16x16x32xf32>,
    return
  }
  func.func @transform_0(%arg0: i32) -> (i32, i32, i32, i32) {
    %c0_i32 = arith.constant 0 : i32
    %c0_i32_0 = arith.constant 0 : i32
    %c0_i32_1 = arith.constant 0 : i32
    %c0_i32_2 = arith.constant 0 : i32
    return %arg0, %c0_i32, %c0_i32_0, %c0_i32_1 : i32, i32, i32, i32
  }
  func.func @transform_1(%arg0: i32) -> (i32, i32, i32) {
    %c0_i32 = arith.constant 0 : i32
    %c0_i32_0 = arith.constant 0 : i32
    %c0_i32_1 = arith.constant 0 : i32
    %c0_i32_2 = arith.constant 0 : i32
    return %c0_i32, %c0_i32_0, %c0_i32_1 : i32, i32, i32
  }
  func.func @transform_2(%arg0: i32) -> (i32, i32, i32) {
    %c0_i32 = arith.constant 0 : i32
    %c0_i32_0 = arith.constant 0 : i32
    %c0_i32_1 = arith.constant 0 : i32
    %c0_i32_2 = arith.constant 0 : i32
    return %c0_i32, %c0_i32_0, %c0_i32_1 : i32, i32, i32
  }
  func.func @transform_3(%arg0: i32) -> (i32, i32) {
    %c0_i32 = arith.constant 0 : i32
    %c0_i32_0 = arith.constant 0 : i32
    %c0_i32_1 = arith.constant 0 : i32
    return %c0_i32, %c0_i32_0 : i32, i32
  }
  func.func @transform_4(%arg0: i32) -> (i32, i32, i32) {
    %c0_i32 = arith.constant 0 : i32
    %c0_i32_0 = arith.constant 0 : i32
    %c0_i32_1 = arith.constant 0 : i32
    %c0_i32_2 = arith.constant 0 : i32
    return %c0_i32, %c0_i32_0, %c0_i32_1 : i32, i32, i32
  }
  func.func @transform_5(%arg0: i32) -> (i32, i32, i32) {
    %c0_i32 = arith.constant 0 : i32
    %c0_i32_0 = arith.constant 0 : i32
    %c0_i32_1 = arith.constant 0 : i32
    %c0_i32_2 = arith.constant 0 : i32
    return %c0_i32, %c0_i32_0, %c0_i32_1 : i32, i32, i32
  }
  func.func @transform_6(%arg0: i32) -> (i32, i32, i32) {
    %c0_i32 = arith.constant 0 : i32
    %c0_i32_0 = arith.constant 0 : i32
    %c0_i32_1 = arith.constant 0 : i32
    %c0_i32_2 = arith.constant 0 : i32
    return %c0_i32, %c0_i32_0, %c0_i32_1 : i32, i32, i32
  }
  func.func @transform_7(%arg0: i32) -> (i32, i32, i32) {
    %c0_i32 = arith.constant 0 : i32
    %c0_i32_0 = arith.constant 0 : i32
    %c0_i32_1 = arith.constant 0 : i32
    %c0_i32_2 = arith.constant 0 : i32
    return %c0_i32, %c0_i32_0, %c0_i32_1 : i32, i32, i32
  }
  func.func @transform_8(%arg0: i32) -> (i32, i32, i32) {
    %c0_i32 = arith.constant 0 : i32
    %c0_i32_0 = arith.constant 0 : i32
    %c0_i32_1 = arith.constant 0 : i32
    %c0_i32_2 = arith.constant 0 : i32
    return %c0_i32, %c0_i32_0, %c0_i32_1 : i32, i32, i32
  }
  func.func @transform_9(%arg0: i32) -> (i32, i32, i32) {
    %c0_i32 = arith.constant 0 : i32
    %c0_i32_0 = arith.constant 0 : i32
    %c0_i32_1 = arith.constant 0 : i32
    %c0_i32_2 = arith.constant 0 : i32
    return %c0_i32, %c0_i32_0, %c0_i32_1 : i32, i32, i32
  }
  func.func @transform_10(%arg0: i32) -> (i32, i32, i32) {
    %c0_i32 = arith.constant 0 : i32
    %c0_i32_0 = arith.constant 0 : i32
    %c0_i32_1 = arith.constant 0 : i32
    %c0_i32_2 = arith.constant 0 : i32
    return %c0_i32, %c0_i32_0, %c0_i32_1 : i32, i32, i32
  }
  func.func @transform_11(%arg0: i32) -> (i32, i32, i32) {
    %c0_i32 = arith.constant 0 : i32
    %c0_i32_0 = arith.constant 0 : i32
    %c0_i32_1 = arith.constant 0 : i32
    %c0_i32_2 = arith.constant 0 : i32
    return %c0_i32, %c0_i32_0, %c0_i32_1 : i32, i32, i32
  }
  func.func @transform_12(%arg0: i32) -> (i32, i32, i32) {
    %c0_i32 = arith.constant 0 : i32
    %c0_i32_0 = arith.constant 0 : i32
    %c0_i32_1 = arith.constant 0 : i32
    %c0_i32_2 = arith.constant 0 : i32
    return %c0_i32, %c0_i32_0, %c0_i32_1 : i32, i32, i32
  }
  func.func @transform_13(%arg0: i32) -> (i32, i32, i32) {
    %c0_i32 = arith.constant 0 : i32
    %c0_i32_0 = arith.constant 0 : i32
    %c0_i32_1 = arith.constant 0 : i32
    %c0_i32_2 = arith.constant 0 : i32
    return %c0_i32, %c0_i32_0, %c0_i32_1 : i32, i32, i32
  }
  func.func @transform_14(%arg0: i32) -> (i32, i32, i32) {
    %c0_i32 = arith.constant 0 : i32
    %c0_i32_0 = arith.constant 0 : i32
    %c0_i32_1 = arith.constant 0 : i32
    %c0_i32_2 = arith.constant 0 : i32
    return %c0_i32, %c0_i32_0, %c0_i32_1 : i32, i32, i32
  }
  func.func @transform_15(%arg0: i32) -> (i32, i32, i32) {
    %c0_i32 = arith.constant 0 : i32
    %c0_i32_0 = arith.constant 0 : i32
    %c0_i32_1 = arith.constant 0 : i32
    %c0_i32_2 = arith.constant 0 : i32
    return %c0_i32, %c0_i32_0, %c0_i32_1 : i32, i32, i32
  }
  func.func @transform_16(%arg0: i32) -> (i32, i32, i32) {
    %c0_i32 = arith.constant 0 : i32
    %c0_i32_0 = arith.constant 0 : i32
    %c0_i32_1 = arith.constant 0 : i32
    %c0_i32_2 = arith.constant 0 : i32
    return %c0_i32, %c0_i32_0, %c0_i32_1 : i32, i32, i32
  }
  func.func @transform_17(%arg0: i32) -> (i32, i32, i32) {
    %c0_i32 = arith.constant 0 : i32
    %c0_i32_0 = arith.constant 0 : i32
    %c0_i32_1 = arith.constant 0 : i32
    %c0_i32_2 = arith.constant 0 : i32
    return %c0_i32, %c0_i32_0, %c0_i32_1 : i32, i32, i32
  }
  func.func @transform_18(%arg0: i32) -> (i32, i32, i32) {
    %c0_i32 = arith.constant 0 : i32
    %c0_i32_0 = arith.constant 0 : i32
    %c0_i32_1 = arith.constant 0 : i32
    %c0_i32_2 = arith.constant 0 : i32
    return %c0_i32, %c0_i32_0, %c0_i32_1 : i32, i32, i32
  }
  func.func @transform_19(%arg0: i32) -> (i32, i32, i32) {
    %c0_i32 = arith.constant 0 : i32
    %c0_i32_0 = arith.constant 0 : i32
    %c0_i32_1 = arith.constant 0 : i32
    %c0_i32_2 = arith.constant 0 : i32
    return %c0_i32, %c0_i32_0, %c0_i32_1 : i32, i32, i32
  }
  func.func @transform_20(%arg0: i32) -> (i32, i32, i32) {
    %c0_i32 = arith.constant 0 : i32
    %c0_i32_0 = arith.constant 0 : i32
    %c0_i32_1 = arith.constant 0 : i32
    %c0_i32_2 = arith.constant 0 : i32
    return %c0_i32, %c0_i32_0, %c0_i32_1 : i32, i32, i32
  }
  func.func @transform_21(%arg0: i32) -> (i32, i32, i32, i32) {
    %c0_i32 = arith.constant 0 : i32
    %c0_i32_0 = arith.constant 0 : i32
    %c0_i32_1 = arith.constant 0 : i32
    %c0_i32_2 = arith.constant 0 : i32
    return %arg0, %c0_i32, %c0_i32_0, %c0_i32_1 : i32, i32, i32, i32
  }
}

</mosaic_0001>

<bundles_post_ra>
// kernel: tpu_custom_call.1
= control target key start
LH: loop header
LB: loop body
LE: loop exit
PB: predicated region body
PF: predicated region fallthrough
CT: control target
= control target key end

     0   :  { %s16053_s0 = inlined_call_operand.vmem [shape: f32[2,16,16,2], index: 0, kind: input, shape index: {}]   ;;  %s16054_s1 = inlined_call_operand.vmem [shape: f32[1,1,2], index: 1, kind: input, shape index: {}]   ;;  %s16055_s2 = inlined_call_operand.vmem [shape: f32[1,1,2], index: 2, kind: input, shape index: {}]   ;;  %s16056_s3 = inlined_call_operand.vmem [shape: bf16[2,32], index: 3, kind: input, shape index: {}]   ;;  %s16057_s4 = inlined_call_operand.vmem [shape: f32[1,1,32], index: 4, kind: input, shape index: {}]   ;;  %s16058_s5 = inlined_call_operand.vmem [shape: f32[1,1,2], index: 5, kind: input, shape index: {}]   ;;  %s16059_s6 = inlined_call_operand.vmem [shape: f32[1,1,2], index: 6, kind: input, shape index: {}]   ;;  %s16060_s7 = inlined_call_operand.vmem [shape: bf16[9,2,32], index: 7, kind: input, shape index: {}]   ;;  %s16061_s8 = inlined_call_operand.vmem [shape: f32[1,1,32], index: 8, kind: input, shape index: {}]   ;;  %s16062_s9 = inlined_call_operand.vmem [shape: f32[1,1,32], index: 9, kind: input, shape index: {}]   ;;  %s16063_s10 = inlined_call_operand.vmem [shape: f32[1,1,32], index: 10, kind: input, shape index: {}]   ;;  %s16064_s11 = inlined_call_operand.vmem [shape: bf16[9,32,32], index: 11, kind: input, shape index: {}]   ;;  %s16065_s12 = inlined_call_operand.vmem [shape: f32[1,1,32], index: 12, kind: input, shape index: {}]   ;;  %s16066_s13 = inlined_call_operand.vmem [shape: f32[1,1,32], index: 13, kind: input, shape index: {}]   ;;  %s16067_s14 = inlined_call_operand.vmem [shape: f32[1,1,32], index: 14, kind: input, shape index: {}]   ;;  %s16068_s15 = inlined_call_operand.vmem [shape: bf16[9,32,32], index: 15, kind: input, shape index: {}]   ;;  %s16069_s16 = inlined_call_operand.vmem [shape: f32[1,1,32], index: 16, kind: input, shape index: {}]   ;;  %s16070_s17 = inlined_call_operand.vmem [shape: f32[1,1,32], index: 17, kind: input, shape index: {}]   ;;  %s16071_s18 = inlined_call_operand.vmem [shape: f32[1,1,32], index: 18, kind: input, shape index: {}]   ;;  %s16072_s19 = inlined_call_operand.vmem [shape: bf16[9,32,32], index: 19, kind: input, shape index: {}]   ;;  %s16073_s20 = inlined_call_operand.vmem [shape: f32[1,1,32], index: 20, kind: input, shape index: {}]   ;;  %s16074_s21 = inlined_call_operand.hbm [shape: f32[2,16,16,32], index: 21, kind: output, shape index: {}]  }
   0x1   :  { %16149 = sst [smem:[#allocation74_spill]] %s16053_s0 }
   0x2   :  { %16150 = sst [smem:[#allocation75_spill]] %s16054_s1 }
   0x3   :  { %16151 = sst [smem:[#allocation76_spill]] %s16055_s2 }
   0x4   :  { %16152 = sst [smem:[#allocation77_spill]] %s16056_s3 }
   0x5   :  { %16153 = sst [smem:[#allocation78_spill]] %s16057_s4 }
   0x6   :  { %16154 = sst [smem:[#allocation79_spill]] %s16058_s5 }
   0x7   :  { %16155 = sst [smem:[#allocation80_spill]] %s16059_s6 }
   0x8   :  { %16156 = sst [smem:[#allocation81_spill]] %s16060_s7 }
   0x9   :  { %16157 = sst [smem:[#allocation82_spill]] %s16074_s21 }
   0xa   :  { %26 = vsyncpa [#allocation5], 0 }
   0xb   :  { %28 = vsyncpa [#allocation5 + $0x1], 0  ;;  %s11311_s2 = smov 0   ;;  %s11313_s25 = smov 0  }
   0xc   :  { %s11315_s26 = smov 0   ;;  %s11317_s27 = smov 0  }
   0xd LB: > { %16158 = sst [smem:[#allocation7_spill]] %s11184_s2  ;;  %s11332_s3 = sadd.s32 4294967295, %s11196_s27   ;;  %s11196_s27 = sphi %s11317_s27, %s16551_s27   ;;  %s11192_s26 = sphi %s11315_s26, %s16553_s26   ;;  %s11188_s25 = sphi %s11313_s25, %s16555_s25   ;;  %s11184_s2 = sphi %s11311_s2, %s16554_s2  }
   0xe   : > { %16159 = sst [smem:[#allocation8_spill]] %s11192_s26  ;;  %s10084_s28 = sadd.s32 4294967294, %s11196_s27  }
   0xf   : > { %16160 = sst [smem:[#allocation9_spill]] %s11196_s27  ;;  %s11336_s29 = sadd.s32 1, %s11196_s27  }
  0x10   : > { %16161 = sst [smem:[#allocation10_spill]] %s11336_s29  ;;  %s487_s0 = sadd.s32 1, %s11192_s26 }
  0x11   : > { %s484_s4 = ssub.s32 %s11196_s27, %s11336_s29  ;;  %p497_p0 = scmp.ne.s32.totalorder %s11192_s26, %s11188_s25 }
  0x12   : > { %p485_p1 = scmp.eq.s32.totalorder %s484_s4, 0  ;;  %p498_p2 = scmp.eq.s32.totalorder %s11332_s3, 1 }
  0x13   : > { %p503_p3 = scmp.ne.s32.totalorder %s11188_s25, %s11184_s2  ;;  %p504_p4 = scmp.eq.s32.totalorder %s10084_s28, 1 }
  0x14   : > { %s11347_s30 = scalar_select %p485_p1, %s11192_s26, %s487_s0  }
  0x15   : > { %p11349_p5 = por %p498_p2, %p497_p0  ;;  %p11353_p6 = por %p504_p4, %p503_p3 }
  0x16   : > { %16162 = sst [smem:[#allocation11_spill]] %s11347_s30  ;;  %p10087_p7 = scmp.ge.s32.totalorder %s11196_s27, 1 }
  0x17   : > { %s16163_s5 = scalar_select %p11349_p5, 1, 0 }
  0x18   : > { %s16165_s22 = scalar_select %p11353_p6, 1, 0 }
  0x19   : > { %16164 = sst [smem:[#allocation12_spill]] %s16163_s5  ;;  %p590_p8 = scmp.lt.s32.totalorder %s11196_s27, 3 }
  0x1a   : > { %16166 = sst [smem:[#allocation13_spill]] %s16165_s22 }
  0x1b   : > { %p591_p9 = pnand %p10087_p7, %p590_p8 }
  0x1d   : > { %594 = sbr.rel (%p591_p9) target bundleno = 2973 (0xb9d), region = 104 }
  0x22   : > { %s16167_s24 = sld [smem:[#allocation77_spill]]  ;;  %vm941_vm0 = vcmask 1040384   ;;  %p650_p10 = scmp.lt.s32.totalorder %s11332_s3, 1  ;;  %vm688_vm1 = vcmask 15360   ;;  %vm691_vm2 = vcmask 9216   ;;  %v16085_v2 = vmov 0.0  }
  0x23   : > { %705 = vst.msk [vmem:[#allocation2 + $0x78] sm:$0xff] %vm688_vm1, %v16085_v2  ;;  %s16168_s23 = sld [smem:[#allocation75_spill]]  ;;  %vm744_vm3 = vcmask 261120   ;;  %vm747_vm4 = vcmask 254976  }
  0x24   : > { %s651_s28 = scalar_select %p650_p10, %s11332_s3, 1  ;;  %706 = vst.msk [vmem:[#allocation2 + $0x80] sm:$0xff] %vm688_vm1, %v16085_v2 }
  0x25   : > { %707 = vst.msk [vmem:[#allocation2 + $0x88] sm:$0x3] %vm691_vm2, %v16085_v2  ;;  %s16169_s30 = sld [smem:[#allocation76_spill]] }
  0x26   : > { %s11008_s26 = sshll.u32 %s651_s28, 8  ;;  %s16170_s2 = sld [smem:[#allocation79_spill]]  ;;  %689 = vst.msk [vmem:[#allocation2] sm:$0xff] %vm688_vm1, %v16085_v2 }
  0x27   : > { %s16172_s6 = sld [smem:[#allocation80_spill]]  ;;  %690 = vst.msk [vmem:[#allocation2 + $0x8] sm:$0xff] %vm688_vm1, %v16085_v2 }
  0x28   : > { %v888_v0 = vld [vmem:[%s16167_s24] sm:$0x1]  ;;  %692 = vst.msk [vmem:[#allocation2 + $0x10] sm:$0x3] %vm691_vm2, %v16085_v2  ;;  %s16173_s7 = sld [smem:[#allocation81_spill]] }
  0x29   : > { %v943_v1 = vsel %vm941_vm0, %v888_v0, 0  ;;  %v11372_v3 = vld [vmem:[%s16168_s23] ss:$0 sm:$0xff]  ;;  %s16171_s23 = sld [smem:[#allocation74_spill]]  ;;  %693 = vst.msk [vmem:[#allocation2 + $0x18] sm:$0xff] %vm688_vm1, %v16085_v2 }
  0x2a   : > { %11064 = vmatpush.bf16.msra.mxu1 %v943_v1  ;;  %11065 = vmatpush.bf16.msra.mxu2 %v943_v1  ;;  %694 = vst.msk [vmem:[#allocation2 + $0x20] sm:$0xff] %vm688_vm1, %v16085_v2  ;;  %s16174_s4 = sld [smem:[#allocation78_spill]] }
  0x2b   : > { %11066 = vmatpush.bf16.msra.mxu3 %v943_v1  ;;  %v11379_v4 = vld [vmem:[%s16169_s30] ss:$0 sm:$0xff]  ;;  %952 = vmatpush.bf16.msra.mxu0 %v943_v1  ;;  %695 = vst.msk [vmem:[#allocation2 + $0x28] sm:$0x3] %vm691_vm2, %v16085_v2  ;;  %s16545_s5 = sld [smem:[#allocation82_spill]] }
  0x2c   : > { %v11384_v5 = vld [vmem:[%s16170_s2] ss:$0 sm:$0xff]  ;;  %696 = vst.msk [vmem:[#allocation2 + $0x30] sm:$0xff] %vm688_vm1, %v16085_v2 }
  0x2d   : > { %v11396_v6 = vld [vmem:[%s16172_s6] ss:$0 sm:$0xff]  ;;  %697 = vst.msk [vmem:[#allocation2 + $0x38] sm:$0xff] %vm688_vm1, %v16085_v2 }
  0x2e   : > { %698 = vst.msk [vmem:[#allocation2 + $0x40] sm:$0x3] %vm691_vm2, %v16085_v2  ;;  %v1480_v0 = vld [vmem:[%s16173_s7] sm:$0x1] }
  0x2f   : > { %s11391_s27 = scalar_lea.vmem %s16171_s23, %s11008_s26  ;;  %699 = vst.msk [vmem:[#allocation2 + $0x48] sm:$0xff] %vm688_vm1, %v16085_v2  ;;  %s647_s23 = sand.u32 1, %s11188_s25  }
  0x30   : > { %v664_v7 = vld [vmem:[%s11391_s27 + $0x40] sm:$0xff]  ;;  %v665_v8 = vld [vmem:[%s11391_s27 + $0x48] sm:$0xff]  ;;  %v11459_v38 = vld [vmem:[%s11391_s27 + $0x50] sm:$0xff]  ;;  %700 = vst.msk [vmem:[#allocation2 + $0x50] sm:$0xff] %vm688_vm1, %v16085_v2  ;;  %s10088_s21 = sshll.u32 %s647_s23, 8  ;;  %s11063_s26 = sshll.u32 %s11332_s3, 8 }
  0x31   : > { %v11405_v9 = vld [vmem:[%s11391_s27 + $0x80] sm:$0xff]  ;;  %v812_v10 = vmul.f32 %v11372_v3, %v664_v7  ;;  %v813_v11 = vmul.f32 %v11372_v3, %v665_v8  ;;  %v1046_v12 = vmul.f32 %v11384_v5, %v664_v7  ;;  %v1047_v13 = vmul.f32 %v11384_v5, %v665_v8  ;;  %v11414_v14 = vld [vmem:[%s11391_s27 + $0x88] sm:$0xff]  ;;  %v11462_v39 = vld [vmem:[%s11391_s27 + $0x58] sm:$0xff]  ;;  %701 = vst.msk [vmem:[#allocation2 + $0x58] sm:$0x3] %vm691_vm2, %v16085_v2  ;;  %s15879_s2 = scalar_lea.vmem [#allocation4], %s10088_s21  ;;  %s10018_s22 = scalar_lea.hbm %s16545_s5, %s11063_s26 }
  0x32   : > { %v11417_v15 = vld [vmem:[%s11391_s27 + $0xc0] sm:$0xff]  ;;  %v11420_v16 = vld [vmem:[%s11391_s27 + $0xc8] sm:$0xff]  ;;  %v820_v17 = vmul.f32 %v11372_v3, %v11405_v9  ;;  %v821_v18 = vmul.f32 %v11372_v3, %v11414_v14  ;;  %v11465_v40 = vld [vmem:[%s11391_s27 + $0x90] sm:$0xff]  ;;  %v814_v47 = vmul.f32 %v11372_v3, %v11459_v38  ;;  %v815_v48 = vmul.f32 %v11372_v3, %v11462_v39  ;;  %702 = vst.msk [vmem:[#allocation2 + $0x60] sm:$0xff] %vm688_vm1, %v16085_v2  ;;  %s10021_s3 = sshll.u32 %s10018_s22, 4  ;;  %s10007_s1 = scalar_lea.sflag [#allocation5], %s647_s23  ;;  %s10022_s3 = int_to_ptr.hbm [resolvable:$true] %s10021_s3 }
  0x33   : > { %v828_v19 = vmul.f32 %v11372_v3, %v11417_v15  ;;  %v829_v20 = vmul.f32 %v11372_v3, %v11420_v16  ;;  %v11433_v21 = vld [vmem:[%s11391_s27] sm:$0xff]  ;;  %v848_v22 = vadd.f32 %v11379_v4, %v812_v10  ;;  %v849_v23 = vadd.f32 %v11379_v4, %v813_v11  ;;  %v11442_v26 = vld [vmem:[%s11391_s27 + $0x8] sm:$0xff]  ;;  %v11471_v42 = vld [vmem:[%s11391_s27 + $0x98] sm:$0xff]  ;;  %703 = vst.msk [vmem:[#allocation2 + $0x68] sm:$0xff] %vm688_vm1, %v16085_v2  ;;  %s11148_s24 = sshra.s32 %s10022_s3, 4  ;;  %s11154_s29 = scalar_lea.hbm %s16545_s5, 512  ;;  %s11149_s24 = int_to_ptr.hbm [resolvable:$true] %s11148_s24 }
  0x34   : > { %v1082_v24 = vadd.f32 %v11396_v6, %v1046_v12  ;;  %v1083_v25 = vadd.f32 %v11396_v6, %v1047_v13  ;;  %v856_v27 = vadd.f32 %v11379_v4, %v820_v17  ;;  %v857_v28 = vadd.f32 %v11379_v4, %v821_v18  ;;  %v11478_v44 = vld [vmem:[%s11391_s27 + $0xd0] sm:$0xff]  ;;  %v11483_v45 = vld [vmem:[%s11391_s27 + $0xd8] sm:$0xff]  ;;  %704 = vst.msk [vmem:[#allocation2 + $0x70] sm:$0x3] %vm691_vm2, %v16085_v2  ;;  %v11547_v12 = vld [vmem:[%s11391_s27 + $0x60] sm:$0xff]  ;;  %s11150_s0 = scalar_lea.hbm %s11149_s24, 256  ;;  %p11155_p0 = scmp.lt.s32.totalorder %s11149_s24, %s16545_s5 }
  0x35   : > { %v864_v29 = vadd.f32 %v11379_v4, %v828_v19  ;;  %v865_v30 = vadd.f32 %v11379_v4, %v829_v20  ;;  %v876_v31 = vpack.c.bf16 %v849_v23, %v848_v22  ;;  %v804_v34 = vmul.f32 %v11372_v3, %v11433_v21  ;;  %v11507_v53 = vld [vmem:[%s11391_s27 + $0x10] sm:$0xff]  ;;  %v11510_v54 = vld [vmem:[%s11391_s27 + $0x18] sm:$0xff]  ;;  %708 = vst.msk [vmem:[#allocation2 + $0x90] sm:$0xff] %vm688_vm1, %v16085_v2  ;;  %v11550_v13 = vld [vmem:[%s11391_s27 + $0x68] sm:$0xff]  ;;  %p11151_p11 = scmp.ne.s32.totalorder %s11149_s24, %s11150_s0  ;;  %p11156_p1 = scmp.lt.s32.totalorder %s11154_s29, %s11150_s0 }
  0x36   : > { %v1114_v32 = vmax.f32 %v1082_v24, 0.0  ;;  %v1115_v33 = vmax.f32 %v1083_v25, 0.0  ;;  %v880_v35 = vpack.c.bf16 %v857_v28, %v856_v27  ;;  %v805_v37 = vmul.f32 %v11372_v3, %v11442_v26  ;;  %709 = vst.msk [vmem:[#allocation2 + $0x98] sm:$0xff] %vm688_vm1, %v16085_v2  ;;  %v11556_v17 = vld [vmem:[%s11391_s27 + $0xa0] sm:$0xff]  ;;  %v11559_v18 = vld [vmem:[%s11391_s27 + $0xa8] sm:$0xff] }
  0x37   : > { %v884_v36 = vpack.c.bf16 %v865_v30, %v864_v29  ;;  %10095 = vmatmul.msk.bf16.vlgmr.msra.gmra.mxu1 %vm688_vm1, %v876_v31  ;;  %v840_v41 = vadd.f32 %v11379_v4, %v804_v34  ;;  %v822_v49 = vmul.f32 %v11372_v3, %v11465_v40  ;;  %v823_v50 = vmul.f32 %v11372_v3, %v11471_v42  ;;  %v11562_v19 = vld [vmem:[%s11391_s27 + $0xe0] sm:$0xff]  ;;  %v685_v22 = vld [vmem:[%s11391_s27 + $0xe8] sm:$0xff]  ;;  %v11594_v34 = vld [vmem:[%s11391_s27 + $0x70] sm:$0xff]  ;;  %p11152_p12 = pnand %p11151_p11, %p11349_p5  ;;  %p11157_p2 = por %p11156_p1, %p11155_p0 }
  0x38   : > { %1147 = vst.msk [vmem:[#allocation2 + $0x79] sm:$0xff] %vm688_vm1, %v1114_v32  ;;  %10099 = vmatmul.msk.bf16.vlgmr.msra.gmra.mxu2 %vm688_vm1, %v880_v35  ;;  %v841_v43 = vadd.f32 %v11379_v4, %v805_v37  ;;  %v830_v51 = vmul.f32 %v11372_v3, %v11478_v44  ;;  %v831_v52 = vmul.f32 %v11372_v3, %v11483_v45  ;;  %v1530_v11 = vsel %vm941_vm0, %v1480_v0, 0  ;;  %v660_v24 = vld [vmem:[%s11391_s27 + $0x20] sm:$0xff]  ;;  %v661_v25 = vld [vmem:[%s11391_s27 + $0x28] sm:$0xff]  ;;  %v11597_v35 = vld [vmem:[%s11391_s27 + $0x78] sm:$0xff] }
  0x39   : > { %1148 = vst.msk [vmem:[#allocation2 + $0x81] sm:$0xff] %vm688_vm1, %v1115_v33  ;;  %10103 = vmatmul.msk.bf16.vlgmr.msra.gmra.mxu3 %vm688_vm1, %v884_v36  ;;  %v850_v55 = vadd.f32 %v11379_v4, %v814_v47  ;;  %v851_v56 = vadd.f32 %v11379_v4, %v815_v48  ;;  %v858_v57 = vadd.f32 %v11379_v4, %v822_v49  ;;  %p11153_p13 = pneg %p11152_p12 }
  0x3a   : > { %v872_v46 = vpack.c.bf16 %v841_v43, %v840_v41  ;;  %v859_v58 = vadd.f32 %v11379_v4, %v823_v50  ;;  %v866_v59 = vadd.f32 %v11379_v4, %v830_v51  ;;  %v867_v60 = vadd.f32 %v11379_v4, %v831_v52  ;;  %710 = vst.msk [vmem:[#allocation2 + $0xa0] sm:$0x3] %vm691_vm2, %v16085_v2 }
  0x3b   : > { %v806_v61 = vmul.f32 %v11372_v3, %v11507_v53  ;;  %v807_v62 = vmul.f32 %v11372_v3, %v11510_v54  ;;  %711 = vst.msk [vmem:[#allocation2 + $0xa8] sm:$0xff] %vm688_vm1, %v16085_v2  ;;  %v877_v63 = vpack.c.bf16 %v851_v56, %v850_v55  ;;  %1539 = vmatpush.bf16.msrb.mxu1 %v1530_v11  ;;  %p11158_p3 = pnand %p11157_p2, %p11153_p13 }
  0x3c   : > { %10091 = vmatmul.msk.bf16.vlgmr.msra.gmra.mxu0 %vm688_vm1, %v872_v46  ;;  %712 = vst.msk [vmem:[#allocation2 + $0xb0] sm:$0xff] %vm688_vm1, %v16085_v2  ;;  %v881_v1 = vpack.c.bf16 %v859_v58, %v858_v57  ;;  %v885_v7 = vpack.c.bf16 %v867_v60, %v866_v59  ;;  %v816_v23 = vmul.f32 %v11372_v3, %v11547_v12  ;;  %v678_v57 = vld [vmem:[%s11391_s27 + $0xb0] sm:$0xff]  ;;  %v679_v59 = vld [vmem:[%s11391_s27 + $0xb8] sm:$0xff] }
  0x3d   : > { %713 = vst.msk [vmem:[#allocation2 + $0xb8] sm:$0x3] %vm691_vm2, %v16085_v2  ;;  %v842_v8 = vadd.f32 %v11379_v4, %v806_v61  ;;  %v843_v10 = vadd.f32 %v11379_v4, %v807_v62  ;;  %v817_v27 = vmul.f32 %v11372_v3, %v11550_v13  ;;  %v824_v28 = vmul.f32 %v11372_v3, %v11556_v17 }
  0x3e   : > { %714 = vst.msk [vmem:[#allocation2 + $0xc0] sm:$0xff] %vm688_vm1, %v16085_v2  ;;  %v825_v29 = vmul.f32 %v11372_v3, %v11559_v18  ;;  %v832_v30 = vmul.f32 %v11372_v3, %v11562_v19  ;;  %v833_v31 = vmul.f32 %v11372_v3, %v685_v22  ;;  %v808_v32 = vmul.f32 %v11372_v3, %v660_v24 }
  0x3f   : > { %715 = vst.msk [vmem:[#allocation2 + $0xc8] sm:$0xff] %vm688_vm1, %v16085_v2  ;;  %v873_v20 = vpack.c.bf16 %v843_v10, %v842_v8  ;;  %v809_v33 = vmul.f32 %v11372_v3, %v661_v25  ;;  %v852_v36 = vadd.f32 %v11379_v4, %v816_v23  ;;  %v853_v37 = vadd.f32 %v11379_v4, %v817_v27 }
  0x40   : > { %716 = vst.msk [vmem:[#allocation2 + $0xd0] sm:$0x3] %vm691_vm2, %v16085_v2  ;;  %v860_v41 = vadd.f32 %v11379_v4, %v824_v28  ;;  %v861_v43 = vadd.f32 %v11379_v4, %v825_v29  ;;  %v868_v46 = vadd.f32 %v11379_v4, %v832_v30  ;;  %v1054_v47 = vmul.f32 %v11384_v5, %v11405_v9 }
  0x41   : > { %717 = vst.msk [vmem:[#allocation2 + $0xd8] sm:$0xff] %vm688_vm1, %v16085_v2  ;;  %v869_v48 = vadd.f32 %v11379_v4, %v833_v31  ;;  %v818_v49 = vmul.f32 %v11372_v3, %v11594_v34  ;;  %v819_v50 = vmul.f32 %v11372_v3, %v11597_v35  ;;  %v1055_v51 = vmul.f32 %v11384_v5, %v11414_v14 }
  0x42   : > { %718 = vst.msk [vmem:[#allocation2 + $0xe0] sm:$0xff] %vm688_vm1, %v16085_v2  ;;  %v11622_v52 = vadd.f32 %v11379_v4, %v808_v32  ;;  %v11625_v55 = vadd.f32 %v11379_v4, %v809_v33  ;;  %v1062_v9 = vmul.f32 %v11384_v5, %v11417_v15  ;;  %v1063_v56 = vmul.f32 %v11384_v5, %v11420_v16  ;;  %v10123_v16 = vld [vmem:[%s16173_s7 + $0x1] sm:$0x1]  ;;  %v686_v32 = vld [vmem:[%s11391_s27 + $0xf0] sm:$0xff] }
  0x43   : > { %719 = vst.msk [vmem:[#allocation2 + $0xe8] sm:$0x3] %vm691_vm2, %v16085_v2  ;;  %v878_v14 = vpack.c.bf16 %v853_v37, %v852_v36  ;;  %v882_v58 = vpack.c.bf16 %v861_v43, %v860_v41  ;;  %v11640_v60 = vadd.f32 %v11396_v6, %v1054_v47  ;;  %v886_v61 = vpack.c.bf16 %v869_v48, %v868_v46  ;;  %v687_v36 = vld [vmem:[%s11391_s27 + $0xf8] sm:$0xff] }
  0x44   : > { %720 = vst.msk [vmem:[#allocation2 + $0xf0] sm:$0xff] %vm688_vm1, %v16085_v2  ;;  %v11643_v62 = vadd.f32 %v11379_v4, %v818_v49  ;;  %v11646_v15 = vadd.f32 %v11379_v4, %v819_v50  ;;  %v1067_v0 = vmul.f32 %v11384_v5, %v685_v22  ;;  %v11663_v8 = vadd.f32 %v11396_v6, %v1062_v9  ;;  %v10140_v22 = vld [vmem:[%s16173_s7 + $0x2] sm:$0x1] }
  0x45   : > { %721 = vst.msk [vmem:[#allocation2 + $0xf8] sm:$0xff] %vm688_vm1, %v16085_v2  ;;  %v11666_v10 = vadd.f32 %v11396_v6, %v1063_v56  ;;  %v827_v11 = vmul.f32 %v11372_v3, %v679_v59  ;;  %v1038_v23 = vmul.f32 %v11384_v5, %v11433_v21  ;;  %v1042_v28 = vmul.f32 %v11384_v5, %v660_v24 }
  0x46   : > { %722 = vst.msk [vmem:[#allocation2 + $0x100] sm:$0x3] %vm691_vm2, %v16085_v2  ;;  %v11678_v27 = vadd.f32 %v11396_v6, %v1067_v0  ;;  %v1043_v29 = vmul.f32 %v11384_v5, %v661_v25  ;;  %v1122_v30 = vmax.f32 %v11640_v60, 0.0  ;;  %v1039_v31 = vmul.f32 %v11384_v5, %v11442_v26 }
  0x47   : > { %10096 = vmatmul.msk.bf16.gmra.mxu1 %vm688_vm1, %v877_v63  ;;  %723 = vst.msk [vmem:[#allocation2 + $0x108] sm:$0xff] %vm688_vm1, %v16085_v2  ;;  %v11654_v63 = vadd.f32 %v11396_v6, %v1055_v51  ;;  %v879_v21 = vpack.c.bf16 %v11646_v15, %v11643_v62  ;;  %v1910_v24 = vsel %vm941_vm0, %v10140_v22, 0  ;;  %v1048_v25 = vmul.f32 %v11384_v5, %v11459_v38 }
  0x48   : > { %10100 = vmatmul.msk.bf16.gmra.mxu2 %vm688_vm1, %v881_v1  ;;  %724 = vst.msk [vmem:[#allocation2 + $0x110] sm:$0xff] %vm688_vm1, %v16085_v2  ;;  %v874_v1 = vpack.c.bf16 %v11625_v55, %v11622_v52  ;;  %v11699_v26 = vadd.f32 %v11396_v6, %v1042_v28  ;;  %v11702_v33 = vadd.f32 %v11396_v6, %v1043_v29  ;;  %v1130_v51 = vmax.f32 %v11663_v8, 0.0  ;;  %v10174_v29 = vld [vmem:[%s16173_s7 + $0x4] sm:$0x1] }
  0x49   : > { %10104 = vmatmul.msk.bf16.gmra.mxu3 %vm688_vm1, %v885_v7  ;;  %725 = vst.msk [vmem:[#allocation2 + $0x118] sm:$0x3] %vm691_vm2, %v16085_v2  ;;  %v826_v7 = vmul.f32 %v11372_v3, %v678_v57  ;;  %v1123_v37 = vmax.f32 %v11654_v63, 0.0  ;;  %v1049_v41 = vmul.f32 %v11384_v5, %v11462_v39  ;;  %v1052_v38 = vmul.f32 %v11384_v5, %v11594_v34 }
  0x4a   : > { %726 = vst.msk [vmem:[#allocation2 + $0x120] sm:$0xff] %vm688_vm1, %v16085_v2  ;;  %v1053_v43 = vmul.f32 %v11384_v5, %v11597_v35  ;;  %1919 = vmatpush.bf16.msrb.mxu3 %v1910_v24  ;;  %v11717_v46 = vadd.f32 %v11396_v6, %v1038_v23  ;;  %v1060_v47 = vmul.f32 %v11384_v5, %v678_v57 }
  0x4b   : > { %727 = vst.msk [vmem:[#allocation2 + $0x128] sm:$0xff] %vm688_vm1, %v16085_v2  ;;  %v1061_v48 = vmul.f32 %v11384_v5, %v679_v59  ;;  %v834_v49 = vmul.f32 %v11372_v3, %v686_v32  ;;  %v11725_v39 = vadd.f32 %v11396_v6, %v1039_v31  ;;  %v11728_v34 = vadd.f32 %v11396_v6, %v1052_v38  ;;  %v662_v59 = vld [vmem:[%s11391_s27 + $0x30] sm:$0xff] }
  0x4c   : > { %10092 = vmatmul.msk.bf16.gmra.mxu0 %vm688_vm1, %v873_v20  ;;  %728 = vst.msk [vmem:[#allocation2 + $0x130] sm:$0x3] %vm691_vm2, %v16085_v2  ;;  %v1720_v20 = vsel %vm941_vm0, %v10123_v16, 0  ;;  %v11731_v35 = vadd.f32 %v11396_v6, %v1053_v43  ;;  %v835_v50 = vmul.f32 %v11372_v3, %v687_v36  ;;  %v11739_v52 = vadd.f32 %v11396_v6, %v1060_v47  ;;  %v10157_v16 = vld [vmem:[%s16173_s7 + $0x3] sm:$0x1] }
  0x4d   : > { %729 = vst.msk [vmem:[#allocation2 + $0x138] sm:$0xff] %vm688_vm1, %v16085_v2  ;;  %1729 = vmatpush.bf16.msrb.mxu2 %v1720_v20  ;;  %v11742_v55 = vadd.f32 %v11396_v6, %v1061_v48  ;;  %v1068_v9 = vmul.f32 %v11384_v5, %v686_v32  ;;  %v1056_v56 = vmul.f32 %v11384_v5, %v11465_v40  ;;  %v2100_v20 = vsel %vm941_vm0, %v10157_v16, 0 }
  0x4e   : > { %730 = vst.msk [vmem:[#allocation2 + $0x140] sm:$0xff] %vm688_vm1, %v16085_v2  ;;  %v862_v57 = vadd.f32 %v11379_v4, %v826_v7  ;;  %v1057_v63 = vmul.f32 %v11384_v5, %v11471_v42  ;;  %v870_v40 = vadd.f32 %v11379_v4, %v834_v49  ;;  %v871_v7 = vadd.f32 %v11379_v4, %v835_v50 }
  0x4f   : > { %731 = vst.msk [vmem:[#allocation2 + $0x148] sm:$0x3] %vm691_vm2, %v16085_v2  ;;  %v11763_v0 = vadd.f32 %v11396_v6, %v1068_v9  ;;  %v1131_v42 = vmax.f32 %v11666_v10, 0.0  ;;  %v810_v22 = vmul.f32 %v11372_v3, %v662_v59  ;;  %2109 = vmatpush.bf16.msrb.mxu0 %v2100_v20  ;;  %v1084_v31 = vadd.f32 %v11396_v6, %v1048_v25  ;;  %v1204_v20 = vld [vmem:[#allocation2 + $0x9] sm:$0xff] }
  0x50   : > { %732 = vst.msk [vmem:[#allocation2 + $0x150] sm:$0xff] %vm688_vm1, %v16085_v2  ;;  %v1064_v10 = vmul.f32 %v11384_v5, %v11478_v44  ;;  %v1106_v24 = vmax.f32 %v11717_v46, 0.0  ;;  %v1085_v38 = vadd.f32 %v11396_v6, %v1049_v41  ;;  %v1065_v25 = vmul.f32 %v11384_v5, %v11483_v45 }
  0x51   : > { %733 = vst.msk [vmem:[#allocation2 + $0x158] sm:$0xff] %vm688_vm1, %v16085_v2  ;;  %v1092_v44 = vadd.f32 %v11396_v6, %v1056_v56  ;;  %v1093_v43 = vadd.f32 %v11396_v6, %v1057_v63  ;;  %v1040_v47 = vmul.f32 %v11384_v5, %v11507_v53  ;;  %v1041_v41 = vmul.f32 %v11384_v5, %v11510_v54 }
  0x52   : > { %734 = vst.msk [vmem:[#allocation2 + $0x160] sm:$0x3] %vm691_vm2, %v16085_v2  ;;  %v887_v48 = vpack.c.bf16 %v871_v7, %v870_v40  ;;  %v846_v45 = vadd.f32 %v11379_v4, %v810_v22  ;;  %v1100_v49 = vadd.f32 %v11396_v6, %v1064_v10  ;;  %v1117_v53 = vmax.f32 %v1085_v38, 0.0  ;;  %v1171_v40 = vld [vmem:[#allocation2] sm:$0xff]  ;;  %v1236_v22 = vld [vmem:[#allocation2 + $0xa] sm:$0xff] }
  0x53   : > { %735 = vst.msk [vmem:[#allocation2 + $0x168] sm:$0xff] %vm688_vm1, %v16085_v2  ;;  %v1051_v54 = vmul.f32 %v11384_v5, %v11550_v13  ;;  %v1124_v50 = vmax.f32 %v1092_v44, 0.0  ;;  %v1058_v9 = vmul.f32 %v11384_v5, %v11556_v17  ;;  %v1059_v13 = vmul.f32 %v11384_v5, %v11559_v18  ;;  %v1203_v7 = vld [vmem:[#allocation2 + $0x1] sm:$0xff] }
  0x54   : > { %736 = vst.msk [vmem:[#allocation2 + $0x170] sm:$0xff] %vm688_vm1, %v16085_v2  ;;  %v1132_v17 = vmax.f32 %v1100_v49, 0.0  ;;  %v1066_v62 = vmul.f32 %v11384_v5, %v11562_v19  ;;  %v1653_v10 = vpack.c.bf16 %v1204_v20, %v1203_v7 }
  0x55   : > { %737 = vst.msk [vmem:[#allocation2 + $0x178] sm:$0x3] %vm691_vm2, %v16085_v2 }
  0x56   : > { %738 = vst.msk [vmem:[#allocation2 + $0x180] sm:$0xff] %vm688_vm1, %v16085_v2  ;;  %v1102_v19 = vadd.f32 %v11396_v6, %v1066_v62  ;;  %v11926_v62 = vld [vmem:[%s16174_s4] ss:$0 sm:$0xff] }
  0x57   : > { %10097 = vmatmul.msk.bf16.gmra.mxu1 %vm688_vm1, %v878_v14  ;;  %v863_v14 = vadd.f32 %v11379_v4, %v827_v11  ;;  %739 = vst.msk [vmem:[#allocation2 + $0x188] sm:$0xff] %vm688_vm1, %v16085_v2 }
  0x58   : > { %10101 = vmatmul.msk.bf16.gmra.mxu2 %vm688_vm1, %v882_v58  ;;  %v1069_v58 = vmul.f32 %v11384_v5, %v687_v36  ;;  %740 = vst.msk [vmem:[#allocation2 + $0x190] sm:$0x3] %vm691_vm2, %v16085_v2  ;;  %v1107_v36 = vmax.f32 %v11725_v39, 0.0  ;;  %v1050_v39 = vmul.f32 %v11384_v5, %v11547_v12  ;;  %v1077_v12 = vadd.f32 %v11396_v6, %v1041_v41 }
  0x59   : > { %10105 = vmatmul.msk.bf16.gmra.mxu3 %vm688_vm1, %v886_v61  ;;  %v663_v61 = vld [vmem:[%s11391_s27 + $0x38] sm:$0xff]  ;;  %741 = vst.msk [vmem:[#allocation2 + $0x198] sm:$0xff] %vm688_vm1, %v16085_v2  ;;  %v883_v46 = vpack.c.bf16 %v863_v14, %v862_v57  ;;  %v1094_v14 = vadd.f32 %v11396_v6, %v1058_v9  ;;  %s10019_s27 = sshll.u32 %s15879_s2, 4  ;;  %s10020_s27 = int_to_ptr.vmem [resolvable:$true] %s10019_s27 }
  0x5a   : > { %v11770_v8 = vadd.f32 %v11396_v6, %v1069_v58  ;;  %v1045_v11 = vmul.f32 %v11384_v5, %v663_v61  ;;  %v811_v23 = vmul.f32 %v11372_v3, %v663_v61  ;;  %742 = vst.msk [vmem:[#allocation2 + $0x1a0] sm:$0xff] %vm688_vm1, %v16085_v2  ;;  %v2290_v3 = vsel %vm941_vm0, %v10174_v29, 0 }
  0x5b   : > { %743 = vst.msk [vmem:[#allocation2 + $0x1a8] sm:$0x3] %vm691_vm2, %v16085_v2  ;;  %2299 = vmatpush.bf16.msra.mxu1 %v2290_v3  ;;  %v1086_v57 = vadd.f32 %v11396_v6, %v1050_v39  ;;  %v1109_v58 = vmax.f32 %v1077_v12, 0.0  ;;  %v1126_v16 = vmax.f32 %v1094_v14, 0.0 }
  0x5c   : > { %10093 = vmatmul.msk.bf16.gmra.mxu0 %vm688_vm1, %v874_v1  ;;  %v1044_v1 = vmul.f32 %v11384_v5, %v662_v59  ;;  %v11791_v32 = vadd.f32 %v11396_v6, %v1045_v11  ;;  %1155 = vst.msk [vmem:[#allocation2 + $0xd9] sm:$0xff] %vm688_vm1, %v1122_v30  ;;  %v847_v60 = vadd.f32 %v11379_v4, %v811_v23  ;;  %v1116_v30 = vmax.f32 %v1084_v31, 0.0 }
  0x5d   : > { %1156 = vst.msk [vmem:[#allocation2 + $0xe1] sm:$0xff] %vm688_vm1, %v1123_v37  ;;  %v1101_v37 = vadd.f32 %v11396_v6, %v1065_v25  ;;  %v1125_v4 = vmax.f32 %v1093_v43, 0.0  ;;  %v1095_v59 = vadd.f32 %v11396_v6, %v1059_v13  ;;  %v1118_v5 = vmax.f32 %v1086_v57, 0.0 }
  0x5e   : > { %v11780_v28 = vadd.f32 %v11396_v6, %v1044_v1  ;;  %1163 = vst.msk [vmem:[#allocation2 + $0x139] sm:$0xff] %vm688_vm1, %v1130_v51  ;;  %v1076_v51 = vadd.f32 %v11396_v6, %v1040_v47  ;;  %v875_v56 = vpack.c.bf16 %v847_v60, %v846_v45  ;;  %v1172_v1 = vld [vmem:[#allocation2 + $0x8] sm:$0xff]  ;;  %v1134_v11 = vmax.f32 %v1102_v19, 0.0 }
  0x5f   : > { %1164 = vst.msk [vmem:[#allocation2 + $0x141] sm:$0xff] %vm688_vm1, %v1131_v42  ;;  %v1133_v15 = vmax.f32 %v1101_v37, 0.0  ;;  %v1127_v63 = vmax.f32 %v1095_v59, 0.0  ;;  %v1235_v42 = vld [vmem:[#allocation2 + $0x2] sm:$0xff]  ;;  %v1110_v23 = vmax.f32 %v11699_v26, 0.0  ;;  %v1464_v29 = vpack.c.bf16 %v1172_v1, %v1171_v40 }
  0x60   : > { %1139 = vst.msk [vmem:[#allocation2 + $0x19] sm:$0xff] %vm688_vm1, %v1106_v24  ;;  %v1108_v18 = vmax.f32 %v1076_v51, 0.0  ;;  %v1111_v31 = vmax.f32 %v11702_v33, 0.0  ;;  %v1843_v3 = vpack.c.bf16 %v1236_v22, %v1235_v42  ;;  %v1120_v24 = vmax.f32 %v11728_v34, 0.0 }
  0x61   : > { %1140 = vst.msk [vmem:[#allocation2 + $0x21] sm:$0xff] %vm688_vm1, %v1107_v36  ;;  %v1128_v26 = vmax.f32 %v11739_v52, 0.0  ;;  %v1129_v33 = vmax.f32 %v11742_v55, 0.0  ;;  %v1136_v25 = vmax.f32 %v11763_v0, 0.0  ;;  %v1112_v52 = vmax.f32 %v11780_v28, 0.0 }
  0x62   : > { %1149 = vst.msk [vmem:[#allocation2 + $0x91] sm:$0xff] %vm688_vm1, %v1116_v30  ;;  %v1113_v55 = vmax.f32 %v11791_v32, 0.0 }
  0x63   : > { %1150 = vst.msk [vmem:[#allocation2 + $0x99] sm:$0xff] %vm688_vm1, %v1117_v53 }
  0x64   : > { %1157 = vst.msk [vmem:[#allocation2 + $0xf1] sm:$0xff] %vm688_vm1, %v1124_v50 }
  0x65   : > { %1158 = vst.msk [vmem:[#allocation2 + $0xf9] sm:$0xff] %vm688_vm1, %v1125_v4 }
  0x66   : > { %1165 = vst.msk [vmem:[#allocation2 + $0x151] sm:$0xff] %vm688_vm1, %v1132_v17 }
  0x67   : > { %10098 = vmatmul.msk.bf16.gmra.mxu1 %vm688_vm1, %v879_v21  ;;  %v1087_v21 = vadd.f32 %v11396_v6, %v1051_v54  ;;  %1166 = vst.msk [vmem:[#allocation2 + $0x159] sm:$0xff] %vm688_vm1, %v1133_v15  ;;  %v1135_v6 = vmax.f32 %v11678_v27, 0.0  ;;  %v1267_v36 = vld [vmem:[#allocation2 + $0x18] sm:$0xff]  ;;  %v1121_v27 = vmax.f32 %v11731_v35, 0.0  ;;  %v1137_v35 = vmax.f32 %v11770_v8, 0.0 }
  0x68   : > { %10102 = vmatmul.msk.bf16.gmra.mxu2 %vm688_vm1, %v883_v46  ;;  %1141 = vst.msk [vmem:[#allocation2 + $0x31] sm:$0xff] %vm688_vm1, %v1108_v18  ;;  %v1268_v38 = vld [vmem:[#allocation2 + $0x20] sm:$0xff] }
  0x69   : > { %10106 = vmatmul.msk.bf16.gmra.mxu3 %vm688_vm1, %v887_v48  ;;  %v1119_v61 = vmax.f32 %v1087_v21, 0.0  ;;  %1142 = vst.msk [vmem:[#allocation2 + $0x39] sm:$0xff] %vm688_vm1, %v1109_v58  ;;  %v2033_v34 = vpack.c.bf16 %v1268_v38, %v1267_v36  ;;  %v1205_v0 = vld [vmem:[#allocation2 + $0x19] sm:$0xff]  ;;  %v1206_v8 = vld [vmem:[#allocation2 + $0x21] sm:$0xff] }
  0x6a   : > { %1151 = vst.msk [vmem:[#allocation2 + $0xa9] sm:$0xff] %vm688_vm1, %v1118_v5  ;;  %v1237_v44 = vld [vmem:[#allocation2 + $0x1a] sm:$0xff]  ;;  %v1238_v43 = vld [vmem:[#allocation2 + $0x22] sm:$0xff]  ;;  %v11882_v47 = vpack.c.bf16 %v1206_v8, %v1205_v0 }
  0x6b   : > { %1152 = vst.msk [vmem:[#allocation2 + $0xb1] sm:$0xff] %vm688_vm1, %v1119_v61  ;;  %v11884_v28 = vpack.c.bf16 %v1238_v43, %v1237_v44  ;;  %v1275_v61 = vld [vmem:[#allocation2 + $0x78] sm:$0xff] }
  0x6c   : > { %10094 = vmatmul.msk.bf16.gmra.mxu0 %vm688_vm1, %v875_v56  ;;  %1159 = vst.msk [vmem:[#allocation2 + $0x109] sm:$0xff] %vm688_vm1, %v1126_v16  ;;  %v1276_v16 = vld [vmem:[#allocation2 + $0x80] sm:$0xff] }
  0x6d   : > { %1160 = vst.msk [vmem:[#allocation2 + $0x111] sm:$0xff] %vm688_vm1, %v1127_v63  ;;  %v11941_v63 = vpack.c.bf16 %v1276_v16, %v1275_v61 }
  0x6e   : > { %1167 = vst.msk [vmem:[#allocation2 + $0x169] sm:$0xff] %vm688_vm1, %v1134_v11 }
  0x6f   : > { %1168 = vst.msk [vmem:[#allocation2 + $0x171] sm:$0xff] %vm688_vm1, %v1135_v6  ;;  %v1269_v46 = vld [vmem:[#allocation2 + $0x30] sm:$0xff]  ;;  %v1213_v6 = vld [vmem:[#allocation2 + $0x79] sm:$0xff] }
  0x70   : > { %1143 = vst.msk [vmem:[#allocation2 + $0x49] sm:$0xff] %vm688_vm1, %v1110_v23  ;;  %v1270_v32 = vld [vmem:[#allocation2 + $0x38] sm:$0xff] }
  0x71   : > { %1144 = vst.msk [vmem:[#allocation2 + $0x51] sm:$0xff] %vm688_vm1, %v1111_v31  ;;  %v11891_v41 = vpack.c.bf16 %v1270_v32, %v1269_v46  ;;  %v1207_v48 = vld [vmem:[#allocation2 + $0x31] sm:$0xff]  ;;  %v1208_v45 = vld [vmem:[#allocation2 + $0x39] sm:$0xff] }
  0x72   : > { %1153 = vst.msk [vmem:[#allocation2 + $0xc1] sm:$0xff] %vm688_vm1, %v1120_v24  ;;  %v1239_v60 = vld [vmem:[#allocation2 + $0x32] sm:$0xff]  ;;  %v1240_v30 = vld [vmem:[#allocation2 + $0x3a] sm:$0xff]  ;;  %v11895_v49 = vpack.c.bf16 %v1208_v45, %v1207_v48 }
  0x73   : > { %1154 = vst.msk [vmem:[#allocation2 + $0xc9] sm:$0xff] %vm688_vm1, %v1121_v27  ;;  %v11897_v39 = vpack.c.bf16 %v1240_v30, %v1239_v60  ;;  %v1245_v31 = vld [vmem:[#allocation2 + $0x7a] sm:$0xff]  ;;  %v1215_v48 = vld [vmem:[#allocation2 + $0x91] sm:$0xff] }
  0x74   : > { %1161 = vst.msk [vmem:[#allocation2 + $0x121] sm:$0xff] %vm688_vm1, %v1128_v26  ;;  %v1216_v60 = vld [vmem:[#allocation2 + $0x99] sm:$0xff] }
  0x75   : > { %1162 = vst.msk [vmem:[#allocation2 + $0x129] sm:$0xff] %vm688_vm1, %v1129_v33  ;;  %v1247_v30 = vld [vmem:[#allocation2 + $0x92] sm:$0xff] }
  0x76   : > { %1169 = vst.msk [vmem:[#allocation2 + $0x181] sm:$0xff] %vm688_vm1, %v1136_v25  ;;  %v1277_v25 = vld [vmem:[#allocation2 + $0x90] sm:$0xff] }
  0x77   : > { %10107 = vmatmul.msk.bf16.vlgmr.msrb.gmra.mxu1 %vm688_vm1, %v1464_v29  ;;  %1170 = vst.msk [vmem:[#allocation2 + $0x189] sm:$0xff] %vm688_vm1, %v1137_v35  ;;  %v1271_v53 = vld [vmem:[#allocation2 + $0x48] sm:$0xff]  ;;  %v1278_v35 = vld [vmem:[#allocation2 + $0x98] sm:$0xff] }
  0x78   : > { %10124 = vmatmul.msk.bf16.vlgmr.msrb.gmra.mxu2 %vm688_vm1, %v1653_v10  ;;  %1145 = vst.msk [vmem:[#allocation2 + $0x61] sm:$0xff] %vm688_vm1, %v1112_v52  ;;  %v1272_v37 = vld [vmem:[#allocation2 + $0x50] sm:$0xff]  ;;  %v1214_v29 = vld [vmem:[#allocation2 + $0x81] sm:$0xff]  ;;  %v11977_v52 = vpack.c.bf16 %v1278_v35, %v1277_v25 }
  0x79   : > { %10141 = vmatmul.msk.bf16.vlgmr.msrb.gmra.mxu3 %vm688_vm1, %v1843_v3  ;;  %1146 = vst.msk [vmem:[#allocation2 + $0x69] sm:$0xff] %vm688_vm1, %v1113_v55  ;;  %v11905_v54 = vpack.c.bf16 %v1272_v37, %v1271_v53  ;;  %v1209_v50 = vld [vmem:[#allocation2 + $0x49] sm:$0xff]  ;;  %v1210_v4 = vld [vmem:[#allocation2 + $0x51] sm:$0xff]  ;;  %v11964_v26 = vpack.c.bf16 %v1214_v29, %v1213_v6  ;;  %v1248_v53 = vld [vmem:[#allocation2 + $0x9a] sm:$0xff] }
  0x7a   : > { %v1241_v51 = vld [vmem:[#allocation2 + $0x4a] sm:$0xff]  ;;  %v1242_v9 = vld [vmem:[#allocation2 + $0x52] sm:$0xff]  ;;  %v11909_v12 = vpack.c.bf16 %v1210_v4, %v1209_v50  ;;  %v1246_v10 = vld [vmem:[#allocation2 + $0x82] sm:$0xff] }
  0x7b   : > { %v11911_v13 = vpack.c.bf16 %v1242_v9, %v1241_v51  ;;  %v11966_v33 = vpack.c.bf16 %v1246_v10, %v1245_v31  ;;  %v1217_v29 = vld [vmem:[#allocation2 + $0xa9] sm:$0xff]  ;;  %v10191_v31 = vld [vmem:[%s16173_s7 + $0x5] sm:$0x1] }
  0x7c   : > { %10158 = vmatmul.msk.bf16.vlgmr.msrb.gmra.mxu0 %vm688_vm1, %v2033_v34  ;;  %v2480_v25 = vsel %vm941_vm0, %v10191_v31, 0 }
  0x7d   : > { %2489 = vmatpush.bf16.msra.mxu2 %v2480_v25  ;;  %v1251_v25 = vld [vmem:[#allocation2 + $0xc2] sm:$0xff] }
  0x7f   : > { %v1273_v56 = vld [vmem:[#allocation2 + $0x60] sm:$0xff] }
  0x80   : > { %v1274_v17 = vld [vmem:[#allocation2 + $0x68] sm:$0xff] }
  0x81   : > { %v11919_v57 = vpack.c.bf16 %v1274_v17, %v1273_v56  ;;  %v1211_v15 = vld [vmem:[#allocation2 + $0x61] sm:$0xff]  ;;  %v1212_v21 = vld [vmem:[#allocation2 + $0x69] sm:$0xff]  ;;  %v12000_v56 = vpack.c.bf16 %v1216_v60, %v1215_v48  ;;  %v12002_v17 = vpack.c.bf16 %v1248_v53, %v1247_v30 }
  0x82   : > { %v1243_v18 = vld [vmem:[#allocation2 + $0x62] sm:$0xff]  ;;  %v1244_v14 = vld [vmem:[#allocation2 + $0x6a] sm:$0xff]  ;;  %v11928_v59 = vpack.c.bf16 %v1212_v21, %v1211_v15 }
  0x83   : > { %v11930_v5 = vpack.c.bf16 %v1244_v14, %v1243_v18  ;;  %v1279_v21 = vld [vmem:[#allocation2 + $0xa8] sm:$0xff]  ;;  %v1280_v18 = vld [vmem:[#allocation2 + $0xb0] sm:$0xff] }
  0x84   : > { %v12013_v14 = vpack.c.bf16 %v1280_v18, %v1279_v21 }
  0x87   : > { %10108 = vmatmul.msk.bf16.gmra.mxu1 %vm688_vm1, %v2033_v34 }
  0x88   : > { %10125 = vmatmul.msk.bf16.gmra.mxu2 %vm688_vm1, %v11882_v47 }
  0x89   : > { %10142 = vmatmul.msk.bf16.gmra.mxu3 %vm688_vm1, %v11884_v28 }
  0x8c   : > { %10159 = vmatmul.msk.bf16.gmra.mxu0 %vm688_vm1, %v11891_v41 }
  0x97   : > { %10109 = vmatmul.msk.bf16.gmra.mxu1 %vm688_vm1, %v11891_v41 }
  0x98   : > { %10126 = vmatmul.msk.bf16.gmra.mxu2 %vm688_vm1, %v11895_v49 }
  0x99   : > { %10143 = vmatmul.msk.bf16.gmra.mxu3 %vm688_vm1, %v11897_v39 }
  0x9c   : > { %10160 = vmatmul.msk.bf16.gmra.mxu0 %vm688_vm1, %v11905_v54 }
  0xa7   : > { %10110 = vmatmul.msk.bf16.gmra.mxu1 %vm688_vm1, %v11905_v54 }
  0xa8   : > { %10127 = vmatmul.msk.bf16.gmra.mxu2 %vm688_vm1, %v11909_v12 }
  0xa9   : > { %10144 = vmatmul.msk.bf16.gmra.mxu3 %vm688_vm1, %v11911_v13 }
  0xac   : > { %10161 = vmatmul.msk.bf16.gmra.mxu0 %vm688_vm1, %v11919_v57 }
  0xb4   : > { %v974_v58 = vpop.f32.mrf.mxu1 }
  0xb5   : > { %v11933_v19 = vadd.f32 %v11926_v62, %v974_v58 }
  0xb7   : > { %16175 = vst [vmem:[#allocation14_spill] sm:$0xff] %v11933_v19  ;;  %10111 = vmatmul.msk.bf16.gmra.mxu1 %vm688_vm1, %v11919_v57  ;;  %v1260_v19 = vld [vmem:[#allocation2 + $0x12a] sm:$0xff] }
  0xb8   : > { %10128 = vmatmul.msk.bf16.gmra.mxu2 %vm688_vm1, %v11928_v59 }
  0xb9   : > { %10145 = vmatmul.msk.bf16.gmra.mxu3 %vm688_vm1, %v11930_v5  ;;  %v11943_v40 = vpop.f32.mrf.mxu0 }
  0xba   : > { %16176 = vst [vmem:[#allocation15_spill] sm:$0xff] %v11943_v40 }
  0xbb   : > { %v994_v1 = vpop.f32.mrf.mxu2 }
  0xbc   : > { %v1014_v7 = vpop.f32.mrf.mxu3  ;;  %v11946_v11 = vadd.f32 %v11926_v62, %v994_v1  ;;  %v976_v20 = vpop.f32.mrf.mxu1  ;;  %10162 = vmatmul.msk.bf16.gmra.mxu0 %vm688_vm1, %v11941_v63 }
  0xbd   : > { %v11949_v42 = vadd.f32 %v11926_v62, %v1014_v7  ;;  %v11954_v22 = vadd.f32 %v11926_v62, %v976_v20 }
  0xbe   : > { %16177 = vst [vmem:[#allocation16_spill] sm:$0xff] %v11946_v11 }
  0xbf   : > { %16178 = vst [vmem:[#allocation17_spill] sm:$0xff] %v11949_v42  ;;  %v1253_v42 = vld [vmem:[#allocation2 + $0xda] sm:$0xff] }
  0xc0   : > { %16179 = vst [vmem:[#allocation18_spill] sm:$0xff] %v11954_v22  ;;  %v1290_v22 = vld [vmem:[#allocation2 + $0x128] sm:$0xff] }
  0xc1   : > { %v11956_v23 = vpop.f32.mrf.mxu0 }
  0xc2   : > { %16180 = vst [vmem:[#allocation19_spill] sm:$0xff] %v11956_v23 }
  0xc3   : > { %v996_v3 = vpop.f32.mrf.mxu2 }
  0xc4   : > { %v1016_v24 = vpop.f32.mrf.mxu3  ;;  %v11959_v36 = vadd.f32 %v11926_v62, %v996_v3  ;;  %v979_v38 = vpop.f32.mrf.mxu1  ;;  %v1218_v3 = vld [vmem:[#allocation2 + $0xb1] sm:$0xff] }
  0xc5   : > { %v11962_v27 = vadd.f32 %v11926_v62, %v1016_v24  ;;  %v11969_v34 = vadd.f32 %v11926_v62, %v979_v38  ;;  %v1249_v24 = vld [vmem:[#allocation2 + $0xaa] sm:$0xff]  ;;  %v1250_v38 = vld [vmem:[#allocation2 + $0xb2] sm:$0xff]  ;;  %v12040_v60 = vpack.c.bf16 %v1218_v3, %v1217_v29  ;;  %v1219_v3 = vld [vmem:[#allocation2 + $0xc1] sm:$0xff] }
  0xc6   : > { %16181 = vst [vmem:[#allocation20_spill] sm:$0xff] %v11959_v36  ;;  %v12042_v30 = vpack.c.bf16 %v1250_v38, %v1249_v24  ;;  %v1220_v38 = vld [vmem:[#allocation2 + $0xc9] sm:$0xff] }
  0xc7   : > { %16182 = vst [vmem:[#allocation21_spill] sm:$0xff] %v11962_v27  ;;  %10112 = vmatmul.msk.bf16.gmra.mxu1 %vm688_vm1, %v11941_v63  ;;  %v1222_v27 = vld [vmem:[#allocation2 + $0xe1] sm:$0xff] }
  0xc8   : > { %16183 = vst [vmem:[#allocation22_spill] sm:$0xff] %v11969_v34  ;;  %10129 = vmatmul.msk.bf16.gmra.mxu2 %vm688_vm1, %v11964_v26 }
  0xc9   : > { %10146 = vmatmul.msk.bf16.gmra.mxu3 %vm688_vm1, %v11966_v33  ;;  %v11979_v55 = vpop.f32.mrf.mxu0 }
  0xca   : > { %16184 = vst [vmem:[#allocation23_spill] sm:$0xff] %v11979_v55 }
  0xcb   : > { %v999_v0 = vpop.f32.mrf.mxu2 }
  0xcc   : > { %v1019_v8 = vpop.f32.mrf.mxu3  ;;  %v11982_v44 = vadd.f32 %v11926_v62, %v999_v0  ;;  %v981_v43 = vpop.f32.mrf.mxu1  ;;  %10163 = vmatmul.msk.bf16.gmra.mxu0 %vm688_vm1, %v11977_v52 }
  0xcd   : > { %v11985_v46 = vadd.f32 %v11926_v62, %v1019_v8  ;;  %v11990_v32 = vadd.f32 %v11926_v62, %v981_v43 }
  0xce   : > { %16185 = vst [vmem:[#allocation24_spill] sm:$0xff] %v11982_v44  ;;  %v1256_v44 = vld [vmem:[#allocation2 + $0xfa] sm:$0xff] }
  0xcf   : > { %16186 = vst [vmem:[#allocation25_spill] sm:$0xff] %v11985_v46 }
  0xd0   : > { %16187 = vst [vmem:[#allocation26_spill] sm:$0xff] %v11990_v32 }
  0xd1   : > { %v11992_v45 = vpop.f32.mrf.mxu0 }
  0xd2   : > { %16188 = vst [vmem:[#allocation27_spill] sm:$0xff] %v11992_v45  ;;  %v1262_v45 = vld [vmem:[#allocation2 + $0x142] sm:$0xff] }
  0xd3   : > { %v1001_v37 = vpop.f32.mrf.mxu2 }
  0xd4   : > { %v1021_v50 = vpop.f32.mrf.mxu3  ;;  %v11995_v4 = vadd.f32 %v11926_v62, %v1001_v37  ;;  %v984_v51 = vpop.f32.mrf.mxu1  ;;  %v1281_v37 = vld [vmem:[#allocation2 + $0xc0] sm:$0xff] }
  0xd5   : > { %v11998_v9 = vadd.f32 %v11926_v62, %v1021_v50  ;;  %v12005_v15 = vadd.f32 %v11926_v62, %v984_v51  ;;  %v1282_v50 = vld [vmem:[#allocation2 + $0xc8] sm:$0xff] }
  0xd6   : > { %16189 = vst [vmem:[#allocation28_spill] sm:$0xff] %v11995_v4  ;;  %v12053_v51 = vpack.c.bf16 %v1282_v50, %v1281_v37  ;;  %v1286_v4 = vld [vmem:[#allocation2 + $0xf8] sm:$0xff] }
  0xd7   : > { %16190 = vst [vmem:[#allocation29_spill] sm:$0xff] %v11998_v9  ;;  %10113 = vmatmul.msk.bf16.gmra.mxu1 %vm688_vm1, %v11977_v52  ;;  %v1221_v9 = vld [vmem:[#allocation2 + $0xd9] sm:$0xff] }
  0xd8   : > { %16191 = vst [vmem:[#allocation30_spill] sm:$0xff] %v12005_v15  ;;  %10130 = vmatmul.msk.bf16.gmra.mxu2 %vm688_vm1, %v12000_v56 }
  0xd9   : > { %10147 = vmatmul.msk.bf16.gmra.mxu3 %vm688_vm1, %v12002_v17  ;;  %v12015_v58 = vpop.f32.mrf.mxu0 }
  0xda   : > { %16192 = vst [vmem:[#allocation31_spill] sm:$0xff] %v12015_v58  ;;  %v1292_v58 = vld [vmem:[#allocation2 + $0x140] sm:$0xff] }
  0xdb   : > { %v1004_v61 = vpop.f32.mrf.mxu2 }
  0xdc   : > { %v1024_v16 = vpop.f32.mrf.mxu3  ;;  %v12018_v1 = vadd.f32 %v11926_v62, %v1004_v61  ;;  %v986_v7 = vpop.f32.mrf.mxu1  ;;  %10164 = vmatmul.msk.bf16.gmra.mxu0 %vm688_vm1, %v12013_v14 }
  0xdd   : > { %v12021_v20 = vadd.f32 %v11926_v62, %v1024_v16  ;;  %v12026_v6 = vadd.f32 %v11926_v62, %v986_v7 }
  0xde   : > { %16193 = vst [vmem:[#allocation32_spill] sm:$0xff] %v12018_v1  ;;  %v12099_v1 = vpack.c.bf16 %v1222_v27, %v1221_v9 }
  0xdf   : > { %16194 = vst [vmem:[#allocation33_spill] sm:$0xff] %v12021_v20 }
  0xe0   : > { %16195 = vst [vmem:[#allocation34_spill] sm:$0xff] %v12026_v6  ;;  %v1258_v6 = vld [vmem:[#allocation2 + $0x112] sm:$0xff] }
  0xe1   : > { %v12031_v10 = vpop.f32.mrf.mxu0 }
  0xe2   : > { %16196 = vst [vmem:[#allocation35_spill] sm:$0xff] %v12031_v10 }
  0xe3   : > { %v1006_v35 = vpop.f32.mrf.mxu2 }
  0xe4   : > { %v1026_v0 = vpop.f32.mrf.mxu3  ;;  %v12035_v8 = vadd.f32 %v11926_v62, %v1006_v35  ;;  %v989_v43 = vpop.f32.mrf.mxu1  ;;  %v1252_v35 = vld [vmem:[#allocation2 + $0xca] sm:$0xff] }
  0xe5   : > { %v12038_v48 = vadd.f32 %v11926_v62, %v1026_v0  ;;  %v12045_v53 = vadd.f32 %v11926_v62, %v989_v43  ;;  %v12078_v2 = vpack.c.bf16 %v1252_v35, %v1251_v25 }
  0xe6   : > { %16197 = vst [vmem:[#allocation36_spill] sm:$0xff] %v12035_v8 }
  0xe7   : > { %16198 = vst [vmem:[#allocation37_spill] sm:$0xff] %v12038_v48  ;;  %10114 = vmatmul.msk.bf16.gmra.mxu1 %vm688_vm1, %v12013_v14  ;;  %v12083_v48 = vld [vmem:[%s16061_s8] ss:$0 sm:$0xff] }
  0xe8   : > { %16199 = vst [vmem:[#allocation38_spill] sm:$0xff] %v12045_v53  ;;  %10131 = vmatmul.msk.bf16.gmra.mxu2 %vm688_vm1, %v12040_v60  ;;  %v1288_v53 = vld [vmem:[#allocation2 + $0x110] sm:$0xff] }
  0xe9   : > { %10148 = vmatmul.msk.bf16.gmra.mxu3 %vm688_vm1, %v12042_v30  ;;  %v12055_v21 = vpop.f32.mrf.mxu0 }
  0xea   : > { %16200 = vst [vmem:[#allocation39_spill] sm:$0xff] %v12055_v21 }
  0xeb   : > { %v1009_v18 = vpop.f32.mrf.mxu2 }
  0xec   : > { %v1029_v61 = vpop.f32.mrf.mxu3  ;;  %v12058_v16 = vadd.f32 %v11926_v62, %v1009_v18  ;;  %v991_v7 = vpop.f32.mrf.mxu1  ;;  %10165 = vmatmul.msk.bf16.gmra.mxu0 %vm688_vm1, %v12053_v51 }
  0xed   : > { %v12061_v29 = vadd.f32 %v11926_v62, %v1029_v61  ;;  %v12066_v31 = vadd.f32 %v11926_v62, %v991_v7  ;;  %v12076_v61 = vpack.c.bf16 %v1220_v38, %v1219_v3  ;;  %v1283_v7 = vld [vmem:[#allocation2 + $0xd8] sm:$0xff] }
  0xee   : > { %16201 = vst [vmem:[#allocation40_spill] sm:$0xff] %v12058_v16 }
  0xef   : > { %16202 = vst [vmem:[#allocation41_spill] sm:$0xff] %v12061_v29  ;;  %v1284_v29 = vld [vmem:[#allocation2 + $0xe0] sm:$0xff] }
  0xf0   : > { %16203 = vst [vmem:[#allocation42_spill] sm:$0xff] %v12066_v31 }
  0xf1   : > { %v12068_v24 = vpop.f32.mrf.mxu0 }
  0xf2   : > { %16204 = vst [vmem:[#allocation43_spill] sm:$0xff] %v12068_v24 }
  0xf3   : > { %v1011_v0 = vpop.f32.mrf.mxu2 }
  0xf4   : > { %v1031_v43 = vpop.f32.mrf.mxu3  ;;  %v12071_v37 = vadd.f32 %v11926_v62, %v1011_v0  ;;  %v1541_v18 = vpop.f32.mrf.mxu1 }
  0xf5   : > { %v12074_v50 = vadd.f32 %v11926_v62, %v1031_v43  ;;  %v12091_v62 = vpack.c.bf16 %v1284_v29, %v1283_v7  ;;  %v1621_v38 = vadd.f32 %v12083_v48, %v1541_v18 }
  0xf6   : > { %16205 = vst [vmem:[#allocation44_spill] sm:$0xff] %v12071_v37  ;;  %v1254_v37 = vld [vmem:[#allocation2 + $0xe2] sm:$0xff] }
  0xf7   : > { %16206 = vst [vmem:[#allocation45_spill] sm:$0xff] %v12074_v50  ;;  %10115 = vmatmul.msk.bf16.gmra.mxu1 %vm688_vm1, %v12053_v51 }
  0xf8   : > { %10132 = vmatmul.msk.bf16.gmra.mxu2 %vm688_vm1, %v12076_v61 }
  0xf9   : > { %10149 = vmatmul.msk.bf16.gmra.mxu3 %vm688_vm1, %v12078_v2  ;;  %v2111_v3 = vpop.f32.mrf.mxu0 }
  0xfb   : > { %v1731_v25 = vpop.f32.mrf.mxu2 }
  0xfc   : > { %v1921_v35 = vpop.f32.mrf.mxu3  ;;  %v1811_v0 = vadd.f32 %v1731_v25, %v1621_v38  ;;  %v1543_v43 = vpop.f32.mrf.mxu1  ;;  %10166 = vmatmul.msk.bf16.gmra.mxu0 %vm688_vm1, %v12091_v62  ;;  %v12101_v38 = vpack.c.bf16 %v1254_v37, %v1253_v42  ;;  %v1285_v25 = vld [vmem:[#allocation2 + $0xf0] sm:$0xff] }
  0xfd   : > { %v1622_v29 = vadd.f32 %v12083_v48, %v1543_v43 }
  0xfe   : > { %v2001_v50 = vadd.f32 %v1921_v35, %v1811_v0 }
 0x100   : > { %v12096_v20 = vadd.f32 %v2111_v3, %v2001_v50  ;;  %v12111_v3 = vpack.c.bf16 %v1286_v4, %v1285_v25 }
 0x101   : > { %v2113_v46 = vpop.f32.mrf.mxu0 }
 0x103   : > { %v1733_v7 = vpop.f32.mrf.mxu2 }
 0x104   : > { %v1923_v16 = vpop.f32.mrf.mxu3  ;;  %v1812_v18 = vadd.f32 %v1733_v7, %v1622_v29  ;;  %v1546_v8 = vpop.f32.mrf.mxu1  ;;  %v1223_v29 = vld [vmem:[#allocation2 + $0xf1] sm:$0xff] }
 0x105   : > { %v1623_v42 = vadd.f32 %v12083_v48, %v1546_v8 }
 0x106   : > { %v2002_v35 = vadd.f32 %v1923_v16, %v1812_v18  ;;  %v1224_v18 = vld [vmem:[#allocation2 + $0xf9] sm:$0xff] }
 0x107   : > { %10116 = vmatmul.msk.bf16.gmra.mxu1 %vm688_vm1, %v12091_v62  ;;  %v12119_v31 = vpack.c.bf16 %v1224_v18, %v1223_v29 }
 0x108   : > { %v12105_v50 = vadd.f32 %v2113_v46, %v2002_v35  ;;  %10133 = vmatmul.msk.bf16.gmra.mxu2 %vm688_vm1, %v12099_v1  ;;  %v1255_v35 = vld [vmem:[#allocation2 + $0xf2] sm:$0xff] }
 0x109   : > { %10150 = vmatmul.msk.bf16.gmra.mxu3 %vm688_vm1, %v12101_v38  ;;  %v2116_v27 = vpop.f32.mrf.mxu0 }
 0x10b   : > { %v1736_v9 = vpop.f32.mrf.mxu2 }
 0x10c   : > { %v1926_v37 = vpop.f32.mrf.mxu3  ;;  %v1813_v0 = vadd.f32 %v1736_v9, %v1623_v42  ;;  %v1548_v16 = vpop.f32.mrf.mxu1  ;;  %10167 = vmatmul.msk.bf16.gmra.mxu0 %vm688_vm1, %v12111_v3  ;;  %v12121_v42 = vpack.c.bf16 %v1256_v44, %v1255_v35  ;;  %v1287_v9 = vld [vmem:[#allocation2 + $0x108] sm:$0xff] }
 0x10d   : > { %v1624_v4 = vadd.f32 %v12083_v48, %v1548_v16 }
 0x10e   : > { %v2003_v46 = vadd.f32 %v1926_v37, %v1813_v0  ;;  %v12131_v0 = vpack.c.bf16 %v1288_v53, %v1287_v9 }
 0x110   : > { %v12116_v43 = vadd.f32 %v2116_v27, %v2003_v46 }
 0x111   : > { %v2118_v7 = vpop.f32.mrf.mxu0 }
 0x113   : > { %v1738_v25 = vpop.f32.mrf.mxu2 }
 0x114   : > { %v1928_v36 = vpop.f32.mrf.mxu3  ;;  %v1814_v8 = vadd.f32 %v1738_v25, %v1624_v4  ;;  %v1551_v11 = vpop.f32.mrf.mxu1  ;;  %v1225_v4 = vld [vmem:[#allocation2 + $0x109] sm:$0xff] }
 0x115   : > { %v1625_v44 = vadd.f32 %v12083_v48, %v1551_v11 }
 0x116   : > { %v2004_v37 = vadd.f32 %v1928_v36, %v1814_v8  ;;  %v1226_v8 = vld [vmem:[#allocation2 + $0x111] sm:$0xff] }
 0x117   : > { %10117 = vmatmul.msk.bf16.gmra.mxu1 %vm688_vm1, %v12111_v3  ;;  %v12139_v34 = vpack.c.bf16 %v1226_v8, %v1225_v4 }
 0x118   : > { %v12125_v27 = vadd.f32 %v2118_v7, %v2004_v37  ;;  %10134 = vmatmul.msk.bf16.gmra.mxu2 %vm688_vm1, %v12119_v31  ;;  %v1257_v37 = vld [vmem:[#allocation2 + $0x10a] sm:$0xff] }
 0x119   : > { %10151 = vmatmul.msk.bf16.gmra.mxu3 %vm688_vm1, %v12121_v42  ;;  %v2121_v16 = vpop.f32.mrf.mxu0 }
 0x11b   : > { %v1741_v46 = vpop.f32.mrf.mxu2 }
 0x11c   : > { %v1931_v29 = vpop.f32.mrf.mxu3  ;;  %v1815_v18 = vadd.f32 %v1741_v46, %v1625_v44  ;;  %v1553_v36 = vpop.f32.mrf.mxu1  ;;  %10168 = vmatmul.msk.bf16.gmra.mxu0 %vm688_vm1, %v12131_v0  ;;  %v12141_v44 = vpack.c.bf16 %v1258_v6, %v1257_v37  ;;  %v1289_v46 = vld [vmem:[#allocation2 + $0x120] sm:$0xff] }
 0x11d   : > { %v1626_v53 = vadd.f32 %v12083_v48, %v1553_v36 }
 0x11e   : > { %v2005_v7 = vadd.f32 %v1931_v29, %v1815_v18  ;;  %v12151_v18 = vpack.c.bf16 %v1290_v22, %v1289_v46 }
 0x120   : > { %v12136_v35 = vadd.f32 %v2121_v16, %v2005_v7 }
 0x121   : > { %v2123_v25 = vpop.f32.mrf.mxu0 }
 0x123   : > { %v1743_v9 = vpop.f32.mrf.mxu2 }
 0x124   : > { %v1933_v15 = vpop.f32.mrf.mxu3  ;;  %v1816_v11 = vadd.f32 %v1743_v9, %v1626_v53  ;;  %v1556_v32 = vpop.f32.mrf.mxu1  ;;  %v1227_v53 = vld [vmem:[#allocation2 + $0x121] sm:$0xff] }
 0x125   : > { %v1627_v6 = vadd.f32 %v12083_v48, %v1556_v32 }
 0x126   : > { %v2006_v29 = vadd.f32 %v1933_v15, %v1816_v11  ;;  %v1228_v11 = vld [vmem:[#allocation2 + $0x129] sm:$0xff] }
 0x127   : > { %10118 = vmatmul.msk.bf16.gmra.mxu1 %vm688_vm1, %v12131_v0  ;;  %v12159_v10 = vpack.c.bf16 %v1228_v11, %v1227_v53 }
 0x128   : > { %v12145_v16 = vadd.f32 %v2123_v25, %v2006_v29  ;;  %10135 = vmatmul.msk.bf16.gmra.mxu2 %vm688_vm1, %v12139_v34  ;;  %v1259_v29 = vld [vmem:[#allocation2 + $0x122] sm:$0xff] }
 0x129   : > { %10152 = vmatmul.msk.bf16.gmra.mxu3 %vm688_vm1, %v12141_v44  ;;  %v2126_v36 = vpop.f32.mrf.mxu0 }
 0x12b   : > { %v1746_v7 = vpop.f32.mrf.mxu2 }
 0x12c   : > { %v1936_v4 = vpop.f32.mrf.mxu3  ;;  %v1817_v8 = vadd.f32 %v1746_v7, %v1627_v6  ;;  %v1558_v15 = vpop.f32.mrf.mxu1  ;;  %10169 = vmatmul.msk.bf16.gmra.mxu0 %vm688_vm1, %v12151_v18  ;;  %v12161_v6 = vpack.c.bf16 %v1260_v19, %v1259_v29  ;;  %v1291_v7 = vld [vmem:[#allocation2 + $0x138] sm:$0xff] }
 0x12d   : > { %v1628_v22 = vadd.f32 %v12083_v48, %v1558_v15 }
 0x12e   : > { %v2007_v25 = vadd.f32 %v1936_v4, %v1817_v8  ;;  %v12171_v8 = vpack.c.bf16 %v1292_v58, %v1291_v7 }
 0x130   : > { %v12156_v37 = vadd.f32 %v2126_v36, %v2007_v25  ;;  %16208 = vst [vmem:[#allocation47_spill] sm:$0xff] %v12171_v8 }
 0x131   : > { %v2128_v9 = vpop.f32.mrf.mxu0 }
 0x133   : > { %v1748_v46 = vpop.f32.mrf.mxu2 }
 0x134   : > { %v1938_v24 = vpop.f32.mrf.mxu3  ;;  %v1818_v32 = vadd.f32 %v1748_v46, %v1628_v22  ;;  %v1561_v21 = vpop.f32.mrf.mxu1  ;;  %v1229_v22 = vld [vmem:[#allocation2 + $0x139] sm:$0xff] }
 0x135   : > { %v1629_v19 = vadd.f32 %v12083_v48, %v1561_v21 }
 0x136   : > { %v2008_v4 = vadd.f32 %v1938_v24, %v1818_v32  ;;  %v1230_v32 = vld [vmem:[#allocation2 + $0x141] sm:$0xff] }
 0x137   : > { %10119 = vmatmul.msk.bf16.gmra.mxu1 %vm688_vm1, %v12151_v18  ;;  %v12179_v40 = vpack.c.bf16 %v1230_v32, %v1229_v22 }
 0x138   : > { %v12165_v36 = vadd.f32 %v2128_v9, %v2008_v4  ;;  %10136 = vmatmul.msk.bf16.gmra.mxu2 %vm688_vm1, %v12159_v10  ;;  %v1261_v4 = vld [vmem:[#allocation2 + $0x13a] sm:$0xff] }
 0x139   : > { %10153 = vmatmul.msk.bf16.gmra.mxu3 %vm688_vm1, %v12161_v6  ;;  %v2131_v15 = vpop.f32.mrf.mxu0  ;;  %16210 = vst [vmem:[#allocation49_spill] sm:$0xff] %v12179_v40 }
 0x13a   : > { %16207 = vst [vmem:[#allocation46_spill] sm:$0xff] %v12165_v36  ;;  %v1294_v36 = vld [vmem:[#allocation2 + $0x158] sm:$0xff] }
 0x13b   : > { %v1751_v25 = vpop.f32.mrf.mxu2 }
 0x13c   : > { %v1941_v53 = vpop.f32.mrf.mxu3  ;;  %v1819_v11 = vadd.f32 %v1751_v25, %v1629_v19  ;;  %v1563_v24 = vpop.f32.mrf.mxu1  ;;  %10170 = vmatmul.msk.bf16.gmra.mxu0 %vm688_vm1, %v12171_v8  ;;  %v12181_v19 = vpack.c.bf16 %v1262_v45, %v1261_v4  ;;  %v1293_v25 = vld [vmem:[#allocation2 + $0x150] sm:$0xff]  ;;  %v10208_v4 = vld [vmem:[%s16173_s7 + $0x6] sm:$0x1] }
 0x13d   : > { %v1630_v58 = vadd.f32 %v12083_v48, %v1563_v24 }
 0x13e   : > { %v2009_v9 = vadd.f32 %v1941_v53, %v1819_v11  ;;  %16211 = vst [vmem:[#allocation50_spill] sm:$0xff] %v12181_v19  ;;  %v12191_v11 = vpack.c.bf16 %v1294_v36, %v1293_v25  ;;  %v1231_v36 = vld [vmem:[#allocation2 + $0x151] sm:$0xff] }
 0x13f   : > { %v1263_v25 = vld [vmem:[#allocation2 + $0x152] sm:$0xff] }
 0x140   : > { %v12176_v29 = vadd.f32 %v2131_v15, %v2009_v9  ;;  %16213 = vst [vmem:[#allocation52_spill] sm:$0xff] %v12191_v11 }
 0x141   : > { %v2133_v46 = vpop.f32.mrf.mxu0 }
 0x142   : > { %16209 = vst [vmem:[#allocation48_spill] sm:$0xff] %v12176_v29 }
 0x143   : > { %v1753_v7 = vpop.f32.mrf.mxu2 }
 0x144   : > { %v1943_v55 = vpop.f32.mrf.mxu3  ;;  %v1820_v21 = vadd.f32 %v1753_v7, %v1630_v58  ;;  %v1566_v23 = vpop.f32.mrf.mxu1  ;;  %v2670_v58 = vsel %vm941_vm0, %v10208_v4, 0  ;;  %v1296_v4 = vld [vmem:[#allocation2 + $0x170] sm:$0xff] }
 0x145   : > { %v1631_v45 = vadd.f32 %v12083_v48, %v1566_v23  ;;  %2679 = vmatpush.bf16.msra.mxu3 %v2670_v58  ;;  %v1232_v23 = vld [vmem:[#allocation2 + $0x159] sm:$0xff] }
 0x146   : > { %v2010_v53 = vadd.f32 %v1943_v55, %v1820_v21 }
 0x147   : > { %10120 = vmatmul.msk.bf16.gmra.mxu1 %vm688_vm1, %v12171_v8  ;;  %v1298_v8 = vld [vmem:[#allocation2 + $0x188] sm:$0xff] }
 0x148   : > { %v12185_v15 = vadd.f32 %v2133_v46, %v2010_v53  ;;  %10137 = vmatmul.msk.bf16.gmra.mxu2 %vm688_vm1, %v12179_v40  ;;  %v1264_v53 = vld [vmem:[#allocation2 + $0x15a] sm:$0xff]  ;;  %v1295_v40 = vld [vmem:[#allocation2 + $0x168] sm:$0xff] }
 0x149   : > { %10154 = vmatmul.msk.bf16.gmra.mxu3 %vm688_vm1, %v12181_v19  ;;  %v2136_v24 = vpop.f32.mrf.mxu0  ;;  %v12205_v29 = vpack.c.bf16 %v1264_v53, %v1263_v25 }
 0x14a   : > { %16212 = vst [vmem:[#allocation51_spill] sm:$0xff] %v12185_v15 }
 0x14b   : > { %v1756_v9 = vpop.f32.mrf.mxu2  ;;  %16216 = vst [vmem:[#allocation55_spill] sm:$0xff] %v12205_v29 }
 0x14c   : > { %v1946_v22 = vpop.f32.mrf.mxu3  ;;  %v1821_v32 = vadd.f32 %v1756_v9, %v1631_v45  ;;  %v1568_v55 = vpop.f32.mrf.mxu1  ;;  %10171 = vmatmul.msk.bf16.gmra.mxu0 %vm688_vm1, %v12191_v11 }
 0x14d   : > { %v1632_v45 = vadd.f32 %v12083_v48, %v1568_v55 }
 0x14e   : > { %v2011_v46 = vadd.f32 %v1946_v22, %v1821_v32  ;;  %v12203_v32 = vpack.c.bf16 %v1232_v23, %v1231_v36  ;;  %v12219_v36 = vpack.c.bf16 %v1296_v4, %v1295_v40 }
 0x150   : > { %v12200_v7 = vadd.f32 %v2136_v24, %v2011_v46  ;;  %16215 = vst [vmem:[#allocation54_spill] sm:$0xff] %v12203_v32  ;;  %v10225_v46 = vld [vmem:[%s16173_s7 + $0x7] sm:$0x1] }
 0x151   : > { %v2138_v21 = vpop.f32.mrf.mxu0  ;;  %v2860_v55 = vsel %vm941_vm0, %v10225_v46, 0 }
 0x152   : > { %16214 = vst [vmem:[#allocation53_spill] sm:$0xff] %v12200_v7  ;;  %2869 = vmatpush.bf16.msra.mxu0 %v2860_v55  ;;  %v1266_v55 = vld [vmem:[#allocation2 + $0x172] sm:$0xff] }
 0x153   : > { %v1758_v9 = vpop.f32.mrf.mxu2 }
 0x154   : > { %v1948_v15 = vpop.f32.mrf.mxu3  ;;  %v1822_v19 = vadd.f32 %v1758_v9, %v1632_v45  ;;  %v1571_v22 = vpop.f32.mrf.mxu1 }
 0x155   : > { %v1633_v25 = vadd.f32 %v12083_v48, %v1571_v22 }
 0x156   : > { %v2012_v24 = vadd.f32 %v1948_v15, %v1822_v19  ;;  %v10242_v19 = vld [vmem:[%s16173_s7 + $0x8] sm:$0x1] }
 0x157   : > { %10121 = vmatmul.msk.bf16.gmra.mxu1 %vm688_vm1, %v12191_v11  ;;  %v3050_v23 = vsel %vm941_vm0, %v10242_v19, 0 }
 0x158   : > { %v12213_v58 = vadd.f32 %v2138_v21, %v2012_v24  ;;  %10138 = vmatmul.msk.bf16.gmra.mxu2 %vm688_vm1, %v12203_v32  ;;  %3059 = vmatpush.bf16.msrb.mxu1 %v3050_v23  ;;  %v1233_v24 = vld [vmem:[#allocation2 + $0x169] sm:$0xff] }
 0x159   : > { %10155 = vmatmul.msk.bf16.gmra.mxu3 %vm688_vm1, %v12205_v29  ;;  %v2141_v15 = vpop.f32.mrf.mxu0  ;;  %v1265_v29 = vld [vmem:[#allocation2 + $0x16a] sm:$0xff] }
 0x15a   : > { %16217 = vst [vmem:[#allocation56_spill] sm:$0xff] %v12213_v58  ;;  %v1234_v58 = vld [vmem:[#allocation2 + $0x171] sm:$0xff] }
 0x15b   : > { %v1761_v21 = vpop.f32.mrf.mxu2  ;;  %v12231_v11 = vpack.c.bf16 %v1234_v58, %v1233_v24 }
 0x15c   : > { %v1951_v53 = vpop.f32.mrf.mxu3  ;;  %v1823_v45 = vadd.f32 %v1761_v21, %v1633_v25  ;;  %v1573_v9 = vpop.f32.mrf.mxu1  ;;  %10172 = vmatmul.msk.bf16.gmra.mxu0 %vm688_vm1, %v12219_v36  ;;  %v12233_v25 = vpack.c.bf16 %v1266_v55, %v1265_v29  ;;  %v1297_v21 = vld [vmem:[#allocation2 + $0x180] sm:$0xff] }
 0x15d   : > { %v1634_v19 = vadd.f32 %v12083_v48, %v1573_v9 }
 0x15e   : > { %v2013_v40 = vadd.f32 %v1951_v53, %v1823_v45 }
 0x160   : > { %v12228_v4 = vadd.f32 %v2141_v15, %v2013_v40 }
 0x161   : > { %v2143_v46 = vpop.f32.mrf.mxu0 }
 0x163   : > { %v1763_v7 = vpop.f32.mrf.mxu2 }
 0x164   : > { %v1953_v22 = vpop.f32.mrf.mxu3  ;;  %v1824_v23 = vadd.f32 %v1763_v7, %v1634_v19  ;;  %v1576_v32 = vpop.f32.mrf.mxu1  ;;  %v12243_v7 = vpack.c.bf16 %v1298_v8, %v1297_v21 }
 0x165   : > { %v1635_v29 = vadd.f32 %v12083_v48, %v1576_v32 }
 0x166   : > { %v2014_v53 = vadd.f32 %v1953_v22, %v1824_v23 }
 0x167   : > { %10122 = vmatmul.msk.bf16.gmra.mxu1 %vm688_vm1, %v12219_v36 }
 0x168   : > { %v12237_v15 = vadd.f32 %v2143_v46, %v2014_v53  ;;  %10139 = vmatmul.msk.bf16.gmra.mxu2 %vm688_vm1, %v12231_v11 }
 0x169   : > { %10156 = vmatmul.msk.bf16.gmra.mxu3 %vm688_vm1, %v12233_v25  ;;  %v2146_v58 = vpop.f32.mrf.mxu0 }
 0x16a   : > { %16218 = vst [vmem:[#allocation57_spill] sm:$0xff] %v12237_v15 }
 0x16b   : > { %v1766_v45 = vpop.f32.mrf.mxu2 }
 0x16c   : > { %v1956_v9 = vpop.f32.mrf.mxu3  ;;  %v1825_v40 = vadd.f32 %v1766_v45, %v1635_v29  ;;  %v1578_v24 = vpop.f32.mrf.mxu1  ;;  %10173 = vmatmul.msk.bf16.gmra.mxu0 %vm688_vm1, %v12243_v7 }
 0x16d   : > { %v1636_v22 = vadd.f32 %v12083_v48, %v1578_v24 }
 0x16e   : > { %v2015_v46 = vadd.f32 %v1956_v9, %v1825_v40 }
 0x170   : > { %v12248_v55 = vadd.f32 %v2146_v58, %v2015_v46 }
 0x171   : > { %v2148_v19 = vpop.f32.mrf.mxu0 }
 0x173   : > { %v1768_v23 = vpop.f32.mrf.mxu2 }
 0x174   : > { %v1958_v53 = vpop.f32.mrf.mxu3  ;;  %v1826_v8 = vadd.f32 %v1768_v23, %v1636_v22  ;;  %v1581_v21 = vpop.f32.mrf.mxu1 }
 0x175   : > { %v1637_v29 = vadd.f32 %v12083_v48, %v1581_v21 }
 0x176   : > { %v2016_v15 = vadd.f32 %v1958_v53, %v1826_v8 }
 0x177   : > { %10175 = vmatmul.msk.bf16.vlgmr.msra.gmra.mxu1 %vm688_vm1, %v11882_v47 }
 0x178   : > { %v12253_v32 = vadd.f32 %v2148_v19, %v2016_v15  ;;  %10192 = vmatmul.msk.bf16.vlgmr.msra.gmra.mxu2 %vm688_vm1, %v11884_v28 }
 0x179   : > { %10209 = vmatmul.msk.bf16.vlgmr.msra.gmra.mxu3 %vm688_vm1, %v11891_v41  ;;  %v2151_v58 = vpop.f32.mrf.mxu0 }
 0x17b   : > { %v1771_v45 = vpop.f32.mrf.mxu2 }
 0x17c   : > { %v1961_v9 = vpop.f32.mrf.mxu3  ;;  %v1827_v40 = vadd.f32 %v1771_v45, %v1637_v29  ;;  %v1583_v24 = vpop.f32.mrf.mxu1  ;;  %10226 = vmatmul.msk.bf16.vlgmr.msra.gmra.mxu0 %vm688_vm1, %v11895_v49 }
 0x17d   : > { %v1638_v19 = vadd.f32 %v12083_v48, %v1583_v24 }
 0x17e   : > { %v2017_v46 = vadd.f32 %v1961_v9, %v1827_v40 }
 0x180   : > { %v12262_v47 = vadd.f32 %v2151_v58, %v2017_v46 }
 0x181   : > { %v2153_v15 = vpop.f32.mrf.mxu0 }
 0x183   : > { %v1773_v28 = vpop.f32.mrf.mxu2 }
 0x184   : > { %v1963_v22 = vpop.f32.mrf.mxu3  ;;  %v1828_v23 = vadd.f32 %v1773_v28, %v1638_v19  ;;  %v1586_v41 = vpop.f32.mrf.mxu1 }
 0x185   : > { %v1639_v58 = vadd.f32 %v12083_v48, %v1586_v41 }
 0x186   : > { %v2018_v53 = vadd.f32 %v1963_v22, %v1828_v23 }
 0x187   : > { %10176 = vmatmul.msk.bf16.gmra.mxu1 %vm688_vm1, %v11895_v49 }
 0x188   : > { %v12267_v8 = vadd.f32 %v2153_v15, %v2018_v53  ;;  %10193 = vmatmul.msk.bf16.gmra.mxu2 %vm688_vm1, %v11897_v39 }
 0x189   : > { %10210 = vmatmul.msk.bf16.gmra.mxu3 %vm688_vm1, %v11905_v54  ;;  %v2156_v21 = vpop.f32.mrf.mxu0 }
 0x18b   : > { %v1776_v29 = vpop.f32.mrf.mxu2 }
 0x18c   : > { %v1966_v45 = vpop.f32.mrf.mxu3  ;;  %v1829_v9 = vadd.f32 %v1776_v29, %v1639_v58  ;;  %v1588_v40 = vpop.f32.mrf.mxu1  ;;  %10227 = vmatmul.msk.bf16.gmra.mxu0 %vm688_vm1, %v11909_v12 }
 0x18d   : > { %v1640_v15 = vadd.f32 %v12083_v48, %v1588_v40 }
 0x18e   : > { %v2019_v24 = vadd.f32 %v1966_v45, %v1829_v9 }
 0x190   : > { %v12276_v49 = vadd.f32 %v2156_v21, %v2019_v24 }
 0x191   : > { %v2158_v46 = vpop.f32.mrf.mxu0 }
 0x193   : > { %v1778_v39 = vpop.f32.mrf.mxu2 }
 0x194   : > { %v1968_v19 = vpop.f32.mrf.mxu3  ;;  %v1830_v28 = vadd.f32 %v1778_v39, %v1640_v15  ;;  %v1591_v54 = vpop.f32.mrf.mxu1 }
 0x195   : > { %v1641_v53 = vadd.f32 %v12083_v48, %v1591_v54 }
 0x196   : > { %v2020_v22 = vadd.f32 %v1968_v19, %v1830_v28 }
 0x197   : > { %10177 = vmatmul.msk.bf16.gmra.mxu1 %vm688_vm1, %v11909_v12 }
 0x198   : > { %v12281_v23 = vadd.f32 %v2158_v46, %v2020_v22  ;;  %10194 = vmatmul.msk.bf16.gmra.mxu2 %vm688_vm1, %v11911_v13 }
 0x199   : > { %10211 = vmatmul.msk.bf16.gmra.mxu3 %vm688_vm1, %v11919_v57  ;;  %v2161_v41 = vpop.f32.mrf.mxu0 }
 0x19b   : > { %v1781_v21 = vpop.f32.mrf.mxu2 }
 0x19c   : > { %v1971_v58 = vpop.f32.mrf.mxu3  ;;  %v1831_v29 = vadd.f32 %v1781_v21, %v1641_v53  ;;  %v1593_v45 = vpop.f32.mrf.mxu1  ;;  %10228 = vmatmul.msk.bf16.gmra.mxu0 %vm688_vm1, %v11928_v59 }
 0x19d   : > { %v1642_v24 = vadd.f32 %v12083_v48, %v1593_v45 }
 0x19e   : > { %v2021_v9 = vadd.f32 %v1971_v58, %v1831_v29 }
 0x1a0   : > { %v12290_v12 = vadd.f32 %v2161_v41, %v2021_v9 }
 0x1a1   : > { %v2163_v40 = vpop.f32.mrf.mxu0 }
 0x1a3   : > { %v1783_v13 = vpop.f32.mrf.mxu2 }
 0x1a4   : > { %v1973_v46 = vpop.f32.mrf.mxu3  ;;  %v1832_v15 = vadd.f32 %v1783_v13, %v1642_v24  ;;  %v1596_v57 = vpop.f32.mrf.mxu1 }
 0x1a5   : > { %v1643_v54 = vadd.f32 %v12083_v48, %v1596_v57 }
 0x1a6   : > { %v2022_v39 = vadd.f32 %v1973_v46, %v1832_v15 }
 0x1a7   : > { %10178 = vmatmul.msk.bf16.gmra.mxu1 %vm688_vm1, %v11928_v59 }
 0x1a8   : > { %v12295_v19 = vadd.f32 %v2163_v40, %v2022_v39  ;;  %10195 = vmatmul.msk.bf16.gmra.mxu2 %vm688_vm1, %v11930_v5 }
 0x1a9   : > { %10212 = vmatmul.msk.bf16.gmra.mxu3 %vm688_vm1, %v11941_v63  ;;  %v2166_v28 = vpop.f32.mrf.mxu0 }
 0x1ab   : > { %v1786_v22 = vpop.f32.mrf.mxu2 }
 0x1ac   : > { %v1976_v41 = vpop.f32.mrf.mxu3  ;;  %v1833_v53 = vadd.f32 %v1786_v22, %v1643_v54  ;;  %v1598_v21 = vpop.f32.mrf.mxu1  ;;  %10229 = vmatmul.msk.bf16.gmra.mxu0 %vm688_vm1, %v11964_v26 }
 0x1ad   : > { %v1644_v45 = vadd.f32 %v12083_v48, %v1598_v21 }
 0x1ae   : > { %v2023_v58 = vadd.f32 %v1976_v41, %v1833_v53 }
 0x1b0   : > { %v12304_v59 = vadd.f32 %v2166_v28, %v2023_v58 }
 0x1b1   : > { %v2168_v29 = vpop.f32.mrf.mxu0 }
 0x1b3   : > { %v1788_v5 = vpop.f32.mrf.mxu2 }
 0x1b4   : > { %v1978_v9 = vpop.f32.mrf.mxu3  ;;  %v1834_v40 = vadd.f32 %v1788_v5, %v1644_v45  ;;  %v1601_v63 = vpop.f32.mrf.mxu1 }
 0x1b5   : > { %v1645_v15 = vadd.f32 %v12083_v48, %v1601_v63 }
 0x1b6   : > { %v2024_v24 = vadd.f32 %v1978_v9, %v1834_v40 }
 0x1b7   : > { %10179 = vmatmul.msk.bf16.gmra.mxu1 %vm688_vm1, %v11964_v26 }
 0x1b8   : > { %v12309_v13 = vadd.f32 %v2168_v29, %v2024_v24  ;;  %10196 = vmatmul.msk.bf16.gmra.mxu2 %vm688_vm1, %v11966_v33 }
 0x1b9   : > { %10213 = vmatmul.msk.bf16.gmra.mxu3 %vm688_vm1, %v11977_v52  ;;  %v2171_v46 = vpop.f32.mrf.mxu0 }
 0x1bb   : > { %v1791_v57 = vpop.f32.mrf.mxu2 }
 0x1bc   : > { %v1981_v39 = vpop.f32.mrf.mxu3  ;;  %v1835_v28 = vadd.f32 %v1791_v57, %v1645_v15  ;;  %v1603_v54 = vpop.f32.mrf.mxu1  ;;  %10230 = vmatmul.msk.bf16.gmra.mxu0 %vm688_vm1, %v12000_v56 }
 0x1bd   : > { %v1646_v53 = vadd.f32 %v12083_v48, %v1603_v54 }
 0x1be   : > { %v2025_v22 = vadd.f32 %v1981_v39, %v1835_v28 }
 0x1c0   : > { %v12318_v26 = vadd.f32 %v2171_v46, %v2025_v22 }
 0x1c1   : > { %v2173_v41 = vpop.f32.mrf.mxu0 }
 0x1c3   : > { %v1793_v33 = vpop.f32.mrf.mxu2 }
 0x1c4   : > { %v1983_v21 = vpop.f32.mrf.mxu3  ;;  %v1836_v58 = vadd.f32 %v1793_v33, %v1646_v53  ;;  %v1606_v52 = vpop.f32.mrf.mxu1 }
 0x1c5   : > { %v1647_v9 = vadd.f32 %v12083_v48, %v1606_v52 }
 0x1c6   : > { %v2026_v29 = vadd.f32 %v1983_v21, %v1836_v58 }
 0x1c7   : > { %10180 = vmatmul.msk.bf16.gmra.mxu1 %vm688_vm1, %v12000_v56 }
 0x1c8   : > { %v12323_v45 = vadd.f32 %v2173_v41, %v2026_v29  ;;  %10197 = vmatmul.msk.bf16.gmra.mxu2 %vm688_vm1, %v12002_v17 }
 0x1c9   : > { %10214 = vmatmul.msk.bf16.gmra.mxu3 %vm688_vm1, %v12013_v14  ;;  %v2176_v5 = vpop.f32.mrf.mxu0 }
 0x1cb   : > { %v1796_v40 = vpop.f32.mrf.mxu2 }
 0x1cc   : > { %v1986_v63 = vpop.f32.mrf.mxu3  ;;  %v1837_v24 = vadd.f32 %v1796_v40, %v1647_v9  ;;  %v1608_v46 = vpop.f32.mrf.mxu1  ;;  %10231 = vmatmul.msk.bf16.gmra.mxu0 %vm688_vm1, %v12040_v60 }
 0x1cd   : > { %v1648_v39 = vadd.f32 %v12083_v48, %v1608_v46 }
 0x1ce   : > { %v2027_v15 = vadd.f32 %v1986_v63, %v1837_v24 }
 0x1d0   : > { %v12332_v56 = vadd.f32 %v2176_v5, %v2027_v15 }
 0x1d1   : > { %v2178_v57 = vpop.f32.mrf.mxu0 }
 0x1d3   : > { %v1798_v17 = vpop.f32.mrf.mxu2 }
 0x1d4   : > { %v1988_v28 = vpop.f32.mrf.mxu3  ;;  %v1838_v54 = vadd.f32 %v1798_v17, %v1648_v39  ;;  %v1611_v14 = vpop.f32.mrf.mxu1 }
 0x1d5   : > { %v1649_v33 = vadd.f32 %v12083_v48, %v1611_v14 }
 0x1d6   : > { %v2028_v22 = vadd.f32 %v1988_v28, %v1838_v54 }
 0x1d7   : > { %10181 = vmatmul.msk.bf16.gmra.mxu1 %vm688_vm1, %v12040_v60 }
 0x1d8   : > { %v12337_v41 = vadd.f32 %v2178_v57, %v2028_v22  ;;  %10198 = vmatmul.msk.bf16.gmra.mxu2 %vm688_vm1, %v12042_v30  ;;  %v11010_v30 = vld [vmem:[%s16064_s11 + $0x8] sm:$0xff] }
 0x1d9   : > { %10215 = vmatmul.msk.bf16.gmra.mxu3 %vm688_vm1, %v12053_v51  ;;  %v2181_v53 = vpop.f32.mrf.mxu0  ;;  %3689 = vmatpush.bf16.msrb.mxu2 %v11010_v30 }
 0x1db   : > { %v1801_v21 = vpop.f32.mrf.mxu2 }
 0x1dc   : > { %v1991_v58 = vpop.f32.mrf.mxu3  ;;  %v1839_v52 = vadd.f32 %v1801_v21, %v1649_v33  ;;  %v1613_v29 = vpop.f32.mrf.mxu1  ;;  %10232 = vmatmul.msk.bf16.gmra.mxu0 %vm688_vm1, %v12076_v61 }
 0x1dd   : > { %v1650_v51 = vadd.f32 %v12083_v48, %v1613_v29 }
 0x1de   : > { %v2029_v5 = vadd.f32 %v1991_v58, %v1839_v52 }
 0x1e0   : > { %v12346_v60 = vadd.f32 %v2181_v53, %v2029_v5 }
 0x1e1   : > { %v2183_v9 = vpop.f32.mrf.mxu0 }
 0x1e3   : > { %v1803_v40 = vpop.f32.mrf.mxu2 }
 0x1e4   : > { %v1993_v63 = vpop.f32.mrf.mxu3  ;;  %v1840_v24 = vadd.f32 %v1803_v40, %v1650_v51  ;;  %v1616_v46 = vpop.f32.mrf.mxu1 }
 0x1e5   : > { %v1651_v17 = vadd.f32 %v12083_v48, %v1616_v46 }
 0x1e6   : > { %v2030_v15 = vadd.f32 %v1993_v63, %v1840_v24 }
 0x1e7   : > { %10182 = vmatmul.msk.bf16.gmra.mxu1 %vm688_vm1, %v12076_v61 }
 0x1e8   : > { %v12354_v57 = vadd.f32 %v2183_v9, %v2030_v15  ;;  %10199 = vmatmul.msk.bf16.gmra.mxu2 %vm688_vm1, %v12078_v2 }
 0x1e9   : > { %10216 = vmatmul.msk.bf16.gmra.mxu3 %vm688_vm1, %v12091_v62  ;;  %v2186_v39 = vpop.f32.mrf.mxu0 }
 0x1eb   : > { %v1806_v28 = vpop.f32.mrf.mxu2 }
 0x1ec   : > { %v1996_v54 = vpop.f32.mrf.mxu3  ;;  %v1841_v14 = vadd.f32 %v1806_v28, %v1651_v17  ;;  %v1618_v22 = vpop.f32.mrf.mxu1  ;;  %10233 = vmatmul.msk.bf16.gmra.mxu0 %vm688_vm1, %v12099_v1 }
 0x1ed   : > { %v1652_v21 = vadd.f32 %v12083_v48, %v1618_v22 }
 0x1ee   : > { %v2031_v53 = vadd.f32 %v1996_v54, %v1841_v14 }
 0x1f0   : > { %v12363_v61 = vadd.f32 %v2186_v39, %v2031_v53 }
 0x1f1   : > { %v2188_v33 = vpop.f32.mrf.mxu0 }
 0x1f3   : > { %v1808_v2 = vpop.f32.mrf.mxu2 }
 0x1f4   : > { %v1998_v58 = vpop.f32.mrf.mxu3  ;;  %v1842_v52 = vadd.f32 %v1808_v2, %v1652_v21  ;;  %v2301_v62 = vpop.f32.mrf.mxu1 }
 0x1f5   : > { %v2381_v29 = vadd.f32 %v2301_v62, %v12096_v20 }
 0x1f6   : > { %v2032_v5 = vadd.f32 %v1998_v58, %v1842_v52 }
 0x1f7   : > { %10183 = vmatmul.msk.bf16.gmra.mxu1 %vm688_vm1, %v12099_v1 }
 0x1f8   : > { %v12369_v30 = vadd.f32 %v2188_v33, %v2032_v5  ;;  %10200 = vmatmul.msk.bf16.gmra.mxu2 %vm688_vm1, %v12101_v38 }
 0x1f9   : > { %10217 = vmatmul.msk.bf16.gmra.mxu3 %vm688_vm1, %v12111_v3  ;;  %v2871_v9 = vpop.f32.mrf.mxu0 }
 0x1fb   : > { %v2491_v48 = vpop.f32.mrf.mxu2 }
 0x1fc   : > { %v2681_v51 = vpop.f32.mrf.mxu3  ;;  %v2571_v40 = vadd.f32 %v2491_v48, %v2381_v29  ;;  %v2303_v63 = vpop.f32.mrf.mxu1  ;;  %10234 = vmatmul.msk.bf16.gmra.mxu0 %vm688_vm1, %v12119_v31 }
 0x1fd   : > { %v2382_v20 = vadd.f32 %v2303_v63, %v12105_v50 }
 0x1fe   : > { %v2761_v24 = vadd.f32 %v2681_v51, %v2571_v40 }
 0x200   : > { %v12378_v1 = vadd.f32 %v2871_v9, %v2761_v24 }
 0x201   : > { %v2873_v46 = vpop.f32.mrf.mxu0 }
 0x203   : > { %v2493_v15 = vpop.f32.mrf.mxu2 }
 0x204   : > { %v2683_v39 = vpop.f32.mrf.mxu3  ;;  %v2572_v38 = vadd.f32 %v2493_v15, %v2382_v20  ;;  %v2306_v17 = vpop.f32.mrf.mxu1 }
 0x205   : > { %v2383_v3 = vadd.f32 %v2306_v17, %v12116_v43 }
 0x206   : > { %v2762_v28 = vadd.f32 %v2683_v39, %v2572_v38 }
 0x207   : > { %10184 = vmatmul.msk.bf16.gmra.mxu1 %vm688_vm1, %v12119_v31 }
 0x208   : > { %v12383_v54 = vadd.f32 %v2873_v46, %v2762_v28  ;;  %10201 = vmatmul.msk.bf16.gmra.mxu2 %vm688_vm1, %v12121_v42 }
 0x209   : > { %10218 = vmatmul.msk.bf16.gmra.mxu3 %vm688_vm1, %v12131_v0  ;;  %v2876_v50 = vpop.f32.mrf.mxu0 }
 0x20b   : > { %v2496_v14 = vpop.f32.mrf.mxu2 }
 0x20c   : > { %v2686_v22 = vpop.f32.mrf.mxu3  ;;  %v2573_v53 = vadd.f32 %v2496_v14, %v2383_v3  ;;  %v2308_v33 = vpop.f32.mrf.mxu1  ;;  %10235 = vmatmul.msk.bf16.gmra.mxu0 %vm688_vm1, %v12139_v34 }
 0x20d   : > { %v2384_v43 = vadd.f32 %v2308_v33, %v12125_v27 }
 0x20e   : > { %v2763_v21 = vadd.f32 %v2686_v22, %v2573_v53  ;;  %v16220_v22 = vld [vmem:[#allocation49_spill] sm:$0xff] }
 0x210   : > { %v12392_v31 = vadd.f32 %v2876_v50, %v2763_v21 }
 0x211   : > { %v2878_v2 = vpop.f32.mrf.mxu0 }
 0x213   : > { %v2498_v58 = vpop.f32.mrf.mxu2 }
 0x214   : > { %v2688_v52 = vpop.f32.mrf.mxu3  ;;  %v2574_v42 = vadd.f32 %v2498_v58, %v2384_v43  ;;  %v2311_v62 = vpop.f32.mrf.mxu1  ;;  %v16222_v58 = vld [vmem:[#allocation48_spill] sm:$0xff] }
 0x215   : > { %v2385_v0 = vadd.f32 %v2311_v62, %v12136_v35 }
 0x216   : > { %v2764_v29 = vadd.f32 %v2688_v52, %v2574_v42 }
 0x217   : > { %10185 = vmatmul.msk.bf16.gmra.mxu1 %vm688_vm1, %v12139_v34 }
 0x218   : > { %v12397_v5 = vadd.f32 %v2878_v2, %v2764_v29  ;;  %10202 = vmatmul.msk.bf16.gmra.mxu2 %vm688_vm1, %v12141_v44  ;;  %v16223_v29 = vld [vmem:[#allocation50_spill] sm:$0xff] }
 0x219   : > { %10219 = vmatmul.msk.bf16.gmra.mxu3 %vm688_vm1, %v12151_v18  ;;  %v2881_v27 = vpop.f32.mrf.mxu0 }
 0x21b   : > { %v2501_v9 = vpop.f32.mrf.mxu2 }
 0x21c   : > { %v2691_v48 = vpop.f32.mrf.mxu3  ;;  %v2575_v51 = vadd.f32 %v2501_v9, %v2385_v0  ;;  %v2313_v40 = vpop.f32.mrf.mxu1  ;;  %10236 = vmatmul.msk.bf16.gmra.mxu0 %vm688_vm1, %v12159_v10 }
 0x21d   : > { %v2386_v35 = vadd.f32 %v2313_v40, %v12145_v16  ;;  %v16219_v16 = vld [vmem:[#allocation47_spill] sm:$0xff]  ;;  %v16225_v40 = vld [vmem:[#allocation54_spill] sm:$0xff] }
 0x21e   : > { %v2765_v63 = vadd.f32 %v2691_v48, %v2575_v51 }
 0x220   : > { %v12406_v34 = vadd.f32 %v2881_v27, %v2765_v63  ;;  %v16224_v27 = vld [vmem:[#allocation52_spill] sm:$0xff] }
 0x221   : > { %v2883_v20 = vpop.f32.mrf.mxu0 }
 0x223   : > { %v2503_v24 = vpop.f32.mrf.mxu2 }
 0x224   : > { %v2693_v46 = vpop.f32.mrf.mxu3  ;;  %v2576_v44 = vadd.f32 %v2503_v24, %v2386_v35  ;;  %v2316_v15 = vpop.f32.mrf.mxu1  ;;  %v16226_v35 = vld [vmem:[#allocation51_spill] sm:$0xff] }
 0x225   : > { %v2387_v18 = vadd.f32 %v2316_v15, %v12156_v37  ;;  %v16221_v37 = vld [vmem:[#allocation46_spill] sm:$0xff]  ;;  %v16228_v15 = vld [vmem:[#allocation55_spill] sm:$0xff] }
 0x226   : > { %v2766_v39 = vadd.f32 %v2693_v46, %v2576_v44  ;;  %v16227_v46 = vld [vmem:[#allocation53_spill] sm:$0xff] }
 0x227   : > { %10186 = vmatmul.msk.bf16.gmra.mxu1 %vm688_vm1, %v12159_v10 }
 0x228   : > { %v12411_v38 = vadd.f32 %v2883_v20, %v2766_v39  ;;  %10203 = vmatmul.msk.bf16.gmra.mxu2 %vm688_vm1, %v12161_v6 }
 0x229   : > { %10220 = vmatmul.msk.bf16.gmra.mxu3 %vm688_vm1, %v16219_v16  ;;  %v2886_v17 = vpop.f32.mrf.mxu0 }
 0x22b   : > { %v2506_v3 = vpop.f32.mrf.mxu2 }
 0x22c   : > { %v2696_v28 = vpop.f32.mrf.mxu3  ;;  %v2577_v50 = vadd.f32 %v2506_v3, %v2387_v18  ;;  %v2318_v14 = vpop.f32.mrf.mxu1  ;;  %10237 = vmatmul.msk.bf16.gmra.mxu0 %vm688_vm1, %v16220_v22 }
 0x22d   : > { %v2388_v53 = vadd.f32 %v2318_v14, %v16221_v37  ;;  %v1425_v37 = vld [vmem:[#allocation2 + $0x189] sm:$0xff] }
 0x22e   : > { %v2767_v33 = vadd.f32 %v2696_v28, %v2577_v50 }
 0x230   : > { %v12420_v10 = vadd.f32 %v2886_v17, %v2767_v33  ;;  %v16229_v17 = vld [vmem:[#allocation56_spill] sm:$0xff] }
 0x231   : > { %v2888_v42 = vpop.f32.mrf.mxu0 }
 0x233   : > { %v2508_v43 = vpop.f32.mrf.mxu2 }
 0x234   : > { %v2698_v21 = vpop.f32.mrf.mxu3  ;;  %v2578_v2 = vadd.f32 %v2508_v43, %v2388_v53  ;;  %v2321_v6 = vpop.f32.mrf.mxu1 }
 0x235   : > { %v2389_v52 = vadd.f32 %v2321_v6, %v16222_v58  ;;  %v1362_v6 = vld [vmem:[#allocation2 + $0x18a] sm:$0xff]  ;;  %v1395_v58 = vld [vmem:[#allocation2 + $0x1a0] sm:$0xff] }
 0x236   : > { %v2768_v62 = vadd.f32 %v2698_v21, %v2578_v2  ;;  %v16230_v21 = vld [vmem:[#allocation57_spill] sm:$0xff]  ;;  %v1361_v2 = vld [vmem:[#allocation2 + $0x182] sm:$0xff] }
 0x237   : > { %10187 = vmatmul.msk.bf16.gmra.mxu1 %vm688_vm1, %v16220_v22  ;;  %v1424_v22 = vld [vmem:[#allocation2 + $0x181] sm:$0xff] }
 0x238   : > { %v12425_v0 = vadd.f32 %v2888_v42, %v2768_v62  ;;  %10204 = vmatmul.msk.bf16.gmra.mxu2 %vm688_vm1, %v16223_v29  ;;  %v12474_v42 = vpack.c.bf16 %v1362_v6, %v1361_v2 }
 0x239   : > { %10221 = vmatmul.msk.bf16.gmra.mxu3 %vm688_vm1, %v16224_v27  ;;  %v1426_v27 = vld [vmem:[#allocation2 + $0x199] sm:$0xff] }
 0x23b   : > { %v2511_v9 = vpop.f32.mrf.mxu2 }
 0x23c   : > { %v12431_v48 = vadd.f32 %v2511_v9, %v2389_v52  ;;  %v2323_v51 = vpop.f32.mrf.mxu1  ;;  %10238 = vmatmul.msk.bf16.gmra.mxu0 %vm688_vm1, %v16225_v40  ;;  %v1427_v9 = vld [vmem:[#allocation2 + $0x1a1] sm:$0xff] }
 0x23d   : > { %v12436_v63 = vadd.f32 %v2323_v51, %v16226_v35  ;;  %v2808_v51 = vpack.c.bf16 %v1427_v9, %v1426_v27 }
 0x243   : > { %v12438_v20 = vpop.f32.mrf.mxu2 }
 0x244   : > { %v2326_v24 = vpop.f32.mrf.mxu1 }
 0x245   : > { %v2391_v44 = vadd.f32 %v2326_v24, %v16227_v46 }
 0x247   : > { %10188 = vmatmul.msk.bf16.gmra.mxu1 %vm688_vm1, %v16225_v40 }
 0x248   : > { %10205 = vmatmul.msk.bf16.gmra.mxu2 %vm688_vm1, %v16228_v15  ;;  %v11012_v15 = vld [vmem:[%s16064_s11 + $0x18] sm:$0xff] }
 0x249   : > { %10222 = vmatmul.msk.bf16.gmra.mxu3 %vm688_vm1, %v12219_v36  ;;  %v2807_v36 = vpack.c.bf16 %v1425_v37, %v1424_v22 }
 0x24a   : > { %3891 = vmatpush.bf16.msrb.mxu3 %v11012_v15 }
 0x24b   : > { %v2516_v18 = vpop.f32.mrf.mxu2 }
 0x24c   : > { %v12447_v39 = vadd.f32 %v2516_v18, %v2391_v44  ;;  %v2328_v16 = vpop.f32.mrf.mxu1  ;;  %10239 = vmatmul.msk.bf16.gmra.mxu0 %vm688_vm1, %v12231_v11  ;;  %v1429_v44 = vld [vmem:[#allocation2 + $0x3a] sm:$0xff] }
 0x24d   : > { %v12452_v3 = vadd.f32 %v2328_v16, %v16229_v17 }
 0x253   : > { %v12454_v28 = vpop.f32.mrf.mxu2 }
 0x254   : > { %v2331_v50 = vpop.f32.mrf.mxu1 }
 0x255   : > { %v2393_v14 = vadd.f32 %v2331_v50, %v12228_v4 }
 0x257   : > { %10189 = vmatmul.msk.bf16.gmra.mxu1 %vm688_vm1, %v12231_v11  ;;  %v11009_v11 = vld [vmem:[%s16064_s11] sm:$0xff] }
 0x258   : > { %10206 = vmatmul.msk.bf16.gmra.mxu2 %vm688_vm1, %v12233_v25  ;;  %v1394_v25 = vld [vmem:[#allocation2 + $0x198] sm:$0xff] }
 0x259   : > { %10223 = vmatmul.msk.bf16.gmra.mxu3 %vm688_vm1, %v12243_v7  ;;  %3690 = vmatpush.bf16.msrb.mxu2 %v11009_v11  ;;  %v2618_v62 = vpack.c.bf16 %v1395_v58, %v1394_v25 }
 0x25b   : > { %v2521_v53 = vpop.f32.mrf.mxu2 }
 0x25c   : > { %v12463_v33 = vadd.f32 %v2521_v53, %v2393_v14  ;;  %v2333_v43 = vpop.f32.mrf.mxu1  ;;  %10240 = vmatmul.msk.bf16.gmra.mxu0 %vm688_vm1, %v2807_v36  ;;  %v1431_v53 = vld [vmem:[#allocation2 + $0x52] sm:$0xff] }
 0x25d   : > { %v12467_v4 = vadd.f32 %v2333_v43, %v16230_v21 }
 0x263   : > { %v12472_v7 = vpop.f32.mrf.mxu2 }
 0x264   : > { %v2336_v52 = vpop.f32.mrf.mxu1 }
 0x265   : > { %v2395_v29 = vadd.f32 %v2336_v52, %v12248_v55  ;;  %v1428_v55 = vld [vmem:[#allocation2 + $0x32] sm:$0xff] }
 0x266   : > { %v2983_v16 = vpack.c.bf16 %v1429_v44, %v1428_v55 }
 0x267   : > { %10190 = vmatmul.msk.bf16.gmra.mxu1 %vm688_vm1, %v2807_v36  ;;  %v1430_v36 = vld [vmem:[#allocation2 + $0x4a] sm:$0xff] }
 0x268   : > { %10207 = vmatmul.msk.bf16.gmra.mxu2 %vm688_vm1, %v12474_v42  ;;  %v2984_v21 = vpack.c.bf16 %v1431_v53, %v1430_v36 }
 0x269   : > { %10224 = vmatmul.msk.bf16.gmra.mxu3 %vm688_vm1, %v2618_v62  ;;  %v1433_v62 = vld [vmem:[#allocation2 + $0x6a] sm:$0xff] }
 0x26b   : > { %v2526_v40 = vpop.f32.mrf.mxu2 }
 0x26c   : > { %v12481_v35 = vadd.f32 %v2526_v40, %v2395_v29  ;;  %v2338_v24 = vpop.f32.mrf.mxu1  ;;  %10241 = vmatmul.msk.bf16.gmra.mxu0 %vm688_vm1, %v2808_v51  ;;  %v12510_v29 = vpop.f32.mrf.mxu3 }
 0x26d   : > { %v12485_v46 = vadd.f32 %v2338_v24, %v12253_v32 }
 0x273   : > { %v12490_v18 = vpop.f32.mrf.mxu2 }
 0x274   : > { %v2341_v17 = vpop.f32.mrf.mxu1  ;;  %v12518_v24 = vpop.f32.mrf.mxu3 }
 0x275   : > { %v2397_v50 = vadd.f32 %v2341_v17, %v12262_v47  ;;  %v12503_v47 = vpop.f32.mrf.mxu0  ;;  %v1434_v17 = vld [vmem:[#allocation2 + $0x7a] sm:$0xff] }
 0x277   : > { %10243 = vmatmul.msk.bf16.vlgmr.msrb.gmra.mxu1 %vm688_vm1, %v2983_v16 }
 0x27b   : > { %v2531_v14 = vpop.f32.mrf.mxu2 }
 0x27c   : > { %v12494_v22 = vadd.f32 %v2531_v14, %v2397_v50  ;;  %v2343_v32 = vpop.f32.mrf.mxu1  ;;  %v1435_v50 = vld [vmem:[#allocation2 + $0x82] sm:$0xff] }
 0x27d   : > { %v12497_v37 = vadd.f32 %v2343_v32, %v12267_v8  ;;  %v1432_v8 = vld [vmem:[#allocation2 + $0x62] sm:$0xff]  ;;  %v2986_v32 = vpack.c.bf16 %v1435_v50, %v1434_v17 }
 0x27e   : > { %v2985_v9 = vpack.c.bf16 %v1433_v62, %v1432_v8  ;;  %v1436_v8 = vld [vmem:[#allocation2 + $0x92] sm:$0xff]  ;;  %v1437_v62 = vld [vmem:[#allocation2 + $0x9a] sm:$0xff] }
 0x283   : > { %v12499_v43 = vpop.f32.mrf.mxu2 }
 0x284   : > { %v2346_v2 = vpop.f32.mrf.mxu1 }
 0x285   : > { %v2399_v11 = vadd.f32 %v2346_v2, %v12276_v49  ;;  %v12514_v49 = vpop.f32.mrf.mxu0 }
 0x287   : > { %10244 = vmatmul.msk.bf16.gmra.mxu1 %vm688_vm1, %v2984_v21 }
 0x28b   : > { %v2536_v6 = vpop.f32.mrf.mxu2 }
 0x28c   : > { %v12505_v25 = vadd.f32 %v2536_v6, %v2399_v11  ;;  %v2348_v58 = vpop.f32.mrf.mxu1 }
 0x28d   : > { %v12508_v52 = vadd.f32 %v2348_v58, %v12281_v23  ;;  %v12525_v16 = vpop.f32.mrf.mxu0 }
 0x293   : > { %v12512_v27 = vpop.f32.mrf.mxu2 }
 0x294   : > { %v2351_v51 = vpop.f32.mrf.mxu1 }
 0x295   : > { %v2401_v40 = vadd.f32 %v2351_v51, %v12290_v12  ;;  %v12529_v12 = vpop.f32.mrf.mxu3  ;;  %v12533_v21 = vpop.f32.mrf.mxu0 }
 0x297   : > { %10245 = vmatmul.msk.bf16.gmra.mxu1 %vm688_vm1, %v2985_v9 }
 0x29b   : > { %v2541_v55 = vpop.f32.mrf.mxu2 }
 0x29c   : > { %v12520_v44 = vadd.f32 %v2541_v55, %v2401_v40  ;;  %v2353_v23 = vpop.f32.mrf.mxu1 }
 0x29d   : > { %v12523_v15 = vadd.f32 %v2353_v23, %v12295_v19  ;;  %v12540_v58 = vpop.f32.mrf.mxu3  ;;  %v12542_v9 = vpop.f32.mrf.mxu0 }
 0x29e   : > { %16231 = vst [vmem:[#allocation47_spill] sm:$0xff] %v12520_v44 }
 0x29f   : > { %16232 = vst [vmem:[#allocation49_spill] sm:$0xff] %v12523_v15 }
 0x2a3   : > { %v12527_v14 = vpop.f32.mrf.mxu2 }
 0x2a4   : > { %16233 = vst [vmem:[#allocation46_spill] sm:$0xff] %v12527_v14  ;;  %v2356_v36 = vpop.f32.mrf.mxu1 }
 0x2a5   : > { %v2403_v53 = vadd.f32 %v2356_v36, %v12304_v59  ;;  %v2987_v59 = vpack.c.bf16 %v1437_v62, %v1436_v8  ;;  %v12548_v23 = vpop.f32.mrf.mxu3 }
 0x2a7   : > { %10246 = vmatmul.msk.bf16.gmra.mxu1 %vm688_vm1, %v2986_v32  ;;  %v12552_v32 = vpop.f32.mrf.mxu0 }
 0x2ab   : > { %v2546_v2 = vpop.f32.mrf.mxu2 }
 0x2ac   : > { %v12535_v11 = vadd.f32 %v2546_v2, %v2403_v53  ;;  %v2358_v19 = vpop.f32.mrf.mxu1  ;;  %v1438_v53 = vld [vmem:[#allocation2 + $0xaa] sm:$0xff]  ;;  %v1439_v2 = vld [vmem:[#allocation2 + $0xb2] sm:$0xff] }
 0x2ad   : > { %v12538_v6 = vadd.f32 %v2358_v19, %v12309_v13  ;;  %v12557_v19 = vpop.f32.mrf.mxu3 }
 0x2ae   : > { %16234 = vst [vmem:[#allocation48_spill] sm:$0xff] %v12535_v11 }
 0x2af   : > { %16235 = vst [vmem:[#allocation50_spill] sm:$0xff] %v12538_v6 }
 0x2b3   : > { %v12544_v51 = vpop.f32.mrf.mxu2 }
 0x2b4   : > { %16236 = vst [vmem:[#allocation52_spill] sm:$0xff] %v12544_v51  ;;  %v2361_v40 = vpop.f32.mrf.mxu1 }
 0x2b5   : > { %v2405_v55 = vadd.f32 %v2361_v40, %v12318_v26  ;;  %v2988_v26 = vpack.c.bf16 %v1439_v2, %v1438_v53  ;;  %v12562_v40 = vpop.f32.mrf.mxu0  ;;  %v1441_v53 = vld [vmem:[#allocation2 + $0xca] sm:$0xff] }
 0x2b7   : > { %10247 = vmatmul.msk.bf16.gmra.mxu1 %vm688_vm1, %v2987_v59 }
 0x2bb   : > { %v2551_v17 = vpop.f32.mrf.mxu2 }
 0x2bc   : > { %v12550_v50 = vadd.f32 %v2551_v17, %v2405_v55  ;;  %v2363_v13 = vpop.f32.mrf.mxu1 }
 0x2bd   : > { %v12555_v36 = vadd.f32 %v2363_v13, %v12323_v45  ;;  %v12567_v45 = vpop.f32.mrf.mxu3  ;;  %v12578_v2 = vpop.f32.mrf.mxu0 }
 0x2be   : > { %16237 = vst [vmem:[#allocation54_spill] sm:$0xff] %v12550_v50 }
 0x2bf   : > { %16238 = vst [vmem:[#allocation51_spill] sm:$0xff] %v12555_v36  ;;  %v16242_v36 = vmov 0.0  }
 0x2c0   : > { %749 = vst.msk [vmem:[#allocation3 + $0x18] sm:$0xff] %vm744_vm3, %v16242_v36 }
 0x2c1   : > { %750 = vst.msk [vmem:[#allocation3 + $0x20] sm:$0xff] %vm744_vm3, %v16242_v36 }
 0x2c2   : > { %745 = vst.msk [vmem:[#allocation3] sm:$0xff] %vm744_vm3, %v16242_v36 }
 0x2c3   : > { %v12559_v8 = vpop.f32.mrf.mxu2  ;;  %746 = vst.msk [vmem:[#allocation3 + $0x8] sm:$0xff] %vm744_vm3, %v16242_v36 }
 0x2c4   : > { %16239 = vst [vmem:[#allocation53_spill] sm:$0xff] %v12559_v8  ;;  %v2366_v62 = vpop.f32.mrf.mxu1 }
 0x2c5   : > { %v2407_v59 = vadd.f32 %v2366_v62, %v12332_v56  ;;  %v1440_v56 = vld [vmem:[#allocation2 + $0xc2] sm:$0xff]  ;;  %752 = vst.msk [vmem:[#allocation3 + $0x30] sm:$0xff] %vm744_vm3, %v16242_v36 }
 0x2c6   : > { %753 = vst.msk [vmem:[#allocation3 + $0x38] sm:$0xff] %vm744_vm3, %v16242_v36 }
 0x2c7   : > { %10248 = vmatmul.msk.bf16.gmra.mxu1 %vm688_vm1, %v2988_v26  ;;  %755 = vst.msk [vmem:[#allocation3 + $0x48] sm:$0xff] %vm744_vm3, %v16242_v36 }
 0x2c8   : > { %756 = vst.msk [vmem:[#allocation3 + $0x50] sm:$0xff] %vm744_vm3, %v16242_v36 }
 0x2c9   : > { %758 = vst.msk [vmem:[#allocation3 + $0x60] sm:$0xff] %vm744_vm3, %v16242_v36 }
 0x2ca   : > { %759 = vst.msk [vmem:[#allocation3 + $0x68] sm:$0xff] %vm744_vm3, %v16242_v36 }
 0x2cb   : > { %v2556_v55 = vpop.f32.mrf.mxu2  ;;  %761 = vst.msk [vmem:[#allocation3 + $0x78] sm:$0xff] %vm744_vm3, %v16242_v36 }
 0x2cc   : > { %v12565_v17 = vadd.f32 %v2556_v55, %v2407_v59  ;;  %v2368_v50 = vpop.f32.mrf.mxu1  ;;  %v11011_v59 = vld [vmem:[%s16064_s11 + $0x10] sm:$0xff]  ;;  %v12598_v55 = vpop.f32.mrf.mxu3  ;;  %762 = vst.msk [vmem:[#allocation3 + $0x80] sm:$0xff] %vm744_vm3, %v16242_v36 }
 0x2cd   : > { %v12570_v13 = vadd.f32 %v2368_v50, %v12337_v41  ;;  %v2989_v50 = vpack.c.bf16 %v1441_v53, %v1440_v56  ;;  %3892 = vmatpush.bf16.msrb.mxu3 %v11011_v59  ;;  %v3310_v56 = vld [vmem:[#allocation3] sm:$0xff]  ;;  %v3311_v53 = vld [vmem:[#allocation3 + $0x8] sm:$0xff]  ;;  %764 = vst.msk [vmem:[#allocation3 + $0x90] sm:$0xff] %vm744_vm3, %v16242_v36 }
 0x2ce   : > { %16240 = vst [vmem:[#allocation55_spill] sm:$0xff] %v12565_v17  ;;  %v12709_v17 = vld [vmem:[%s16063_s10] ss:$0 sm:$0xff] }
 0x2cf   : > { %16241 = vst [vmem:[#allocation56_spill] sm:$0xff] %v12570_v13 }
 0x2d0   : > { %765 = vst.msk [vmem:[#allocation3 + $0x98] sm:$0xff] %vm744_vm3, %v16242_v36 }
 0x2d1   : > { %767 = vst.msk [vmem:[#allocation3 + $0xa8] sm:$0xff] %vm744_vm3, %v16242_v36 }
 0x2d2   : > { %768 = vst.msk [vmem:[#allocation3 + $0xb0] sm:$0xff] %vm744_vm3, %v16242_v36 }
 0x2d3   : > { %v12584_v41 = vpop.f32.mrf.mxu2  ;;  %770 = vst.msk [vmem:[#allocation3 + $0xc0] sm:$0xff] %vm744_vm3, %v16242_v36 }
 0x2d4   : > { %16243 = vst [vmem:[#allocation57_spill] sm:$0xff] %v12584_v41  ;;  %v2371_v26 = vpop.f32.mrf.mxu1 }
 0x2d5   : > { %v2409_v62 = vadd.f32 %v2371_v26, %v12346_v60  ;;  %v11014_v60 = vld [vmem:[%s16064_s11 + $0x28] sm:$0xff]  ;;  %v3603_v26 = vpack.c.bf16 %v3311_v53, %v3310_v56  ;;  %771 = vst.msk [vmem:[#allocation3 + $0xc8] sm:$0xff] %vm744_vm3, %v16242_v36 }
 0x2d6   : > { %4093 = vmatpush.bf16.msrb.mxu0 %v11014_v60  ;;  %v11013_v60 = vld [vmem:[%s16064_s11 + $0x20] sm:$0xff]  ;;  %773 = vst.msk [vmem:[#allocation3 + $0xd8] sm:$0xff] %vm744_vm3, %v16242_v36 }
 0x2d7   : > { %10249 = vmatmul.msk.bf16.gmra.mxu1 %vm688_vm1, %v2989_v50  ;;  %v12612_v50 = vpop.f32.mrf.mxu0  ;;  %10267 = vmatmul.msk.bf16.vlgmr.msrb.gmra.mxu2 %vm744_vm3, %v3603_v26  ;;  %v1443_v53 = vld [vmem:[#allocation2 + $0xe2] sm:$0xff]  ;;  %774 = vst.msk [vmem:[#allocation3 + $0xe0] sm:$0xff] %vm744_vm3, %v16242_v36 }
 0x2d8   : > { %776 = vst.msk [vmem:[#allocation3 + $0xf0] sm:$0xff] %vm744_vm3, %v16242_v36 }
 0x2d9   : > { %777 = vst.msk [vmem:[#allocation3 + $0xf8] sm:$0xff] %vm744_vm3, %v16242_v36 }
 0x2da   : > { %4094 = vmatpush.bf16.msrb.mxu0 %v11013_v60  ;;  %779 = vst.msk [vmem:[#allocation3 + $0x108] sm:$0xff] %vm744_vm3, %v16242_v36 }
 0x2db   : > { %v2561_v59 = vpop.f32.mrf.mxu2  ;;  %780 = vst.msk [vmem:[#allocation3 + $0x110] sm:$0xff] %vm744_vm3, %v16242_v36 }
 0x2dc   : > { %v12617_v41 = vadd.f32 %v2561_v59, %v2409_v62  ;;  %v2373_v13 = vpop.f32.mrf.mxu1  ;;  %v1442_v62 = vld [vmem:[#allocation2 + $0xda] sm:$0xff]  ;;  %782 = vst.msk [vmem:[#allocation3 + $0x120] sm:$0xff] %vm744_vm3, %v16242_v36 }
 0x2dd   : > { %v12622_v56 = vadd.f32 %v2373_v13, %v12354_v57  ;;  %v12635_v57 = vpop.f32.mrf.mxu3  ;;  %v2990_v26 = vpack.c.bf16 %v1443_v53, %v1442_v62  ;;  %v11016_v62 = vld [vmem:[%s16064_s11 + $0x38] sm:$0xff]  ;;  %783 = vst.msk [vmem:[#allocation3 + $0x128] sm:$0xff] %vm744_vm3, %v16242_v36 }
 0x2de   : > { %16244 = vst [vmem:[#allocation58_spill] sm:$0xff] %v12617_v41  ;;  %v11018_v41 = vld [vmem:[%s16064_s11 + $0x48] sm:$0xff]  ;;  %4295 = vmatpush.bf16.msra.mxu1 %v11016_v62 }
 0x2df   : > { %16245 = vst [vmem:[#allocation59_spill] sm:$0xff] %v12622_v56  ;;  %v12647_v60 = vpop.f32.mrf.mxu0  ;;  %4497 = vmatpush.bf16.msra.mxu2 %v11018_v41 }
 0x2e0   : > { %785 = vst.msk [vmem:[#allocation3 + $0x138] sm:$0xff] %vm744_vm3, %v16242_v36 }
 0x2e1   : > { %786 = vst.msk [vmem:[#allocation3 + $0x140] sm:$0xff] %vm744_vm3, %v16242_v36 }
 0x2e2   : > { %788 = vst.msk [vmem:[#allocation3 + $0x150] sm:$0xff] %vm744_vm3, %v16242_v36 }
 0x2e3   : > { %v12641_v13 = vpop.f32.mrf.mxu2  ;;  %789 = vst.msk [vmem:[#allocation3 + $0x158] sm:$0xff] %vm744_vm3, %v16242_v36 }
 0x2e4   : > { %16246 = vst [vmem:[#allocation60_spill] sm:$0xff] %v12641_v13  ;;  %v2376_v59 = vpop.f32.mrf.mxu1 }
 0x2e5   : > { %v2411_v56 = vadd.f32 %v2376_v59, %v12363_v61  ;;  %v12669_v61 = vpop.f32.mrf.mxu3  ;;  %791 = vst.msk [vmem:[#allocation3 + $0x168] sm:$0xff] %vm744_vm3, %v16242_v36 }
 0x2e6   : > { %792 = vst.msk [vmem:[#allocation3 + $0x170] sm:$0xff] %vm744_vm3, %v16242_v36 }
 0x2e7   : > { %10250 = vmatmul.msk.bf16.gmra.mxu1 %vm688_vm1, %v2990_v26  ;;  %794 = vst.msk [vmem:[#allocation3 + $0x180] sm:$0xff] %vm744_vm3, %v16242_v36  ;;  %v12684_v62 = vpop.f32.mrf.mxu0 }
 0x2e8   : > { %795 = vst.msk [vmem:[#allocation3 + $0x188] sm:$0xff] %vm744_vm3, %v16242_v36 }
 0x2e9   : > { %797 = vst.msk [vmem:[#allocation3 + $0x198] sm:$0xff] %vm744_vm3, %v16242_v36 }
 0x2ea   : > { %798 = vst.msk [vmem:[#allocation3 + $0x1a0] sm:$0xff] %vm744_vm3, %v16242_v36 }
 0x2eb   : > { %v2566_v53 = vpop.f32.mrf.mxu2  ;;  %748 = vst.msk [vmem:[#allocation3 + $0x10] sm:$0x3] %vm747_vm4, %v16242_v36 }
 0x2ec   : > { %v12673_v26 = vadd.f32 %v2566_v53, %v2411_v56  ;;  %v2378_v59 = vpop.f32.mrf.mxu1  ;;  %v1444_v56 = vld [vmem:[#allocation2 + $0xf2] sm:$0xff]  ;;  %v1445_v53 = vld [vmem:[#allocation2 + $0xfa] sm:$0xff]  ;;  %751 = vst.msk [vmem:[#allocation3 + $0x28] sm:$0x3] %vm747_vm4, %v16242_v36 }
 0x2ed   : > { %v12678_v41 = vadd.f32 %v2378_v59, %v12369_v30  ;;  %v12697_v30 = vld [vmem:[%s16062_s9] ss:$0 sm:$0xff]  ;;  %v2991_v59 = vpack.c.bf16 %v1445_v53, %v1444_v56  ;;  %754 = vst.msk [vmem:[#allocation3 + $0x40] sm:$0x3] %vm747_vm4, %v16242_v36  ;;  %v3342_v53 = vld [vmem:[#allocation3 + $0x1] sm:$0xff] }
 0x2ee   : > { %16247 = vst [vmem:[#allocation61_spill] sm:$0xff] %v12673_v26  ;;  %v12703_v26 = vpop.f32.mrf.mxu3 }
 0x2ef   : > { %16248 = vst [vmem:[#allocation62_spill] sm:$0xff] %v12678_v41 }
 0x2f0   : > { %757 = vst.msk [vmem:[#allocation3 + $0x58] sm:$0x3] %vm747_vm4, %v16242_v36 }
 0x2f1   : > { %760 = vst.msk [vmem:[#allocation3 + $0x70] sm:$0x3] %vm747_vm4, %v16242_v36 }
 0x2f2   : > { %763 = vst.msk [vmem:[#allocation3 + $0x88] sm:$0x3] %vm747_vm4, %v16242_v36  ;;  %v3343_v51 = vld [vmem:[#allocation3 + $0x9] sm:$0xff] }
 0x2f3   : > { %766 = vst.msk [vmem:[#allocation3 + $0xa0] sm:$0x3] %vm747_vm4, %v16242_v36  ;;  %v3375_v6 = vld [vmem:[#allocation3 + $0xa] sm:$0xff] }
 0x2f4   : > { %v3061_v41 = vpop.f32.mrf.mxu1  ;;  %769 = vst.msk [vmem:[#allocation3 + $0xb8] sm:$0x3] %vm747_vm4, %v16242_v36 }
 0x2f5   : > { %v3141_v13 = vadd.f32 %v3061_v41, %v12378_v1  ;;  %v3374_v1 = vld [vmem:[#allocation3 + $0x2] sm:$0xff]  ;;  %v12721_v41 = vpop.f32.mrf.mxu0  ;;  %772 = vst.msk [vmem:[#allocation3 + $0xd0] sm:$0x3] %vm747_vm4, %v16242_v36 }
 0x2f6   : > { %16249 = vst [vmem:[#allocation63_spill] sm:$0xff] %v12721_v41 }
 0x2f7   : > { %v3177_v56 = vmul.f32 %v12697_v30, %v3141_v13  ;;  %10251 = vmatmul.msk.bf16.gmra.mxu1 %vm688_vm1, %v2991_v59  ;;  %v3804_v13 = vpack.c.bf16 %v3343_v51, %v3342_v53  ;;  %v4006_v59 = vpack.c.bf16 %v3375_v6, %v3374_v1  ;;  %775 = vst.msk [vmem:[#allocation3 + $0xe8] sm:$0x3] %vm747_vm4, %v16242_v36  ;;  %v12738_v6 = vpop.f32.mrf.mxu3  ;;  %v1446_v53 = vld [vmem:[#allocation2 + $0x10a] sm:$0xff]  ;;  %v1447_v1 = vld [vmem:[#allocation2 + $0x112] sm:$0xff] }
 0x2f8   : > { %778 = vst.msk [vmem:[#allocation3 + $0x100] sm:$0x3] %vm747_vm4, %v16242_v36 }
 0x2f9   : > { %v3213_v8 = vadd.f32 %v12709_v17, %v3177_v56  ;;  %10295 = vmatmul.msk.bf16.vlgmr.msrb.gmra.mxu3 %vm744_vm3, %v3804_v13  ;;  %10323 = vmatmul.msk.bf16.vlgmr.msrb.gmra.mxu0 %vm744_vm3, %v4006_v59  ;;  %781 = vst.msk [vmem:[#allocation3 + $0x118] sm:$0x3] %vm747_vm4, %v16242_v36  ;;  %v2992_v59 = vpack.c.bf16 %v1447_v1, %v1446_v53 }
 0x2fa   : > { %16250 = vst [vmem:[#allocation64_spill] sm:$0xff] %v12738_v6 }
 0x2fb   : > { %v3245_v11 = vmax.f32 %v3213_v8, 0.0  ;;  %784 = vst.msk [vmem:[#allocation3 + $0x130] sm:$0x3] %vm747_vm4, %v16242_v36 }
 0x2fc   : > { %v3063_v56 = vpop.f32.mrf.mxu1  ;;  %787 = vst.msk [vmem:[#allocation3 + $0x148] sm:$0x3] %vm747_vm4, %v16242_v36 }
 0x2fd   : > { %3278 = vst.msk [vmem:[#allocation3 + $0x19] sm:$0xff] %vm744_vm3, %v3245_v11  ;;  %v3142_v51 = vadd.f32 %v3063_v56, %v12383_v54  ;;  %v12750_v11 = vpop.f32.mrf.mxu0 }
 0x2fe   : > { %790 = vst.msk [vmem:[#allocation3 + $0x160] sm:$0x3] %vm747_vm4, %v16242_v36 }
 0x2ff   : > { %v3178_v8 = vmul.f32 %v12697_v30, %v3142_v51  ;;  %793 = vst.msk [vmem:[#allocation3 + $0x178] sm:$0x3] %vm747_vm4, %v16242_v36  ;;  %v12760_v14 = vpop.f32.mrf.mxu3 }
 0x300   : > { %16251 = vst [vmem:[#allocation65_spill] sm:$0xff] %v12750_v11 }
 0x301   : > { %v3214_v54 = vadd.f32 %v12709_v17, %v3178_v8  ;;  %796 = vst.msk [vmem:[#allocation3 + $0x190] sm:$0x3] %vm747_vm4, %v16242_v36 }
 0x302   : > { %799 = vst.msk [vmem:[#allocation3 + $0x1a8] sm:$0x3] %vm747_vm4, %v16242_v36 }
 0x303   : > { %v3246_v13 = vmax.f32 %v3214_v54, 0.0  ;;  %16252 = vst [vmem:[#allocation66_spill] sm:$0xff] %v12760_v14 }
 0x304   : > { %v3066_v56 = vpop.f32.mrf.mxu1  ;;  %v3312_v44 = vld [vmem:[#allocation3 + $0x18] sm:$0xff] }
 0x305   : > { %3279 = vst.msk [vmem:[#allocation3 + $0x21] sm:$0xff] %vm744_vm3, %v3246_v13  ;;  %v3143_v51 = vadd.f32 %v3066_v56, %v12392_v31  ;;  %v3344_v54 = vld [vmem:[#allocation3 + $0x19] sm:$0xff]  ;;  %v12763_v6 = vpop.f32.mrf.mxu0 }
 0x306   : > { %16253 = vst [vmem:[#allocation67_spill] sm:$0xff] %v12763_v6  ;;  %v1449_v6 = vld [vmem:[#allocation2 + $0x12a] sm:$0xff] }
 0x307   : > { %v3179_v8 = vmul.f32 %v12697_v30, %v3143_v51  ;;  %10252 = vmatmul.msk.bf16.gmra.mxu1 %vm688_vm1, %v2992_v59  ;;  %v12775_v14 = vpop.f32.mrf.mxu3 }
 0x309   : > { %v3215_v15 = vadd.f32 %v12709_v17, %v3179_v8 }
 0x30b   : > { %v3247_v11 = vmax.f32 %v3215_v15, 0.0  ;;  %v1448_v15 = vld [vmem:[#allocation2 + $0x122] sm:$0xff] }
 0x30c   : > { %v3068_v53 = vpop.f32.mrf.mxu1  ;;  %v3313_v1 = vld [vmem:[#allocation3 + $0x20] sm:$0xff] }
 0x30d   : > { %v3345_v41 = vld [vmem:[#allocation3 + $0x21] sm:$0xff]  ;;  %3280 = vst.msk [vmem:[#allocation3 + $0x31] sm:$0xff] %vm744_vm3, %v3247_v11  ;;  %v3144_v31 = vadd.f32 %v3068_v53, %v12397_v5  ;;  %v12767_v13 = vpack.c.bf16 %v3313_v1, %v3312_v44  ;;  %v2993_v44 = vpack.c.bf16 %v1449_v6, %v1448_v15  ;;  %v12779_v53 = vpop.f32.mrf.mxu0 }
 0x30e   : > { %v3376_v36 = vld [vmem:[#allocation3 + $0x1a] sm:$0xff]  ;;  %v3805_v59 = vpack.c.bf16 %v3345_v41, %v3344_v54  ;;  %v3377_v56 = vld [vmem:[#allocation3 + $0x22] sm:$0xff]  ;;  %16254 = vst [vmem:[#allocation68_spill] sm:$0xff] %v12779_v53  ;;  %v1451_v53 = vld [vmem:[#allocation2 + $0x142] sm:$0xff] }
 0x30f   : > { %v4007_v51 = vpack.c.bf16 %v3377_v56, %v3376_v36  ;;  %v3180_v8 = vmul.f32 %v12697_v30, %v3144_v31  ;;  %10268 = vmatmul.msk.bf16.gmra.mxu2 %vm744_vm3, %v12767_v13  ;;  %v12784_v15 = vpop.f32.mrf.mxu3 }
 0x310   : > { %10296 = vmatmul.msk.bf16.gmra.mxu3 %vm744_vm3, %v3805_v59  ;;  %16255 = vst [vmem:[#allocation69_spill] sm:$0xff] %v12784_v15 }
 0x311   : > { %10324 = vmatmul.msk.bf16.gmra.mxu0 %vm744_vm3, %v4007_v51  ;;  %v3216_v11 = vadd.f32 %v12709_v17, %v3180_v8 }
 0x313   : > { %v3248_v5 = vmax.f32 %v3216_v11, 0.0 }
 0x314   : > { %v3071_v41 = vpop.f32.mrf.mxu1  ;;  %v3314_v59 = vld [vmem:[#allocation3 + $0x30] sm:$0xff] }
 0x315   : > { %3281 = vst.msk [vmem:[#allocation3 + $0x39] sm:$0xff] %vm744_vm3, %v3248_v5  ;;  %v3145_v54 = vadd.f32 %v3071_v41, %v12406_v34  ;;  %v3346_v56 = vld [vmem:[#allocation3 + $0x31] sm:$0xff]  ;;  %v12795_v15 = vpop.f32.mrf.mxu0 }
 0x317   : > { %v3181_v1 = vmul.f32 %v12697_v30, %v3145_v54  ;;  %10253 = vmatmul.msk.bf16.gmra.mxu1 %vm688_vm1, %v2993_v44 }
 0x319   : > { %v3217_v36 = vadd.f32 %v12709_v17, %v3181_v1 }
 0x31b   : > { %v3249_v31 = vmax.f32 %v3217_v36, 0.0  ;;  %v1450_v36 = vld [vmem:[#allocation2 + $0x13a] sm:$0xff] }
 0x31c   : > { %v3073_v51 = vpop.f32.mrf.mxu1  ;;  %v3315_v8 = vld [vmem:[#allocation3 + $0x38] sm:$0xff] }
 0x31d   : > { %v3347_v11 = vld [vmem:[#allocation3 + $0x39] sm:$0xff]  ;;  %3282 = vst.msk [vmem:[#allocation3 + $0x49] sm:$0xff] %vm744_vm3, %v3249_v31  ;;  %v3146_v34 = vadd.f32 %v3073_v51, %v12411_v38  ;;  %v12788_v5 = vpack.c.bf16 %v3315_v8, %v3314_v59  ;;  %v2994_v59 = vpack.c.bf16 %v1451_v53, %v1450_v36  ;;  %v12800_v8 = vpop.f32.mrf.mxu3 }
 0x31e   : > { %v3378_v6 = vld [vmem:[#allocation3 + $0x32] sm:$0xff]  ;;  %v3806_v41 = vpack.c.bf16 %v3347_v11, %v3346_v56  ;;  %v3379_v54 = vld [vmem:[#allocation3 + $0x3a] sm:$0xff] }
 0x31f   : > { %v4008_v44 = vpack.c.bf16 %v3379_v54, %v3378_v6  ;;  %v3182_v1 = vmul.f32 %v12697_v30, %v3146_v34  ;;  %10269 = vmatmul.msk.bf16.gmra.mxu2 %vm744_vm3, %v12788_v5  ;;  %v12805_v34 = vpop.f32.mrf.mxu0 }
 0x320   : > { %10297 = vmatmul.msk.bf16.gmra.mxu3 %vm744_vm3, %v3806_v41  ;;  %16256 = vst [vmem:[#allocation70_spill] sm:$0xff] %v12805_v34  ;;  %v1453_v34 = vld [vmem:[#allocation2 + $0x15a] sm:$0xff] }
 0x321   : > { %10325 = vmatmul.msk.bf16.gmra.mxu0 %vm744_vm3, %v4008_v44  ;;  %v3218_v38 = vadd.f32 %v12709_v17, %v3182_v1 }
 0x323   : > { %v3250_v31 = vmax.f32 %v3218_v38, 0.0 }
 0x324   : > { %v3076_v56 = vpop.f32.mrf.mxu1  ;;  %v3316_v54 = vld [vmem:[#allocation3 + $0x48] sm:$0xff] }
 0x325   : > { %3283 = vst.msk [vmem:[#allocation3 + $0x51] sm:$0xff] %vm744_vm3, %v3250_v31  ;;  %v3147_v51 = vadd.f32 %v3076_v56, %v12420_v10  ;;  %v3348_v44 = vld [vmem:[#allocation3 + $0x49] sm:$0xff] }
 0x327   : > { %v3183_v11 = vmul.f32 %v12697_v30, %v3147_v51  ;;  %10254 = vmatmul.msk.bf16.gmra.mxu1 %vm688_vm1, %v2994_v59 }
 0x329   : > { %v3219_v6 = vadd.f32 %v12709_v17, %v3183_v11  ;;  %v2769_v11 = vadd.f32 %v12510_v29, %v12431_v48  ;;  %v2580_v48 = vadd.f32 %v12438_v20, %v12436_v63 }
 0x32b   : > { %v3251_v41 = vmax.f32 %v3219_v6, 0.0 }
 0x32c   : > { %v3078_v1 = vpop.f32.mrf.mxu1  ;;  %v3317_v53 = vld [vmem:[#allocation3 + $0x50] sm:$0xff] }
 0x32d   : > { %v3349_v36 = vld [vmem:[#allocation3 + $0x51] sm:$0xff]  ;;  %3284 = vst.msk [vmem:[#allocation3 + $0x61] sm:$0xff] %vm744_vm3, %v3251_v41  ;;  %v3148_v10 = vadd.f32 %v3078_v1, %v12425_v0  ;;  %v12809_v31 = vpack.c.bf16 %v3317_v53, %v3316_v54  ;;  %v1452_v41 = vld [vmem:[#allocation2 + $0x152] sm:$0xff]  ;;  %v12818_v0 = vpop.f32.mrf.mxu3 }
 0x32e   : > { %v3380_v38 = vld [vmem:[#allocation3 + $0x4a] sm:$0xff]  ;;  %v3807_v56 = vpack.c.bf16 %v3349_v36, %v3348_v44  ;;  %v3381_v51 = vld [vmem:[#allocation3 + $0x52] sm:$0xff]  ;;  %v2959_v44 = vadd.f32 %v12503_v47, %v2769_v11  ;;  %v2995_v1 = vpack.c.bf16 %v1453_v34, %v1452_v41  ;;  %v12824_v36 = vpop.f32.mrf.mxu0 }
 0x32f   : > { %v4009_v59 = vpack.c.bf16 %v3381_v51, %v3380_v38  ;;  %v3184_v6 = vmul.f32 %v12697_v30, %v3148_v10  ;;  %10270 = vmatmul.msk.bf16.gmra.mxu2 %vm744_vm3, %v12809_v31  ;;  %v2770_v10 = vadd.f32 %v12518_v24, %v2580_v48 }
 0x330   : > { %10298 = vmatmul.msk.bf16.gmra.mxu3 %vm744_vm3, %v3807_v56 }
 0x331   : > { %10326 = vmatmul.msk.bf16.gmra.mxu0 %vm744_vm3, %v4009_v59  ;;  %v3220_v54 = vadd.f32 %v12709_v17, %v3184_v6  ;;  %v2960_v47 = vadd.f32 %v12514_v49, %v2770_v10  ;;  %v2771_v49 = vadd.f32 %v12529_v12, %v12447_v39  ;;  %v1454_v10 = vld [vmem:[#allocation2 + $0x16a] sm:$0xff]  ;;  %v2582_v39 = vadd.f32 %v12454_v28, %v12452_v3 }
 0x333   : > { %v3252_v29 = vmax.f32 %v3220_v54, 0.0 }
 0x334   : > { %v3081_v53 = vpop.f32.mrf.mxu1  ;;  %v3318_v20 = vld [vmem:[#allocation3 + $0x60] sm:$0xff] }
 0x335   : > { %3285 = vst.msk [vmem:[#allocation3 + $0x69] sm:$0xff] %vm744_vm3, %v3252_v29  ;;  %v3149_v38 = vadd.f32 %v3081_v53, %v2959_v44  ;;  %v12832_v59 = vpop.f32.mrf.mxu3  ;;  %v3350_v34 = vld [vmem:[#allocation3 + $0x61] sm:$0xff] }
 0x336   : > { %v12839_v53 = vpop.f32.mrf.mxu0 }
 0x337   : > { %v3185_v56 = vmul.f32 %v12697_v30, %v3149_v38  ;;  %10255 = vmatmul.msk.bf16.gmra.mxu1 %vm688_vm1, %v2995_v1 }
 0x339   : > { %v3221_v51 = vadd.f32 %v12709_v17, %v3185_v56  ;;  %v1455_v56 = vld [vmem:[#allocation2 + $0x172] sm:$0xff] }
 0x33b   : > { %v3253_v63 = vmax.f32 %v3221_v51, 0.0 }
 0x33c   : > { %v3083_v11 = vpop.f32.mrf.mxu1  ;;  %v3319_v6 = vld [vmem:[#allocation3 + $0x68] sm:$0xff] }
 0x33d   : > { %v3351_v41 = vld [vmem:[#allocation3 + $0x69] sm:$0xff]  ;;  %3286 = vst.msk [vmem:[#allocation3 + $0x79] sm:$0xff] %vm744_vm3, %v3253_v63  ;;  %v3150_v24 = vadd.f32 %v3083_v11, %v2960_v47  ;;  %v12835_v44 = vpack.c.bf16 %v3319_v6, %v3318_v20  ;;  %v2961_v47 = vadd.f32 %v12525_v16, %v2771_v49  ;;  %v2996_v63 = vpack.c.bf16 %v1455_v56, %v1454_v10 }
 0x33e   : > { %v3382_v54 = vld [vmem:[#allocation3 + $0x62] sm:$0xff]  ;;  %v3808_v48 = vpack.c.bf16 %v3351_v41, %v3350_v34  ;;  %v3383_v29 = vld [vmem:[#allocation3 + $0x6a] sm:$0xff]  ;;  %v12850_v34 = vpop.f32.mrf.mxu3  ;;  %v2772_v6 = vadd.f32 %v12540_v58, %v2582_v39  ;;  %v2773_v39 = vadd.f32 %v12548_v23, %v12463_v33 }
 0x33f   : > { %v4010_v1 = vpack.c.bf16 %v3383_v29, %v3382_v54  ;;  %v3186_v38 = vmul.f32 %v12697_v30, %v3150_v24  ;;  %10271 = vmatmul.msk.bf16.gmra.mxu2 %vm744_vm3, %v12835_v44  ;;  %v12856_v54 = vpop.f32.mrf.mxu0 }
 0x340   : > { %10299 = vmatmul.msk.bf16.gmra.mxu3 %vm744_vm3, %v3808_v48  ;;  %v2962_v3 = vadd.f32 %v12533_v21, %v2772_v6 }
 0x341   : > { %10327 = vmatmul.msk.bf16.gmra.mxu0 %vm744_vm3, %v4010_v1  ;;  %v3222_v51 = vadd.f32 %v12709_v17, %v3186_v38 }
 0x343   : > { %v3254_v12 = vmax.f32 %v3222_v51, 0.0 }
 0x344   : > { %v3086_v20 = vpop.f32.mrf.mxu1  ;;  %v3320_v24 = vld [vmem:[#allocation3 + $0x78] sm:$0xff] }
 0x345   : > { %3287 = vst.msk [vmem:[#allocation3 + $0x81] sm:$0xff] %vm744_vm3, %v3254_v12  ;;  %v3151_v11 = vadd.f32 %v3086_v20, %v2961_v47  ;;  %v3352_v48 = vld [vmem:[#allocation3 + $0x79] sm:$0xff]  ;;  %v2963_v20 = vadd.f32 %v12542_v9, %v2773_v39 }
 0x346   : > { %v12865_v12 = vpop.f32.mrf.mxu3 }
 0x347   : > { %v3187_v41 = vmul.f32 %v12697_v30, %v3151_v11  ;;  %10256 = vmatmul.msk.bf16.gmra.mxu1 %vm688_vm1, %v2996_v63  ;;  %v2584_v11 = vadd.f32 %v12472_v7, %v12467_v4  ;;  %v12876_v6 = vpop.f32.mrf.mxu0 }
 0x349   : > { %v3223_v16 = vadd.f32 %v12709_v17, %v3187_v41 }
 0x34b   : > { %v3255_v28 = vmax.f32 %v3223_v16, 0.0  ;;  %v11015_v16 = vld [vmem:[%s16064_s11 + $0x30] sm:$0xff] }
 0x34c   : > { %v3088_v29 = vpop.f32.mrf.mxu1  ;;  %v3321_v1 = vld [vmem:[#allocation3 + $0x80] sm:$0xff]  ;;  %4296 = vmatpush.bf16.msra.mxu1 %v11015_v16 }
 0x34d   : > { %v3353_v49 = vld [vmem:[#allocation3 + $0x81] sm:$0xff]  ;;  %3288 = vst.msk [vmem:[#allocation3 + $0x91] sm:$0xff] %vm744_vm3, %v3255_v28  ;;  %v3152_v58 = vadd.f32 %v3088_v29, %v2962_v3  ;;  %v12861_v10 = vpack.c.bf16 %v3321_v1, %v3320_v24  ;;  %v2774_v3 = vadd.f32 %v12557_v19, %v2584_v11 }
 0x34e   : > { %v3384_v38 = vld [vmem:[#allocation3 + $0x7a] sm:$0xff]  ;;  %v3809_v56 = vpack.c.bf16 %v3353_v49, %v3352_v48  ;;  %v3385_v51 = vld [vmem:[#allocation3 + $0x82] sm:$0xff]  ;;  %v12886_v4 = vpop.f32.mrf.mxu3 }
 0x34f   : > { %v4011_v47 = vpack.c.bf16 %v3385_v51, %v3384_v38  ;;  %v3188_v21 = vmul.f32 %v12697_v30, %v3152_v58  ;;  %10272 = vmatmul.msk.bf16.gmra.mxu2 %vm744_vm3, %v12861_v10  ;;  %v2964_v9 = vadd.f32 %v12552_v32, %v2774_v3  ;;  %v12890_v19 = vpop.f32.mrf.mxu0  ;;  %v2775_v32 = vadd.f32 %v12567_v45, %v12481_v35 }
 0x350   : > { %10300 = vmatmul.msk.bf16.gmra.mxu3 %vm744_vm3, %v3809_v56 }
 0x351   : > { %10328 = vmatmul.msk.bf16.gmra.mxu0 %vm744_vm3, %v4011_v47  ;;  %v3224_v63 = vadd.f32 %v12709_v17, %v3188_v21 }
 0x353   : > { %v3256_v33 = vmax.f32 %v3224_v63, 0.0  ;;  %v1458_v63 = vld [vmem:[#allocation2 + $0x19a] sm:$0xff] }
 0x354   : > { %v3091_v23 = vpop.f32.mrf.mxu1  ;;  %v3322_v48 = vld [vmem:[#allocation3 + $0x90] sm:$0xff] }
 0x355   : > { %3289 = vst.msk [vmem:[#allocation3 + $0x99] sm:$0xff] %vm744_vm3, %v3256_v33  ;;  %v3153_v41 = vadd.f32 %v3091_v23, %v2963_v20  ;;  %v3354_v29 = vld [vmem:[#allocation3 + $0x91] sm:$0xff]  ;;  %v2965_v33 = vadd.f32 %v12562_v40, %v2775_v32  ;;  %v2586_v23 = vadd.f32 %v12490_v18, %v12485_v46 }
 0x356   : > { %v1459_v20 = vld [vmem:[#allocation2 + $0x1a2] sm:$0xff] }
 0x357   : > { %v3189_v28 = vmul.f32 %v12697_v30, %v3153_v41  ;;  %10257 = vmatmul.msk.bf16.gmra.mxu1 %vm688_vm1, %v12474_v42  ;;  %v12906_v41 = vpop.f32.mrf.mxu3  ;;  %v2998_v45 = vpack.c.bf16 %v1459_v20, %v1458_v63 }
 0x359   : > { %v3225_v7 = vadd.f32 %v12709_v17, %v3189_v28  ;;  %v11017_v28 = vld [vmem:[%s16064_s11 + $0x40] sm:$0xff] }
 0x35a   : > { %4498 = vmatpush.bf16.msra.mxu2 %v11017_v28 }
 0x35b   : > { %v3257_v24 = vmax.f32 %v3225_v7, 0.0  ;;  %v2776_v7 = vadd.f32 %v12598_v55, %v2586_v23 }
 0x35c   : > { %v3093_v1 = vpop.f32.mrf.mxu1  ;;  %v3323_v49 = vld [vmem:[#allocation3 + $0x98] sm:$0xff] }
 0x35d   : > { %v3355_v38 = vld [vmem:[#allocation3 + $0x99] sm:$0xff]  ;;  %3290 = vst.msk [vmem:[#allocation3 + $0xa9] sm:$0xff] %vm744_vm3, %v3257_v24  ;;  %v3154_v56 = vadd.f32 %v3093_v1, %v2964_v9  ;;  %v12893_v42 = vpack.c.bf16 %v3323_v49, %v3322_v48  ;;  %v12913_v9 = vpop.f32.mrf.mxu0  ;;  %v2966_v18 = vadd.f32 %v12578_v2, %v2776_v7  ;;  %v2777_v2 = vadd.f32 %v12635_v57, %v12494_v22 }
 0x35e   : > { %v3386_v58 = vld [vmem:[#allocation3 + $0x92] sm:$0xff]  ;;  %v3810_v51 = vpack.c.bf16 %v3355_v38, %v3354_v29  ;;  %v3387_v47 = vld [vmem:[#allocation3 + $0x9a] sm:$0xff]  ;;  %v2588_v22 = vadd.f32 %v12499_v43, %v12497_v37  ;;  %v12952_v37 = vld [vmem:[%s16065_s12] ss:$0 sm:$0xff] }
 0x35f   : > { %v4012_v39 = vpack.c.bf16 %v3387_v47, %v3386_v58  ;;  %v3190_v21 = vmul.f32 %v12697_v30, %v3154_v56  ;;  %10273 = vmatmul.msk.bf16.gmra.mxu2 %vm744_vm3, %v12893_v42  ;;  %v12919_v56 = vpop.f32.mrf.mxu3 }
 0x360   : > { %10301 = vmatmul.msk.bf16.gmra.mxu3 %vm744_vm3, %v3810_v51 }
 0x361   : > { %10329 = vmatmul.msk.bf16.gmra.mxu0 %vm744_vm3, %v4012_v39  ;;  %v3226_v11 = vadd.f32 %v12709_v17, %v3190_v21  ;;  %v12926_v21 = vpop.f32.mrf.mxu2 }
 0x363   : > { %v3258_v35 = vmax.f32 %v3226_v11, 0.0 }
 0x364   : > { %v3096_v16 = vpop.f32.mrf.mxu1  ;;  %v3324_v48 = vld [vmem:[#allocation3 + $0xa8] sm:$0xff] }
 0x365   : > { %3291 = vst.msk [vmem:[#allocation3 + $0xb1] sm:$0xff] %vm744_vm3, %v3258_v35  ;;  %v3155_v3 = vadd.f32 %v3096_v16, %v2965_v33  ;;  %v3356_v29 = vld [vmem:[#allocation3 + $0xa9] sm:$0xff]  ;;  %v12933_v20 = vpop.f32.mrf.mxu0  ;;  %v2967_v33 = vadd.f32 %v12612_v50, %v2777_v2  ;;  %v2778_v16 = vadd.f32 %v12669_v61, %v2588_v22 }
 0x367   : > { %v3191_v40 = vmul.f32 %v12697_v30, %v3155_v3  ;;  %10258 = vmatmul.msk.bf16.gmra.mxu1 %vm688_vm1, %v2998_v45  ;;  %v11020_v45 = vld [vmem:[%s16064_s11 + $0x58] sm:$0xff]  ;;  %v12944_v3 = vpop.f32.mrf.mxu3 }
 0x368   : > { %4699 = vmatpush.bf16.msra.mxu3 %v11020_v45 }
 0x369   : > { %v3227_v46 = vadd.f32 %v12709_v17, %v3191_v40  ;;  %v3692_v50 = vpop.f32.mrf.mxu2  ;;  %v2968_v40 = vadd.f32 %v12647_v60, %v2778_v16  ;;  %v2779_v60 = vadd.f32 %v12703_v26, %v12505_v25  ;;  %v2590_v25 = vadd.f32 %v12512_v27, %v12508_v52  ;;  %v16257_v16 = vld [vmem:[#allocation64_spill] sm:$0xff]  ;;  %v16258_v27 = vld [vmem:[#allocation63_spill] sm:$0xff] }
 0x36b   : > { %v3259_v24 = vmax.f32 %v3227_v46, 0.0  ;;  %v2969_v22 = vadd.f32 %v12684_v62, %v2779_v60 }
 0x36c   : > { %v3098_v1 = vpop.f32.mrf.mxu1  ;;  %v3325_v49 = vld [vmem:[#allocation3 + $0xb0] sm:$0xff] }
 0x36d   : > { %v3357_v38 = vld [vmem:[#allocation3 + $0xb1] sm:$0xff]  ;;  %3292 = vst.msk [vmem:[#allocation3 + $0xc1] sm:$0xff] %vm744_vm3, %v3259_v24  ;;  %v3156_v55 = vadd.f32 %v3098_v1, %v2966_v18  ;;  %v12922_v51 = vpack.c.bf16 %v3325_v49, %v3324_v48  ;;  %v3772_v24 = vadd.f32 %v12952_v37, %v3692_v50 }
 0x36e   : > { %v3388_v58 = vld [vmem:[#allocation3 + $0xaa] sm:$0xff]  ;;  %v3811_v47 = vpack.c.bf16 %v3357_v38, %v3356_v29  ;;  %v3389_v39 = vld [vmem:[#allocation3 + $0xb2] sm:$0xff] }
 0x36f   : > { %v4013_v32 = vpack.c.bf16 %v3389_v39, %v3388_v58  ;;  %v3192_v63 = vmul.f32 %v12697_v30, %v3156_v55  ;;  %10274 = vmatmul.msk.bf16.gmra.mxu2 %vm744_vm3, %v12922_v51 }
 0x370   : > { %10302 = vmatmul.msk.bf16.gmra.mxu3 %vm744_vm3, %v3811_v47 }
 0x371   : > { %10330 = vmatmul.msk.bf16.gmra.mxu0 %vm744_vm3, %v4013_v32  ;;  %v3228_v11 = vadd.f32 %v12709_v17, %v3192_v63 }
 0x373   : > { %v3260_v57 = vmax.f32 %v3228_v11, 0.0  ;;  %v3694_v11 = vpop.f32.mrf.mxu2 }
 0x374   : > { %v3101_v23 = vpop.f32.mrf.mxu1  ;;  %v3326_v46 = vld [vmem:[#allocation3 + $0xc0] sm:$0xff] }
 0x375   : > { %3293 = vst.msk [vmem:[#allocation3 + $0xc9] sm:$0xff] %vm744_vm3, %v3260_v57  ;;  %v3157_v35 = vadd.f32 %v3101_v23, %v2967_v33  ;;  %v3358_v18 = vld [vmem:[#allocation3 + $0xc1] sm:$0xff]  ;;  %v3773_v23 = vadd.f32 %v12952_v37, %v3694_v11 }
 0x376   : > { %v4096_v7 = vpop.f32.mrf.mxu0 }
 0x377   : > { %v3193_v28 = vmul.f32 %v12697_v30, %v3157_v35  ;;  %10351 = vmatmul.msk.bf16.vlgmr.msra.gmra.mxu1 %vm744_vm3, %v12767_v13 }
 0x379   : > { %v3229_v43 = vadd.f32 %v12709_v17, %v3193_v28  ;;  %v2780_v28 = vadd.f32 %v16257_v16, %v2590_v25 }
 0x37b   : > { %v3261_v61 = vmax.f32 %v3229_v43, 0.0 }
 0x37c   : > { %v3103_v48 = vpop.f32.mrf.mxu1  ;;  %v3327_v29 = vld [vmem:[#allocation3 + $0xc8] sm:$0xff]  ;;  %v3894_v32 = vpop.f32.mrf.mxu3 }
 0x37d   : > { %v3359_v13 = vld [vmem:[#allocation3 + $0xc9] sm:$0xff]  ;;  %3294 = vst.msk [vmem:[#allocation3 + $0xd9] sm:$0xff] %vm744_vm3, %v3261_v61  ;;  %v3158_v49 = vadd.f32 %v3103_v48, %v2968_v40  ;;  %v12958_v38 = vpack.c.bf16 %v3327_v29, %v3326_v46  ;;  %v3974_v2 = vadd.f32 %v3894_v32, %v3772_v24  ;;  %v2970_v40 = vadd.f32 %v16258_v27, %v2780_v28 }
 0x37e   : > { %v3390_v1 = vld [vmem:[#allocation3 + $0xc2] sm:$0xff]  ;;  %v3812_v58 = vpack.c.bf16 %v3359_v13, %v3358_v18  ;;  %v3391_v55 = vld [vmem:[#allocation3 + $0xca] sm:$0xff]  ;;  %v4098_v57 = vpop.f32.mrf.mxu0 }
 0x37f   : > { %v4014_v47 = vpack.c.bf16 %v3391_v55, %v3390_v1  ;;  %v3194_v39 = vmul.f32 %v12697_v30, %v3158_v49  ;;  %10275 = vmatmul.msk.bf16.gmra.mxu2 %vm744_vm3, %v12958_v38  ;;  %v12968_v33 = vadd.f32 %v4096_v7, %v3974_v2  ;;  %v16260_v32 = vld [vmem:[#allocation66_spill] sm:$0xff] }
 0x380   : > { %10303 = vmatmul.msk.bf16.gmra.mxu3 %vm744_vm3, %v3812_v58 }
 0x381   : > { %10331 = vmatmul.msk.bf16.gmra.mxu0 %vm744_vm3, %v4014_v47  ;;  %v3230_v63 = vadd.f32 %v12709_v17, %v3194_v39  ;;  %v16259_v39 = vld [vmem:[#allocation47_spill] sm:$0xff] }
 0x382   : > { %v2781_v2 = vadd.f32 %v16260_v32, %v16259_v39 }
 0x383   : > { %v3262_v26 = vmax.f32 %v3230_v63, 0.0 }
 0x384   : > { %v3106_v35 = vpop.f32.mrf.mxu1  ;;  %v3896_v43 = vpop.f32.mrf.mxu3  ;;  %v3328_v46 = vld [vmem:[#allocation3 + $0xd8] sm:$0xff] }
 0x385   : > { %3295 = vst.msk [vmem:[#allocation3 + $0xe1] sm:$0xff] %vm744_vm3, %v3262_v26  ;;  %v3159_v45 = vadd.f32 %v3106_v35, %v2969_v22  ;;  %v3975_v62 = vadd.f32 %v3896_v43, %v3773_v23  ;;  %v3360_v18 = vld [vmem:[#allocation3 + $0xd9] sm:$0xff]  ;;  %v16261_v26 = vld [vmem:[#allocation65_spill] sm:$0xff]  ;;  %v16263_v35 = vld [vmem:[#allocation46_spill] sm:$0xff] }
 0x386   : > { %v16262_v23 = vld [vmem:[#allocation49_spill] sm:$0xff] }
 0x387   : > { %v3195_v50 = vmul.f32 %v12697_v30, %v3159_v45  ;;  %10352 = vmatmul.msk.bf16.gmra.mxu1 %vm744_vm3, %v12788_v5  ;;  %v12980_v52 = vadd.f32 %v4098_v57, %v3975_v62  ;;  %v2971_v57 = vadd.f32 %v16261_v26, %v2781_v2  ;;  %v2592_v45 = vadd.f32 %v16263_v35, %v16262_v23  ;;  %v16265_v26 = vld [vmem:[#allocation48_spill] sm:$0xff] }
 0x389   : > { %v3231_v7 = vadd.f32 %v12709_v17, %v3195_v50  ;;  %v2782_v27 = vadd.f32 %v12775_v14, %v2592_v45 }
 0x38b   : > { %v3263_v61 = vmax.f32 %v3231_v7, 0.0 }
 0x38c   : > { %v3108_v24 = vpop.f32.mrf.mxu1  ;;  %v3329_v48 = vld [vmem:[#allocation3 + $0xe0] sm:$0xff] }
 0x38d   : > { %v3361_v29 = vld [vmem:[#allocation3 + $0xe1] sm:$0xff]  ;;  %3296 = vst.msk [vmem:[#allocation3 + $0xf1] sm:$0xff] %vm744_vm3, %v3263_v61  ;;  %v3160_v1 = vadd.f32 %v3108_v24, %v2970_v40  ;;  %v12984_v58 = vpack.c.bf16 %v3329_v48, %v3328_v46  ;;  %v16264_v48 = vld [vmem:[#allocation67_spill] sm:$0xff] }
 0x38e   : > { %v3392_v13 = vld [vmem:[#allocation3 + $0xda] sm:$0xff]  ;;  %v4101_v49 = vpop.f32.mrf.mxu0  ;;  %v3813_v55 = vpack.c.bf16 %v3361_v29, %v3360_v18  ;;  %v3393_v47 = vld [vmem:[#allocation3 + $0xe2] sm:$0xff]  ;;  %v2972_v29 = vadd.f32 %v16264_v48, %v2782_v27  ;;  %v16268_v27 = vld [vmem:[#allocation50_spill] sm:$0xff] }
 0x38f   : > { %v4015_v60 = vpack.c.bf16 %v3393_v47, %v3392_v13  ;;  %v3196_v63 = vmul.f32 %v12697_v30, %v3160_v1  ;;  %10276 = vmatmul.msk.bf16.gmra.mxu2 %vm744_vm3, %v12984_v58 }
 0x390   : > { %10304 = vmatmul.msk.bf16.gmra.mxu3 %vm744_vm3, %v3813_v55 }
 0x391   : > { %10332 = vmatmul.msk.bf16.gmra.mxu0 %vm744_vm3, %v4015_v60  ;;  %v3232_v11 = vadd.f32 %v12709_v17, %v3196_v63 }
 0x392   : > { %v3697_v22 = vpop.f32.mrf.mxu2 }
 0x393   : > { %v3899_v25 = vpop.f32.mrf.mxu3  ;;  %v3264_v16 = vmax.f32 %v3232_v11, 0.0  ;;  %v3774_v28 = vadd.f32 %v12952_v37, %v3697_v22 }
 0x394   : > { %v3111_v50 = vpop.f32.mrf.mxu1  ;;  %v3330_v55 = vld [vmem:[#allocation3 + $0xf0] sm:$0xff] }
 0x395   : > { %3297 = vst.msk [vmem:[#allocation3 + $0xf9] sm:$0xff] %vm744_vm3, %v3264_v16  ;;  %v3976_v43 = vadd.f32 %v3899_v25, %v3774_v28  ;;  %v3161_v62 = vadd.f32 %v3111_v50, %v2971_v57  ;;  %v3362_v47 = vld [vmem:[#allocation3 + $0xf1] sm:$0xff]  ;;  %v16266_v57 = vld [vmem:[#allocation69_spill] sm:$0xff] }
 0x396   : > { %v4103_v7 = vpop.f32.mrf.mxu0  ;;  %v2783_v23 = vadd.f32 %v16266_v57, %v16265_v26 }
 0x397   : > { %v3197_v40 = vmul.f32 %v12697_v30, %v3161_v62  ;;  %10353 = vmatmul.msk.bf16.gmra.mxu1 %vm744_vm3, %v12809_v31  ;;  %v13003_v61 = vadd.f32 %v4101_v49, %v3976_v43  ;;  %v16267_v43 = vld [vmem:[#allocation68_spill] sm:$0xff] }
 0x398   : > { %v2973_v62 = vadd.f32 %v16267_v43, %v2783_v23 }
 0x399   : > { %v3233_v46 = vadd.f32 %v12709_v17, %v3197_v40  ;;  %v16269_v40 = vld [vmem:[#allocation52_spill] sm:$0xff] }
 0x39a   : > { %v3699_v18 = vpop.f32.mrf.mxu2 }
 0x39b   : > { %v3901_v24 = vpop.f32.mrf.mxu3  ;;  %v3265_v13 = vmax.f32 %v3233_v46, 0.0  ;;  %v3775_v1 = vadd.f32 %v12952_v37, %v3699_v18  ;;  %v2594_v46 = vadd.f32 %v16269_v40, %v16268_v27 }
 0x39c   : > { %v3113_v60 = vpop.f32.mrf.mxu1  ;;  %v3331_v14 = vld [vmem:[#allocation3 + $0xf8] sm:$0xff] }
 0x39d   : > { %v3363_v39 = vld [vmem:[#allocation3 + $0xf9] sm:$0xff]  ;;  %3298 = vst.msk [vmem:[#allocation3 + $0x109] sm:$0xff] %vm744_vm3, %v3265_v13  ;;  %v3977_v31 = vadd.f32 %v3901_v24, %v3775_v1  ;;  %v3162_v49 = vadd.f32 %v3113_v60, %v2972_v29  ;;  %v13009_v63 = vpack.c.bf16 %v3331_v14, %v3330_v55  ;;  %v2784_v1 = vadd.f32 %v12800_v8, %v2594_v46 }
 0x39e   : > { %v3394_v32 = vld [vmem:[#allocation3 + $0xf2] sm:$0xff]  ;;  %v4106_v2 = vpop.f32.mrf.mxu0  ;;  %v3814_v11 = vpack.c.bf16 %v3363_v39, %v3362_v47  ;;  %v3395_v22 = vld [vmem:[#allocation3 + $0xfa] sm:$0xff] }
 0x39f   : > { %v4016_v25 = vpack.c.bf16 %v3395_v22, %v3394_v32  ;;  %v3198_v35 = vmul.f32 %v12697_v30, %v3162_v49  ;;  %10277 = vmatmul.msk.bf16.gmra.mxu2 %vm744_vm3, %v13009_v63  ;;  %v13017_v45 = vadd.f32 %v4103_v7, %v3977_v31  ;;  %v2974_v32 = vadd.f32 %v12795_v15, %v2784_v1  ;;  %v16270_v15 = vld [vmem:[#allocation54_spill] sm:$0xff] }
 0x3a0   : > { %10305 = vmatmul.msk.bf16.gmra.mxu3 %vm744_vm3, %v3814_v11  ;;  %v2785_v43 = vadd.f32 %v12818_v0, %v16270_v15 }
 0x3a1   : > { %10333 = vmatmul.msk.bf16.gmra.mxu0 %vm744_vm3, %v4016_v25  ;;  %v3234_v16 = vadd.f32 %v12709_v17, %v3198_v35 }
 0x3a2   : > { %v3702_v28 = vpop.f32.mrf.mxu2 }
 0x3a3   : > { %v3904_v50 = vpop.f32.mrf.mxu3  ;;  %v3266_v18 = vmax.f32 %v3234_v16, 0.0  ;;  %v3776_v24 = vadd.f32 %v12952_v37, %v3702_v28 }
 0x3a4   : > { %v3116_v48 = vpop.f32.mrf.mxu1  ;;  %v3332_v11 = vld [vmem:[#allocation3 + $0x108] sm:$0xff] }
 0x3a5   : > { %3299 = vst.msk [vmem:[#allocation3 + $0x111] sm:$0xff] %vm744_vm3, %v3266_v18  ;;  %v3978_v29 = vadd.f32 %v3904_v50, %v3776_v24  ;;  %v3163_v7 = vadd.f32 %v3116_v48, %v2973_v62  ;;  %v3364_v22 = vld [vmem:[#allocation3 + $0x109] sm:$0xff] }
 0x3a6   : > { %v4108_v13 = vpop.f32.mrf.mxu0  ;;  %v16271_v24 = vld [vmem:[#allocation70_spill] sm:$0xff] }
 0x3a7   : > { %v3199_v55 = vmul.f32 %v12697_v30, %v3163_v7  ;;  %10354 = vmatmul.msk.bf16.gmra.mxu1 %vm744_vm3, %v12835_v44  ;;  %v13030_v47 = vadd.f32 %v4106_v2, %v3978_v29  ;;  %v2975_v48 = vadd.f32 %v16271_v24, %v2785_v43  ;;  %v16272_v29 = vld [vmem:[#allocation51_spill] sm:$0xff]  ;;  %v16273_v7 = vld [vmem:[#allocation53_spill] sm:$0xff] }
 0x3a8   : > { %v2596_v0 = vadd.f32 %v16273_v7, %v16272_v29 }
 0x3a9   : > { %v3235_v60 = vadd.f32 %v12709_v17, %v3199_v55 }
 0x3aa   : > { %v3704_v14 = vpop.f32.mrf.mxu2 }
 0x3ab   : > { %v3906_v39 = vpop.f32.mrf.mxu3  ;;  %v3267_v31 = vmax.f32 %v3235_v60, 0.0  ;;  %v3777_v49 = vadd.f32 %v12952_v37, %v3704_v14 }
 0x3ac   : > { %v3118_v25 = vpop.f32.mrf.mxu1  ;;  %v3333_v8 = vld [vmem:[#allocation3 + $0x110] sm:$0xff] }
 0x3ad   : > { %v3365_v26 = vld [vmem:[#allocation3 + $0x111] sm:$0xff]  ;;  %3300 = vst.msk [vmem:[#allocation3 + $0x121] sm:$0xff] %vm744_vm3, %v3267_v31  ;;  %v3979_v44 = vadd.f32 %v3906_v39, %v3777_v49  ;;  %v3164_v2 = vadd.f32 %v3118_v25, %v2974_v32  ;;  %v13036_v35 = vpack.c.bf16 %v3333_v8, %v3332_v11  ;;  %v2786_v32 = vadd.f32 %v12832_v59, %v2596_v0 }
 0x3ae   : > { %v3396_v57 = vld [vmem:[#allocation3 + $0x10a] sm:$0xff]  ;;  %v4111_v23 = vpop.f32.mrf.mxu0  ;;  %v3815_v16 = vpack.c.bf16 %v3365_v26, %v3364_v22  ;;  %v3397_v28 = vld [vmem:[#allocation3 + $0x112] sm:$0xff] }
 0x3af   : > { %v4017_v50 = vpack.c.bf16 %v3397_v28, %v3396_v57  ;;  %v3200_v62 = vmul.f32 %v12697_v30, %v3164_v2  ;;  %10278 = vmatmul.msk.bf16.gmra.mxu2 %vm744_vm3, %v13036_v35  ;;  %v13044_v27 = vadd.f32 %v4108_v13, %v3979_v44  ;;  %v2976_v8 = vadd.f32 %v12824_v36, %v2786_v32  ;;  %v16274_v36 = vld [vmem:[#allocation55_spill] sm:$0xff] }
 0x3b0   : > { %10306 = vmatmul.msk.bf16.gmra.mxu3 %vm744_vm3, %v3815_v16 }
 0x3b1   : > { %10334 = vmatmul.msk.bf16.gmra.mxu0 %vm744_vm3, %v4017_v50  ;;  %v3236_v40 = vadd.f32 %v12709_v17, %v3200_v62 }
 0x3b2   : > { %v3707_v46 = vpop.f32.mrf.mxu2 }
 0x3b3   : > { %v3909_v18 = vpop.f32.mrf.mxu3  ;;  %v3268_v1 = vmax.f32 %v3236_v40, 0.0  ;;  %v3778_v55 = vadd.f32 %v12952_v37, %v3707_v46 }
 0x3b4   : > { %v3121_v60 = vpop.f32.mrf.mxu1  ;;  %v3334_v44 = vld [vmem:[#allocation3 + $0x120] sm:$0xff] }
 0x3b5   : > { %3301 = vst.msk [vmem:[#allocation3 + $0x129] sm:$0xff] %vm744_vm3, %v3268_v1  ;;  %v3980_v14 = vadd.f32 %v3909_v18, %v3778_v55  ;;  %v3165_v13 = vadd.f32 %v3121_v60, %v2975_v48  ;;  %v3366_v2 = vld [vmem:[#allocation3 + $0x121] sm:$0xff]  ;;  %v2787_v18 = vadd.f32 %v12850_v34, %v16274_v36 }
 0x3b6   : > { %v4113_v39 = vpop.f32.mrf.mxu0  ;;  %v16275_v55 = vld [vmem:[#allocation56_spill] sm:$0xff]  ;;  %v16276_v60 = vld [vmem:[#allocation57_spill] sm:$0xff] }
 0x3b7   : > { %v3201_v31 = vmul.f32 %v12697_v30, %v3165_v13  ;;  %10355 = vmatmul.msk.bf16.gmra.mxu1 %vm744_vm3, %v12861_v10  ;;  %v13057_v49 = vadd.f32 %v4111_v23, %v3980_v14  ;;  %v2977_v1 = vadd.f32 %v12839_v53, %v2787_v18  ;;  %v2598_v34 = vadd.f32 %v16276_v60, %v16275_v55  ;;  %v13097_v18 = vld [vmem:[%s16062_s9] ss:$0 sm:$0xff]  ;;  %v16278_v60 = vld [vmem:[#allocation59_spill] sm:$0xff] }
 0x3b9   : > { %v3237_v11 = vadd.f32 %v12709_v17, %v3201_v31 }
 0x3ba   : > { %v3709_v22 = vpop.f32.mrf.mxu2 }
 0x3bb   : > { %v3911_v25 = vpop.f32.mrf.mxu3  ;;  %v3269_v26 = vmax.f32 %v3237_v11, 0.0  ;;  %v3779_v57 = vadd.f32 %v12952_v37, %v3709_v22  ;;  %v2788_v22 = vadd.f32 %v12865_v12, %v2598_v34  ;;  %v16279_v34 = vld [vmem:[#allocation60_spill] sm:$0xff] }
 0x3bc   : > { %v3123_v16 = vpop.f32.mrf.mxu1  ;;  %v3335_v59 = vld [vmem:[#allocation3 + $0x128] sm:$0xff] }
 0x3bd   : > { %v3367_v28 = vld [vmem:[#allocation3 + $0x129] sm:$0xff]  ;;  %3302 = vst.msk [vmem:[#allocation3 + $0x139] sm:$0xff] %vm744_vm3, %v3269_v26  ;;  %v3981_v10 = vadd.f32 %v3911_v25, %v3779_v57  ;;  %v3166_v23 = vadd.f32 %v3123_v16, %v2976_v8  ;;  %v13063_v43 = vpack.c.bf16 %v3335_v59, %v3334_v44  ;;  %v2978_v44 = vadd.f32 %v12856_v54, %v2788_v22 }
 0x3be   : > { %v3398_v50 = vld [vmem:[#allocation3 + $0x122] sm:$0xff]  ;;  %v4116_v15 = vpop.f32.mrf.mxu0  ;;  %v3816_v62 = vpack.c.bf16 %v3367_v28, %v3366_v2  ;;  %v3399_v40 = vld [vmem:[#allocation3 + $0x12a] sm:$0xff] }
 0x3bf   : > { %v4018_v46 = vpack.c.bf16 %v3399_v40, %v3398_v50  ;;  %v3202_v24 = vmul.f32 %v12697_v30, %v3166_v23  ;;  %10279 = vmatmul.msk.bf16.gmra.mxu2 %vm744_vm3, %v13063_v43  ;;  %v13071_v48 = vadd.f32 %v4113_v39, %v3981_v10  ;;  %v16277_v54 = vld [vmem:[#allocation58_spill] sm:$0xff] }
 0x3c0   : > { %10307 = vmatmul.msk.bf16.gmra.mxu3 %vm744_vm3, %v3816_v62  ;;  %v2789_v36 = vadd.f32 %v12886_v4, %v16277_v54  ;;  %v13109_v4 = vld [vmem:[%s16063_s10] ss:$0 sm:$0xff] }
 0x3c1   : > { %10335 = vmatmul.msk.bf16.gmra.mxu0 %vm744_vm3, %v4018_v46  ;;  %v3238_v29 = vadd.f32 %v12709_v17, %v3202_v24  ;;  %v11021_v54 = vld [vmem:[%s16064_s11 + $0x60] sm:$0xff] }
 0x3c2   : > { %v3712_v7 = vpop.f32.mrf.mxu2  ;;  %v2979_v55 = vadd.f32 %v12876_v6, %v2789_v36  ;;  %v11022_v6 = vld [vmem:[%s16064_s11 + $0x68] sm:$0xff] }
 0x3c3   : > { %v3914_v0 = vpop.f32.mrf.mxu3  ;;  %v3270_v14 = vmax.f32 %v3238_v29, 0.0  ;;  %v3780_v13 = vadd.f32 %v12952_v37, %v3712_v7  ;;  %4901 = vmatpush.bf16.msra.mxu0 %v11022_v6  ;;  %v11024_v6 = vld [vmem:[%s16064_s11 + $0x78] sm:$0xff] }
 0x3c4   : > { %v3126_v32 = vpop.f32.mrf.mxu1  ;;  %v3336_v59 = vld [vmem:[#allocation3 + $0x138] sm:$0xff]  ;;  %5103 = vmatpush.bf16.msrb.mxu1 %v11024_v6 }
 0x3c5   : > { %3303 = vst.msk [vmem:[#allocation3 + $0x141] sm:$0xff] %vm744_vm3, %v3270_v14  ;;  %v3982_v31 = vadd.f32 %v3914_v0, %v3780_v13  ;;  %v3167_v39 = vadd.f32 %v3126_v32, %v2977_v1  ;;  %v3368_v28 = vld [vmem:[#allocation3 + $0x139] sm:$0xff]  ;;  %v2600_v14 = vadd.f32 %v16279_v34, %v16278_v60 }
 0x3c6   : > { %v4118_v11 = vpop.f32.mrf.mxu0  ;;  %v3438_v6 = vld [vmem:[#allocation3 + $0x19] sm:$0xff] }
 0x3c7   : > { %v3203_v25 = vmul.f32 %v12697_v30, %v3167_v39  ;;  %10356 = vmatmul.msk.bf16.gmra.mxu1 %vm744_vm3, %v12893_v42  ;;  %v13084_v53 = vadd.f32 %v4116_v15, %v3982_v31  ;;  %4902 = vmatpush.bf16.msra.mxu0 %v11021_v54 }
 0x3c9   : > { %v3239_v8 = vadd.f32 %v12709_v17, %v3203_v25  ;;  %v2790_v25 = vadd.f32 %v12906_v41, %v2600_v14 }
 0x3ca   : > { %v3714_v26 = vpop.f32.mrf.mxu2 }
 0x3cb   : > { %v3916_v57 = vpop.f32.mrf.mxu3  ;;  %v3271_v2 = vmax.f32 %v3239_v8, 0.0  ;;  %v3781_v16 = vadd.f32 %v12952_v37, %v3714_v26 }
 0x3cc   : > { %v3128_v50 = vpop.f32.mrf.mxu1  ;;  %v3337_v12 = vld [vmem:[#allocation3 + $0x140] sm:$0xff] }
 0x3cd   : > { %v3369_v10 = vld [vmem:[#allocation3 + $0x141] sm:$0xff]  ;;  %3304 = vst.msk [vmem:[#allocation3 + $0x151] sm:$0xff] %vm744_vm3, %v3271_v2  ;;  %v3983_v42 = vadd.f32 %v3916_v57, %v3781_v16  ;;  %v3168_v23 = vadd.f32 %v3128_v50, %v2978_v44  ;;  %v13090_v62 = vpack.c.bf16 %v3337_v12, %v3336_v59  ;;  %v2980_v16 = vadd.f32 %v12890_v19, %v2790_v25 }
 0x3ce   : > { %v3400_v30 = vld [vmem:[#allocation3 + $0x13a] sm:$0xff]  ;;  %v4121_v15 = vpop.f32.mrf.mxu0  ;;  %v3817_v17 = vpack.c.bf16 %v3369_v10, %v3368_v28  ;;  %v3401_v40 = vld [vmem:[#allocation3 + $0x142] sm:$0xff] }
 0x3cf   : > { %v4019_v46 = vpack.c.bf16 %v3401_v40, %v3400_v30  ;;  %v3204_v24 = vmul.f32 %v13097_v18, %v3168_v23  ;;  %10280 = vmatmul.msk.bf16.gmra.mxu2 %vm744_vm3, %v13090_v62  ;;  %v13103_v29 = vadd.f32 %v4118_v11, %v3983_v42  ;;  %v11019_v19 = vld [vmem:[%s16064_s11 + $0x50] sm:$0xff] }
 0x3d0   : > { %10308 = vmatmul.msk.bf16.gmra.mxu3 %vm744_vm3, %v3817_v17 }
 0x3d1   : > { %10336 = vmatmul.msk.bf16.gmra.mxu0 %vm744_vm3, %v4019_v46  ;;  %v3240_v7 = vadd.f32 %v13109_v4, %v3204_v24  ;;  %v16280_v24 = vld [vmem:[#allocation61_spill] sm:$0xff]  ;;  %4700 = vmatpush.bf16.msra.mxu3 %v11019_v19 }
 0x3d2   : > { %v3717_v0 = vpop.f32.mrf.mxu2 }
 0x3d3   : > { %v3919_v1 = vpop.f32.mrf.mxu3  ;;  %v3272_v13 = vmax.f32 %v3240_v7, 0.0  ;;  %v3782_v32 = vadd.f32 %v12952_v37, %v3717_v0  ;;  %v2791_v7 = vadd.f32 %v12919_v56, %v16280_v24 }
 0x3d4   : > { %v3131_v31 = vpop.f32.mrf.mxu1  ;;  %v3338_v28 = vld [vmem:[#allocation3 + $0x150] sm:$0xff] }
 0x3d5   : > { %3305 = vst.msk [vmem:[#allocation3 + $0x159] sm:$0xff] %vm744_vm3, %v3272_v13  ;;  %v3984_v39 = vadd.f32 %v3919_v1, %v3782_v32  ;;  %v3169_v11 = vadd.f32 %v3131_v31, %v2979_v55  ;;  %v3370_v50 = vld [vmem:[#allocation3 + $0x151] sm:$0xff]  ;;  %v2981_v14 = vadd.f32 %v12913_v9, %v2791_v7 }
 0x3d6   : > { %v4123_v22 = vpop.f32.mrf.mxu0  ;;  %v11026_v55 = vld [vmem:[%s16064_s11 + $0x88] sm:$0xff]  ;;  %v16281_v13 = vld [vmem:[#allocation62_spill] sm:$0xff] }
 0x3d7   : > { %v3205_v8 = vmul.f32 %v13097_v18, %v3169_v11  ;;  %10357 = vmatmul.msk.bf16.gmra.mxu1 %vm744_vm3, %v12922_v51  ;;  %v13124_v26 = vadd.f32 %v4121_v15, %v3984_v39  ;;  %5305 = vmatpush.bf16.msrb.mxu2 %v11026_v55  ;;  %v2602_v32 = vadd.f32 %v12926_v21, %v16281_v13 }
 0x3d9   : > { %v3241_v57 = vadd.f32 %v13109_v4, %v3205_v8 }
 0x3da   : > { %v3719_v44 = vpop.f32.mrf.mxu2 }
 0x3db   : > { %v3921_v2 = vpop.f32.mrf.mxu3  ;;  %v3273_v59 = vmax.f32 %v3241_v57, 0.0  ;;  %v3783_v41 = vadd.f32 %v12952_v37, %v3719_v44  ;;  %v2792_v57 = vadd.f32 %v12944_v3, %v2602_v32 }
 0x3dc   : > { %v3133_v12 = vpop.f32.mrf.mxu1  ;;  %v3339_v51 = vld [vmem:[#allocation3 + $0x158] sm:$0xff] }
 0x3dd   : > { %v3371_v10 = vld [vmem:[#allocation3 + $0x159] sm:$0xff]  ;;  %3306 = vst.msk [vmem:[#allocation3 + $0x169] sm:$0xff] %vm744_vm3, %v3273_v59  ;;  %v3985_v42 = vadd.f32 %v3921_v2, %v3783_v41  ;;  %v3170_v23 = vadd.f32 %v3133_v12, %v2980_v16  ;;  %v13130_v17 = vpack.c.bf16 %v3339_v51, %v3338_v28  ;;  %v2982_v59 = vadd.f32 %v12933_v20, %v2792_v57 }
 0x3de   : > { %v3402_v30 = vld [vmem:[#allocation3 + $0x152] sm:$0xff]  ;;  %v4126_v15 = vpop.f32.mrf.mxu0  ;;  %v13132_v40 = vpack.c.bf16 %v3371_v10, %v3370_v50  ;;  %v3403_v46 = vld [vmem:[#allocation3 + $0x15a] sm:$0xff] }
 0x3df   : > { %v13140_v36 = vpack.c.bf16 %v3403_v46, %v3402_v30  ;;  %v3206_v0 = vmul.f32 %v13097_v18, %v3170_v23  ;;  %10281 = vmatmul.msk.bf16.gmra.mxu2 %vm744_vm3, %v13130_v17  ;;  %v13149_v1 = vadd.f32 %v4123_v22, %v3985_v42 }
 0x3e0   : > { %10309 = vmatmul.msk.bf16.gmra.mxu3 %vm744_vm3, %v13132_v40 }
 0x3e1   : > { %10337 = vmatmul.msk.bf16.gmra.mxu0 %vm744_vm3, %v13140_v36  ;;  %v3242_v56 = vadd.f32 %v13109_v4, %v3206_v0 }
 0x3e2   : > { %v3722_v60 = vpop.f32.mrf.mxu2 }
 0x3e3   : > { %v3924_v34 = vpop.f32.mrf.mxu3  ;;  %v3274_v31 = vmax.f32 %v3242_v56, 0.0  ;;  %v3784_v39 = vadd.f32 %v12952_v37, %v3722_v60 }
 0x3e4   : > { %v3136_v11 = vpop.f32.mrf.mxu1  ;;  %v3340_v50 = vld [vmem:[#allocation3 + $0x168] sm:$0xff] }
 0x3e5   : > { %3307 = vst.msk [vmem:[#allocation3 + $0x171] sm:$0xff] %vm744_vm3, %v3274_v31  ;;  %v3986_v22 = vadd.f32 %v3924_v34, %v3784_v39  ;;  %v3171_v25 = vadd.f32 %v3136_v11, %v2981_v14  ;;  %v3372_v12 = vld [vmem:[#allocation3 + $0x169] sm:$0xff]  ;;  %v3439_v39 = vld [vmem:[#allocation3 + $0x21] sm:$0xff] }
 0x3e6   : > { %v4128_v8 = vpop.f32.mrf.mxu0  ;;  %v3470_v11 = vld [vmem:[#allocation3 + $0x1a] sm:$0xff] }
 0x3e7   : > { %v3207_v9 = vmul.f32 %v13097_v18, %v3171_v25  ;;  %10358 = vmatmul.msk.bf16.gmra.mxu1 %vm744_vm3, %v12958_v38  ;;  %v13169_v21 = vadd.f32 %v4126_v15, %v3986_v22  ;;  %v3471_v22 = vld [vmem:[#allocation3 + $0x22] sm:$0xff] }
 0x3e9   : > { %v3243_v44 = vadd.f32 %v13109_v4, %v3207_v9 }
 0x3ea   : > { %v3724_v2 = vpop.f32.mrf.mxu2 }
 0x3eb   : > { %v3926_v16 = vpop.f32.mrf.mxu3  ;;  %v3275_v41 = vmax.f32 %v3243_v44, 0.0  ;;  %v3785_v28 = vadd.f32 %v12952_v37, %v3724_v2  ;;  %v4612_v2 = vpack.c.bf16 %v3471_v22, %v3470_v11 }
 0x3ec   : > { %v3138_v3 = vpop.f32.mrf.mxu1  ;;  %v3341_v51 = vld [vmem:[#allocation3 + $0x170] sm:$0xff] }
 0x3ed   : > { %v3373_v10 = vld [vmem:[#allocation3 + $0x171] sm:$0xff]  ;;  %3308 = vst.msk [vmem:[#allocation3 + $0x181] sm:$0xff] %vm744_vm3, %v3275_v41  ;;  %v3987_v38 = vadd.f32 %v3926_v16, %v3785_v28  ;;  %v3172_v42 = vadd.f32 %v3138_v3, %v2982_v59  ;;  %v13175_v15 = vpack.c.bf16 %v3341_v51, %v3340_v50 }
 0x3ee   : > { %v3404_v30 = vld [vmem:[#allocation3 + $0x16a] sm:$0xff]  ;;  %v4131_v23 = vpop.f32.mrf.mxu0  ;;  %v13177_v46 = vpack.c.bf16 %v3373_v10, %v3372_v12  ;;  %v3405_v19 = vld [vmem:[#allocation3 + $0x172] sm:$0xff] }
 0x3ef   : > { %v13179_v20 = vpack.c.bf16 %v3405_v19, %v3404_v30  ;;  %v3208_v54 = vmul.f32 %v13097_v18, %v3172_v42  ;;  %10282 = vmatmul.msk.bf16.gmra.mxu2 %vm744_vm3, %v13175_v15  ;;  %v13186_v24 = vadd.f32 %v4128_v8, %v3987_v38  ;;  %v3441_v30 = vld [vmem:[#allocation3 + $0x39] sm:$0xff] }
 0x3f0   : > { %10310 = vmatmul.msk.bf16.gmra.mxu3 %vm744_vm3, %v13177_v46  ;;  %v3472_v38 = vld [vmem:[#allocation3 + $0x32] sm:$0xff] }
 0x3f1   : > { %10338 = vmatmul.msk.bf16.gmra.mxu0 %vm744_vm3, %v13179_v20  ;;  %v3244_v7 = vadd.f32 %v13109_v4, %v3208_v54  ;;  %v3440_v54 = vld [vmem:[#allocation3 + $0x31] sm:$0xff] }
 0x3f2   : > { %v3727_v0 = vpop.f32.mrf.mxu2 }
 0x3f3   : > { %v3929_v55 = vpop.f32.mrf.mxu3  ;;  %v3276_v56 = vmax.f32 %v3244_v7, 0.0  ;;  %v3786_v60 = vadd.f32 %v12952_v37, %v3727_v0 }
 0x3f4   : > { %v4298_v34 = vpop.f32.mrf.mxu1 }
 0x3f5   : > { %3309 = vst.msk [vmem:[#allocation3 + $0x189] sm:$0xff] %vm744_vm3, %v3276_v56  ;;  %v3988_v18 = vadd.f32 %v3929_v55, %v3786_v60  ;;  %v13194_v13 = vadd.f32 %v4298_v34, %v12968_v33  ;;  %v4410_v33 = vpack.c.bf16 %v3439_v39, %v3438_v6  ;;  %v13222_v55 = vpack.c.bf16 %v3441_v30, %v3440_v54  ;;  %v3505_v60 = vld [vmem:[#allocation3 + $0x48] sm:$0xff] }
 0x3f6   : > { %v4133_v14 = vpop.f32.mrf.mxu0 }
 0x3f7   : > { %10359 = vmatmul.msk.bf16.gmra.mxu1 %vm744_vm3, %v12984_v58  ;;  %v13198_v32 = vadd.f32 %v4131_v23, %v3988_v18  ;;  %v3506_v23 = vld [vmem:[#allocation3 + $0x50] sm:$0xff] }
 0x3f8   : > { %v4815_v34 = vpack.c.bf16 %v3506_v23, %v3505_v60 }
 0x3fa   : > { %v3729_v31 = vpop.f32.mrf.mxu2 }
 0x3fb   : > { %v3931_v4 = vpop.f32.mrf.mxu3  ;;  %v3787_v25 = vadd.f32 %v12952_v37, %v3729_v31 }
 0x3fc   : > { %v4300_v8 = vpop.f32.mrf.mxu1 }
 0x3fd   : > { %v3989_v57 = vadd.f32 %v3931_v4, %v3787_v25  ;;  %v13202_v44 = vadd.f32 %v4300_v8, %v12980_v52 }
 0x3fe   : > { %v4136_v9 = vpop.f32.mrf.mxu0 }
 0x3ff   : > { %10379 = vmatmul.msk.bf16.vlgmr.msra.gmra.mxu2 %vm744_vm3, %v4410_v33  ;;  %v13206_v58 = vadd.f32 %v4133_v14, %v3989_v57  ;;  %v3443_v57 = vld [vmem:[#allocation3 + $0x51] sm:$0xff] }
 0x400   : > { %10407 = vmatmul.msk.bf16.vlgmr.msra.gmra.mxu3 %vm744_vm3, %v4612_v2  ;;  %v3475_v33 = vld [vmem:[#allocation3 + $0x52] sm:$0xff] }
 0x401   : > { %10435 = vmatmul.msk.bf16.vlgmr.msra.gmra.mxu0 %vm744_vm3, %v12788_v5  ;;  %v3473_v5 = vld [vmem:[#allocation3 + $0x3a] sm:$0xff] }
 0x402   : > { %v3732_v16 = vpop.f32.mrf.mxu2  ;;  %v13224_v56 = vpack.c.bf16 %v3473_v5, %v3472_v38 }
 0x403   : > { %v3934_v59 = vpop.f32.mrf.mxu3  ;;  %v3788_v41 = vadd.f32 %v12952_v37, %v3732_v16  ;;  %v3508_v16 = vld [vmem:[#allocation3 + $0x68] sm:$0xff] }
 0x404   : > { %v4303_v28 = vpop.f32.mrf.mxu1  ;;  %16282 = vst [vmem:[#allocation64_spill] sm:$0xff] %v13224_v56 }
 0x405   : > { %v3990_v50 = vadd.f32 %v3934_v59, %v3788_v41  ;;  %v13212_v52 = vadd.f32 %v4303_v28, %v13003_v61  ;;  %v3442_v41 = vld [vmem:[#allocation3 + $0x49] sm:$0xff] }
 0x406   : > { %v4138_v12 = vpop.f32.mrf.mxu0 }
 0x407   : > { %10360 = vmatmul.msk.bf16.gmra.mxu1 %vm744_vm3, %v13009_v63  ;;  %v13216_v3 = vadd.f32 %v4136_v9, %v3990_v50  ;;  %v3474_v9 = vld [vmem:[#allocation3 + $0x4a] sm:$0xff] }
 0x40a   : > { %v3734_v51 = vpop.f32.mrf.mxu2 }
 0x40b   : > { %v3936_v10 = vpop.f32.mrf.mxu3  ;;  %v3789_v42 = vadd.f32 %v12952_v37, %v3734_v51  ;;  %v13247_v51 = vpack.c.bf16 %v3475_v33, %v3474_v9 }
 0x40c   : > { %v4305_v19 = vpop.f32.mrf.mxu1 }
 0x40d   : > { %v3991_v7 = vadd.f32 %v3936_v10, %v3789_v42  ;;  %v13220_v61 = vadd.f32 %v4305_v19, %v13017_v45  ;;  %16283 = vst [vmem:[#allocation63_spill] sm:$0xff] %v13247_v51  ;;  %v3507_v10 = vld [vmem:[#allocation3 + $0x60] sm:$0xff] }
 0x40e   : > { %v4141_v0 = vpop.f32.mrf.mxu0  ;;  %v4816_v30 = vpack.c.bf16 %v3508_v16, %v3507_v10 }
 0x40f   : > { %10380 = vmatmul.msk.bf16.gmra.mxu2 %vm744_vm3, %v13222_v55  ;;  %v13230_v18 = vadd.f32 %v4138_v12, %v3991_v7  ;;  %v13245_v12 = vpack.c.bf16 %v3443_v57, %v3442_v41 }
 0x410   : > { %10408 = vmatmul.msk.bf16.gmra.mxu3 %vm744_vm3, %v13224_v56 }
 0x411   : > { %10436 = vmatmul.msk.bf16.gmra.mxu0 %vm744_vm3, %v4815_v34 }
 0x412   : > { %v3737_v14 = vpop.f32.mrf.mxu2 }
 0x413   : > { %v3939_v31 = vpop.f32.mrf.mxu3  ;;  %v3790_v45 = vadd.f32 %v12952_v37, %v3737_v14  ;;  %v3445_v14 = vld [vmem:[#allocation3 + $0x69] sm:$0xff] }
 0x414   : > { %v4308_v4 = vpop.f32.mrf.mxu1 }
 0x415   : > { %v3992_v39 = vadd.f32 %v3939_v31, %v3790_v45  ;;  %v13235_v22 = vadd.f32 %v4308_v4, %v13030_v47  ;;  %v3476_v31 = vld [vmem:[#allocation3 + $0x62] sm:$0xff]  ;;  %v3477_v45 = vld [vmem:[#allocation3 + $0x6a] sm:$0xff] }
 0x416   : > { %v4143_v11 = vpop.f32.mrf.mxu0  ;;  %v13270_v33 = vpack.c.bf16 %v3477_v45, %v3476_v31  ;;  %v3446_v45 = vld [vmem:[#allocation3 + $0x79] sm:$0xff] }
 0x417   : > { %10361 = vmatmul.msk.bf16.gmra.mxu1 %vm744_vm3, %v13036_v35  ;;  %v13239_v25 = vadd.f32 %v4141_v0, %v3992_v39  ;;  %v3510_v39 = vld [vmem:[#allocation3 + $0x80] sm:$0xff] }
 0x418   : > { %16284 = vst [vmem:[#allocation47_spill] sm:$0xff] %v13270_v33 }
 0x41a   : > { %v3739_v8 = vpop.f32.mrf.mxu2 }
 0x41b   : > { %v3941_v6 = vpop.f32.mrf.mxu3  ;;  %v3791_v2 = vadd.f32 %v12952_v37, %v3739_v8  ;;  %v3444_v8 = vld [vmem:[#allocation3 + $0x61] sm:$0xff] }
 0x41c   : > { %v4310_v59 = vpop.f32.mrf.mxu1  ;;  %v13268_v9 = vpack.c.bf16 %v3445_v14, %v3444_v8  ;;  %v3512_v14 = vld [vmem:[#allocation3 + $0x98] sm:$0xff] }
 0x41d   : > { %v3993_v28 = vadd.f32 %v3941_v6, %v3791_v2  ;;  %v13243_v47 = vadd.f32 %v4310_v59, %v13044_v27  ;;  %v3509_v2 = vld [vmem:[#allocation3 + $0x78] sm:$0xff] }
 0x41e   : > { %v4146_v50 = vpop.f32.mrf.mxu0  ;;  %v4817_v16 = vpack.c.bf16 %v3510_v39, %v3509_v2 }
 0x41f   : > { %10381 = vmatmul.msk.bf16.gmra.mxu2 %vm744_vm3, %v13245_v12  ;;  %v13253_v38 = vadd.f32 %v4143_v11, %v3993_v28 }
 0x420   : > { %10409 = vmatmul.msk.bf16.gmra.mxu3 %vm744_vm3, %v13247_v51  ;;  %v3518_v51 = vld [vmem:[#allocation3 + $0xe0] sm:$0xff] }
 0x421   : > { %10437 = vmatmul.msk.bf16.gmra.mxu0 %vm744_vm3, %v4816_v30 }
 0x422   : > { %v3742_v5 = vpop.f32.mrf.mxu2 }
 0x423   : > { %v3944_v42 = vpop.f32.mrf.mxu3  ;;  %v3792_v27 = vadd.f32 %v12952_v37, %v3742_v5 }
 0x424   : > { %v4313_v23 = vpop.f32.mrf.mxu1 }
 0x425   : > { %v3994_v19 = vadd.f32 %v3944_v42, %v3792_v27  ;;  %v13258_v7 = vadd.f32 %v4313_v23, %v13057_v49 }
 0x426   : > { %v4148_v54 = vpop.f32.mrf.mxu0 }
 0x427   : > { %10362 = vmatmul.msk.bf16.gmra.mxu1 %vm744_vm3, %v13063_v43  ;;  %v13262_v0 = vadd.f32 %v4146_v50, %v3994_v19  ;;  %v3447_v19 = vld [vmem:[#allocation3 + $0x81] sm:$0xff] }
 0x42a   : > { %v3744_v60 = vpop.f32.mrf.mxu2 }
 0x42b   : > { %v3946_v34 = vpop.f32.mrf.mxu3  ;;  %v3793_v4 = vadd.f32 %v12952_v37, %v3744_v60  ;;  %v3479_v60 = vld [vmem:[#allocation3 + $0x82] sm:$0xff] }
 0x42c   : > { %v4315_v11 = vpop.f32.mrf.mxu1 }
 0x42d   : > { %v3995_v6 = vadd.f32 %v3946_v34, %v3793_v4  ;;  %v13266_v49 = vadd.f32 %v4315_v11, %v13071_v48  ;;  %v13291_v11 = vpack.c.bf16 %v3447_v19, %v3446_v45  ;;  %v3449_v19 = vld [vmem:[#allocation3 + $0x99] sm:$0xff]  ;;  %v3448_v45 = vld [vmem:[#allocation3 + $0x91] sm:$0xff] }
 0x42e   : > { %v4151_v57 = vpop.f32.mrf.mxu0 }
 0x42f   : > { %10382 = vmatmul.msk.bf16.gmra.mxu2 %vm744_vm3, %v13268_v9  ;;  %v13276_v59 = vadd.f32 %v4148_v54, %v3995_v6  ;;  %v3478_v54 = vld [vmem:[#allocation3 + $0x7a] sm:$0xff]  ;;  %v3511_v6 = vld [vmem:[#allocation3 + $0x90] sm:$0xff] }
 0x430   : > { %10410 = vmatmul.msk.bf16.gmra.mxu3 %vm744_vm3, %v13270_v33  ;;  %v13293_v8 = vpack.c.bf16 %v3479_v60, %v3478_v54  ;;  %v3480_v54 = vld [vmem:[#allocation3 + $0x92] sm:$0xff]  ;;  %v3481_v60 = vld [vmem:[#allocation3 + $0x9a] sm:$0xff]  ;;  %v3485_v33 = vld [vmem:[#allocation3 + $0xca] sm:$0xff] }
 0x431   : > { %10438 = vmatmul.msk.bf16.gmra.mxu0 %vm744_vm3, %v4817_v16 }
 0x432   : > { %v3747_v41 = vpop.f32.mrf.mxu2  ;;  %16285 = vst [vmem:[#allocation66_spill] sm:$0xff] %v13293_v8 }
 0x433   : > { %v3949_v28 = vpop.f32.mrf.mxu3  ;;  %v3794_v48 = vadd.f32 %v12952_v37, %v3747_v41 }
 0x434   : > { %v4318_v50 = vpop.f32.mrf.mxu1 }
 0x435   : > { %v3996_v10 = vadd.f32 %v3949_v28, %v3794_v48  ;;  %v13281_v5 = vadd.f32 %v4318_v50, %v13084_v53 }
 0x436   : > { %v4153_v30 = vpop.f32.mrf.mxu0 }
 0x437   : > { %10363 = vmatmul.msk.bf16.gmra.mxu1 %vm744_vm3, %v13090_v62  ;;  %v13285_v42 = vadd.f32 %v4151_v57, %v3996_v10  ;;  %v4818_v57 = vpack.c.bf16 %v3512_v14, %v3511_v6  ;;  %v3514_v14 = vld [vmem:[#allocation3 + $0xb0] sm:$0xff] }
 0x43a   : > { %v3749_v27 = vpop.f32.mrf.mxu2 }
 0x43b   : > { %v3951_v23 = vpop.f32.mrf.mxu3  ;;  %v3795_v34 = vadd.f32 %v12952_v37, %v3749_v27 }
 0x43c   : > { %v4320_v31 = vpop.f32.mrf.mxu1 }
 0x43d   : > { %v3997_v4 = vadd.f32 %v3951_v23, %v3795_v34  ;;  %v13289_v53 = vadd.f32 %v4320_v31, %v13103_v29 }
 0x43e   : > { %v4156_v39 = vpop.f32.mrf.mxu0 }
 0x43f   : > { %10383 = vmatmul.msk.bf16.gmra.mxu2 %vm744_vm3, %v13291_v11  ;;  %v13299_v2 = vadd.f32 %v4153_v30, %v3997_v4 }
 0x440   : > { %10411 = vmatmul.msk.bf16.gmra.mxu3 %vm744_vm3, %v13293_v8  ;;  %v3453_v8 = vld [vmem:[#allocation3 + $0xc9] sm:$0xff] }
 0x441   : > { %10439 = vmatmul.msk.bf16.gmra.mxu0 %vm744_vm3, %v4818_v57  ;;  %v13314_v57 = vpack.c.bf16 %v3449_v19, %v3448_v45  ;;  %v3483_v45 = vld [vmem:[#allocation3 + $0xb2] sm:$0xff] }
 0x442   : > { %v3752_v16 = vpop.f32.mrf.mxu2 }
 0x443   : > { %v3954_v41 = vpop.f32.mrf.mxu3  ;;  %v3796_v29 = vadd.f32 %v12952_v37, %v3752_v16  ;;  %v13316_v16 = vpack.c.bf16 %v3481_v60, %v3480_v54  ;;  %v11023_v60 = vld [vmem:[%s16064_s11 + $0x70] sm:$0xff] }
 0x444   : > { %v4323_v28 = vpop.f32.mrf.mxu1  ;;  %5104 = vmatpush.bf16.msrb.mxu1 %v11023_v60  ;;  %v3515_v60 = vld [vmem:[#allocation3 + $0xc0] sm:$0xff] }
 0x445   : > { %v3998_v48 = vadd.f32 %v3954_v41, %v3796_v29  ;;  %v13304_v10 = vadd.f32 %v4323_v28, %v13124_v26  ;;  %16286 = vst [vmem:[#allocation65_spill] sm:$0xff] %v13316_v16 }
 0x446   : > { %v4158_v50 = vpop.f32.mrf.mxu0 }
 0x447   : > { %10364 = vmatmul.msk.bf16.gmra.mxu1 %vm744_vm3, %v13130_v17  ;;  %v13308_v27 = vadd.f32 %v4156_v39, %v3998_v48  ;;  %v3513_v39 = vld [vmem:[#allocation3 + $0xa8] sm:$0xff] }
 0x448   : > { %v4819_v41 = vpack.c.bf16 %v3514_v14, %v3513_v39  ;;  %v3516_v39 = vld [vmem:[#allocation3 + $0xc8] sm:$0xff] }
 0x44a   : > { %v3754_v23 = vpop.f32.mrf.mxu2 }
 0x44b   : > { %v3956_v30 = vpop.f32.mrf.mxu3  ;;  %v3797_v34 = vadd.f32 %v12952_v37, %v3754_v23 }
 0x44c   : > { %v4325_v31 = vpop.f32.mrf.mxu1 }
 0x44d   : > { %v3999_v4 = vadd.f32 %v3956_v30, %v3797_v34  ;;  %v13312_v26 = vadd.f32 %v4325_v31, %v13149_v1  ;;  %v3451_v31 = vld [vmem:[#allocation3 + $0xb1] sm:$0xff] }
 0x44e   : > { %v4161_v6 = vpop.f32.mrf.mxu0 }
 0x44f   : > { %10384 = vmatmul.msk.bf16.gmra.mxu2 %vm744_vm3, %v13314_v57  ;;  %v13322_v29 = vadd.f32 %v4158_v50, %v3999_v4 }
 0x450   : > { %10412 = vmatmul.msk.bf16.gmra.mxu3 %vm744_vm3, %v13316_v16  ;;  %v4820_v16 = vpack.c.bf16 %v3516_v39, %v3515_v60  ;;  %v3436_v39 = vld [vmem:[#allocation3 + $0x180] sm:$0xff] }
 0x451   : > { %10440 = vmatmul.msk.bf16.gmra.mxu0 %vm744_vm3, %v4819_v41 }
 0x452   : > { %v3757_v28 = vpop.f32.mrf.mxu2 }
 0x453   : > { %v3959_v48 = vpop.f32.mrf.mxu3  ;;  %v3798_v1 = vadd.f32 %v12952_v37, %v3757_v28  ;;  %v3482_v37 = vld [vmem:[#allocation3 + $0xaa] sm:$0xff] }
 0x454   : > { %v4328_v23 = vpop.f32.mrf.mxu1  ;;  %v3450_v28 = vld [vmem:[#allocation3 + $0xa9] sm:$0xff] }
 0x455   : > { %v4000_v30 = vadd.f32 %v3959_v48, %v3798_v1  ;;  %v13327_v54 = vadd.f32 %v4328_v23, %v13169_v21  ;;  %v13339_v21 = vld [vmem:[%s16065_s12] ss:$0 sm:$0xff]  ;;  %v13345_v23 = vpack.c.bf16 %v3451_v31, %v3450_v28 }
 0x456   : > { %v4163_v19 = vpop.f32.mrf.mxu0 }
 0x457   : > { %10365 = vmatmul.msk.bf16.gmra.mxu1 %vm744_vm3, %v13175_v15  ;;  %v13334_v50 = vadd.f32 %v4161_v6, %v4000_v30  ;;  %v13347_v30 = vpack.c.bf16 %v3483_v45, %v3482_v37  ;;  %v3437_v37 = vld [vmem:[#allocation3 + $0x188] sm:$0xff] }
 0x459   : > { %16287 = vst [vmem:[#allocation49_spill] sm:$0xff] %v13347_v30 }
 0x45a   : > { %v3759_v34 = vpop.f32.mrf.mxu2 }
 0x45b   : > { %v3961_v14 = vpop.f32.mrf.mxu3  ;;  %v3799_v4 = vadd.f32 %v13339_v21, %v3759_v34 }
 0x45c   : > { %v4330_v41 = vpop.f32.mrf.mxu1 }
 0x45d   : > { %v4001_v48 = vadd.f32 %v3961_v14, %v3799_v4  ;;  %v13343_v6 = vadd.f32 %v4330_v41, %v13186_v24  ;;  %v11025_v24 = vld [vmem:[%s16064_s11 + $0x80] sm:$0xff] }
 0x45e   : > { %v4166_v1 = vpop.f32.mrf.mxu0  ;;  %5306 = vmatpush.bf16.msrb.mxu2 %v11025_v24  ;;  %v3484_v24 = vld [vmem:[#allocation3 + $0xc2] sm:$0xff] }
 0x45f   : > { %10385 = vmatmul.msk.bf16.gmra.mxu2 %vm744_vm3, %v13345_v23  ;;  %v13353_v34 = vadd.f32 %v4163_v19, %v4001_v48  ;;  %v13363_v19 = vpack.c.bf16 %v3437_v37, %v3436_v39  ;;  %v13375_v39 = vpack.c.bf16 %v3485_v33, %v3484_v24 }
 0x460   : > { %10413 = vmatmul.msk.bf16.gmra.mxu3 %vm744_vm3, %v13347_v30 }
 0x461   : > { %10441 = vmatmul.msk.bf16.gmra.mxu0 %vm744_vm3, %v4820_v16  ;;  %16290 = vst [vmem:[#allocation48_spill] sm:$0xff] %v13375_v39 }
 0x462   : > { %v3762_v14 = vpop.f32.mrf.mxu2 }
 0x463   : > { %v3964_v31 = vpop.f32.mrf.mxu3  ;;  %v3800_v45 = vadd.f32 %v13339_v21, %v3762_v14 }
 0x464   : > { %v4333_v4 = vpop.f32.mrf.mxu1 }
 0x465   : > { %v4002_v41 = vadd.f32 %v3964_v31, %v3800_v45  ;;  %v13361_v60 = vadd.f32 %v4333_v4, %v13198_v32  ;;  %v3452_v45 = vld [vmem:[#allocation3 + $0xc1] sm:$0xff] }
 0x466   : > { %v4168_v28 = vpop.f32.mrf.mxu0  ;;  %v13373_v4 = vpack.c.bf16 %v3453_v8, %v3452_v45 }
 0x467   : > { %16288 = vst [vmem:[#allocation46_spill] sm:$0xff] %v13361_v60  ;;  %10366 = vmatmul.msk.bf16.gmra.mxu1 %vm744_vm3, %v13363_v19  ;;  %v13367_v16 = vadd.f32 %v4166_v1, %v4002_v41  ;;  %v3517_v1 = vld [vmem:[#allocation3 + $0xd8] sm:$0xff] }
 0x468   : > { %v4821_v41 = vpack.c.bf16 %v3518_v51, %v3517_v1  ;;  %v3455_v1 = vld [vmem:[#allocation3 + $0xe1] sm:$0xff] }
 0x46a   : > { %v3764_v48 = vpop.f32.mrf.mxu2 }
 0x46b   : > { %v3966_v30 = vpop.f32.mrf.mxu3  ;;  %v3801_v14 = vadd.f32 %v13339_v21, %v3764_v48 }
 0x46c   : > { %v4335_v31 = vpop.f32.mrf.mxu1 }
 0x46d   : > { %v4003_v56 = vadd.f32 %v3966_v30, %v3801_v14  ;;  %v13371_v37 = vadd.f32 %v4335_v31, %v13206_v58  ;;  %v11028_v58 = vld [vmem:[%s16068_s15 + $0x8] sm:$0xff] }
 0x46e   : > { %v4171_v32 = vpop.f32.mrf.mxu0  ;;  %5966 = vmatpush.bf16.msrb.mxu3 %v11028_v58 }
 0x46f   : > { %16289 = vst [vmem:[#allocation67_spill] sm:$0xff] %v13371_v37  ;;  %10386 = vmatmul.msk.bf16.gmra.mxu2 %vm744_vm3, %v13373_v4  ;;  %v13381_v48 = vadd.f32 %v4168_v28, %v4003_v56 }
 0x470   : > { %10414 = vmatmul.msk.bf16.gmra.mxu3 %vm744_vm3, %v13375_v39  ;;  %v3487_v39 = vld [vmem:[#allocation3 + $0xe2] sm:$0xff] }
 0x471   : > { %10442 = vmatmul.msk.bf16.gmra.mxu0 %vm744_vm3, %v4821_v41  ;;  %v3486_v41 = vld [vmem:[#allocation3 + $0xda] sm:$0xff] }
 0x472   : > { %v3767_v8 = vpop.f32.mrf.mxu2 }
 0x473   : > { %v3969_v30 = vpop.f32.mrf.mxu3  ;;  %v3802_v33 = vadd.f32 %v13339_v21, %v3767_v8  ;;  %v3454_v8 = vld [vmem:[#allocation3 + $0xd9] sm:$0xff] }
 0x474   : > { %v4338_v51 = vpop.f32.mrf.mxu1 }
 0x475   : > { %v4004_v24 = vadd.f32 %v3969_v30, %v3802_v33  ;;  %v13389_v31 = vadd.f32 %v4338_v51, %v13216_v3  ;;  %v13399_v33 = vpack.c.bf16 %v3455_v1, %v3454_v8  ;;  %v13401_v51 = vpack.c.bf16 %v3487_v39, %v3486_v41  ;;  %v3457_v1 = vld [vmem:[#allocation3 + $0xf9] sm:$0xff] }
 0x476   : > { %v4173_v14 = vpop.f32.mrf.mxu0  ;;  %v3488_v41 = vld [vmem:[#allocation3 + $0xf2] sm:$0xff] }
 0x477   : > { %10463 = vmatmul.msk.bf16.vlgmr.msrb.gmra.mxu1 %vm744_vm3, %v13222_v55  ;;  %v13393_v56 = vadd.f32 %v4171_v32, %v4004_v24 }
 0x47a   : > { %v3769_v28 = vpop.f32.mrf.mxu2 }
 0x47b   : > { %v3971_v45 = vpop.f32.mrf.mxu3  ;;  %v3803_v58 = vadd.f32 %v13339_v21, %v3769_v28 }
 0x47c   : > { %v4340_v37 = vpop.f32.mrf.mxu1 }
 0x47d   : > { %v4005_v60 = vadd.f32 %v3971_v45, %v3803_v58  ;;  %v13397_v30 = vadd.f32 %v4340_v37, %v13230_v18 }
 0x47e   : > { %v4904_v3 = vpop.f32.mrf.mxu0 }
 0x47f   : > { %10387 = vmatmul.msk.bf16.gmra.mxu2 %vm744_vm3, %v13399_v33  ;;  %v13407_v55 = vadd.f32 %v4173_v14, %v4005_v60 }
 0x480   : > { %10415 = vmatmul.msk.bf16.gmra.mxu3 %vm744_vm3, %v13401_v51 }
 0x481   : > { %10443 = vmatmul.msk.bf16.gmra.mxu0 %vm744_vm3, %v13009_v63  ;;  %v3489_v63 = vld [vmem:[#allocation3 + $0xfa] sm:$0xff] }
 0x482   : > { %v4500_v21 = vpop.f32.mrf.mxu2 }
 0x483   : > { %v4702_v32 = vpop.f32.mrf.mxu3  ;;  %v4580_v18 = vadd.f32 %v4500_v21, %v13194_v13  ;;  %v3456_v13 = vld [vmem:[#allocation3 + $0xf1] sm:$0xff] }
 0x484   : > { %v4343_v37 = vpop.f32.mrf.mxu1 }
 0x485   : > { %v4782_v24 = vadd.f32 %v4702_v32, %v4580_v18  ;;  %v13413_v39 = vadd.f32 %v4343_v37, %v13239_v25  ;;  %v13423_v18 = vpack.c.bf16 %v3457_v1, %v3456_v13  ;;  %v13425_v37 = vpack.c.bf16 %v3489_v63, %v3488_v41 }
 0x486   : > { %v4906_v28 = vpop.f32.mrf.mxu0 }
 0x487   : > { %10464 = vmatmul.msk.bf16.gmra.mxu1 %vm744_vm3, %v13245_v12  ;;  %v13417_v45 = vadd.f32 %v4904_v3, %v4782_v24 }
 0x48a   : > { %v4502_v60 = vpop.f32.mrf.mxu2 }
 0x48b   : > { %v4704_v14 = vpop.f32.mrf.mxu3  ;;  %v4581_v58 = vadd.f32 %v4502_v60, %v13202_v44 }
 0x48c   : > { %v4345_v8 = vpop.f32.mrf.mxu1 }
 0x48d   : > { %v4783_v21 = vadd.f32 %v4704_v14, %v4581_v58  ;;  %v13421_v32 = vadd.f32 %v4345_v8, %v13253_v38  ;;  %v3459_v58 = vld [vmem:[#allocation3 + $0x111] sm:$0xff] }
 0x48e   : > { %v4909_v25 = vpop.f32.mrf.mxu0  ;;  %v3490_v8 = vld [vmem:[#allocation3 + $0x10a] sm:$0xff] }
 0x48f   : > { %10388 = vmatmul.msk.bf16.gmra.mxu2 %vm744_vm3, %v13423_v18  ;;  %v13431_v12 = vadd.f32 %v4906_v28, %v4783_v21 }
 0x490   : > { %10416 = vmatmul.msk.bf16.gmra.mxu3 %vm744_vm3, %v13425_v37 }
 0x491   : > { %10444 = vmatmul.msk.bf16.gmra.mxu0 %vm744_vm3, %v13036_v35  ;;  %v3491_v35 = vld [vmem:[#allocation3 + $0x112] sm:$0xff] }
 0x492   : > { %v4505_v44 = vpop.f32.mrf.mxu2 }
 0x493   : > { %v4707_v3 = vpop.f32.mrf.mxu3  ;;  %v4582_v38 = vadd.f32 %v4505_v44, %v13212_v52  ;;  %v3458_v52 = vld [vmem:[#allocation3 + $0x109] sm:$0xff] }
 0x494   : > { %v4348_v24 = vpop.f32.mrf.mxu1 }
 0x495   : > { %v4784_v60 = vadd.f32 %v4707_v3, %v4582_v38  ;;  %v13437_v14 = vadd.f32 %v4348_v24, %v13262_v0  ;;  %v13447_v38 = vpack.c.bf16 %v3459_v58, %v3458_v52  ;;  %v13449_v24 = vpack.c.bf16 %v3491_v35, %v3490_v8 }
 0x496   : > { %v4911_v1 = vpop.f32.mrf.mxu0 }
 0x497   : > { %10465 = vmatmul.msk.bf16.gmra.mxu1 %vm744_vm3, %v13268_v9  ;;  %v13441_v41 = vadd.f32 %v4909_v25, %v4784_v60 }
 0x49a   : > { %v4507_v28 = vpop.f32.mrf.mxu2 }
 0x49b   : > { %v4709_v63 = vpop.f32.mrf.mxu3  ;;  %v4583_v13 = vadd.f32 %v4507_v28, %v13220_v61 }
 0x49c   : > { %v4350_v21 = vpop.f32.mrf.mxu1 }
 0x49d   : > { %v4785_v44 = vadd.f32 %v4709_v63, %v4583_v13  ;;  %v13445_v3 = vadd.f32 %v4350_v21, %v13276_v59  ;;  %v3461_v13 = vld [vmem:[#allocation3 + $0x129] sm:$0xff] }
 0x49e   : > { %v4914_v0 = vpop.f32.mrf.mxu0  ;;  %v3492_v21 = vld [vmem:[#allocation3 + $0x122] sm:$0xff] }
 0x49f   : > { %10389 = vmatmul.msk.bf16.gmra.mxu2 %vm744_vm3, %v13447_v38  ;;  %v13455_v9 = vadd.f32 %v4911_v1, %v4785_v44 }
 0x4a0   : > { %10417 = vmatmul.msk.bf16.gmra.mxu3 %vm744_vm3, %v13449_v24 }
 0x4a1   : > { %10445 = vmatmul.msk.bf16.gmra.mxu0 %vm744_vm3, %v13063_v43  ;;  %v3493_v43 = vld [vmem:[#allocation3 + $0x12a] sm:$0xff] }
 0x4a2   : > { %v4510_v61 = vpop.f32.mrf.mxu2 }
 0x4a3   : > { %v4712_v25 = vpop.f32.mrf.mxu3  ;;  %v4584_v59 = vadd.f32 %v4510_v61, %v13235_v22  ;;  %v3460_v22 = vld [vmem:[#allocation3 + $0x121] sm:$0xff] }
 0x4a4   : > { %v4353_v60 = vpop.f32.mrf.mxu1 }
 0x4a5   : > { %v4786_v28 = vadd.f32 %v4712_v25, %v4584_v59  ;;  %v13461_v63 = vadd.f32 %v4353_v60, %v13285_v42  ;;  %v13471_v42 = vpack.c.bf16 %v3461_v13, %v3460_v22  ;;  %v13473_v59 = vpack.c.bf16 %v3493_v43, %v3492_v21  ;;  %v3463_v43 = vld [vmem:[#allocation3 + $0x141] sm:$0xff] }
 0x4a6   : > { %v4916_v58 = vpop.f32.mrf.mxu0 }
 0x4a7   : > { %10466 = vmatmul.msk.bf16.gmra.mxu1 %vm744_vm3, %v13291_v11  ;;  %v13465_v8 = vadd.f32 %v4914_v0, %v4786_v28 }
 0x4aa   : > { %v4512_v1 = vpop.f32.mrf.mxu2 }
 0x4ab   : > { %v4714_v35 = vpop.f32.mrf.mxu3  ;;  %v4585_v52 = vadd.f32 %v4512_v1, %v13243_v47 }
 0x4ac   : > { %v4355_v44 = vpop.f32.mrf.mxu1 }
 0x4ad   : > { %v4787_v61 = vadd.f32 %v4714_v35, %v4585_v52  ;;  %v13469_v25 = vadd.f32 %v4355_v44, %v13299_v2  ;;  %v3494_v52 = vld [vmem:[#allocation3 + $0x13a] sm:$0xff] }
 0x4ae   : > { %v4919_v47 = vpop.f32.mrf.mxu0 }
 0x4af   : > { %10390 = vmatmul.msk.bf16.gmra.mxu2 %vm744_vm3, %v13471_v42  ;;  %v13479_v11 = vadd.f32 %v4916_v58, %v4787_v61 }
 0x4b0   : > { %10418 = vmatmul.msk.bf16.gmra.mxu3 %vm744_vm3, %v13473_v59 }
 0x4b1   : > { %10446 = vmatmul.msk.bf16.gmra.mxu0 %vm744_vm3, %v13090_v62  ;;  %v3495_v62 = vld [vmem:[#allocation3 + $0x142] sm:$0xff] }
 0x4b2   : > { %v4515_v0 = vpop.f32.mrf.mxu2 }
 0x4b3   : > { %v4717_v60 = vpop.f32.mrf.mxu3  ;;  %v4586_v2 = vadd.f32 %v4515_v0, %v13258_v7  ;;  %v3462_v7 = vld [vmem:[#allocation3 + $0x139] sm:$0xff] }
 0x4b4   : > { %v4358_v28 = vpop.f32.mrf.mxu1 }
 0x4b5   : > { %v4788_v1 = vadd.f32 %v4717_v60, %v4586_v2  ;;  %v13485_v35 = vadd.f32 %v4358_v28, %v13308_v27  ;;  %v13495_v27 = vpack.c.bf16 %v3463_v43, %v3462_v7  ;;  %v13497_v2 = vpack.c.bf16 %v3495_v62, %v3494_v52 }
 0x4b6   : > { %v4921_v22 = vpop.f32.mrf.mxu0 }
 0x4b7   : > { %10467 = vmatmul.msk.bf16.gmra.mxu1 %vm744_vm3, %v13314_v57  ;;  %v13489_v13 = vadd.f32 %v4919_v47, %v4788_v1 }
 0x4ba   : > { %v4517_v58 = vpop.f32.mrf.mxu2 }
 0x4bb   : > { %v4719_v21 = vpop.f32.mrf.mxu3  ;;  %v4587_v44 = vadd.f32 %v4517_v58, %v13266_v49 }
 0x4bc   : > { %v4360_v61 = vpop.f32.mrf.mxu1 }
 0x4bd   : > { %v4789_v0 = vadd.f32 %v4719_v21, %v4587_v44  ;;  %v13493_v60 = vadd.f32 %v4360_v61, %v13322_v29 }
 0x4be   : > { %v4924_v21 = vpop.f32.mrf.mxu0 }
 0x4bf   : > { %10391 = vmatmul.msk.bf16.gmra.mxu2 %vm744_vm3, %v13495_v27  ;;  %v13503_v57 = vadd.f32 %v4921_v22, %v4789_v0 }
 0x4c0   : > { %10419 = vmatmul.msk.bf16.gmra.mxu3 %vm744_vm3, %v13497_v2 }
 0x4c1   : > { %10447 = vmatmul.msk.bf16.gmra.mxu0 %vm744_vm3, %v13130_v17 }
 0x4c2   : > { %v4520_v49 = vpop.f32.mrf.mxu2 }
 0x4c3   : > { %v4722_v47 = vpop.f32.mrf.mxu3  ;;  %v4588_v29 = vadd.f32 %v4520_v49, %v13281_v5 }
 0x4c4   : > { %v4363_v28 = vpop.f32.mrf.mxu1 }
 0x4c5   : > { %v4790_v1 = vadd.f32 %v4722_v47, %v4588_v29  ;;  %v13509_v58 = vadd.f32 %v4363_v28, %v13334_v50  ;;  %v3469_v28 = vld [vmem:[#allocation3 + $0x189] sm:$0xff] }
 0x4c7   : > { %10468 = vmatmul.msk.bf16.gmra.mxu1 %vm744_vm3, %v13345_v23  ;;  %v13513_v43 = vadd.f32 %v4924_v21, %v4790_v1  ;;  %v3501_v1 = vld [vmem:[#allocation3 + $0x18a] sm:$0xff] }
 0x4ca   : > { %v4522_v52 = vpop.f32.mrf.mxu2 }
 0x4cb   : > { %v13515_v62 = vpop.f32.mrf.mxu3  ;;  %v13518_v17 = vadd.f32 %v4522_v52, %v13289_v53  ;;  %v3468_v52 = vld [vmem:[#allocation3 + $0x181] sm:$0xff] }
 0x4cc   : > { %v4365_v44 = vpop.f32.mrf.mxu1 }
 0x4cd   : > { %v13521_v5 = vadd.f32 %v4365_v44, %v13353_v34 }
 0x4cf   : > { %10392 = vmatmul.msk.bf16.gmra.mxu2 %vm744_vm3, %v13132_v40 }
 0x4d0   : > { %10420 = vmatmul.msk.bf16.gmra.mxu3 %vm744_vm3, %v13140_v36 }
 0x4d1   : > { %10448 = vmatmul.msk.bf16.gmra.mxu0 %vm744_vm3, %v13175_v15 }
 0x4d2   : > { %v4525_v50 = vpop.f32.mrf.mxu2 }
 0x4d3   : > { %v4727_v23 = vpop.f32.mrf.mxu3  ;;  %v4590_v22 = vadd.f32 %v4525_v50, %v13304_v10  ;;  %v13567_v50 = vpack.c.bf16 %v3469_v28, %v3468_v52  ;;  %v11030_v28 = vld [vmem:[%s16068_s15 + $0x18] sm:$0xff] }
 0x4d4   : > { %v4368_v61 = vpop.f32.mrf.mxu1  ;;  %6168 = vmatpush.bf16.msrb.mxu0 %v11030_v28 }
 0x4d5   : > { %v13530_v53 = vadd.f32 %v4727_v23, %v4590_v22  ;;  %v13533_v7 = vadd.f32 %v4368_v61, %v13367_v16  ;;  %v16291_v22 = vld [vmem:[#allocation46_spill] sm:$0xff] }
 0x4d7   : > { %10469 = vmatmul.msk.bf16.gmra.mxu1 %vm744_vm3, %v13373_v4 }
 0x4da   : > { %v4527_v40 = vpop.f32.mrf.mxu2 }
 0x4db   : > { %v13537_v34 = vpop.f32.mrf.mxu3  ;;  %v13540_v36 = vadd.f32 %v4527_v40, %v13312_v26 }
 0x4dc   : > { %v4370_v15 = vpop.f32.mrf.mxu1 }
 0x4dd   : > { %v13543_v0 = vadd.f32 %v4370_v15, %v13381_v48  ;;  %v3534_v48 = vld [vmem:[#allocation3 + $0x1a0] sm:$0xff] }
 0x4df   : > { %10393 = vmatmul.msk.bf16.gmra.mxu2 %vm744_vm3, %v13177_v46  ;;  %v3533_v46 = vld [vmem:[#allocation3 + $0x198] sm:$0xff] }
 0x4e0   : > { %10421 = vmatmul.msk.bf16.gmra.mxu3 %vm744_vm3, %v13179_v20  ;;  %v4829_v44 = vpack.c.bf16 %v3534_v48, %v3533_v46 }
 0x4e1   : > { %10449 = vmatmul.msk.bf16.gmra.mxu0 %vm744_vm3, %v13363_v19  ;;  %v3500_v19 = vld [vmem:[#allocation3 + $0x182] sm:$0xff] }
 0x4e2   : > { %v4530_v10 = vpop.f32.mrf.mxu2 }
 0x4e3   : > { %v4732_v16 = vpop.f32.mrf.mxu3  ;;  %v4592_v4 = vadd.f32 %v4530_v10, %v13327_v54 }
 0x4e4   : > { %v4373_v49 = vpop.f32.mrf.mxu1 }
 0x4e5   : > { %v13552_v26 = vadd.f32 %v4732_v16, %v4592_v4  ;;  %v13555_v47 = vadd.f32 %v4373_v49, %v13393_v56  ;;  %v16292_v49 = vld [vmem:[#allocation67_spill] sm:$0xff] }
 0x4e7   : > { %10470 = vmatmul.msk.bf16.gmra.mxu1 %vm744_vm3, %v13399_v33  ;;  %v13569_v33 = vpack.c.bf16 %v3501_v1, %v3500_v19  ;;  %v16293_v19 = vld [vmem:[#allocation64_spill] sm:$0xff] }
 0x4ea   : > { %v4532_v29 = vpop.f32.mrf.mxu2 }
 0x4eb   : > { %v13559_v20 = vpop.f32.mrf.mxu3  ;;  %v13562_v21 = vadd.f32 %v4532_v29, %v13343_v6  ;;  %v11027_v6 = vld [vmem:[%s16068_s15] sm:$0xff] }
 0x4ec   : > { %v4375_v54 = vpop.f32.mrf.mxu1  ;;  %5967 = vmatpush.bf16.msrb.mxu3 %v11027_v6 }
 0x4ed   : > { %v13565_v56 = vadd.f32 %v4375_v54, %v13407_v55 }
 0x4ef   : > { %10394 = vmatmul.msk.bf16.gmra.mxu2 %vm744_vm3, %v13567_v50 }
 0x4f0   : > { %10422 = vmatmul.msk.bf16.gmra.mxu3 %vm744_vm3, %v13569_v33 }
 0x4f1   : > { %10450 = vmatmul.msk.bf16.gmra.mxu0 %vm744_vm3, %v4829_v44 }
 0x4f2   : > { %v4535_v23 = vpop.f32.mrf.mxu2 }
 0x4f3   : > { %v4737_v55 = vpop.f32.mrf.mxu3  ;;  %v4594_v61 = vadd.f32 %v4535_v23, %v16291_v22 }
 0x4f4   : > { %v5106_v40 = vpop.f32.mrf.mxu1 }
 0x4f5   : > { %v13580_v15 = vadd.f32 %v4737_v55, %v4594_v61  ;;  %v13583_v10 = vadd.f32 %v5106_v40, %v13417_v45 }
 0x4f7   : > { %10471 = vmatmul.msk.bf16.gmra.mxu1 %vm744_vm3, %v13423_v18 }
 0x4fa   : > { %v4537_v16 = vpop.f32.mrf.mxu2 }
 0x4fb   : > { %v13587_v4 = vpop.f32.mrf.mxu3  ;;  %v13590_v46 = vadd.f32 %v4537_v16, %v16292_v49  ;;  %v4926_v49 = vpop.f32.mrf.mxu0 }
 0x4fc   : > { %v5108_v48 = vpop.f32.mrf.mxu1 }
 0x4fd   : > { %v13593_v29 = vadd.f32 %v5108_v48, %v13431_v12 }
 0x4ff   : > { %10491 = vmatmul.msk.bf16.vlgmr.msrb.gmra.mxu2 %vm744_vm3, %v16293_v19 }
 0x502   : > { %v4540_v45 = vpop.f32.mrf.mxu2 }
 0x503   : > { %v4742_v18 = vpop.f32.mrf.mxu3  ;;  %v4596_v1 = vadd.f32 %v4540_v45, %v13389_v31  ;;  %v16294_v31 = vld [vmem:[#allocation63_spill] sm:$0xff] }
 0x504   : > { %v5111_v54 = vpop.f32.mrf.mxu1 }
 0x505   : > { %v13601_v52 = vadd.f32 %v4742_v18, %v4596_v1  ;;  %v13604_v44 = vadd.f32 %v5111_v54, %v13441_v41  ;;  %v16295_v18 = vld [vmem:[#allocation47_spill] sm:$0xff] }
 0x507   : > { %10472 = vmatmul.msk.bf16.gmra.mxu1 %vm744_vm3, %v13447_v38 }
 0x50a   : > { %v4542_v12 = vpop.f32.mrf.mxu2 }
 0x50b   : > { %v13608_v6 = vpop.f32.mrf.mxu3  ;;  %v13611_v23 = vadd.f32 %v4542_v12, %v13397_v30 }
 0x50c   : > { %v5113_v55 = vpop.f32.mrf.mxu1 }
 0x50d   : > { %v13614_v22 = vadd.f32 %v5113_v55, %v13455_v9 }
 0x50f   : > { %10492 = vmatmul.msk.bf16.gmra.mxu2 %vm744_vm3, %v16294_v31 }
 0x512   : > { %v4545_v61 = vpop.f32.mrf.mxu2 }
 0x513   : > { %v4747_v40 = vpop.f32.mrf.mxu3  ;;  %v4598_v41 = vadd.f32 %v4545_v61, %v13413_v39  ;;  %v13634_v39 = vpop.f32.mrf.mxu0 }
 0x514   : > { %v5116_v16 = vpop.f32.mrf.mxu1 }
 0x515   : > { %v13619_v38 = vadd.f32 %v4747_v40, %v4598_v41  ;;  %v13622_v48 = vadd.f32 %v5116_v16, %v13465_v8  ;;  %v16299_v41 = vld [vmem:[#allocation66_spill] sm:$0xff] }
 0x517   : > { %10473 = vmatmul.msk.bf16.gmra.mxu1 %vm744_vm3, %v13471_v42 }
 0x51a   : > { %v4547_v30 = vpop.f32.mrf.mxu2 }
 0x51b   : > { %v13626_v9 = vpop.f32.mrf.mxu3  ;;  %v13629_v28 = vadd.f32 %v4547_v30, %v13421_v32  ;;  %v13646_v32 = vpop.f32.mrf.mxu0  ;;  %v3560_v30 = vld [vmem:[#allocation3 + $0x159] sm:$0xff] }
 0x51c   : > { %v5118_v19 = vpop.f32.mrf.mxu1 }
 0x51d   : > { %v13632_v45 = vadd.f32 %v5118_v19, %v13479_v11 }
 0x51f   : > { %10493 = vmatmul.msk.bf16.gmra.mxu2 %vm744_vm3, %v16295_v18 }
 0x522   : > { %v4550_v8 = vpop.f32.mrf.mxu2 }
 0x523   : > { %v4752_v1 = vpop.f32.mrf.mxu3  ;;  %v4600_v54 = vadd.f32 %v4550_v8, %v13437_v14  ;;  %v13658_v19 = vpop.f32.mrf.mxu0  ;;  %v3559_v8 = vld [vmem:[#allocation3 + $0x151] sm:$0xff] }
 0x524   : > { %v5121_v42 = vpop.f32.mrf.mxu1 }
 0x525   : > { %v13639_v12 = vadd.f32 %v4752_v1, %v4600_v54  ;;  %v13642_v55 = vadd.f32 %v5121_v42, %v13489_v13  ;;  %v5028_v54 = vpack.c.bf16 %v3560_v30, %v3559_v8  ;;  %v3561_v8 = vld [vmem:[#allocation3 + $0x169] sm:$0xff] }
 0x527   : > { %16296 = vst [vmem:[#allocation69_spill] sm:$0xff] %v13639_v12  ;;  %10474 = vmatmul.msk.bf16.gmra.mxu1 %vm744_vm3, %v13495_v27 }
 0x52a   : > { %v4552_v11 = vpop.f32.mrf.mxu2 }
 0x52b   : > { %v13648_v31 = vpop.f32.mrf.mxu3  ;;  %v13651_v61 = vadd.f32 %v4552_v11, %v13445_v3 }
 0x52c   : > { %16297 = vst [vmem:[#allocation68_spill] sm:$0xff] %v13648_v31  ;;  %v5123_v40 = vpop.f32.mrf.mxu1 }
 0x52d   : > { %16298 = vst [vmem:[#allocation50_spill] sm:$0xff] %v13651_v61  ;;  %v13654_v14 = vadd.f32 %v5123_v40, %v13503_v57  ;;  %v4791_v57 = vadd.f32 %v13515_v62, %v13518_v17  ;;  %v3562_v62 = vld [vmem:[#allocation3 + $0x171] sm:$0xff] }
 0x52f   : > { %10494 = vmatmul.msk.bf16.gmra.mxu2 %vm744_vm3, %v16299_v41 }
 0x532   : > { %v4555_v13 = vpop.f32.mrf.mxu2 }
 0x533   : > { %v4757_v16 = vpop.f32.mrf.mxu3  ;;  %v4602_v27 = vadd.f32 %v4555_v13, %v13461_v63  ;;  %v4993_v63 = vadd.f32 %v4926_v49, %v4791_v57  ;;  %v13674_v13 = vpop.f32.mrf.mxu0 }
 0x534   : > { %v5126_v18 = vpop.f32.mrf.mxu1 }
 0x535   : > { %v13661_v1 = vadd.f32 %v4757_v16, %v4602_v27  ;;  %v13664_v3 = vadd.f32 %v5126_v18, %v13513_v43  ;;  %v16303_v43 = vld [vmem:[#allocation65_spill] sm:$0xff] }
 0x537   : > { %16300 = vst [vmem:[#allocation52_spill] sm:$0xff] %v13661_v1  ;;  %10475 = vmatmul.msk.bf16.gmra.mxu1 %vm744_vm3, %v5028_v54 }
 0x53a   : > { %v4557_v42 = vpop.f32.mrf.mxu2 }
 0x53b   : > { %v13669_v11 = vpop.f32.mrf.mxu3  ;;  %v13672_v40 = vadd.f32 %v4557_v42, %v13469_v25  ;;  %v5029_v25 = vpack.c.bf16 %v3562_v62, %v3561_v8  ;;  %v13685_v49 = vpop.f32.mrf.mxu0 }
 0x53c   : > { %16301 = vst [vmem:[#allocation54_spill] sm:$0xff] %v13669_v11  ;;  %v5128_v41 = vpop.f32.mrf.mxu1 }
 0x53d   : > { %16302 = vst [vmem:[#allocation70_spill] sm:$0xff] %v13672_v40  ;;  %v13676_v16 = vadd.f32 %v5128_v41, %v4993_v63 }
 0x53f   : > { %10495 = vmatmul.msk.bf16.gmra.mxu2 %vm744_vm3, %v16303_v43  ;;  %v16307_v43 = vld [vmem:[#allocation49_spill] sm:$0xff] }
 0x542   : > { %v4560_v30 = vpop.f32.mrf.mxu2 }
 0x543   : > { %v4762_v27 = vpop.f32.mrf.mxu3  ;;  %v4604_v17 = vadd.f32 %v4560_v30, %v13485_v35  ;;  %v13697_v35 = vpop.f32.mrf.mxu0 }
 0x544   : > { %v13681_v18 = vpop.f32.mrf.mxu1 }
 0x545   : > { %v13683_v54 = vadd.f32 %v4762_v27, %v4604_v17 }
 0x547   : > { %16304 = vst [vmem:[#allocation51_spill] sm:$0xff] %v13683_v54  ;;  %10476 = vmatmul.msk.bf16.gmra.mxu1 %vm744_vm3, %v5029_v25 }
 0x54a   : > { %v4562_v57 = vpop.f32.mrf.mxu2 }
 0x54b   : > { %v13688_v42 = vpop.f32.mrf.mxu3  ;;  %v13691_v63 = vadd.f32 %v4562_v57, %v13493_v60  ;;  %v13708_v57 = vpop.f32.mrf.mxu0 }
 0x54c   : > { %16305 = vst [vmem:[#allocation53_spill] sm:$0xff] %v13688_v42  ;;  %v13693_v41 = vpop.f32.mrf.mxu1 }
 0x54d   : > { %16306 = vst [vmem:[#allocation55_spill] sm:$0xff] %v13691_v63  ;;  %v16311_v63 = vld [vmem:[#allocation48_spill] sm:$0xff] }
 0x54f   : > { %10496 = vmatmul.msk.bf16.gmra.mxu2 %vm744_vm3, %v16307_v43 }
 0x552   : > { %v4565_v30 = vpop.f32.mrf.mxu2 }
 0x553   : > { %v4767_v27 = vpop.f32.mrf.mxu3  ;;  %v4606_v62 = vadd.f32 %v4565_v30, %v13509_v58  ;;  %v3565_v58 = vld [vmem:[#allocation3 + $0x199] sm:$0xff]  ;;  %v3566_v30 = vld [vmem:[#allocation3 + $0x1a1] sm:$0xff] }
 0x554   : > { %v13700_v17 = vpop.f32.mrf.mxu1 }
 0x555   : > { %v13702_v8 = vadd.f32 %v4767_v27, %v4606_v62 }
 0x557   : > { %16308 = vst [vmem:[#allocation56_spill] sm:$0xff] %v13702_v8  ;;  %10477 = vmatmul.msk.bf16.gmra.mxu1 %vm744_vm3, %v13567_v50  ;;  %v5031_v50 = vpack.c.bf16 %v3566_v30, %v3565_v58  ;;  %v11029_v58 = vld [vmem:[%s16068_s15 + $0x10] sm:$0xff]  ;;  %v11031_v30 = vld [vmem:[%s16068_s15 + $0x20] sm:$0xff] }
 0x558   : > { %6169 = vmatpush.bf16.msrb.mxu0 %v11029_v58  ;;  %v11036_v58 = vld [vmem:[%s16068_s15 + $0x48] sm:$0xff] }
 0x559   : > { %6774 = vmatpush.bf16.msra.mxu3 %v11036_v58 }
 0x55a   : > { %v4567_v60 = vpop.f32.mrf.mxu2 }
 0x55b   : > { %v13706_v25 = vpop.f32.mrf.mxu3  ;;  %v13711_v43 = vadd.f32 %v4567_v60, %v13521_v5  ;;  %v5588_v5 = vld [vmem:[#allocation3] sm:$0xff]  ;;  %v5589_v60 = vld [vmem:[#allocation3 + $0x8] sm:$0xff] }
 0x55c   : > { %16309 = vst [vmem:[#allocation57_spill] sm:$0xff] %v13706_v25  ;;  %v13713_v42 = vpop.f32.mrf.mxu1  ;;  %v13720_v25 = vpop.f32.mrf.mxu0 }
 0x55d   : > { %16310 = vst [vmem:[#allocation58_spill] sm:$0xff] %v13711_v43  ;;  %v5880_v43 = vpack.c.bf16 %v5589_v60, %v5588_v5 }
 0x55f   : > { %10497 = vmatmul.msk.bf16.gmra.mxu2 %vm744_vm3, %v16311_v63  ;;  %v11032_v63 = vld [vmem:[%s16068_s15 + $0x28] sm:$0xff]  ;;  %10515 = vmatmul.msk.bf16.vlgmr.msrb.gmra.mxu3 %vm744_vm3, %v5880_v43  ;;  %v5620_v43 = vld [vmem:[#allocation3 + $0x1] sm:$0xff] }
 0x560   : > { %6370 = vmatpush.bf16.msra.mxu1 %v11032_v63 }
 0x562   : > { %v4570_v27 = vpop.f32.mrf.mxu2 }
 0x563   : > { %v4772_v62 = vpop.f32.mrf.mxu3  ;;  %v4608_v8 = vadd.f32 %v4570_v27, %v13533_v7 }
 0x564   : > { %v13718_v54 = vpop.f32.mrf.mxu1  ;;  %v13742_v27 = vpop.f32.mrf.mxu0  ;;  %6371 = vmatpush.bf16.msra.mxu1 %v11031_v30 }
 0x565   : > { %v13722_v11 = vadd.f32 %v4772_v62, %v4608_v8  ;;  %v5652_v62 = vld [vmem:[#allocation3 + $0x2] sm:$0xff] }
 0x567   : > { %16312 = vst [vmem:[#allocation59_spill] sm:$0xff] %v13722_v11  ;;  %10478 = vmatmul.msk.bf16.gmra.mxu1 %vm744_vm3, %v5031_v50  ;;  %v5653_v50 = vld [vmem:[#allocation3 + $0xa] sm:$0xff] }
 0x568   : > { %v6283_v63 = vpack.c.bf16 %v5653_v50, %v5652_v62  ;;  %v16317_v62 = vld [vmem:[#allocation15_spill] sm:$0xff] }
 0x56a   : > { %v4572_v40 = vpop.f32.mrf.mxu2 }
 0x56b   : > { %v13728_v1 = vpop.f32.mrf.mxu3  ;;  %v13732_v7 = vadd.f32 %v4572_v40, %v13543_v0  ;;  %v5621_v0 = vld [vmem:[#allocation3 + $0x9] sm:$0xff] }
 0x56c   : > { %16313 = vst [vmem:[#allocation60_spill] sm:$0xff] %v13728_v1  ;;  %v13734_v8 = vpop.f32.mrf.mxu1  ;;  %v6081_v40 = vpack.c.bf16 %v5621_v0, %v5620_v43  ;;  %v13759_v30 = vpop.f32.mrf.mxu0 }
 0x56d   : > { %16314 = vst [vmem:[#allocation61_spill] sm:$0xff] %v13732_v7 }
 0x56e   : > { %10543 = vmatmul.msk.bf16.vlgmr.msrb.gmra.mxu0 %vm744_vm3, %v6081_v40  ;;  %v13771_v40 = vld [vmem:[%s16174_s4] ss:$0 sm:$0xff] }
 0x56f   : > { %10498 = vmatmul.msk.bf16.gmra.mxu2 %vm744_vm3, %v13401_v51  ;;  %v11034_v51 = vld [vmem:[%s16068_s15 + $0x38] sm:$0xff]  ;;  %v955_v50 = vadd.f32 %v13771_v40, %v16317_v62 }
 0x570   : > { %6572 = vmatpush.bf16.msra.mxu2 %v11034_v51  ;;  %v13790_v51 = vld [vmem:[%s16067_s14] ss:$0 sm:$0xff] }
 0x572   : > { %v4575_v5 = vpop.f32.mrf.mxu2 }
 0x573   : > { %v4610_v60 = vadd.f32 %v4575_v5, %v13555_v47  ;;  %v4777_v1 = vpop.f32.mrf.mxu3 }
 0x574   : > { %v13748_v7 = vpop.f32.mrf.mxu1  ;;  %v13775_v5 = vpop.f32.mrf.mxu0 }
 0x575   : > { %v13750_v11 = vadd.f32 %v4777_v1, %v4610_v60  ;;  %16318 = vst [vmem:[#allocation67_spill] sm:$0xff] %v13775_v5 }
 0x577   : > { %16315 = vst [vmem:[#allocation62_spill] sm:$0xff] %v13750_v11  ;;  %10571 = vmatmul.msk.bf16.vlgmr.msra.gmra.mxu1 %vm744_vm3, %v6283_v63 }
 0x57a   : > { %v4577_v47 = vpop.f32.mrf.mxu2 }
 0x57b   : > { %v13762_v43 = vadd.f32 %v4577_v47, %v13565_v56  ;;  %v13781_v56 = vld [vmem:[%s16066_s13] ss:$0 sm:$0xff] }
 0x57c   : > { %v13764_v1 = vpop.f32.mrf.mxu1 }
 0x57d   : > { %16316 = vst [vmem:[#allocation46_spill] sm:$0xff] %v13762_v43 }
 0x57f   : > { %10499 = vmatmul.msk.bf16.gmra.mxu2 %vm744_vm3, %v13425_v37 }
 0x582   : > { %v5308_v0 = vpop.f32.mrf.mxu2 }
 0x583   : > { %v5388_v60 = vadd.f32 %v5308_v0, %v13583_v10  ;;  %v16320_v0 = vld [vmem:[#allocation19_spill] sm:$0xff] }
 0x584   : > { %v13783_v63 = vpop.f32.mrf.mxu1  ;;  %v957_v62 = vadd.f32 %v13771_v40, %v16320_v0 }
 0x585   : > { %v13785_v37 = vadd.f32 %v5388_v60, %v955_v50  ;;  %v13800_v50 = vpop.f32.mrf.mxu0 }
 0x586   : > { %16322 = vst [vmem:[#allocation47_spill] sm:$0xff] %v13800_v50 }
 0x587   : > { %16319 = vst [vmem:[#allocation64_spill] sm:$0xff] %v13785_v37  ;;  %v5456_v58 = vmul.f32 %v13781_v56, %v13785_v37 }
 0x589   : > { %v5492_v47 = vadd.f32 %v13790_v51, %v5456_v58 }
 0x58a   : > { %v5310_v10 = vpop.f32.mrf.mxu2 }
 0x58b   : > { %v5524_v43 = vmax.f32 %v5492_v47, 0.0  ;;  %v5389_v11 = vadd.f32 %v5310_v10, %v13593_v29  ;;  %v16324_v47 = vld [vmem:[#allocation23_spill] sm:$0xff] }
 0x58c   : > { %v13798_v31 = vpop.f32.mrf.mxu1  ;;  %v960_v29 = vadd.f32 %v13771_v40, %v16324_v47 }
 0x58d   : > { %16321 = vst [vmem:[#allocation63_spill] sm:$0xff] %v13798_v31  ;;  %v13803_v60 = vadd.f32 %v5389_v11, %v957_v62 }
 0x58e   : > { %5556 = vst.msk [vmem:[#allocation3 + $0x19] sm:$0xff] %vm744_vm3, %v5524_v43  ;;  %v13818_v43 = vpop.f32.mrf.mxu0 }
 0x58f   : > { %16323 = vst [vmem:[#allocation66_spill] sm:$0xff] %v13803_v60  ;;  %v5457_v37 = vmul.f32 %v13781_v56, %v13803_v60  ;;  %10500 = vmatmul.msk.bf16.gmra.mxu2 %vm744_vm3, %v13449_v24  ;;  %v16328_v60 = vld [vmem:[#allocation27_spill] sm:$0xff] }
 0x590   : > { %16327 = vst [vmem:[#allocation48_spill] sm:$0xff] %v13818_v43  ;;  %v962_v47 = vadd.f32 %v13771_v40, %v16328_v60 }
 0x591   : > { %v5493_v58 = vadd.f32 %v13790_v51, %v5457_v37 }
 0x592   : > { %v5313_v0 = vpop.f32.mrf.mxu2 }
 0x593   : > { %v5525_v10 = vmax.f32 %v5493_v58, 0.0  ;;  %v5390_v61 = vadd.f32 %v5313_v0, %v13604_v44 }
 0x594   : > { %v13813_v50 = vpop.f32.mrf.mxu1 }
 0x595   : > { %16325 = vst [vmem:[#allocation65_spill] sm:$0xff] %v13813_v50  ;;  %v13816_v11 = vadd.f32 %v5390_v61, %v960_v29  ;;  %v5590_v0 = vld [vmem:[#allocation3 + $0x18] sm:$0xff] }
 0x596   : > { %5557 = vst.msk [vmem:[#allocation3 + $0x21] sm:$0xff] %vm744_vm3, %v5525_v10  ;;  %v5622_v50 = vld [vmem:[#allocation3 + $0x19] sm:$0xff] }
 0x597   : > { %16326 = vst [vmem:[#allocation49_spill] sm:$0xff] %v13816_v11  ;;  %v5458_v24 = vmul.f32 %v13781_v56, %v13816_v11 }
 0x599   : > { %v5494_v37 = vadd.f32 %v13790_v51, %v5458_v24 }
 0x59a   : > { %v5315_v62 = vpop.f32.mrf.mxu2 }
 0x59b   : > { %v5526_v58 = vmax.f32 %v5494_v37, 0.0  ;;  %v5391_v44 = vadd.f32 %v5315_v62, %v13614_v22  ;;  %v13841_v22 = vpop.f32.mrf.mxu0  ;;  %v16331_v62 = vld [vmem:[#allocation31_spill] sm:$0xff] }
 0x59c   : > { %v13826_v5 = vpop.f32.mrf.mxu1  ;;  %16330 = vst [vmem:[#allocation19_spill] sm:$0xff] %v13841_v22 }
 0x59d   : > { %v5591_v61 = vld [vmem:[#allocation3 + $0x20] sm:$0xff]  ;;  %5558 = vst.msk [vmem:[#allocation3 + $0x31] sm:$0xff] %vm744_vm3, %v5526_v58  ;;  %v13829_v43 = vadd.f32 %v5391_v44, %v962_v47 }
 0x59e   : > { %v5623_v29 = vld [vmem:[#allocation3 + $0x21] sm:$0xff]  ;;  %v13831_v11 = vpack.c.bf16 %v5591_v61, %v5590_v0 }
 0x59f   : > { %v5654_v10 = vld [vmem:[#allocation3 + $0x1a] sm:$0xff]  ;;  %16329 = vst [vmem:[#allocation15_spill] sm:$0xff] %v13829_v43  ;;  %v6082_v24 = vpack.c.bf16 %v5623_v29, %v5622_v50  ;;  %v5655_v12 = vld [vmem:[#allocation3 + $0x22] sm:$0xff]  ;;  %v5459_v60 = vmul.f32 %v13781_v56, %v13829_v43  ;;  %10501 = vmatmul.msk.bf16.gmra.mxu2 %vm744_vm3, %v13473_v59 }
 0x5a0   : > { %v6284_v31 = vpack.c.bf16 %v5655_v12, %v5654_v10  ;;  %10516 = vmatmul.msk.bf16.gmra.mxu3 %vm744_vm3, %v13831_v11  ;;  %v965_v12 = vadd.f32 %v13771_v40, %v16331_v62  ;;  %v16333_v29 = vld [vmem:[#allocation35_spill] sm:$0xff] }
 0x5a1   : > { %10544 = vmatmul.msk.bf16.gmra.mxu0 %vm744_vm3, %v6082_v24  ;;  %v5495_v37 = vadd.f32 %v13790_v51, %v5459_v60  ;;  %v967_v10 = vadd.f32 %v13771_v40, %v16333_v29 }
 0x5a2   : > { %10572 = vmatmul.msk.bf16.gmra.mxu1 %vm744_vm3, %v6284_v31  ;;  %v5318_v50 = vpop.f32.mrf.mxu2 }
 0x5a3   : > { %v5527_v47 = vmax.f32 %v5495_v37, 0.0  ;;  %v5392_v58 = vadd.f32 %v5318_v50, %v13622_v48  ;;  %v13857_v24 = vpop.f32.mrf.mxu0 }
 0x5a4   : > { %v13847_v44 = vpop.f32.mrf.mxu1  ;;  %16334 = vst [vmem:[#allocation27_spill] sm:$0xff] %v13857_v24  ;;  %v5592_v37 = vld [vmem:[#allocation3 + $0x30] sm:$0xff] }
 0x5a5   : > { %5559 = vst.msk [vmem:[#allocation3 + $0x39] sm:$0xff] %vm744_vm3, %v5527_v47  ;;  %v13850_v59 = vadd.f32 %v5392_v58, %v965_v12  ;;  %v5624_v50 = vld [vmem:[#allocation3 + $0x31] sm:$0xff] }
 0x5a7   : > { %16332 = vst [vmem:[#allocation23_spill] sm:$0xff] %v13850_v59  ;;  %v5460_v31 = vmul.f32 %v13781_v56, %v13850_v59 }
 0x5a9   : > { %v5496_v0 = vadd.f32 %v13790_v51, %v5460_v31 }
 0x5aa   : > { %v5320_v61 = vpop.f32.mrf.mxu2 }
 0x5ab   : > { %v5528_v60 = vmax.f32 %v5496_v0, 0.0  ;;  %v5393_v48 = vadd.f32 %v5320_v61, %v13632_v45 }
 0x5ac   : > { %v13860_v62 = vpop.f32.mrf.mxu1  ;;  %v5593_v12 = vld [vmem:[#allocation3 + $0x38] sm:$0xff] }
 0x5ad   : > { %16335 = vst [vmem:[#allocation31_spill] sm:$0xff] %v13860_v62  ;;  %v5625_v47 = vld [vmem:[#allocation3 + $0x39] sm:$0xff]  ;;  %v13863_v59 = vadd.f32 %v5393_v48, %v967_v10  ;;  %v13865_v31 = vpack.c.bf16 %v5593_v12, %v5592_v37  ;;  %v13881_v12 = vpop.f32.mrf.mxu0 }
 0x5ae   : > { %v5656_v58 = vld [vmem:[#allocation3 + $0x32] sm:$0xff]  ;;  %5560 = vst.msk [vmem:[#allocation3 + $0x49] sm:$0xff] %vm744_vm3, %v5528_v60  ;;  %v6083_v43 = vpack.c.bf16 %v5625_v47, %v5624_v50  ;;  %v5657_v29 = vld [vmem:[#allocation3 + $0x3a] sm:$0xff] }
 0x5af   : > { %16336 = vst [vmem:[#allocation35_spill] sm:$0xff] %v13863_v59  ;;  %v6285_v22 = vpack.c.bf16 %v5657_v29, %v5656_v58  ;;  %v5461_v0 = vmul.f32 %v13781_v56, %v13863_v59  ;;  %10502 = vmatmul.msk.bf16.gmra.mxu2 %vm744_vm3, %v13497_v2  ;;  %v16337_v10 = vld [vmem:[#allocation39_spill] sm:$0xff] }
 0x5b0   : > { %10517 = vmatmul.msk.bf16.gmra.mxu3 %vm744_vm3, %v13865_v31  ;;  %v970_v60 = vadd.f32 %v13771_v40, %v16337_v10  ;;  %16339 = vst [vmem:[#allocation71_spill] sm:$0xff] %v13881_v12  ;;  %v3591_v58 = vld [vmem:[#allocation3 + $0x152] sm:$0xff]  ;;  %v3592_v29 = vld [vmem:[#allocation3 + $0x15a] sm:$0xff] }
 0x5b1   : > { %10545 = vmatmul.msk.bf16.gmra.mxu0 %vm744_vm3, %v6083_v43  ;;  %v5497_v45 = vadd.f32 %v13790_v51, %v5461_v0  ;;  %v16341_v0 = vld [vmem:[#allocation43_spill] sm:$0xff] }
 0x5b2   : > { %10573 = vmatmul.msk.bf16.gmra.mxu1 %vm744_vm3, %v6285_v22  ;;  %v5323_v61 = vpop.f32.mrf.mxu2 }
 0x5b3   : > { %v5529_v48 = vmax.f32 %v5497_v45, 0.0  ;;  %v5394_v37 = vadd.f32 %v5323_v61, %v13642_v55  ;;  %v972_v45 = vadd.f32 %v13771_v40, %v16341_v0  ;;  %v16343_v0 = vld [vmem:[#allocation14_spill] sm:$0xff] }
 0x5b4   : > { %v13879_v50 = vpop.f32.mrf.mxu1 }
 0x5b5   : > { %16338 = vst [vmem:[#allocation39_spill] sm:$0xff] %v13879_v50  ;;  %v13884_v2 = vadd.f32 %v5394_v37, %v970_v60  ;;  %v5594_v10 = vld [vmem:[#allocation3 + $0x48] sm:$0xff] }
 0x5b6   : > { %5561 = vst.msk [vmem:[#allocation3 + $0x51] sm:$0xff] %vm744_vm3, %v5529_v48  ;;  %v5626_v59 = vld [vmem:[#allocation3 + $0x49] sm:$0xff] }
 0x5b7   : > { %16340 = vst [vmem:[#allocation72_spill] sm:$0xff] %v13884_v2  ;;  %v5462_v43 = vmul.f32 %v13781_v56, %v13884_v2 }
 0x5b9   : > { %v5498_v22 = vadd.f32 %v13790_v51, %v5462_v43  ;;  %v5230_v43 = vpack.c.bf16 %v3592_v29, %v3591_v58 }
 0x5ba   : > { %v5325_v47 = vpop.f32.mrf.mxu2 }
 0x5bb   : > { %v5530_v55 = vmax.f32 %v5498_v22, 0.0  ;;  %v5395_v61 = vadd.f32 %v5325_v47, %v13654_v14  ;;  %v13899_v22 = vpop.f32.mrf.mxu0 }
 0x5bc   : > { %v13892_v12 = vpop.f32.mrf.mxu1 }
 0x5bd   : > { %v5595_v60 = vld [vmem:[#allocation3 + $0x50] sm:$0xff]  ;;  %5562 = vst.msk [vmem:[#allocation3 + $0x61] sm:$0xff] %vm744_vm3, %v5530_v55  ;;  %v13895_v2 = vadd.f32 %v5395_v61, %v972_v45 }
 0x5be   : > { %v5627_v48 = vld [vmem:[#allocation3 + $0x51] sm:$0xff]  ;;  %v13897_v50 = vpack.c.bf16 %v5595_v60, %v5594_v10 }
 0x5bf   : > { %v5658_v37 = vld [vmem:[#allocation3 + $0x4a] sm:$0xff]  ;;  %16342 = vst [vmem:[#allocation43_spill] sm:$0xff] %v13895_v2  ;;  %v6084_v24 = vpack.c.bf16 %v5627_v48, %v5626_v59  ;;  %v5659_v62 = vld [vmem:[#allocation3 + $0x52] sm:$0xff]  ;;  %v5463_v14 = vmul.f32 %v13781_v56, %v13895_v2  ;;  %10503 = vmatmul.msk.bf16.gmra.mxu2 %vm744_vm3, %v5230_v43 }
 0x5c0   : > { %v6286_v40 = vpack.c.bf16 %v5659_v62, %v5658_v37  ;;  %10518 = vmatmul.msk.bf16.gmra.mxu3 %vm744_vm3, %v13897_v50  ;;  %v3593_v60 = vld [vmem:[#allocation3 + $0x16a] sm:$0xff]  ;;  %v3594_v48 = vld [vmem:[#allocation3 + $0x172] sm:$0xff] }
 0x5c1   : > { %10546 = vmatmul.msk.bf16.gmra.mxu0 %vm744_vm3, %v6084_v24  ;;  %v5499_v47 = vadd.f32 %v13790_v51, %v5463_v14 }
 0x5c2   : > { %10574 = vmatmul.msk.bf16.gmra.mxu1 %vm744_vm3, %v6286_v40  ;;  %v5328_v58 = vpop.f32.mrf.mxu2 }
 0x5c3   : > { %v5531_v59 = vmax.f32 %v5499_v47, 0.0  ;;  %v5396_v62 = vadd.f32 %v5328_v58, %v13664_v3  ;;  %v13918_v61 = vpop.f32.mrf.mxu0 }
 0x5c4   : > { %v13910_v29 = vpop.f32.mrf.mxu1  ;;  %16345 = vst [vmem:[#allocation73_spill] sm:$0xff] %v13918_v61  ;;  %v5596_v43 = vld [vmem:[#allocation3 + $0x60] sm:$0xff] }
 0x5c5   : > { %5563 = vst.msk [vmem:[#allocation3 + $0x69] sm:$0xff] %vm744_vm3, %v5531_v59  ;;  %v13914_v45 = vadd.f32 %v5396_v62, %v16343_v0  ;;  %v5628_v40 = vld [vmem:[#allocation3 + $0x61] sm:$0xff]  ;;  %v16346_v62 = vld [vmem:[#allocation18_spill] sm:$0xff] }
 0x5c7   : > { %16344 = vst [vmem:[#allocation14_spill] sm:$0xff] %v13914_v45  ;;  %v5464_v55 = vmul.f32 %v13781_v56, %v13914_v45  ;;  %v5231_v45 = vpack.c.bf16 %v3594_v48, %v3593_v60 }
 0x5c9   : > { %v5500_v24 = vadd.f32 %v13790_v51, %v5464_v55 }
 0x5ca   : > { %v5330_v10 = vpop.f32.mrf.mxu2 }
 0x5cb   : > { %v5532_v37 = vmax.f32 %v5500_v24, 0.0  ;;  %v5397_v3 = vadd.f32 %v5330_v10, %v13676_v16  ;;  %v4994_v16 = vadd.f32 %v13634_v39, %v13530_v53  ;;  %v4793_v53 = vadd.f32 %v13537_v34, %v13540_v36  ;;  %v13943_v39 = vpop.f32.mrf.mxu0 }
 0x5cc   : > { %v13922_v14 = vpop.f32.mrf.mxu1  ;;  %v5597_v47 = vld [vmem:[#allocation3 + $0x68] sm:$0xff] }
 0x5cd   : > { %v5629_v58 = vld [vmem:[#allocation3 + $0x69] sm:$0xff]  ;;  %5564 = vst.msk [vmem:[#allocation3 + $0x79] sm:$0xff] %vm744_vm3, %v5532_v37  ;;  %v13926_v0 = vadd.f32 %v5397_v3, %v16346_v62  ;;  %v13928_v55 = vpack.c.bf16 %v5597_v47, %v5596_v43  ;;  %v5196_v60 = vadd.f32 %v13681_v18, %v4994_v16 }
 0x5ce   : > { %v5660_v59 = vld [vmem:[#allocation3 + $0x62] sm:$0xff]  ;;  %v6085_v2 = vpack.c.bf16 %v5629_v58, %v5628_v40  ;;  %v5661_v61 = vld [vmem:[#allocation3 + $0x6a] sm:$0xff]  ;;  %v4995_v40 = vadd.f32 %v13646_v32, %v4793_v53 }
 0x5cf   : > { %16347 = vst [vmem:[#allocation18_spill] sm:$0xff] %v13926_v0  ;;  %v6287_v24 = vpack.c.bf16 %v5661_v61, %v5660_v59  ;;  %v5465_v10 = vmul.f32 %v13781_v56, %v13926_v0  ;;  %10504 = vmatmul.msk.bf16.gmra.mxu2 %vm744_vm3, %v5231_v45  ;;  %v16348_v43 = vld [vmem:[#allocation22_spill] sm:$0xff] }
 0x5d0   : > { %10519 = vmatmul.msk.bf16.gmra.mxu3 %vm744_vm3, %v13928_v55  ;;  %v5197_v47 = vadd.f32 %v13693_v41, %v4995_v40  ;;  %v16350_v32 = vld [vmem:[#allocation26_spill] sm:$0xff] }
 0x5d1   : > { %10547 = vmatmul.msk.bf16.gmra.mxu0 %vm744_vm3, %v6085_v2  ;;  %v5501_v48 = vadd.f32 %v13790_v51, %v5465_v10 }
 0x5d2   : > { %10575 = vmatmul.msk.bf16.gmra.mxu1 %vm744_vm3, %v6287_v24  ;;  %v5333_v61 = vpop.f32.mrf.mxu2 }
 0x5d3   : > { %v5533_v37 = vmax.f32 %v5501_v48, 0.0  ;;  %v5398_v3 = vadd.f32 %v5333_v61, %v5196_v60  ;;  %v13956_v48 = vpop.f32.mrf.mxu0 }
 0x5d4   : > { %v13945_v45 = vpop.f32.mrf.mxu1  ;;  %v5598_v62 = vld [vmem:[#allocation3 + $0x78] sm:$0xff] }
 0x5d5   : > { %5565 = vst.msk [vmem:[#allocation3 + $0x81] sm:$0xff] %vm744_vm3, %v5533_v37  ;;  %v13949_v2 = vadd.f32 %v5398_v3, %v16348_v43  ;;  %v5630_v24 = vld [vmem:[#allocation3 + $0x79] sm:$0xff] }
 0x5d6   : > { %v11033_v43 = vld [vmem:[%s16068_s15 + $0x30] sm:$0xff] }
 0x5d7   : > { %16349 = vst [vmem:[#allocation22_spill] sm:$0xff] %v13949_v2  ;;  %v5466_v18 = vmul.f32 %v13781_v56, %v13949_v2  ;;  %6573 = vmatpush.bf16.msra.mxu2 %v11033_v43 }
 0x5d9   : > { %v5502_v34 = vadd.f32 %v13790_v51, %v5466_v18  ;;  %v4996_v18 = vadd.f32 %v13658_v19, %v13552_v26  ;;  %v4795_v26 = vadd.f32 %v13559_v20, %v13562_v21 }
 0x5da   : > { %v5335_v36 = vpop.f32.mrf.mxu2 }
 0x5db   : > { %v5534_v58 = vmax.f32 %v5502_v34, 0.0  ;;  %v5399_v59 = vadd.f32 %v5335_v36, %v5197_v47  ;;  %v5198_v34 = vadd.f32 %v13700_v17, %v4996_v18 }
 0x5dc   : > { %v5599_v16 = vld [vmem:[#allocation3 + $0x80] sm:$0xff]  ;;  %v13962_v53 = vpop.f32.mrf.mxu1 }
 0x5dd   : > { %v5631_v10 = vld [vmem:[#allocation3 + $0x81] sm:$0xff]  ;;  %5566 = vst.msk [vmem:[#allocation3 + $0x91] sm:$0xff] %vm744_vm3, %v5534_v58  ;;  %v13960_v61 = vadd.f32 %v5399_v59, %v16350_v32  ;;  %v13964_v41 = vpack.c.bf16 %v5599_v16, %v5598_v62  ;;  %v13983_v62 = vpop.f32.mrf.mxu0  ;;  %v4997_v16 = vadd.f32 %v13674_v13, %v4795_v26  ;;  %v16354_v26 = vld [vmem:[#allocation34_spill] sm:$0xff] }
 0x5de   : > { %v5662_v60 = vld [vmem:[#allocation3 + $0x7a] sm:$0xff]  ;;  %v6086_v37 = vpack.c.bf16 %v5631_v10, %v5630_v24  ;;  %v5663_v3 = vld [vmem:[#allocation3 + $0x82] sm:$0xff] }
 0x5df   : > { %16351 = vst [vmem:[#allocation26_spill] sm:$0xff] %v13960_v61  ;;  %v6288_v40 = vpack.c.bf16 %v5663_v3, %v5662_v60  ;;  %v5467_v47 = vmul.f32 %v13781_v56, %v13960_v61  ;;  %10505 = vmatmul.msk.bf16.gmra.mxu2 %vm744_vm3, %v13569_v33  ;;  %v16352_v33 = vld [vmem:[#allocation30_spill] sm:$0xff]  ;;  %v3597_v60 = vld [vmem:[#allocation3 + $0x19a] sm:$0xff]  ;;  %v3598_v32 = vld [vmem:[#allocation3 + $0x1a2] sm:$0xff]  ;;  %v5199_v20 = vadd.f32 %v13713_v42, %v4997_v16 }
 0x5e0   : > { %10520 = vmatmul.msk.bf16.gmra.mxu3 %vm744_vm3, %v13964_v41 }
 0x5e1   : > { %10548 = vmatmul.msk.bf16.gmra.mxu0 %vm744_vm3, %v6086_v37  ;;  %v5503_v36 = vadd.f32 %v13790_v51, %v5467_v47 }
 0x5e2   : > { %10576 = vmatmul.msk.bf16.gmra.mxu1 %vm744_vm3, %v6288_v40  ;;  %v5338_v58 = vpop.f32.mrf.mxu2  ;;  %v5233_v40 = vpack.c.bf16 %v3598_v32, %v3597_v60 }
 0x5e3   : > { %v5535_v19 = vmax.f32 %v5503_v36, 0.0  ;;  %v5400_v59 = vadd.f32 %v5338_v58, %v5198_v34  ;;  %v13996_v58 = vpop.f32.mrf.mxu3 }
 0x5e4   : > { %v13992_v10 = vpop.f32.mrf.mxu1  ;;  %v5600_v18 = vld [vmem:[#allocation3 + $0x90] sm:$0xff] }
 0x5e5   : > { %5567 = vst.msk [vmem:[#allocation3 + $0x99] sm:$0xff] %vm744_vm3, %v5535_v19  ;;  %v13987_v24 = vadd.f32 %v5400_v59, %v16352_v33  ;;  %v5632_v47 = vld [vmem:[#allocation3 + $0x91] sm:$0xff]  ;;  %v14006_v60 = vpop.f32.mrf.mxu0 }
 0x5e7   : > { %16353 = vst [vmem:[#allocation30_spill] sm:$0xff] %v13987_v24  ;;  %v5468_v17 = vmul.f32 %v13781_v56, %v13987_v24 }
 0x5e9   : > { %v5504_v21 = vadd.f32 %v13790_v51, %v5468_v17  ;;  %v4998_v17 = vadd.f32 %v13685_v49, %v13580_v15  ;;  %v4797_v49 = vadd.f32 %v13587_v4, %v13590_v46 }
 0x5ea   : > { %v5340_v37 = vpop.f32.mrf.mxu2 }
 0x5eb   : > { %v5536_v3 = vmax.f32 %v5504_v21, 0.0  ;;  %v5401_v43 = vadd.f32 %v5340_v37, %v5199_v20  ;;  %v5200_v20 = vadd.f32 %v13718_v54, %v4998_v17  ;;  %v5969_v54 = vpop.f32.mrf.mxu3  ;;  %v4999_v4 = vadd.f32 %v13697_v35, %v4797_v49 }
 0x5ec   : > { %v5601_v34 = vld [vmem:[#allocation3 + $0x98] sm:$0xff]  ;;  %v14017_v37 = vpop.f32.mrf.mxu1 }
 0x5ed   : > { %v5633_v36 = vld [vmem:[#allocation3 + $0x99] sm:$0xff]  ;;  %5568 = vst.msk [vmem:[#allocation3 + $0xa9] sm:$0xff] %vm744_vm3, %v5536_v3  ;;  %v14000_v19 = vadd.f32 %v5401_v43, %v16354_v26  ;;  %v14002_v59 = vpack.c.bf16 %v5601_v34, %v5600_v18  ;;  %v16356_v18 = vld [vmem:[#allocation38_spill] sm:$0xff] }
 0x5ee   : > { %v5664_v13 = vld [vmem:[#allocation3 + $0x92] sm:$0xff]  ;;  %v6087_v42 = vpack.c.bf16 %v5633_v36, %v5632_v47  ;;  %v5665_v33 = vld [vmem:[#allocation3 + $0x9a] sm:$0xff] }
 0x5ef   : > { %16355 = vst [vmem:[#allocation34_spill] sm:$0xff] %v14000_v19  ;;  %v6289_v16 = vpack.c.bf16 %v5665_v33, %v5664_v13  ;;  %v5469_v32 = vmul.f32 %v13781_v56, %v14000_v19  ;;  %10506 = vmatmul.msk.bf16.gmra.mxu2 %vm744_vm3, %v5233_v40  ;;  %v14024_v40 = vld [vmem:[%s16069_s16] ss:$0 sm:$0xff]  ;;  %v6171_v13 = vpop.f32.mrf.mxu0 }
 0x5f0   : > { %10521 = vmatmul.msk.bf16.gmra.mxu3 %vm744_vm3, %v14002_v59  ;;  %v11035_v34 = vld [vmem:[%s16068_s15 + $0x40] sm:$0xff]  ;;  %v6049_v36 = vadd.f32 %v14024_v40, %v5969_v54 }
 0x5f1   : > { %10549 = vmatmul.msk.bf16.gmra.mxu0 %vm744_vm3, %v6087_v42  ;;  %v5505_v21 = vadd.f32 %v13790_v51, %v5469_v32  ;;  %6775 = vmatpush.bf16.msra.mxu3 %v11035_v34  ;;  %v5201_v42 = vadd.f32 %v13734_v8, %v4999_v4 }
 0x5f2   : > { %10577 = vmatmul.msk.bf16.gmra.mxu1 %vm744_vm3, %v6289_v16  ;;  %v5343_v15 = vpop.f32.mrf.mxu2  ;;  %v6251_v26 = vadd.f32 %v6171_v13, %v6049_v36 }
 0x5f3   : > { %v5537_v3 = vmax.f32 %v5505_v21, 0.0  ;;  %v5402_v43 = vadd.f32 %v5343_v15, %v5200_v20 }
 0x5f4   : > { %v6373_v16 = vpop.f32.mrf.mxu1  ;;  %v5602_v15 = vld [vmem:[#allocation3 + $0xa8] sm:$0xff] }
 0x5f5   : > { %5569 = vst.msk [vmem:[#allocation3 + $0xb1] sm:$0xff] %vm744_vm3, %v5537_v3  ;;  %v14028_v47 = vadd.f32 %v5402_v43, %v16356_v18  ;;  %v14039_v32 = vadd.f32 %v6373_v16, %v6251_v26  ;;  %v5634_v3 = vld [vmem:[#allocation3 + $0xa9] sm:$0xff] }
 0x5f6   : > { %v16358_v18 = vld [vmem:[#allocation42_spill] sm:$0xff] }
 0x5f7   : > { %16357 = vst [vmem:[#allocation38_spill] sm:$0xff] %v14028_v47  ;;  %v5470_v46 = vmul.f32 %v13781_v56, %v14028_v47  ;;  %v5759_v47 = vld [vmem:[#allocation3 + $0x9a] sm:$0xff] }
 0x5f9   : > { %v5506_v33 = vadd.f32 %v13790_v51, %v5470_v46  ;;  %v5000_v46 = vadd.f32 %v13708_v57, %v13601_v52  ;;  %v4799_v52 = vadd.f32 %v13608_v6, %v13611_v23 }
 0x5fa   : > { %v5345_v17 = vpop.f32.mrf.mxu2 }
 0x5fb   : > { %v5538_v20 = vmax.f32 %v5506_v33, 0.0  ;;  %v5403_v21 = vadd.f32 %v5345_v17, %v5201_v42  ;;  %v5202_v26 = vadd.f32 %v13748_v7, %v5000_v46  ;;  %v16360_v17 = vld [vmem:[#allocation16_spill] sm:$0xff] }
 0x5fc   : > { %v5603_v43 = vld [vmem:[#allocation3 + $0xb0] sm:$0xff] }
 0x5fd   : > { %v5635_v35 = vld [vmem:[#allocation3 + $0xb1] sm:$0xff]  ;;  %5570 = vst.msk [vmem:[#allocation3 + $0xc1] sm:$0xff] %vm744_vm3, %v5538_v20  ;;  %v14043_v54 = vadd.f32 %v5403_v21, %v16358_v18  ;;  %v14045_v34 = vpack.c.bf16 %v5603_v43, %v5602_v15  ;;  %v5001_v21 = vadd.f32 %v13720_v25, %v4799_v52 }
 0x5fe   : > { %v5666_v49 = vld [vmem:[#allocation3 + $0xaa] sm:$0xff]  ;;  %v6088_v8 = vpack.c.bf16 %v5635_v35, %v5634_v3  ;;  %v5667_v36 = vld [vmem:[#allocation3 + $0xb2] sm:$0xff] }
 0x5ff   : > { %16359 = vst [vmem:[#allocation42_spill] sm:$0xff] %v14043_v54  ;;  %v6290_v4 = vpack.c.bf16 %v5667_v36, %v5666_v49  ;;  %v5471_v13 = vmul.f32 %v13781_v56, %v14043_v54  ;;  %10599 = vmatmul.msk.bf16.vlgmr.msra.gmra.mxu2 %vm744_vm3, %v13831_v11  ;;  %v11038_v11 = vld [vmem:[%s16068_s15 + $0x58] sm:$0xff]  ;;  %v5203_v15 = vadd.f32 %v13764_v1, %v5001_v21  ;;  %v14095_v21 = vpop.f32.mrf.mxu1  ;;  %v5758_v54 = vld [vmem:[#allocation3 + $0x92] sm:$0xff] }
 0x600   : > { %10522 = vmatmul.msk.bf16.gmra.mxu3 %vm744_vm3, %v14045_v34  ;;  %6976 = vmatpush.bf16.msra.mxu0 %v11038_v11  ;;  %v14093_v11 = vpop.f32.mrf.mxu0  ;;  %v5791_v19 = vld [vmem:[#allocation3 + $0xb0] sm:$0xff] }
 0x601   : > { %10550 = vmatmul.msk.bf16.gmra.mxu0 %vm744_vm3, %v6088_v8  ;;  %v5507_v42 = vadd.f32 %v13790_v51, %v5471_v13  ;;  %v5729_v61 = vld [vmem:[#allocation3 + $0xb1] sm:$0xff] }
 0x602   : > { %10578 = vmatmul.msk.bf16.gmra.mxu1 %vm744_vm3, %v6290_v4  ;;  %v5348_v33 = vpop.f32.mrf.mxu2  ;;  %v16362_v4 = vld [vmem:[#allocation20_spill] sm:$0xff]  ;;  %v5761_v0 = vld [vmem:[#allocation3 + $0xb2] sm:$0xff] }
 0x603   : > { %v5539_v57 = vmax.f32 %v5507_v42, 0.0  ;;  %v5404_v16 = vadd.f32 %v5348_v33, %v5202_v26  ;;  %v5002_v42 = vadd.f32 %v13742_v27, %v13619_v38  ;;  %v4801_v38 = vadd.f32 %v13626_v9, %v13629_v28  ;;  %v14106_v28 = vpop.f32.mrf.mxu3 }
 0x604   : > { %v5604_v35 = vld [vmem:[#allocation3 + $0xc0] sm:$0xff] }
 0x605   : > { %5571 = vst.msk [vmem:[#allocation3 + $0xc9] sm:$0xff] %vm744_vm3, %v5539_v57  ;;  %v14063_v20 = vadd.f32 %v5404_v16, %v16360_v17  ;;  %v5636_v49 = vld [vmem:[#allocation3 + $0xc1] sm:$0xff]  ;;  %v5204_v52 = vadd.f32 %v13783_v63, %v5002_v42 }
 0x607   : > { %16361 = vst [vmem:[#allocation16_spill] sm:$0xff] %v14063_v20  ;;  %v5472_v7 = vmul.f32 %v13781_v56, %v14063_v20 }
 0x609   : > { %v5508_v6 = vadd.f32 %v13790_v51, %v5472_v7 }
 0x60a   : > { %v5350_v23 = vpop.f32.mrf.mxu2 }
 0x60b   : > { %v5540_v3 = vmax.f32 %v5508_v6, 0.0  ;;  %v5405_v43 = vadd.f32 %v5350_v23, %v5203_v15  ;;  %v5003_v15 = vadd.f32 %v13759_v30, %v4801_v38  ;;  %v16366_v6 = vld [vmem:[#allocation63_spill] sm:$0xff]  ;;  %v16367_v30 = vld [vmem:[#allocation28_spill] sm:$0xff] }
 0x60c   : > { %v5605_v18 = vld [vmem:[#allocation3 + $0xc8] sm:$0xff]  ;;  %v16370_v38 = vld [vmem:[#allocation67_spill] sm:$0xff] }
 0x60d   : > { %v5637_v8 = vld [vmem:[#allocation3 + $0xc9] sm:$0xff]  ;;  %5572 = vst.msk [vmem:[#allocation3 + $0xd9] sm:$0xff] %vm744_vm3, %v5540_v3  ;;  %v14075_v25 = vadd.f32 %v5405_v43, %v16362_v4  ;;  %v14077_v46 = vpack.c.bf16 %v5605_v18, %v5604_v35  ;;  %v5205_v23 = vadd.f32 %v16366_v6, %v5003_v15 }
 0x60e   : > { %v5668_v36 = vld [vmem:[#allocation3 + $0xc2] sm:$0xff]  ;;  %v6089_v13 = vpack.c.bf16 %v5637_v8, %v5636_v49  ;;  %v5669_v26 = vld [vmem:[#allocation3 + $0xca] sm:$0xff] }
 0x60f   : > { %16363 = vst [vmem:[#allocation20_spill] sm:$0xff] %v14075_v25  ;;  %v6291_v1 = vpack.c.bf16 %v5669_v26, %v5668_v36  ;;  %v5473_v33 = vmul.f32 %v13781_v56, %v14075_v25  ;;  %10600 = vmatmul.msk.bf16.gmra.mxu2 %vm744_vm3, %v13865_v31  ;;  %v16364_v31 = vld [vmem:[#allocation24_spill] sm:$0xff]  ;;  %v5789_v25 = vld [vmem:[#allocation3 + $0x98] sm:$0xff] }
 0x610   : > { %10523 = vmatmul.msk.bf16.gmra.mxu3 %vm744_vm3, %v14077_v46 }
 0x611   : > { %10551 = vmatmul.msk.bf16.gmra.mxu0 %vm744_vm3, %v6089_v13  ;;  %v5509_v57 = vadd.f32 %v13790_v51, %v5473_v33 }
 0x612   : > { %10579 = vmatmul.msk.bf16.gmra.mxu1 %vm744_vm3, %v6291_v1  ;;  %v5353_v16 = vpop.f32.mrf.mxu2 }
 0x613   : > { %v5541_v27 = vmax.f32 %v5509_v57, 0.0  ;;  %v5406_v17 = vadd.f32 %v5353_v16, %v5204_v52  ;;  %v16369_v16 = vld [vmem:[#allocation69_spill] sm:$0xff] }
 0x614   : > { %v5606_v49 = vld [vmem:[#allocation3 + $0xd8] sm:$0xff] }
 0x615   : > { %5573 = vst.msk [vmem:[#allocation3 + $0xe1] sm:$0xff] %vm744_vm3, %v5541_v27  ;;  %v14099_v7 = vadd.f32 %v5406_v17, %v16364_v31  ;;  %v5638_v18 = vld [vmem:[#allocation3 + $0xd9] sm:$0xff]  ;;  %v5004_v27 = vadd.f32 %v16370_v38, %v16369_v16  ;;  %v16371_v31 = vld [vmem:[#allocation65_spill] sm:$0xff] }
 0x617   : > { %16365 = vst [vmem:[#allocation24_spill] sm:$0xff] %v14099_v7  ;;  %v5474_v63 = vmul.f32 %v13781_v56, %v14099_v7  ;;  %v5206_v15 = vadd.f32 %v16371_v31, %v5004_v27  ;;  %v5757_v7 = vld [vmem:[#allocation3 + $0x82] sm:$0xff] }
 0x619   : > { %v5510_v9 = vadd.f32 %v13790_v51, %v5474_v63 }
 0x61a   : > { %v5355_v3 = vpop.f32.mrf.mxu2 }
 0x61b   : > { %v5542_v43 = vmax.f32 %v5510_v9, 0.0  ;;  %v5407_v35 = vadd.f32 %v5355_v3, %v5205_v23  ;;  %v16372_v9 = vld [vmem:[#allocation50_spill] sm:$0xff]  ;;  %v16373_v3 = vld [vmem:[#allocation68_spill] sm:$0xff] }
 0x61c   : > { %v5607_v8 = vld [vmem:[#allocation3 + $0xe0] sm:$0xff] }
 0x61d   : > { %v5639_v36 = vld [vmem:[#allocation3 + $0xe1] sm:$0xff]  ;;  %5574 = vst.msk [vmem:[#allocation3 + $0xf1] sm:$0xff] %vm744_vm3, %v5542_v43  ;;  %v14110_v13 = vadd.f32 %v5407_v35, %v16367_v30  ;;  %v14112_v42 = vpack.c.bf16 %v5607_v8, %v5606_v49  ;;  %v4803_v43 = vadd.f32 %v16373_v3, %v16372_v9 }
 0x61e   : > { %v5670_v4 = vld [vmem:[#allocation3 + $0xda] sm:$0xff]  ;;  %v6176_v26 = vpop.f32.mrf.mxu0  ;;  %v6090_v33 = vpack.c.bf16 %v5639_v36, %v5638_v18  ;;  %v5671_v52 = vld [vmem:[#allocation3 + $0xe2] sm:$0xff] }
 0x61f   : > { %16368 = vst [vmem:[#allocation63_spill] sm:$0xff] %v14110_v13  ;;  %v6378_v1 = vpop.f32.mrf.mxu1  ;;  %v6292_v57 = vpack.c.bf16 %v5671_v52, %v5670_v4  ;;  %v5475_v17 = vmul.f32 %v13781_v56, %v14110_v13  ;;  %10601 = vmatmul.msk.bf16.gmra.mxu2 %vm744_vm3, %v13897_v50  ;;  %v16374_v50 = vld [vmem:[#allocation32_spill] sm:$0xff] }
 0x620   : > { %10524 = vmatmul.msk.bf16.gmra.mxu3 %vm744_vm3, %v14112_v42 }
 0x621   : > { %10552 = vmatmul.msk.bf16.gmra.mxu0 %vm744_vm3, %v6090_v33  ;;  %v5511_v63 = vadd.f32 %v13790_v51, %v5475_v17  ;;  %v16376_v33 = vld [vmem:[#allocation47_spill] sm:$0xff] }
 0x622   : > { %10580 = vmatmul.msk.bf16.gmra.mxu1 %vm744_vm3, %v6292_v57  ;;  %v5358_v6 = vpop.f32.mrf.mxu2  ;;  %v5005_v52 = vadd.f32 %v16376_v33, %v4803_v43 }
 0x623   : > { %v5974_v23 = vpop.f32.mrf.mxu3  ;;  %v5543_v35 = vmax.f32 %v5511_v63, 0.0  ;;  %v5408_v49 = vadd.f32 %v5358_v6, %v5206_v15 }
 0x624   : > { %v6051_v18 = vadd.f32 %v14024_v40, %v5974_v23  ;;  %v5207_v38 = vadd.f32 %v13826_v5, %v5005_v52  ;;  %v5640_v23 = vld [vmem:[#allocation3 + $0xf1] sm:$0xff] }
 0x625   : > { %5575 = vst.msk [vmem:[#allocation3 + $0xf9] sm:$0xff] %vm744_vm3, %v5543_v35  ;;  %v14131_v8 = vadd.f32 %v5408_v49, %v16374_v50  ;;  %v16377_v35 = vld [vmem:[#allocation36_spill] sm:$0xff] }
 0x626   : > { %v6253_v36 = vadd.f32 %v6176_v26, %v6051_v18  ;;  %v6178_v4 = vpop.f32.mrf.mxu0  ;;  %v5608_v26 = vld [vmem:[#allocation3 + $0xf0] sm:$0xff] }
 0x627   : > { %16375 = vst [vmem:[#allocation28_spill] sm:$0xff] %v14131_v8  ;;  %v6380_v30 = vpop.f32.mrf.mxu1  ;;  %v5476_v57 = vmul.f32 %v13781_v56, %v14131_v8 }
 0x628   : > { %v14136_v16 = vadd.f32 %v6378_v1, %v6253_v36 }
 0x629   : > { %v5512_v27 = vadd.f32 %v13790_v51, %v5476_v57  ;;  %v16379_v57 = vld [vmem:[#allocation52_spill] sm:$0xff] }
 0x62a   : > { %v5360_v17 = vpop.f32.mrf.mxu2 }
 0x62b   : > { %v5976_v31 = vpop.f32.mrf.mxu3  ;;  %v5544_v15 = vmax.f32 %v5512_v27, 0.0  ;;  %v5409_v63 = vadd.f32 %v5360_v17, %v5207_v38  ;;  %v16380_v38 = vld [vmem:[#allocation48_spill] sm:$0xff] }
 0x62c   : > { %v6052_v6 = vadd.f32 %v14024_v40, %v5976_v31  ;;  %v5609_v9 = vld [vmem:[#allocation3 + $0xf8] sm:$0xff]  ;;  %v5006_v27 = vadd.f32 %v16380_v38, %v16379_v57 }
 0x62d   : > { %v5641_v3 = vld [vmem:[#allocation3 + $0xf9] sm:$0xff]  ;;  %5576 = vst.msk [vmem:[#allocation3 + $0x109] sm:$0xff] %vm744_vm3, %v5544_v15  ;;  %v14143_v1 = vadd.f32 %v5409_v63, %v16377_v35  ;;  %v14145_v50 = vpack.c.bf16 %v5609_v9, %v5608_v26  ;;  %v16381_v26 = vld [vmem:[#allocation70_spill] sm:$0xff] }
 0x62e   : > { %v5672_v43 = vld [vmem:[#allocation3 + $0xf2] sm:$0xff]  ;;  %v6254_v49 = vadd.f32 %v6178_v4, %v6052_v6  ;;  %v6181_v5 = vpop.f32.mrf.mxu0  ;;  %v6091_v36 = vpack.c.bf16 %v5641_v3, %v5640_v23  ;;  %v5673_v33 = vld [vmem:[#allocation3 + $0xfa] sm:$0xff]  ;;  %v5208_v31 = vadd.f32 %v13847_v44, %v5006_v27 }
 0x62f   : > { %16378 = vst [vmem:[#allocation69_spill] sm:$0xff] %v14143_v1  ;;  %v6383_v18 = vpop.f32.mrf.mxu1  ;;  %v6293_v52 = vpack.c.bf16 %v5673_v33, %v5672_v43  ;;  %v5477_v17 = vmul.f32 %v13781_v56, %v14143_v1  ;;  %10602 = vmatmul.msk.bf16.gmra.mxu2 %vm744_vm3, %v13928_v55  ;;  %v16382_v23 = vld [vmem:[#allocation54_spill] sm:$0xff]  ;;  %v16383_v55 = vld [vmem:[#allocation40_spill] sm:$0xff]  ;;  %v16385_v44 = vld [vmem:[#allocation19_spill] sm:$0xff] }
 0x630   : > { %10525 = vmatmul.msk.bf16.gmra.mxu3 %vm744_vm3, %v14145_v50  ;;  %v14155_v4 = vadd.f32 %v6380_v30, %v6254_v49  ;;  %v4805_v9 = vadd.f32 %v16382_v23, %v16381_v26  ;;  %v16386_v27 = vld [vmem:[#allocation31_spill] sm:$0xff] }
 0x631   : > { %10553 = vmatmul.msk.bf16.gmra.mxu0 %vm744_vm3, %v6091_v36  ;;  %v5513_v15 = vadd.f32 %v13790_v51, %v5477_v17 }
 0x632   : > { %10581 = vmatmul.msk.bf16.gmra.mxu1 %vm744_vm3, %v6293_v52  ;;  %v5363_v63 = vpop.f32.mrf.mxu2  ;;  %v5007_v52 = vadd.f32 %v16385_v44, %v4805_v9 }
 0x633   : > { %v5979_v6 = vpop.f32.mrf.mxu3  ;;  %v5545_v3 = vmax.f32 %v5513_v15, 0.0  ;;  %v5410_v43 = vadd.f32 %v5363_v63, %v5208_v31 }
 0x634   : > { %v6053_v35 = vadd.f32 %v14024_v40, %v5979_v6  ;;  %v5209_v17 = vadd.f32 %v16386_v27, %v5007_v52 }
 0x635   : > { %5577 = vst.msk [vmem:[#allocation3 + $0x111] sm:$0xff] %vm744_vm3, %v5545_v3  ;;  %v14166_v30 = vadd.f32 %v5410_v43, %v16383_v55  ;;  %v5642_v3 = vld [vmem:[#allocation3 + $0x109] sm:$0xff]  ;;  %v16387_v55 = vld [vmem:[#allocation44_spill] sm:$0xff] }
 0x636   : > { %v6255_v49 = vadd.f32 %v6181_v5, %v6053_v35  ;;  %v6183_v36 = vpop.f32.mrf.mxu0  ;;  %v5610_v5 = vld [vmem:[#allocation3 + $0x108] sm:$0xff] }
 0x637   : > { %16384 = vst [vmem:[#allocation67_spill] sm:$0xff] %v14166_v30  ;;  %v6385_v33 = vpop.f32.mrf.mxu1  ;;  %v5478_v57 = vmul.f32 %v13781_v56, %v14166_v30 }
 0x638   : > { %v14171_v38 = vadd.f32 %v6383_v18, %v6255_v49 }
 0x639   : > { %v5514_v31 = vadd.f32 %v13790_v51, %v5478_v57 }
 0x63a   : > { %v5365_v15 = vpop.f32.mrf.mxu2 }
 0x63b   : > { %v5981_v63 = vpop.f32.mrf.mxu3  ;;  %v5546_v6 = vmax.f32 %v5514_v31, 0.0  ;;  %v5411_v26 = vadd.f32 %v5365_v15, %v5209_v17  ;;  %v16389_v15 = vld [vmem:[#allocation51_spill] sm:$0xff] }
 0x63c   : > { %v6054_v23 = vadd.f32 %v14024_v40, %v5981_v63  ;;  %v5611_v43 = vld [vmem:[#allocation3 + $0x110] sm:$0xff]  ;;  %v16390_v63 = vld [vmem:[#allocation27_spill] sm:$0xff] }
 0x63d   : > { %v5643_v35 = vld [vmem:[#allocation3 + $0x111] sm:$0xff]  ;;  %5578 = vst.msk [vmem:[#allocation3 + $0x121] sm:$0xff] %vm744_vm3, %v5546_v6  ;;  %v14178_v18 = vadd.f32 %v5411_v26, %v16387_v55  ;;  %v14180_v57 = vpack.c.bf16 %v5611_v43, %v5610_v5  ;;  %v5008_v30 = vadd.f32 %v16390_v63, %v16389_v15 }
 0x63e   : > { %v5674_v9 = vld [vmem:[#allocation3 + $0x10a] sm:$0xff]  ;;  %v6256_v49 = vadd.f32 %v6183_v36, %v6054_v23  ;;  %v6186_v44 = vpop.f32.mrf.mxu0  ;;  %v6092_v27 = vpack.c.bf16 %v5643_v35, %v5642_v3  ;;  %v5675_v31 = vld [vmem:[#allocation3 + $0x112] sm:$0xff] }
 0x63f   : > { %16388 = vst [vmem:[#allocation65_spill] sm:$0xff] %v14178_v18  ;;  %v6388_v52 = vpop.f32.mrf.mxu1  ;;  %v6294_v17 = vpack.c.bf16 %v5675_v31, %v5674_v9  ;;  %v5479_v1 = vmul.f32 %v13781_v56, %v14178_v18  ;;  %10603 = vmatmul.msk.bf16.gmra.mxu2 %vm744_vm3, %v13964_v41  ;;  %v16391_v6 = vld [vmem:[#allocation39_spill] sm:$0xff]  ;;  %v16393_v35 = vld [vmem:[#allocation53_spill] sm:$0xff] }
 0x640   : > { %10526 = vmatmul.msk.bf16.gmra.mxu3 %vm744_vm3, %v14180_v57  ;;  %v14190_v36 = vadd.f32 %v6385_v33, %v6256_v49  ;;  %v5210_v26 = vadd.f32 %v16391_v6, %v5008_v30  ;;  %v16392_v43 = vld [vmem:[#allocation55_spill] sm:$0xff]  ;;  %v16394_v41 = vld [vmem:[#allocation17_spill] sm:$0xff] }
 0x641   : > { %10554 = vmatmul.msk.bf16.gmra.mxu0 %vm744_vm3, %v6092_v27  ;;  %v5515_v23 = vadd.f32 %v13790_v51, %v5479_v1  ;;  %v4807_v9 = vadd.f32 %v16393_v35, %v16392_v43  ;;  %v16396_v30 = vld [vmem:[#allocation71_spill] sm:$0xff] }
 0x642   : > { %10582 = vmatmul.msk.bf16.gmra.mxu1 %vm744_vm3, %v6294_v17  ;;  %v5368_v5 = vpop.f32.mrf.mxu2 }
 0x643   : > { %v5984_v3 = vpop.f32.mrf.mxu3  ;;  %v5547_v55 = vmax.f32 %v5515_v23, 0.0  ;;  %v5412_v31 = vadd.f32 %v5368_v5, %v5210_v26  ;;  %v5009_v63 = vadd.f32 %v16396_v30, %v4807_v9  ;;  %v16397_v30 = vld [vmem:[#allocation21_spill] sm:$0xff] }
 0x644   : > { %v6055_v15 = vadd.f32 %v14024_v40, %v5984_v3 }
 0x645   : > { %5579 = vst.msk [vmem:[#allocation3 + $0x129] sm:$0xff] %vm744_vm3, %v5547_v55  ;;  %v14201_v33 = vadd.f32 %v5412_v31, %v16394_v41  ;;  %v5211_v23 = vadd.f32 %v13892_v12, %v5009_v63  ;;  %v5644_v31 = vld [vmem:[#allocation3 + $0x121] sm:$0xff] }
 0x646   : > { %v6257_v49 = vadd.f32 %v6186_v44, %v6055_v15  ;;  %v6188_v27 = vpop.f32.mrf.mxu0  ;;  %v5612_v44 = vld [vmem:[#allocation3 + $0x120] sm:$0xff] }
 0x647   : > { %16395 = vst [vmem:[#allocation50_spill] sm:$0xff] %v14201_v33  ;;  %v6390_v17 = vpop.f32.mrf.mxu1  ;;  %v5480_v1 = vmul.f32 %v13781_v56, %v14201_v33 }
 0x648   : > { %v14206_v6 = vadd.f32 %v6388_v52, %v6257_v49 }
 0x649   : > { %v5516_v26 = vadd.f32 %v13790_v51, %v5480_v1 }
 0x64a   : > { %v5370_v5 = vpop.f32.mrf.mxu2 }
 0x64b   : > { %v5986_v3 = vpop.f32.mrf.mxu3  ;;  %v5548_v43 = vmax.f32 %v5516_v26, 0.0  ;;  %v5413_v35 = vadd.f32 %v5370_v5, %v5211_v23  ;;  %v16399_v5 = vld [vmem:[#allocation56_spill] sm:$0xff] }
 0x64c   : > { %v6056_v55 = vadd.f32 %v14024_v40, %v5986_v3  ;;  %v5613_v15 = vld [vmem:[#allocation3 + $0x128] sm:$0xff]  ;;  %v5010_v3 = vadd.f32 %v13899_v22, %v16399_v5 }
 0x64d   : > { %v5645_v41 = vld [vmem:[#allocation3 + $0x129] sm:$0xff]  ;;  %5580 = vst.msk [vmem:[#allocation3 + $0x139] sm:$0xff] %vm744_vm3, %v5548_v43  ;;  %v14213_v52 = vadd.f32 %v5413_v35, %v16397_v30  ;;  %v14215_v1 = vpack.c.bf16 %v5613_v15, %v5612_v44 }
 0x64e   : > { %v5676_v9 = vld [vmem:[#allocation3 + $0x122] sm:$0xff]  ;;  %v6258_v49 = vadd.f32 %v6188_v27, %v6056_v55  ;;  %v6191_v12 = vpop.f32.mrf.mxu0  ;;  %v6093_v33 = vpack.c.bf16 %v5645_v41, %v5644_v31  ;;  %v5677_v26 = vld [vmem:[#allocation3 + $0x12a] sm:$0xff]  ;;  %v5212_v43 = vadd.f32 %v13910_v29, %v5010_v3 }
 0x64f   : > { %16398 = vst [vmem:[#allocation68_spill] sm:$0xff] %v14213_v52  ;;  %v6393_v63 = vpop.f32.mrf.mxu1  ;;  %v6295_v23 = vpack.c.bf16 %v5677_v26, %v5676_v9  ;;  %v5481_v18 = vmul.f32 %v13781_v56, %v14213_v52  ;;  %10604 = vmatmul.msk.bf16.gmra.mxu2 %vm744_vm3, %v14002_v59  ;;  %v16400_v44 = vld [vmem:[#allocation58_spill] sm:$0xff]  ;;  %v16401_v31 = vld [vmem:[#allocation57_spill] sm:$0xff]  ;;  %v5787_v52 = vld [vmem:[#allocation3 + $0x80] sm:$0xff] }
 0x650   : > { %10527 = vmatmul.msk.bf16.gmra.mxu3 %vm744_vm3, %v14215_v1  ;;  %v14225_v27 = vadd.f32 %v6390_v17, %v6258_v49  ;;  %v4809_v15 = vadd.f32 %v16401_v31, %v16400_v44  ;;  %v16402_v59 = vld [vmem:[#allocation25_spill] sm:$0xff] }
 0x651   : > { %10555 = vmatmul.msk.bf16.gmra.mxu0 %vm744_vm3, %v6093_v33  ;;  %v5517_v35 = vadd.f32 %v13790_v51, %v5481_v18  ;;  %v16404_v29 = vld [vmem:[#allocation73_spill] sm:$0xff] }
 0x652   : > { %10583 = vmatmul.msk.bf16.gmra.mxu1 %vm744_vm3, %v6295_v23  ;;  %v5373_v22 = vpop.f32.mrf.mxu2  ;;  %v5011_v23 = vadd.f32 %v16404_v29, %v4809_v15 }
 0x653   : > { %v5989_v55 = vpop.f32.mrf.mxu3  ;;  %v5549_v41 = vmax.f32 %v5517_v35, 0.0  ;;  %v5414_v9 = vadd.f32 %v5373_v22, %v5212_v43 }
 0x654   : > { %v6057_v30 = vadd.f32 %v14024_v40, %v5989_v55  ;;  %v5213_v3 = vadd.f32 %v13922_v14, %v5011_v23 }
 0x655   : > { %5581 = vst.msk [vmem:[#allocation3 + $0x141] sm:$0xff] %vm744_vm3, %v5549_v41  ;;  %v14236_v17 = vadd.f32 %v5414_v9, %v16402_v59  ;;  %v5646_v41 = vld [vmem:[#allocation3 + $0x139] sm:$0xff]  ;;  %v16405_v59 = vld [vmem:[#allocation29_spill] sm:$0xff] }
 0x656   : > { %v6259_v33 = vadd.f32 %v6191_v12, %v6057_v30  ;;  %v6193_v49 = vpop.f32.mrf.mxu0  ;;  %v5614_v12 = vld [vmem:[#allocation3 + $0x138] sm:$0xff] }
 0x657   : > { %16403 = vst [vmem:[#allocation32_spill] sm:$0xff] %v14236_v17  ;;  %v6395_v26 = vpop.f32.mrf.mxu1  ;;  %v5482_v18 = vmul.f32 %v13781_v56, %v14236_v17  ;;  %v5755_v17 = vld [vmem:[#allocation3 + $0x6a] sm:$0xff] }
 0x658   : > { %v14241_v5 = vadd.f32 %v6393_v63, %v6259_v33 }
 0x659   : > { %v5518_v43 = vadd.f32 %v13790_v51, %v5482_v18 }
 0x65a   : > { %v5375_v35 = vpop.f32.mrf.mxu2 }
 0x65b   : > { %v5991_v22 = vpop.f32.mrf.mxu3  ;;  %v5550_v55 = vmax.f32 %v5518_v43, 0.0  ;;  %v5415_v44 = vadd.f32 %v5375_v35, %v5213_v3  ;;  %v16407_v43 = vld [vmem:[#allocation59_spill] sm:$0xff] }
 0x65c   : > { %v6058_v31 = vadd.f32 %v14024_v40, %v5991_v22  ;;  %v5615_v9 = vld [vmem:[#allocation3 + $0x140] sm:$0xff]  ;;  %v5012_v35 = vadd.f32 %v13943_v39, %v16407_v43  ;;  %v14268_v39 = vld [vmem:[%s16067_s14] ss:$0 sm:$0xff] }
 0x65d   : > { %v5647_v30 = vld [vmem:[#allocation3 + $0x141] sm:$0xff]  ;;  %5582 = vst.msk [vmem:[#allocation3 + $0x151] sm:$0xff] %vm744_vm3, %v5550_v55  ;;  %v14248_v63 = vadd.f32 %v5415_v44, %v16405_v59  ;;  %v14250_v51 = vpack.c.bf16 %v5615_v9, %v5614_v12  ;;  %v14285_v43 = vld [vmem:[%s16066_s13] ss:$0 sm:$0xff] }
 0x65e   : > { %v5678_v15 = vld [vmem:[#allocation3 + $0x13a] sm:$0xff]  ;;  %v6260_v33 = vadd.f32 %v6193_v49, %v6058_v31  ;;  %v6196_v14 = vpop.f32.mrf.mxu0  ;;  %v6094_v23 = vpack.c.bf16 %v5647_v30, %v5646_v41  ;;  %v5679_v18 = vld [vmem:[#allocation3 + $0x142] sm:$0xff]  ;;  %v5214_v55 = vadd.f32 %v13945_v45, %v5012_v35 }
 0x65f   : > { %16406 = vst [vmem:[#allocation47_spill] sm:$0xff] %v14248_v63  ;;  %v6398_v29 = vpop.f32.mrf.mxu1  ;;  %v6296_v3 = vpack.c.bf16 %v5679_v18, %v5678_v15  ;;  %v5483_v22 = vmul.f32 %v13781_v56, %v14248_v63  ;;  %10605 = vmatmul.msk.bf16.gmra.mxu2 %vm744_vm3, %v14045_v34  ;;  %v16408_v12 = vld [vmem:[#allocation61_spill] sm:$0xff]  ;;  %v16409_v41 = vld [vmem:[#allocation60_spill] sm:$0xff]  ;;  %v11040_v18 = vld [vmem:[%s16068_s15 + $0x68] sm:$0xff] }
 0x660   : > { %10528 = vmatmul.msk.bf16.gmra.mxu3 %vm744_vm3, %v14250_v51  ;;  %v14260_v49 = vadd.f32 %v6395_v26, %v6260_v33  ;;  %v4811_v34 = vadd.f32 %v16409_v41, %v16408_v12  ;;  %v16410_v15 = vld [vmem:[#allocation33_spill] sm:$0xff]  ;;  %7178 = vmatpush.bf16.msrb.mxu1 %v11040_v18 }
 0x661   : > { %10556 = vmatmul.msk.bf16.gmra.mxu0 %vm744_vm3, %v6094_v23  ;;  %v5519_v56 = vadd.f32 %v14268_v39, %v5483_v22 }
 0x662   : > { %10584 = vmatmul.msk.bf16.gmra.mxu1 %vm744_vm3, %v6296_v3  ;;  %v5378_v44 = vpop.f32.mrf.mxu2  ;;  %v5013_v3 = vadd.f32 %v13956_v48, %v4811_v34 }
 0x663   : > { %v5994_v31 = vpop.f32.mrf.mxu3  ;;  %v5551_v26 = vmax.f32 %v5519_v56, 0.0  ;;  %v5416_v9 = vadd.f32 %v5378_v44, %v5214_v55 }
 0x664   : > { %v6059_v30 = vadd.f32 %v14024_v40, %v5994_v31  ;;  %v5616_v41 = vld [vmem:[#allocation3 + $0x150] sm:$0xff] }
 0x665   : > { %5583 = vst.msk [vmem:[#allocation3 + $0x159] sm:$0xff] %vm744_vm3, %v5551_v26  ;;  %v14276_v45 = vadd.f32 %v5416_v9, %v16410_v15  ;;  %v5648_v34 = vld [vmem:[#allocation3 + $0x151] sm:$0xff]  ;;  %v16412_v15 = vld [vmem:[#allocation37_spill] sm:$0xff] }
 0x666   : > { %v6261_v59 = vadd.f32 %v6196_v14, %v6059_v30  ;;  %v6198_v33 = vpop.f32.mrf.mxu0  ;;  %v5215_v14 = vadd.f32 %v13962_v53, %v5013_v3 }
 0x667   : > { %16411 = vst [vmem:[#allocation36_spill] sm:$0xff] %v14276_v45  ;;  %v6400_v23 = vpop.f32.mrf.mxu1  ;;  %v5484_v35 = vmul.f32 %v14285_v43, %v14276_v45 }
 0x668   : > { %v14289_v22 = vadd.f32 %v6398_v29, %v6261_v59 }
 0x669   : > { %v5520_v55 = vadd.f32 %v14268_v39, %v5484_v35 }
 0x66a   : > { %v5380_v56 = vpop.f32.mrf.mxu2 }
 0x66b   : > { %v5996_v44 = vpop.f32.mrf.mxu3  ;;  %v5552_v31 = vmax.f32 %v5520_v55, 0.0  ;;  %v5417_v12 = vadd.f32 %v5380_v56, %v5215_v14  ;;  %v11037_v14 = vld [vmem:[%s16068_s15 + $0x50] sm:$0xff]  ;;  %v11039_v56 = vld [vmem:[%s16068_s15 + $0x60] sm:$0xff] }
 0x66c   : > { %v6060_v48 = vadd.f32 %v14024_v40, %v5996_v44  ;;  %v5617_v26 = vld [vmem:[#allocation3 + $0x158] sm:$0xff]  ;;  %6977 = vmatpush.bf16.msra.mxu0 %v11037_v14  ;;  %7179 = vmatpush.bf16.msrb.mxu1 %v11039_v56 }
 0x66d   : > { %v5649_v9 = vld [vmem:[#allocation3 + $0x159] sm:$0xff]  ;;  %5584 = vst.msk [vmem:[#allocation3 + $0x169] sm:$0xff] %vm744_vm3, %v5552_v31  ;;  %v14296_v29 = vadd.f32 %v5417_v12, %v16412_v15  ;;  %v14298_v3 = vpack.c.bf16 %v5617_v26, %v5616_v41  ;;  %v11042_v31 = vld [vmem:[%s16068_s15 + $0x78] sm:$0xff] }
 0x66e   : > { %v5680_v30 = vld [vmem:[#allocation3 + $0x152] sm:$0xff]  ;;  %v6262_v59 = vadd.f32 %v6198_v33, %v6060_v48  ;;  %v6201_v53 = vpop.f32.mrf.mxu0  ;;  %v6095_v35 = vpack.c.bf16 %v5649_v9, %v5648_v34  ;;  %v5681_v55 = vld [vmem:[#allocation3 + $0x15a] sm:$0xff]  ;;  %7380 = vmatpush.bf16.msrb.mxu2 %v11042_v31 }
 0x66f   : > { %16413 = vst [vmem:[#allocation52_spill] sm:$0xff] %v14296_v29  ;;  %v6403_v18 = vpop.f32.mrf.mxu1  ;;  %v6297_v44 = vpack.c.bf16 %v5681_v55, %v5680_v30  ;;  %v16414_v33 = vld [vmem:[#allocation62_spill] sm:$0xff]  ;;  %v5485_v48 = vmul.f32 %v14285_v43, %v14296_v29  ;;  %10606 = vmatmul.msk.bf16.gmra.mxu2 %vm744_vm3, %v14077_v46  ;;  %v11044_v34 = vld [vmem:[%s16068_s15 + $0x88] sm:$0xff]  ;;  %v16416_v55 = vld [vmem:[#allocation41_spill] sm:$0xff] }
 0x670   : > { %v5014_v12 = vadd.f32 %v13983_v62, %v16414_v33  ;;  %10529 = vmatmul.msk.bf16.gmra.mxu3 %vm744_vm3, %v14298_v3  ;;  %v14317_v41 = vadd.f32 %v6400_v23, %v6262_v59  ;;  %v16415_v46 = vld [vmem:[#allocation46_spill] sm:$0xff]  ;;  %v5785_v29 = vld [vmem:[#allocation3 + $0x68] sm:$0xff] }
 0x671   : > { %10557 = vmatmul.msk.bf16.gmra.mxu0 %vm744_vm3, %v6095_v35  ;;  %v5521_v26 = vadd.f32 %v14268_v39, %v5485_v48  ;;  %7582 = vmatpush.bf16.msrb.mxu3 %v11044_v34  ;;  %v4813_v23 = vadd.f32 %v13996_v58, %v16415_v46 }
 0x672   : > { %10585 = vmatmul.msk.bf16.gmra.mxu1 %vm744_vm3, %v6297_v44  ;;  %v5216_v62 = vadd.f32 %v13992_v10, %v5014_v12  ;;  %v5383_v9 = vpop.f32.mrf.mxu2 }
 0x673   : > { %v5999_v30 = vpop.f32.mrf.mxu3  ;;  %v5553_v15 = vmax.f32 %v5521_v26, 0.0  ;;  %v5015_v56 = vadd.f32 %v14006_v60, %v4813_v23  ;;  %v16418_v23 = vld [vmem:[#allocation45_spill] sm:$0xff] }
 0x674   : > { %v5418_v59 = vadd.f32 %v5383_v9, %v5216_v62  ;;  %v6061_v35 = vadd.f32 %v14024_v40, %v5999_v30  ;;  %v5650_v46 = vld [vmem:[#allocation3 + $0x169] sm:$0xff] }
 0x675   : > { %5585 = vst.msk [vmem:[#allocation3 + $0x171] sm:$0xff] %vm744_vm3, %v5553_v15  ;;  %v5217_v58 = vadd.f32 %v14017_v37, %v5015_v56 }
 0x676   : > { %v14331_v44 = vadd.f32 %v5418_v59, %v16416_v55  ;;  %v6263_v10 = vadd.f32 %v6201_v53, %v6061_v35  ;;  %v6203_v33 = vpop.f32.mrf.mxu0  ;;  %v5618_v53 = vld [vmem:[#allocation3 + $0x168] sm:$0xff] }
 0x677   : > { %v6405_v14 = vpop.f32.mrf.mxu1 }
 0x678   : > { %16417 = vst [vmem:[#allocation48_spill] sm:$0xff] %v14331_v44  ;;  %v5486_v31 = vmul.f32 %v14285_v43, %v14331_v44  ;;  %v14336_v12 = vadd.f32 %v6403_v18, %v6263_v10  ;;  %v5753_v44 = vld [vmem:[#allocation3 + $0x52] sm:$0xff] }
 0x67a   : > { %v5522_v48 = vadd.f32 %v14268_v39, %v5486_v31  ;;  %v5385_v34 = vpop.f32.mrf.mxu2 }
 0x67b   : > { %v6001_v62 = vpop.f32.mrf.mxu3  ;;  %v5419_v9 = vadd.f32 %v5385_v34, %v5217_v58 }
 0x67c   : > { %v5554_v26 = vmax.f32 %v5522_v48, 0.0  ;;  %v6062_v30 = vadd.f32 %v14024_v40, %v6001_v62  ;;  %v5619_v15 = vld [vmem:[#allocation3 + $0x170] sm:$0xff] }
 0x67d   : > { %v5651_v59 = vld [vmem:[#allocation3 + $0x171] sm:$0xff]  ;;  %v14343_v18 = vadd.f32 %v5419_v9, %v16418_v23  ;;  %v14345_v10 = vpack.c.bf16 %v5619_v15, %v5618_v53  ;;  %v5748_v23 = vld [vmem:[#allocation3 + $0x1a] sm:$0xff] }
 0x67e   : > { %v5682_v60 = vld [vmem:[#allocation3 + $0x16a] sm:$0xff]  ;;  %5586 = vst.msk [vmem:[#allocation3 + $0x181] sm:$0xff] %vm744_vm3, %v5554_v26  ;;  %v6264_v35 = vadd.f32 %v6203_v33, %v6062_v30  ;;  %v6206_v37 = vpop.f32.mrf.mxu0  ;;  %v14347_v56 = vpack.c.bf16 %v5651_v59, %v5650_v46  ;;  %v5683_v31 = vld [vmem:[#allocation3 + $0x172] sm:$0xff] }
 0x67f   : > { %16419 = vst [vmem:[#allocation70_spill] sm:$0xff] %v14343_v18  ;;  %v6408_v55 = vpop.f32.mrf.mxu1  ;;  %v14349_v58 = vpack.c.bf16 %v5683_v31, %v5682_v60  ;;  %v5487_v48 = vmul.f32 %v14285_v43, %v14343_v18  ;;  %10607 = vmatmul.msk.bf16.gmra.mxu2 %vm744_vm3, %v14112_v42  ;;  %v5717_v60 = vld [vmem:[#allocation3 + $0x21] sm:$0xff]  ;;  %v5781_v31 = vld [vmem:[#allocation3 + $0x38] sm:$0xff] }
 0x680   : > { %10530 = vmatmul.msk.bf16.gmra.mxu3 %vm744_vm3, %v14345_v10  ;;  %v14357_v34 = vadd.f32 %v6405_v14, %v6264_v35  ;;  %v5749_v35 = vld [vmem:[#allocation3 + $0x22] sm:$0xff] }
 0x681   : > { %10558 = vmatmul.msk.bf16.gmra.mxu0 %vm744_vm3, %v14347_v56  ;;  %v5523_v33 = vadd.f32 %v14268_v39, %v5487_v48  ;;  %v5716_v48 = vld [vmem:[#allocation3 + $0x19] sm:$0xff] }
 0x682   : > { %10586 = vmatmul.msk.bf16.gmra.mxu1 %vm744_vm3, %v14349_v58  ;;  %v6575_v26 = vpop.f32.mrf.mxu2 }
 0x683   : > { %v6004_v62 = vpop.f32.mrf.mxu3  ;;  %v5555_v9 = vmax.f32 %v5523_v33, 0.0  ;;  %v14366_v30 = vadd.f32 %v6575_v26, %v14039_v32  ;;  %v6687_v26 = vpack.c.bf16 %v5717_v60, %v5716_v48 }
 0x684   : > { %v6063_v43 = vadd.f32 %v14024_v40, %v6004_v62 }
 0x685   : > { %5587 = vst.msk [vmem:[#allocation3 + $0x189] sm:$0xff] %vm744_vm3, %v5555_v9  ;;  %v5780_v9 = vld [vmem:[#allocation3 + $0x30] sm:$0xff] }
 0x686   : > { %v6265_v42 = vadd.f32 %v6206_v37, %v6063_v43  ;;  %v6208_v14 = vpop.f32.mrf.mxu0  ;;  %v6889_v37 = vpack.c.bf16 %v5749_v35, %v5748_v23  ;;  %v7091_v43 = vpack.c.bf16 %v5781_v31, %v5780_v9  ;;  %v5750_v9 = vld [vmem:[#allocation3 + $0x32] sm:$0xff] }
 0x687   : > { %v6410_v53 = vpop.f32.mrf.mxu1 }
 0x688   : > { %v14369_v46 = vadd.f32 %v6408_v55, %v6265_v42 }
 0x68a   : > { %v14371_v59 = vpop.f32.mrf.mxu2 }
 0x68b   : > { %v6006_v15 = vpop.f32.mrf.mxu3 }
 0x68c   : > { %v6064_v39 = vadd.f32 %v14024_v40, %v6006_v15 }
 0x68e   : > { %v6266_v33 = vadd.f32 %v6208_v14, %v6064_v39  ;;  %v6211_v32 = vpop.f32.mrf.mxu0 }
 0x68f   : > { %v6413_v62 = vpop.f32.mrf.mxu1  ;;  %10608 = vmatmul.msk.bf16.gmra.mxu2 %vm744_vm3, %v14145_v50 }
 0x690   : > { %10627 = vmatmul.msk.bf16.vlgmr.msra.gmra.mxu3 %vm744_vm3, %v6687_v26  ;;  %v14377_v55 = vadd.f32 %v6410_v53, %v6266_v33  ;;  %v5719_v53 = vld [vmem:[#allocation3 + $0x39] sm:$0xff] }
 0x691   : > { %10655 = vmatmul.msk.bf16.vlgmr.msra.gmra.mxu0 %vm744_vm3, %v6889_v37  ;;  %v5751_v37 = vld [vmem:[#allocation3 + $0x3a] sm:$0xff] }
 0x692   : > { %10683 = vmatmul.msk.bf16.vlgmr.msrb.gmra.mxu1 %vm744_vm3, %v7091_v43  ;;  %v6580_v15 = vpop.f32.mrf.mxu2  ;;  %v5783_v43 = vld [vmem:[#allocation3 + $0x50] sm:$0xff] }
 0x693   : > { %v6009_v42 = vpop.f32.mrf.mxu3  ;;  %v14383_v60 = vadd.f32 %v6580_v15, %v14136_v16 }
 0x694   : > { %v6065_v14 = vadd.f32 %v14024_v40, %v6009_v42  ;;  %v5718_v42 = vld [vmem:[#allocation3 + $0x31] sm:$0xff] }
 0x696   : > { %v6267_v39 = vadd.f32 %v6211_v32, %v6065_v14  ;;  %v6213_v23 = vpop.f32.mrf.mxu0  ;;  %v14391_v32 = vpack.c.bf16 %v5719_v53, %v5718_v42  ;;  %v5782_v14 = vld [vmem:[#allocation3 + $0x48] sm:$0xff] }
 0x697   : > { %v6415_v35 = vpop.f32.mrf.mxu1 }
 0x698   : > { %v14385_v31 = vadd.f32 %v6413_v62, %v6267_v39  ;;  %v14393_v62 = vpack.c.bf16 %v5751_v37, %v5750_v9  ;;  %v7092_v39 = vpack.c.bf16 %v5783_v43, %v5782_v14 }
 0x69a   : > { %v6582_v48 = vpop.f32.mrf.mxu2  ;;  %16420 = vst [vmem:[#allocation54_spill] sm:$0xff] %v14393_v62 }
 0x69b   : > { %v6011_v50 = vpop.f32.mrf.mxu3  ;;  %v14389_v26 = vadd.f32 %v6582_v48, %v14155_v4 }
 0x69c   : > { %v6066_v33 = vadd.f32 %v14024_v40, %v6011_v50 }
 0x69e   : > { %v6268_v18 = vadd.f32 %v6213_v23, %v6066_v33  ;;  %v6216_v16 = vpop.f32.mrf.mxu0 }
 0x69f   : > { %v6418_v15 = vpop.f32.mrf.mxu1  ;;  %10609 = vmatmul.msk.bf16.gmra.mxu2 %vm744_vm3, %v14180_v57 }
 0x6a0   : > { %10628 = vmatmul.msk.bf16.gmra.mxu3 %vm744_vm3, %v14391_v32  ;;  %v14399_v4 = vadd.f32 %v6415_v35, %v6268_v18  ;;  %v5721_v35 = vld [vmem:[#allocation3 + $0x51] sm:$0xff] }
 0x6a1   : > { %10656 = vmatmul.msk.bf16.gmra.mxu0 %vm744_vm3, %v14393_v62 }
 0x6a2   : > { %10684 = vmatmul.msk.bf16.gmra.mxu1 %vm744_vm3, %v7092_v39  ;;  %v6585_v50 = vpop.f32.mrf.mxu2  ;;  %v5752_v39 = vld [vmem:[#allocation3 + $0x4a] sm:$0xff] }
 0x6a3   : > { %v6014_v23 = vpop.f32.mrf.mxu3  ;;  %v14406_v53 = vadd.f32 %v6585_v50, %v14171_v38 }
 0x6a4   : > { %v6067_v48 = vadd.f32 %v14024_v40, %v6014_v23  ;;  %v5720_v23 = vld [vmem:[#allocation3 + $0x49] sm:$0xff] }
 0x6a6   : > { %v6269_v33 = vadd.f32 %v6216_v16, %v6067_v48  ;;  %v6218_v9 = vpop.f32.mrf.mxu0  ;;  %v14414_v16 = vpack.c.bf16 %v5721_v35, %v5720_v23  ;;  %v5784_v48 = vld [vmem:[#allocation3 + $0x60] sm:$0xff] }
 0x6a7   : > { %v6420_v57 = vpop.f32.mrf.mxu1 }
 0x6a8   : > { %v14408_v37 = vadd.f32 %v6418_v15, %v6269_v33  ;;  %v14416_v15 = vpack.c.bf16 %v5753_v44, %v5752_v39  ;;  %v7093_v33 = vpack.c.bf16 %v5785_v29, %v5784_v48 }
 0x6aa   : > { %v6587_v18 = vpop.f32.mrf.mxu2  ;;  %16421 = vst [vmem:[#allocation40_spill] sm:$0xff] %v14416_v15 }
 0x6ab   : > { %v6016_v43 = vpop.f32.mrf.mxu3  ;;  %v14412_v14 = vadd.f32 %v6587_v18, %v14190_v36 }
 0x6ac   : > { %v6068_v42 = vadd.f32 %v14024_v40, %v6016_v43 }
 0x6ae   : > { %v6270_v45 = vadd.f32 %v6218_v9, %v6068_v42  ;;  %v6221_v38 = vpop.f32.mrf.mxu0 }
 0x6af   : > { %v6423_v50 = vpop.f32.mrf.mxu1  ;;  %10610 = vmatmul.msk.bf16.gmra.mxu2 %vm744_vm3, %v14215_v1 }
 0x6b0   : > { %10629 = vmatmul.msk.bf16.gmra.mxu3 %vm744_vm3, %v14414_v16  ;;  %v14422_v36 = vadd.f32 %v6420_v57, %v6270_v45  ;;  %v5723_v57 = vld [vmem:[#allocation3 + $0x69] sm:$0xff] }
 0x6b1   : > { %10657 = vmatmul.msk.bf16.gmra.mxu0 %vm744_vm3, %v14416_v15 }
 0x6b2   : > { %10685 = vmatmul.msk.bf16.gmra.mxu1 %vm744_vm3, %v7093_v33  ;;  %v6590_v43 = vpop.f32.mrf.mxu2  ;;  %v5754_v33 = vld [vmem:[#allocation3 + $0x62] sm:$0xff] }
 0x6b3   : > { %v6019_v9 = vpop.f32.mrf.mxu3  ;;  %v14429_v44 = vadd.f32 %v6590_v43, %v14206_v6 }
 0x6b4   : > { %v6069_v18 = vadd.f32 %v14024_v40, %v6019_v9  ;;  %v5722_v9 = vld [vmem:[#allocation3 + $0x61] sm:$0xff] }
 0x6b6   : > { %v6271_v29 = vadd.f32 %v6221_v38, %v6069_v18  ;;  %v6223_v35 = vpop.f32.mrf.mxu0  ;;  %v14437_v38 = vpack.c.bf16 %v5723_v57, %v5722_v9  ;;  %v5786_v18 = vld [vmem:[#allocation3 + $0x78] sm:$0xff] }
 0x6b7   : > { %v6425_v42 = vpop.f32.mrf.mxu1 }
 0x6b8   : > { %v14431_v39 = vadd.f32 %v6423_v50, %v6271_v29  ;;  %v14439_v50 = vpack.c.bf16 %v5755_v17, %v5754_v33  ;;  %v7094_v29 = vpack.c.bf16 %v5787_v52, %v5786_v18 }
 0x6ba   : > { %v6592_v45 = vpop.f32.mrf.mxu2  ;;  %16422 = vst [vmem:[#allocation19_spill] sm:$0xff] %v14439_v50 }
 0x6bb   : > { %v6021_v23 = vpop.f32.mrf.mxu3  ;;  %v14435_v63 = vadd.f32 %v6592_v45, %v14225_v27 }
 0x6bc   : > { %v6070_v48 = vadd.f32 %v14024_v40, %v6021_v23 }
 0x6be   : > { %v6272_v8 = vadd.f32 %v6223_v35, %v6070_v48  ;;  %v6226_v6 = vpop.f32.mrf.mxu0 }
 0x6bf   : > { %v6428_v43 = vpop.f32.mrf.mxu1  ;;  %10611 = vmatmul.msk.bf16.gmra.mxu2 %vm744_vm3, %v14250_v51 }
 0x6c0   : > { %10630 = vmatmul.msk.bf16.gmra.mxu3 %vm744_vm3, %v14437_v38  ;;  %v14445_v27 = vadd.f32 %v6425_v42, %v6272_v8  ;;  %v5725_v42 = vld [vmem:[#allocation3 + $0x81] sm:$0xff] }
 0x6c1   : > { %10658 = vmatmul.msk.bf16.gmra.mxu0 %vm744_vm3, %v14439_v50 }
 0x6c2   : > { %10686 = vmatmul.msk.bf16.gmra.mxu1 %vm744_vm3, %v7094_v29  ;;  %v6595_v23 = vpop.f32.mrf.mxu2  ;;  %v5756_v29 = vld [vmem:[#allocation3 + $0x7a] sm:$0xff] }
 0x6c3   : > { %v6024_v35 = vpop.f32.mrf.mxu3  ;;  %v14452_v17 = vadd.f32 %v6595_v23, %v14241_v5 }
 0x6c4   : > { %v6071_v45 = vadd.f32 %v14024_v40, %v6024_v35  ;;  %v5724_v35 = vld [vmem:[#allocation3 + $0x79] sm:$0xff] }
 0x6c6   : > { %v6273_v52 = vadd.f32 %v6226_v6, %v6071_v45  ;;  %v6228_v57 = vpop.f32.mrf.mxu0  ;;  %v14460_v6 = vpack.c.bf16 %v5725_v42, %v5724_v35  ;;  %v5788_v45 = vld [vmem:[#allocation3 + $0x90] sm:$0xff]  ;;  %v5727_v35 = vld [vmem:[#allocation3 + $0x99] sm:$0xff] }
 0x6c7   : > { %v6430_v48 = vpop.f32.mrf.mxu1 }
 0x6c8   : > { %v14454_v33 = vadd.f32 %v6428_v43, %v6273_v52  ;;  %v14462_v43 = vpack.c.bf16 %v5757_v7, %v5756_v29  ;;  %v7095_v52 = vpack.c.bf16 %v5789_v25, %v5788_v45  ;;  %v14476_v7 = vld [vmem:[%s16069_s16] ss:$0 sm:$0xff] }
 0x6ca   : > { %v6597_v8 = vpop.f32.mrf.mxu2  ;;  %16423 = vst [vmem:[#allocation31_spill] sm:$0xff] %v14462_v43 }
 0x6cb   : > { %v6026_v9 = vpop.f32.mrf.mxu3  ;;  %v14458_v13 = vadd.f32 %v6597_v8, %v14260_v49 }
 0x6cc   : > { %v6072_v18 = vadd.f32 %v14024_v40, %v6026_v9 }
 0x6ce   : > { %v6274_v20 = vadd.f32 %v6228_v57, %v6072_v18  ;;  %v6231_v5 = vpop.f32.mrf.mxu0 }
 0x6cf   : > { %v6433_v23 = vpop.f32.mrf.mxu1  ;;  %10612 = vmatmul.msk.bf16.gmra.mxu2 %vm744_vm3, %v14298_v3 }
 0x6d0   : > { %10631 = vmatmul.msk.bf16.gmra.mxu3 %vm744_vm3, %v14460_v6  ;;  %v14468_v40 = vadd.f32 %v6430_v48, %v6274_v20 }
 0x6d1   : > { %10659 = vmatmul.msk.bf16.gmra.mxu0 %vm744_vm3, %v14462_v43 }
 0x6d2   : > { %10687 = vmatmul.msk.bf16.gmra.mxu1 %vm744_vm3, %v7095_v52  ;;  %v6600_v57 = vpop.f32.mrf.mxu2 }
 0x6d3   : > { %v6029_v49 = vpop.f32.mrf.mxu3  ;;  %v14480_v9 = vadd.f32 %v6600_v57, %v14289_v22 }
 0x6d4   : > { %v6073_v25 = vadd.f32 %v14476_v7, %v6029_v49  ;;  %v5726_v49 = vld [vmem:[#allocation3 + $0x91] sm:$0xff] }
 0x6d6   : > { %v6275_v8 = vadd.f32 %v6231_v5, %v6073_v25  ;;  %v6233_v20 = vpop.f32.mrf.mxu0  ;;  %v14488_v5 = vpack.c.bf16 %v5727_v35, %v5726_v49  ;;  %v5790_v25 = vld [vmem:[#allocation3 + $0xa8] sm:$0xff] }
 0x6d7   : > { %v6435_v48 = vpop.f32.mrf.mxu1 }
 0x6d8   : > { %v14482_v42 = vadd.f32 %v6433_v23, %v6275_v8  ;;  %v11041_v23 = vld [vmem:[%s16068_s15 + $0x70] sm:$0xff]  ;;  %v14493_v8 = vpack.c.bf16 %v5759_v47, %v5758_v54 }
 0x6d9   : > { %7381 = vmatpush.bf16.msrb.mxu2 %v11041_v23 }
 0x6da   : > { %v6602_v29 = vpop.f32.mrf.mxu2  ;;  %16424 = vst [vmem:[#allocation44_spill] sm:$0xff] %v14493_v8 }
 0x6db   : > { %v6031_v18 = vpop.f32.mrf.mxu3  ;;  %v14486_v52 = vadd.f32 %v6602_v29, %v14317_v41 }
 0x6dc   : > { %v6074_v45 = vadd.f32 %v14476_v7, %v6031_v18  ;;  %v7096_v18 = vpack.c.bf16 %v5791_v19, %v5790_v25  ;;  %v5715_v25 = vld [vmem:[#allocation3 + $0x188] sm:$0xff] }
 0x6de   : > { %v6276_v24 = vadd.f32 %v6233_v20, %v6074_v45  ;;  %v6236_v22 = vpop.f32.mrf.mxu0 }
 0x6df   : > { %v6438_v57 = vpop.f32.mrf.mxu1  ;;  %10613 = vmatmul.msk.bf16.gmra.mxu2 %vm744_vm3, %v14345_v10 }
 0x6e0   : > { %10632 = vmatmul.msk.bf16.gmra.mxu3 %vm744_vm3, %v14488_v5  ;;  %v14499_v41 = vadd.f32 %v6435_v48, %v6276_v24 }
 0x6e1   : > { %10660 = vmatmul.msk.bf16.gmra.mxu0 %vm744_vm3, %v14493_v8  ;;  %v5714_v8 = vld [vmem:[#allocation3 + $0x180] sm:$0xff] }
 0x6e2   : > { %10688 = vmatmul.msk.bf16.gmra.mxu1 %vm744_vm3, %v7096_v18  ;;  %v6605_v29 = vpop.f32.mrf.mxu2  ;;  %v5760_v18 = vld [vmem:[#allocation3 + $0xaa] sm:$0xff]  ;;  %v14514_v43 = vpack.c.bf16 %v5715_v25, %v5714_v8 }
 0x6e3   : > { %v6034_v20 = vpop.f32.mrf.mxu3  ;;  %v14506_v19 = vadd.f32 %v6605_v29, %v14336_v12  ;;  %v5728_v12 = vld [vmem:[#allocation3 + $0xa9] sm:$0xff]  ;;  %v14518_v50 = vpack.c.bf16 %v5761_v0, %v5760_v18 }
 0x6e4   : > { %v6075_v47 = vadd.f32 %v14476_v7, %v6034_v20  ;;  %v5793_v20 = vld [vmem:[#allocation3 + $0xc8] sm:$0xff] }
 0x6e5   : > { %16425 = vst [vmem:[#allocation51_spill] sm:$0xff] %v14518_v50 }
 0x6e6   : > { %v6277_v54 = vadd.f32 %v6236_v22, %v6075_v47  ;;  %v6238_v35 = vpop.f32.mrf.mxu0 }
 0x6e7   : > { %v6440_v45 = vpop.f32.mrf.mxu1 }
 0x6e8   : > { %v14508_v49 = vadd.f32 %v6438_v57, %v6277_v54  ;;  %v14516_v57 = vpack.c.bf16 %v5729_v61, %v5728_v12  ;;  %v5792_v54 = vld [vmem:[#allocation3 + $0xc0] sm:$0xff] }
 0x6e9   : > { %v7097_v15 = vpack.c.bf16 %v5793_v20, %v5792_v54  ;;  %v5762_v54 = vld [vmem:[#allocation3 + $0xc2] sm:$0xff] }
 0x6ea   : > { %v6607_v48 = vpop.f32.mrf.mxu2 }
 0x6eb   : > { %v6036_v24 = vpop.f32.mrf.mxu3  ;;  %v14512_v23 = vadd.f32 %v6607_v48, %v14357_v34 }
 0x6ec   : > { %v6076_v2 = vadd.f32 %v14476_v7, %v6036_v24 }
 0x6ee   : > { %v6278_v29 = vadd.f32 %v6238_v35, %v6076_v2  ;;  %v6241_v22 = vpop.f32.mrf.mxu0  ;;  %v11043_v2 = vld [vmem:[%s16068_s15 + $0x80] sm:$0xff] }
 0x6ef   : > { %v6443_v47 = vpop.f32.mrf.mxu1  ;;  %10614 = vmatmul.msk.bf16.gmra.mxu2 %vm744_vm3, %v14514_v43  ;;  %7583 = vmatpush.bf16.msrb.mxu3 %v11043_v2  ;;  %v5763_v2 = vld [vmem:[#allocation3 + $0xca] sm:$0xff] }
 0x6f0   : > { %10633 = vmatmul.msk.bf16.gmra.mxu3 %vm744_vm3, %v14516_v57  ;;  %v14524_v34 = vadd.f32 %v6440_v45, %v6278_v29 }
 0x6f1   : > { %10661 = vmatmul.msk.bf16.gmra.mxu0 %vm744_vm3, %v14518_v50  ;;  %v5795_v50 = vld [vmem:[#allocation3 + $0xe0] sm:$0xff] }
 0x6f2   : > { %10689 = vmatmul.msk.bf16.gmra.mxu1 %vm744_vm3, %v7097_v15  ;;  %v6610_v61 = vpop.f32.mrf.mxu2  ;;  %v5731_v15 = vld [vmem:[#allocation3 + $0xc9] sm:$0xff] }
 0x6f3   : > { %v6039_v0 = vpop.f32.mrf.mxu3  ;;  %v14534_v35 = vadd.f32 %v6610_v61, %v14369_v46 }
 0x6f4   : > { %v6077_v8 = vadd.f32 %v14476_v7, %v6039_v0  ;;  %v5730_v0 = vld [vmem:[#allocation3 + $0xc1] sm:$0xff] }
 0x6f5   : > { %16426 = vst [vmem:[#allocation27_spill] sm:$0xff] %v14534_v35 }
 0x6f6   : > { %v6279_v24 = vadd.f32 %v6241_v22, %v6077_v8  ;;  %v6243_v45 = vpop.f32.mrf.mxu0  ;;  %v14542_v22 = vpack.c.bf16 %v5731_v15, %v5730_v0  ;;  %v5794_v8 = vld [vmem:[#allocation3 + $0xd8] sm:$0xff] }
 0x6f7   : > { %v6445_v48 = vpop.f32.mrf.mxu1 }
 0x6f8   : > { %v14536_v25 = vadd.f32 %v6443_v47, %v6279_v24  ;;  %v11046_v47 = vld [vmem:[%s16072_s19 + $0x8] sm:$0xff]  ;;  %v14547_v24 = vpack.c.bf16 %v5763_v2, %v5762_v54 }
 0x6f9   : > { %8211 = vmatpush.bf16.msrb.mxu0 %v11046_v47  ;;  %v5764_v47 = vld [vmem:[#allocation3 + $0xda] sm:$0xff] }
 0x6fa   : > { %v6612_v20 = vpop.f32.mrf.mxu2  ;;  %16428 = vst [vmem:[#allocation55_spill] sm:$0xff] %v14547_v24 }
 0x6fb   : > { %v6041_v18 = vpop.f32.mrf.mxu3  ;;  %v14540_v29 = vadd.f32 %v6612_v20, %v14377_v55 }
 0x6fc   : > { %v6078_v12 = vadd.f32 %v14476_v7, %v6041_v18  ;;  %v7098_v18 = vpack.c.bf16 %v5795_v50, %v5794_v8 }
 0x6fd   : > { %16427 = vst [vmem:[#allocation39_spill] sm:$0xff] %v14540_v29  ;;  %v5797_v29 = vld [vmem:[#allocation3 + $0xf8] sm:$0xff] }
 0x6fe   : > { %v6280_v62 = vadd.f32 %v6243_v45, %v6078_v12  ;;  %v6246_v46 = vpop.f32.mrf.mxu0 }
 0x6ff   : > { %v6448_v61 = vpop.f32.mrf.mxu1  ;;  %10711 = vmatmul.msk.bf16.vlgmr.msrb.gmra.mxu2 %vm744_vm3, %v14391_v32 }
 0x700   : > { %10634 = vmatmul.msk.bf16.gmra.mxu3 %vm744_vm3, %v14542_v22  ;;  %v14553_v55 = vadd.f32 %v6445_v48, %v6280_v62  ;;  %v5733_v48 = vld [vmem:[#allocation3 + $0xe1] sm:$0xff] }
 0x701   : > { %10662 = vmatmul.msk.bf16.gmra.mxu0 %vm744_vm3, %v14547_v24  ;;  %v5765_v24 = vld [vmem:[#allocation3 + $0xe2] sm:$0xff] }
 0x702   : > { %10690 = vmatmul.msk.bf16.gmra.mxu1 %vm744_vm3, %v7098_v18  ;;  %v6615_v20 = vpop.f32.mrf.mxu2 }
 0x703   : > { %v6044_v45 = vpop.f32.mrf.mxu3  ;;  %v14560_v50 = vadd.f32 %v6615_v20, %v14385_v31 }
 0x704   : > { %v6079_v15 = vadd.f32 %v14476_v7, %v6044_v45  ;;  %v5732_v45 = vld [vmem:[#allocation3 + $0xd9] sm:$0xff] }
 0x705   : > { %16429 = vst [vmem:[#allocation53_spill] sm:$0xff] %v14560_v50  ;;  %v6050_v50 = vadd.f32 %v14476_v7, %v14106_v28 }
 0x706   : > { %v6281_v12 = vadd.f32 %v6246_v46, %v6079_v15  ;;  %v6248_v54 = vpop.f32.mrf.mxu0  ;;  %v14568_v46 = vpack.c.bf16 %v5733_v48, %v5732_v45  ;;  %v5796_v15 = vld [vmem:[#allocation3 + $0xf0] sm:$0xff]  ;;  %v5735_v45 = vld [vmem:[#allocation3 + $0xf9] sm:$0xff] }
 0x707   : > { %v6450_v2 = vpop.f32.mrf.mxu1 }
 0x708   : > { %v14562_v0 = vadd.f32 %v6448_v61, %v6281_v12  ;;  %v14570_v61 = vpack.c.bf16 %v5765_v24, %v5764_v47  ;;  %v7099_v12 = vpack.c.bf16 %v5797_v29, %v5796_v15  ;;  %v6252_v29 = vadd.f32 %v14093_v11, %v6050_v50  ;;  %v5767_v50 = vld [vmem:[#allocation3 + $0xfa] sm:$0xff] }
 0x70a   : > { %v6617_v62 = vpop.f32.mrf.mxu2 }
 0x70b   : > { %v6046_v32 = vpop.f32.mrf.mxu3  ;;  %v14566_v18 = vadd.f32 %v6617_v62, %v14399_v4 }
 0x70c   : > { %v6080_v8 = vadd.f32 %v14476_v7, %v6046_v32 }
 0x70e   : > { %v6282_v35 = vadd.f32 %v6248_v54, %v6080_v8  ;;  %v6979_v31 = vpop.f32.mrf.mxu0 }
 0x70f   : > { %v7181_v20 = vpop.f32.mrf.mxu1  ;;  %10712 = vmatmul.msk.bf16.gmra.mxu2 %vm744_vm3, %v14414_v16  ;;  %v6454_v16 = vadd.f32 %v14095_v21, %v6252_v29  ;;  %v5798_v21 = vld [vmem:[#allocation3 + $0x108] sm:$0xff] }
 0x710   : > { %10635 = vmatmul.msk.bf16.gmra.mxu3 %vm744_vm3, %v14568_v46  ;;  %v14578_v4 = vadd.f32 %v6450_v2, %v6282_v35 }
 0x711   : > { %10663 = vmatmul.msk.bf16.gmra.mxu0 %vm744_vm3, %v14570_v61  ;;  %v6656_v2 = vadd.f32 %v14371_v59, %v6454_v16 }
 0x712   : > { %10691 = vmatmul.msk.bf16.gmra.mxu1 %vm744_vm3, %v7099_v12  ;;  %v6620_v54 = vpop.f32.mrf.mxu2  ;;  %v5799_v12 = vld [vmem:[#allocation3 + $0x110] sm:$0xff] }
 0x713   : > { %v6777_v24 = vpop.f32.mrf.mxu3  ;;  %v14585_v32 = vadd.f32 %v6620_v54, %v14408_v37  ;;  %v5766_v37 = vld [vmem:[#allocation3 + $0xf2] sm:$0xff]  ;;  %v7100_v59 = vpack.c.bf16 %v5799_v12, %v5798_v21  ;;  %v5768_v12 = vld [vmem:[#allocation3 + $0x10a] sm:$0xff] }
 0x714   : > { %v6857_v28 = vadd.f32 %v6777_v24, %v14366_v30  ;;  %v5734_v30 = vld [vmem:[#allocation3 + $0xf1] sm:$0xff] }
 0x716   : > { %v7059_v7 = vadd.f32 %v6979_v31, %v6857_v28  ;;  %v6981_v62 = vpop.f32.mrf.mxu0  ;;  %v14595_v28 = vpack.c.bf16 %v5735_v45, %v5734_v30  ;;  %v5769_v30 = vld [vmem:[#allocation3 + $0x112] sm:$0xff] }
 0x717   : > { %v7183_v48 = vpop.f32.mrf.mxu1 }
 0x718   : > { %v14589_v35 = vadd.f32 %v7181_v20, %v7059_v7  ;;  %v14597_v20 = vpack.c.bf16 %v5767_v50, %v5766_v37 }
 0x71a   : > { %v6622_v8 = vpop.f32.mrf.mxu2 }
 0x71b   : > { %v6779_v47 = vpop.f32.mrf.mxu3  ;;  %v14593_v15 = vadd.f32 %v6622_v8, %v14422_v36 }
 0x71c   : > { %v6858_v11 = vadd.f32 %v6779_v47, %v6656_v2 }
 0x71e   : > { %v7060_v31 = vadd.f32 %v6981_v62, %v6858_v11  ;;  %v6984_v54 = vpop.f32.mrf.mxu0  ;;  %v5737_v11 = vld [vmem:[#allocation3 + $0x111] sm:$0xff] }
 0x71f   : > { %v7186_v24 = vpop.f32.mrf.mxu1  ;;  %10713 = vmatmul.msk.bf16.gmra.mxu2 %vm744_vm3, %v14437_v38 }
 0x720   : > { %10636 = vmatmul.msk.bf16.gmra.mxu3 %vm744_vm3, %v14595_v28  ;;  %v14603_v36 = vadd.f32 %v7183_v48, %v7060_v31  ;;  %v5736_v31 = vld [vmem:[#allocation3 + $0x109] sm:$0xff] }
 0x721   : > { %10664 = vmatmul.msk.bf16.gmra.mxu0 %vm744_vm3, %v14597_v20 }
 0x722   : > { %10692 = vmatmul.msk.bf16.gmra.mxu1 %vm744_vm3, %v7100_v59  ;;  %v6625_v29 = vpop.f32.mrf.mxu2 }
 0x723   : > { %v6782_v7 = vpop.f32.mrf.mxu3  ;;  %v14609_v62 = vadd.f32 %v6625_v29, %v14431_v39 }
 0x724   : > { %v6859_v16 = vadd.f32 %v6782_v7, %v14383_v60  ;;  %v14618_v60 = vpack.c.bf16 %v5737_v11, %v5736_v31 }
 0x726   : > { %v7061_v2 = vadd.f32 %v6984_v54, %v6859_v16  ;;  %v6986_v8 = vpop.f32.mrf.mxu0  ;;  %v14620_v54 = vpack.c.bf16 %v5769_v30, %v5768_v12  ;;  %v5771_v12 = vld [vmem:[#allocation3 + $0x12a] sm:$0xff]  ;;  %v5738_v30 = vld [vmem:[#allocation3 + $0x121] sm:$0xff] }
 0x727   : > { %v7188_v47 = vpop.f32.mrf.mxu1 }
 0x728   : > { %v14612_v45 = vadd.f32 %v7186_v24, %v7061_v2 }
 0x72a   : > { %v6627_v38 = vpop.f32.mrf.mxu2 }
 0x72b   : > { %v6784_v48 = vpop.f32.mrf.mxu3  ;;  %v14615_v37 = vadd.f32 %v6627_v38, %v14445_v27 }
 0x72c   : > { %v6860_v50 = vadd.f32 %v6784_v48, %v14389_v26  ;;  %v5739_v48 = vld [vmem:[#allocation3 + $0x129] sm:$0xff] }
 0x72e   : > { %v7062_v39 = vadd.f32 %v6986_v8, %v6860_v50  ;;  %v6989_v21 = vpop.f32.mrf.mxu0  ;;  %v5770_v50 = vld [vmem:[#allocation3 + $0x122] sm:$0xff] }
 0x72f   : > { %v7191_v59 = vpop.f32.mrf.mxu1  ;;  %10714 = vmatmul.msk.bf16.gmra.mxu2 %vm744_vm3, %v14460_v6 }
 0x730   : > { %10637 = vmatmul.msk.bf16.gmra.mxu3 %vm744_vm3, %v14618_v60  ;;  %v14626_v27 = vadd.f32 %v7188_v47, %v7062_v39  ;;  %v14642_v39 = vpack.c.bf16 %v5739_v48, %v5738_v30  ;;  %v5772_v48 = vld [vmem:[#allocation3 + $0x13a] sm:$0xff] }
 0x731   : > { %10665 = vmatmul.msk.bf16.gmra.mxu0 %vm744_vm3, %v14620_v54 }
 0x732   : > { %10693 = vmatmul.msk.bf16.gmra.mxu1 %vm744_vm3, %v14215_v1  ;;  %v6630_v26 = vpop.f32.mrf.mxu2 }
 0x733   : > { %v6787_v24 = vpop.f32.mrf.mxu3  ;;  %v14633_v29 = vadd.f32 %v6630_v26, %v14454_v33 }
 0x734   : > { %v6861_v7 = vadd.f32 %v6787_v24, %v14406_v53  ;;  %v14644_v53 = vpack.c.bf16 %v5771_v12, %v5770_v50  ;;  %v5740_v12 = vld [vmem:[#allocation3 + $0x139] sm:$0xff] }
 0x736   : > { %v7063_v16 = vadd.f32 %v6989_v21, %v6861_v7  ;;  %v6991_v2 = vpop.f32.mrf.mxu0 }
 0x737   : > { %v7193_v8 = vpop.f32.mrf.mxu1 }
 0x738   : > { %v14636_v38 = vadd.f32 %v7191_v59, %v7063_v16 }
 0x73a   : > { %v6632_v6 = vpop.f32.mrf.mxu2 }
 0x73b   : > { %v6789_v47 = vpop.f32.mrf.mxu3  ;;  %v14639_v11 = vadd.f32 %v6632_v6, %v14468_v40  ;;  %v5741_v6 = vld [vmem:[#allocation3 + $0x141] sm:$0xff] }
 0x73c   : > { %v6862_v1 = vadd.f32 %v6789_v47, %v14412_v14 }
 0x73e   : > { %v7064_v33 = vadd.f32 %v6991_v2, %v6862_v1  ;;  %v6994_v31 = vpop.f32.mrf.mxu0  ;;  %v5773_v1 = vld [vmem:[#allocation3 + $0x142] sm:$0xff] }
 0x73f   : > { %10715 = vmatmul.msk.bf16.gmra.mxu2 %vm744_vm3, %v14488_v5  ;;  %v7196_v14 = vpop.f32.mrf.mxu1 }
 0x740   : > { %10638 = vmatmul.msk.bf16.gmra.mxu3 %vm744_vm3, %v14642_v39  ;;  %v14650_v21 = vadd.f32 %v7193_v8, %v7064_v33  ;;  %v14666_v33 = vpack.c.bf16 %v5741_v6, %v5740_v12 }
 0x741   : > { %10666 = vmatmul.msk.bf16.gmra.mxu0 %vm744_vm3, %v14644_v53 }
 0x742   : > { %10694 = vmatmul.msk.bf16.gmra.mxu1 %vm744_vm3, %v14250_v51  ;;  %v6635_v40 = vpop.f32.mrf.mxu2 }
 0x743   : > { %v6792_v59 = vpop.f32.mrf.mxu3  ;;  %v14657_v26 = vadd.f32 %v6635_v40, %v14482_v42 }
 0x744   : > { %v6863_v24 = vadd.f32 %v6792_v59, %v14429_v44  ;;  %v14668_v44 = vpack.c.bf16 %v5773_v1, %v5772_v48  ;;  %v5742_v48 = vld [vmem:[#allocation3 + $0x151] sm:$0xff] }
 0x746   : > { %v7065_v7 = vadd.f32 %v6994_v31, %v6863_v24  ;;  %v6996_v16 = vpop.f32.mrf.mxu0 }
 0x747   : > { %v7198_v50 = vpop.f32.mrf.mxu1 }
 0x748   : > { %v14660_v2 = vadd.f32 %v7196_v14, %v7065_v7 }
 0x74a   : > { %v6637_v5 = vpop.f32.mrf.mxu2 }
 0x74b   : > { %v6794_v8 = vpop.f32.mrf.mxu3  ;;  %v14663_v47 = vadd.f32 %v6637_v5, %v14499_v41 }
 0x74c   : > { %v6864_v51 = vadd.f32 %v6794_v8, %v14435_v63  ;;  %v5743_v8 = vld [vmem:[#allocation3 + $0x159] sm:$0xff] }
 0x74e   : > { %v7066_v42 = vadd.f32 %v6996_v16, %v6864_v51  ;;  %v6999_v30 = vpop.f32.mrf.mxu0  ;;  %v5774_v51 = vld [vmem:[#allocation3 + $0x152] sm:$0xff] }
 0x74f   : > { %10716 = vmatmul.msk.bf16.gmra.mxu2 %vm744_vm3, %v14516_v57  ;;  %v7201_v7 = vpop.f32.mrf.mxu1 }
 0x750   : > { %10639 = vmatmul.msk.bf16.gmra.mxu3 %vm744_vm3, %v14666_v33  ;;  %v14674_v41 = vadd.f32 %v7198_v50, %v7066_v42 }
 0x751   : > { %10667 = vmatmul.msk.bf16.gmra.mxu0 %vm744_vm3, %v14668_v44 }
 0x752   : > { %10695 = vmatmul.msk.bf16.gmra.mxu1 %vm744_vm3, %v14298_v3  ;;  %v6640_v63 = vpop.f32.mrf.mxu2 }
 0x753   : > { %v6797_v31 = vpop.f32.mrf.mxu3  ;;  %v14681_v14 = vadd.f32 %v6640_v63, %v14508_v49  ;;  %v5775_v49 = vld [vmem:[#allocation3 + $0x15a] sm:$0xff] }
 0x754   : > { %v6865_v40 = vadd.f32 %v6797_v31, %v14452_v17  ;;  %v14694_v17 = vpack.c.bf16 %v5743_v8, %v5742_v48  ;;  %v14696_v50 = vpack.c.bf16 %v5775_v49, %v5774_v51  ;;  %v5747_v51 = vld [vmem:[#allocation3 + $0x189] sm:$0xff]  ;;  %v5746_v48 = vld [vmem:[#allocation3 + $0x181] sm:$0xff] }
 0x755   : > { %v5778_v49 = vld [vmem:[#allocation3 + $0x182] sm:$0xff] }
 0x756   : > { %v7067_v59 = vadd.f32 %v6999_v30, %v6865_v40  ;;  %v14684_v24 = vpop.f32.mrf.mxu0 }
 0x758   : > { %v14686_v57 = vadd.f32 %v7201_v7, %v7067_v59 }
 0x75a   : > { %v6642_v16 = vpop.f32.mrf.mxu2 }
 0x75b   : > { %v6799_v5 = vpop.f32.mrf.mxu3  ;;  %v14689_v6 = vadd.f32 %v6642_v16, %v14524_v34 }
 0x75c   : > { %v14692_v3 = vadd.f32 %v6799_v5, %v14458_v13  ;;  %v5811_v5 = vld [vmem:[#allocation3 + $0x1a0] sm:$0xff] }
 0x75e   : > { %v7004_v1 = vpop.f32.mrf.mxu0 }
 0x75f   : > { %10717 = vmatmul.msk.bf16.gmra.mxu2 %vm744_vm3, %v14542_v22 }
 0x760   : > { %10640 = vmatmul.msk.bf16.gmra.mxu3 %vm744_vm3, %v14694_v17 }
 0x761   : > { %10668 = vmatmul.msk.bf16.gmra.mxu0 %vm744_vm3, %v14696_v50 }
 0x762   : > { %10696 = vmatmul.msk.bf16.gmra.mxu1 %vm744_vm3, %v14345_v10  ;;  %v6645_v13 = vpop.f32.mrf.mxu2 }
 0x763   : > { %v6802_v34 = vpop.f32.mrf.mxu3  ;;  %v14707_v12 = vadd.f32 %v6645_v13, %v14536_v25  ;;  %v14742_v13 = vpack.c.bf16 %v5747_v51, %v5746_v48  ;;  %v16432_v51 = vld [vmem:[#allocation54_spill] sm:$0xff] }
 0x764   : > { %v6867_v42 = vadd.f32 %v6802_v34, %v14480_v9  ;;  %v11045_v34 = vld [vmem:[%s16072_s19] sm:$0xff] }
 0x765   : > { %8212 = vmatpush.bf16.msrb.mxu0 %v11045_v34 }
 0x766   : > { %v14710_v30 = vadd.f32 %v7004_v1, %v6867_v42  ;;  %v14712_v63 = vpop.f32.mrf.mxu0 }
 0x76a   : > { %v6647_v31 = vpop.f32.mrf.mxu2 }
 0x76b   : > { %v6804_v40 = vpop.f32.mrf.mxu3  ;;  %v14715_v22 = vadd.f32 %v6647_v31, %v14553_v55  ;;  %v16430_v31 = vld [vmem:[#allocation27_spill] sm:$0xff] }
 0x76c   : > { %v14718_v59 = vadd.f32 %v6804_v40, %v14486_v52 }
 0x76e   : > { %v7009_v10 = vpop.f32.mrf.mxu0 }
 0x76f   : > { %10718 = vmatmul.msk.bf16.gmra.mxu2 %vm744_vm3, %v14568_v46 }
 0x770   : > { %10641 = vmatmul.msk.bf16.gmra.mxu3 %vm744_vm3, %v14347_v56  ;;  %v5810_v56 = vld [vmem:[#allocation3 + $0x198] sm:$0xff] }
 0x771   : > { %10669 = vmatmul.msk.bf16.gmra.mxu0 %vm744_vm3, %v14349_v58  ;;  %v7106_v1 = vpack.c.bf16 %v5811_v5, %v5810_v56 }
 0x772   : > { %10697 = vmatmul.msk.bf16.gmra.mxu1 %vm744_vm3, %v14514_v43  ;;  %v6650_v9 = vpop.f32.mrf.mxu2 }
 0x773   : > { %v6807_v25 = vpop.f32.mrf.mxu3  ;;  %v14729_v55 = vadd.f32 %v6650_v9, %v14562_v0  ;;  %v5779_v0 = vld [vmem:[#allocation3 + $0x18a] sm:$0xff] }
 0x774   : > { %v6869_v52 = vadd.f32 %v6807_v25, %v14506_v19  ;;  %v14747_v42 = vpack.c.bf16 %v5779_v0, %v5778_v49  ;;  %v16433_v0 = vld [vmem:[#allocation53_spill] sm:$0xff] }
 0x776   : > { %v14732_v7 = vadd.f32 %v7009_v10, %v6869_v52  ;;  %v14734_v16 = vpop.f32.mrf.mxu0 }
 0x77a   : > { %v6652_v46 = vpop.f32.mrf.mxu2 }
 0x77b   : > { %v6809_v8 = vpop.f32.mrf.mxu3  ;;  %v14737_v58 = vadd.f32 %v6652_v46, %v14578_v4 }
 0x77c   : > { %v14740_v43 = vadd.f32 %v6809_v8, %v14512_v23 }
 0x77e   : > { %v7014_v19 = vpop.f32.mrf.mxu0 }
 0x77f   : > { %10719 = vmatmul.msk.bf16.gmra.mxu2 %vm744_vm3, %v14595_v28  ;;  %v16431_v28 = vld [vmem:[#allocation39_spill] sm:$0xff] }
 0x780   : > { %10642 = vmatmul.msk.bf16.gmra.mxu3 %vm744_vm3, %v14742_v13 }
 0x781   : > { %10670 = vmatmul.msk.bf16.gmra.mxu0 %vm744_vm3, %v14747_v42 }
 0x782   : > { %10698 = vmatmul.msk.bf16.gmra.mxu1 %vm744_vm3, %v7106_v1  ;;  %v7383_v4 = vpop.f32.mrf.mxu2 }
 0x783   : > { %v6812_v23 = vpop.f32.mrf.mxu3  ;;  %v14758_v10 = vadd.f32 %v7383_v4, %v14589_v35  ;;  %v7203_v4 = vpop.f32.mrf.mxu1 }
 0x784   : > { %v6871_v40 = vadd.f32 %v6812_v23, %v16430_v31 }
 0x786   : > { %v14760_v9 = vadd.f32 %v7014_v19, %v6871_v40  ;;  %v14762_v25 = vpop.f32.mrf.mxu0 }
 0x78a   : > { %v7385_v56 = vpop.f32.mrf.mxu2 }
 0x78b   : > { %v6814_v52 = vpop.f32.mrf.mxu3  ;;  %v14768_v46 = vadd.f32 %v7385_v56, %v14603_v36 }
 0x78c   : > { %v14765_v5 = vadd.f32 %v6814_v52, %v16431_v28  ;;  %v16434_v52 = vld [vmem:[#allocation40_spill] sm:$0xff] }
 0x78e   : > { %v7019_v8 = vpop.f32.mrf.mxu0 }
 0x78f   : > { %10720 = vmatmul.msk.bf16.gmra.mxu2 %vm744_vm3, %v14618_v60 }
 0x790   : > { %10739 = vmatmul.msk.bf16.vlgmr.msrb.gmra.mxu3 %vm744_vm3, %v16432_v51  ;;  %v14796_v51 = vpop.f32.mrf.mxu1 }
 0x792   : > { %v7388_v49 = vpop.f32.mrf.mxu2 }
 0x793   : > { %v6817_v35 = vpop.f32.mrf.mxu3  ;;  %v14776_v1 = vadd.f32 %v7388_v49, %v14612_v45 }
 0x794   : > { %v6873_v48 = vadd.f32 %v6817_v35, %v16433_v0 }
 0x796   : > { %v14778_v19 = vadd.f32 %v7019_v8, %v6873_v48  ;;  %v14780_v34 = vpop.f32.mrf.mxu0 }
 0x79a   : > { %v7390_v23 = vpop.f32.mrf.mxu2 }
 0x79b   : > { %v6819_v36 = vpop.f32.mrf.mxu3  ;;  %v14786_v60 = vadd.f32 %v7390_v23, %v14626_v27 }
 0x79c   : > { %v14783_v31 = vadd.f32 %v6819_v36, %v14566_v18  ;;  %v14808_v36 = vpop.f32.mrf.mxu1 }
 0x79e   : > { %v7024_v40 = vpop.f32.mrf.mxu0 }
 0x79f   : > { %10721 = vmatmul.msk.bf16.gmra.mxu2 %vm744_vm3, %v14642_v39 }
 0x7a0   : > { %10740 = vmatmul.msk.bf16.gmra.mxu3 %vm744_vm3, %v16434_v52 }
 0x7a2   : > { %v7393_v56 = vpop.f32.mrf.mxu2 }
 0x7a3   : > { %v6822_v45 = vpop.f32.mrf.mxu3  ;;  %v14794_v8 = vadd.f32 %v7393_v56, %v14636_v38 }
 0x7a4   : > { %v6875_v28 = vadd.f32 %v6822_v45, %v14585_v32  ;;  %v16435_v32 = vld [vmem:[#allocation19_spill] sm:$0xff]  ;;  %v14822_v45 = vpop.f32.mrf.mxu1 }
 0x7a6   : > { %v14798_v18 = vadd.f32 %v7024_v40, %v6875_v28  ;;  %v14800_v27 = vpop.f32.mrf.mxu0 }
 0x7aa   : > { %v7395_v49 = vpop.f32.mrf.mxu2 }
 0x7ab   : > { %v6824_v35 = vpop.f32.mrf.mxu3  ;;  %v14806_v0 = vadd.f32 %v7395_v49, %v14650_v21 }
 0x7ac   : > { %v14803_v39 = vadd.f32 %v6824_v35, %v14593_v15 }
 0x7ae   : > { %v7029_v48 = vpop.f32.mrf.mxu0 }
 0x7af   : > { %10722 = vmatmul.msk.bf16.gmra.mxu2 %vm744_vm3, %v14666_v33 }
 0x7b0   : > { %10741 = vmatmul.msk.bf16.gmra.mxu3 %vm744_vm3, %v16435_v32  ;;  %v14834_v32 = vpop.f32.mrf.mxu1 }
 0x7b2   : > { %v7398_v23 = vpop.f32.mrf.mxu2 }
 0x7b3   : > { %v6827_v38 = vpop.f32.mrf.mxu3  ;;  %v14816_v52 = vadd.f32 %v7398_v23, %v14660_v2 }
 0x7b4   : > { %v6877_v40 = vadd.f32 %v6827_v38, %v14609_v62  ;;  %v16439_v62 = vld [vmem:[#allocation31_spill] sm:$0xff] }
 0x7b6   : > { %v14818_v15 = vadd.f32 %v7029_v48, %v6877_v40  ;;  %v14820_v21 = vpop.f32.mrf.mxu0 }
 0x7b7   : > { %16437 = vst [vmem:[#allocation71_spill] sm:$0xff] %v14820_v21 }
 0x7b8   : > { %16436 = vst [vmem:[#allocation17_spill] sm:$0xff] %v14818_v15 }
 0x7ba   : > { %v7400_v28 = vpop.f32.mrf.mxu2 }
 0x7bb   : > { %v6829_v56 = vpop.f32.mrf.mxu3  ;;  %v14828_v35 = vadd.f32 %v7400_v28, %v14674_v41 }
 0x7bc   : > { %v14825_v33 = vadd.f32 %v6829_v56, %v14615_v37  ;;  %v7068_v37 = vadd.f32 %v14684_v24, %v14692_v3  ;;  %v16443_v24 = vld [vmem:[#allocation44_spill] sm:$0xff] }
 0x7be   : > { %16438 = vst [vmem:[#allocation21_spill] sm:$0xff] %v14825_v33  ;;  %v7034_v49 = vpop.f32.mrf.mxu0 }
 0x7bf   : > { %10723 = vmatmul.msk.bf16.gmra.mxu2 %vm744_vm3, %v14694_v17  ;;  %v7270_v17 = vadd.f32 %v7203_v4, %v7068_v37 }
 0x7c0   : > { %10742 = vmatmul.msk.bf16.gmra.mxu3 %vm744_vm3, %v16439_v62  ;;  %v5839_v62 = vld [vmem:[#allocation3 + $0x171] sm:$0xff] }
 0x7c2   : > { %v7403_v48 = vpop.f32.mrf.mxu2 }
 0x7c3   : > { %v6832_v2 = vpop.f32.mrf.mxu3  ;;  %v14838_v23 = vadd.f32 %v7403_v48, %v14686_v57 }
 0x7c4   : > { %v6879_v38 = vadd.f32 %v6832_v2, %v14633_v29  ;;  %v5838_v29 = vld [vmem:[#allocation3 + $0x169] sm:$0xff]  ;;  %v14851_v2 = vpop.f32.mrf.mxu1 }
 0x7c5   : > { %v7306_v48 = vpack.c.bf16 %v5839_v62, %v5838_v29  ;;  %v16447_v29 = vld [vmem:[#allocation51_spill] sm:$0xff] }
 0x7c6   : > { %v14842_v41 = vadd.f32 %v7034_v49, %v6879_v38  ;;  %v14844_v40 = vpop.f32.mrf.mxu0 }
 0x7c7   : > { %16441 = vst [vmem:[#allocation58_spill] sm:$0xff] %v14844_v40  ;;  %v11050_v40 = vld [vmem:[%s16072_s19 + $0x28] sm:$0xff] }
 0x7c8   : > { %16440 = vst [vmem:[#allocation56_spill] sm:$0xff] %v14842_v41  ;;  %8615 = vmatpush.bf16.msra.mxu2 %v11050_v40 }
 0x7ca   : > { %v7405_v28 = vpop.f32.mrf.mxu2 }
 0x7cb   : > { %v6834_v56 = vpop.f32.mrf.mxu3  ;;  %v14849_v33 = vadd.f32 %v7405_v28, %v7270_v17 }
 0x7cc   : > { %v14847_v21 = vadd.f32 %v6834_v56, %v14639_v11  ;;  %v14863_v37 = vpop.f32.mrf.mxu1 }
 0x7ce   : > { %16442 = vst [vmem:[#allocation57_spill] sm:$0xff] %v14847_v21  ;;  %v7039_v57 = vpop.f32.mrf.mxu0  ;;  %v7898_v21 = vld [vmem:[#allocation3 + $0xa] sm:$0xff] }
 0x7cf   : > { %10724 = vmatmul.msk.bf16.gmra.mxu2 %vm744_vm3, %v7306_v48 }
 0x7d0   : > { %10743 = vmatmul.msk.bf16.gmra.mxu3 %vm744_vm3, %v16443_v24 }
 0x7d2   : > { %v14856_v4 = vpop.f32.mrf.mxu2 }
 0x7d3   : > { %v6837_v3 = vpop.f32.mrf.mxu3 }
 0x7d4   : > { %v6881_v49 = vadd.f32 %v6837_v3, %v14657_v26  ;;  %v14874_v26 = vpop.f32.mrf.mxu1 }
 0x7d6   : > { %v14859_v38 = vadd.f32 %v7039_v57, %v6881_v49  ;;  %v14861_v11 = vpop.f32.mrf.mxu0 }
 0x7d7   : > { %16445 = vst [vmem:[#allocation73_spill] sm:$0xff] %v14861_v11 }
 0x7d8   : > { %16444 = vst [vmem:[#allocation25_spill] sm:$0xff] %v14859_v38 }
 0x7da   : > { %v14865_v56 = vpop.f32.mrf.mxu2 }
 0x7db   : > { %v6839_v17 = vpop.f32.mrf.mxu3 }
 0x7dc   : > { %v14868_v28 = vadd.f32 %v6839_v17, %v14663_v47  ;;  %v5842_v47 = vld [vmem:[#allocation3 + $0x199] sm:$0xff]  ;;  %v5843_v17 = vld [vmem:[#allocation3 + $0x1a1] sm:$0xff] }
 0x7dd   : > { %v7308_v38 = vpack.c.bf16 %v5843_v17, %v5842_v47  ;;  %v11047_v17 = vld [vmem:[%s16072_s19 + $0x10] sm:$0xff] }
 0x7de   : > { %16446 = vst [vmem:[#allocation29_spill] sm:$0xff] %v14868_v28  ;;  %v7044_v62 = vpop.f32.mrf.mxu0 }
 0x7df   : > { %10725 = vmatmul.msk.bf16.gmra.mxu2 %vm744_vm3, %v14742_v13  ;;  %v14885_v13 = vpop.f32.mrf.mxu1 }
 0x7e0   : > { %10744 = vmatmul.msk.bf16.gmra.mxu3 %vm744_vm3, %v16447_v29 }
 0x7e2   : > { %v14876_v48 = vpop.f32.mrf.mxu2 }
 0x7e3   : > { %v6842_v57 = vpop.f32.mrf.mxu3 }
 0x7e4   : > { %v6883_v24 = vadd.f32 %v6842_v57, %v14681_v14  ;;  %v11048_v57 = vld [vmem:[%s16072_s19 + $0x18] sm:$0xff] }
 0x7e5   : > { %8413 = vmatpush.bf16.msra.mxu1 %v11048_v57  ;;  %v7866_v57 = vld [vmem:[#allocation3 + $0x9] sm:$0xff] }
 0x7e6   : > { %v14879_v3 = vadd.f32 %v7044_v62, %v6883_v24  ;;  %v14881_v49 = vpop.f32.mrf.mxu0  ;;  %v16451_v62 = vld [vmem:[#allocation55_spill] sm:$0xff] }
 0x7e7   : > { %16449 = vst [vmem:[#allocation61_spill] sm:$0xff] %v14881_v49  ;;  %v14905_v47 = vpop.f32.mrf.mxu1  ;;  %v7834_v49 = vld [vmem:[#allocation3 + $0x8] sm:$0xff] }
 0x7e8   : > { %16448 = vst [vmem:[#allocation59_spill] sm:$0xff] %v14879_v3  ;;  %v7865_v3 = vld [vmem:[#allocation3 + $0x1] sm:$0xff] }
 0x7e9   : > { %8414 = vmatpush.bf16.msra.mxu1 %v11047_v17  ;;  %v8326_v41 = vpack.c.bf16 %v7866_v57, %v7865_v3 }
 0x7ea   : > { %v14883_v28 = vpop.f32.mrf.mxu2 }
 0x7eb   : > { %v6844_v11 = vpop.f32.mrf.mxu3 }
 0x7ec   : > { %v14888_v29 = vadd.f32 %v6844_v11, %v14689_v6  ;;  %v11049_v6 = vld [vmem:[%s16072_s19 + $0x20] sm:$0xff]  ;;  %10791 = vmatmul.msk.bf16.vlgmr.msra.gmra.mxu1 %vm744_vm3, %v8326_v41 }
 0x7ed   : > { %8616 = vmatpush.bf16.msra.mxu2 %v11049_v6  ;;  %v7897_v6 = vld [vmem:[#allocation3 + $0x2] sm:$0xff] }
 0x7ee   : > { %16450 = vst [vmem:[#allocation60_spill] sm:$0xff] %v14888_v29  ;;  %v7049_v14 = vpop.f32.mrf.mxu0 }
 0x7ef   : > { %10726 = vmatmul.msk.bf16.gmra.mxu2 %vm744_vm3, %v7308_v38  ;;  %v14924_v17 = vpop.f32.mrf.mxu1 }
 0x7f0   : > { %10745 = vmatmul.msk.bf16.gmra.mxu3 %vm744_vm3, %v16451_v62  ;;  %v7833_v62 = vld [vmem:[#allocation3] sm:$0xff] }
 0x7f1   : > { %v8125_v29 = vpack.c.bf16 %v7834_v49, %v7833_v62  ;;  %v11052_v49 = vld [vmem:[%s16072_s19 + $0x38] sm:$0xff] }
 0x7f2   : > { %v14902_v24 = vpop.f32.mrf.mxu2  ;;  %8817 = vmatpush.bf16.msra.mxu3 %v11052_v49 }
 0x7f3   : > { %v6847_v11 = vpop.f32.mrf.mxu3  ;;  %10763 = vmatmul.msk.bf16.vlgmr.msrb.gmra.mxu0 %vm744_vm3, %v8125_v29 }
 0x7f4   : > { %v6885_v40 = vadd.f32 %v6847_v11, %v14707_v12 }
 0x7f6   : > { %v14907_v38 = vadd.f32 %v7049_v14, %v6885_v40  ;;  %v14912_v15 = vpop.f32.mrf.mxu0  ;;  %v8528_v40 = vpack.c.bf16 %v7898_v21, %v7897_v6 }
 0x7f7   : > { %16453 = vst [vmem:[#allocation37_spill] sm:$0xff] %v14912_v15  ;;  %v14937_v57 = vpop.f32.mrf.mxu1 }
 0x7f8   : > { %16452 = vst [vmem:[#allocation33_spill] sm:$0xff] %v14907_v38 }
 0x7fa   : > { %v14915_v14 = vpop.f32.mrf.mxu2 }
 0x7fb   : > { %v6849_v12 = vpop.f32.mrf.mxu3 }
 0x7fc   : > { %v14919_v11 = vadd.f32 %v6849_v12, %v14715_v22  ;;  %v11054_v22 = vld [vmem:[%s16072_s19 + $0x48] sm:$0xff] }
 0x7fd   : > { %9019 = vmatpush.bf16.msra.mxu0 %v11054_v22 }
 0x7fe   : > { %16454 = vst [vmem:[#allocation62_spill] sm:$0xff] %v14919_v11  ;;  %v7054_v21 = vpop.f32.mrf.mxu0 }
 0x7ff   : > { %10819 = vmatmul.msk.bf16.vlgmr.msra.gmra.mxu2 %vm744_vm3, %v8528_v40 }
 0x800   : > { %10746 = vmatmul.msk.bf16.gmra.mxu3 %vm744_vm3, %v14570_v61 }
 0x802   : > { %v14929_v29 = vpop.f32.mrf.mxu2 }
 0x803   : > { %v6852_v3 = vpop.f32.mrf.mxu3 }
 0x804   : > { %v6887_v41 = vadd.f32 %v6852_v3, %v14729_v55  ;;  %v14949_v55 = vld [vmem:[%s16070_s17] ss:$0 sm:$0xff]  ;;  %v14953_v3 = vpop.f32.mrf.mxu1 }
 0x805   : > { %16457 = vst [vmem:[#allocation45_spill] sm:$0xff] %v14953_v3 }
 0x806   : > { %v14935_v62 = vadd.f32 %v7054_v21, %v6887_v41 }
 0x808   : > { %16455 = vst [vmem:[#allocation46_spill] sm:$0xff] %v14935_v62 }
 0x80a   : > { %v14939_v12 = vpop.f32.mrf.mxu2 }
 0x80b   : > { %v6854_v6 = vpop.f32.mrf.mxu3 }
 0x80c   : > { %v14942_v61 = vadd.f32 %v6854_v6, %v14737_v58  ;;  %v14959_v58 = vld [vmem:[%s16071_s18] ss:$0 sm:$0xff]  ;;  %v14967_v15 = vpop.f32.mrf.mxu1 }
 0x80d   : > { %16458 = vst [vmem:[#allocation27_spill] sm:$0xff] %v14967_v15 }
 0x80e   : > { %16456 = vst [vmem:[#allocation41_spill] sm:$0xff] %v14942_v61 }
 0x810   : > { %10747 = vmatmul.msk.bf16.gmra.mxu3 %vm744_vm3, %v14597_v20 }
 0x812   : > { %v14951_v40 = vpop.f32.mrf.mxu2 }
 0x813   : > { %v7585_v49 = vpop.f32.mrf.mxu3 }
 0x814   : > { %v7665_v41 = vadd.f32 %v7585_v49, %v14758_v10 }
 0x816   : > { %v7701_v22 = vmul.f32 %v14949_v55, %v7665_v41 }
 0x818   : > { %v7737_v20 = vadd.f32 %v14959_v58, %v7701_v22 }
 0x81a   : > { %v7769_v21 = vmax.f32 %v7737_v20, 0.0  ;;  %v14963_v6 = vpop.f32.mrf.mxu2 }
 0x81b   : > { %v7587_v61 = vpop.f32.mrf.mxu3 }
 0x81c   : > { %7801 = vst.msk [vmem:[#allocation3 + $0x19] sm:$0xff] %vm744_vm3, %v7769_v21  ;;  %v7666_v62 = vadd.f32 %v7587_v61, %v14768_v46  ;;  %v14978_v46 = vpop.f32.mrf.mxu1 }
 0x81d   : > { %16460 = vst [vmem:[#allocation54_spill] sm:$0xff] %v14978_v46 }
 0x81e   : > { %v7702_v10 = vmul.f32 %v14949_v55, %v7666_v62 }
 0x820   : > { %v7738_v49 = vadd.f32 %v14959_v58, %v7702_v10  ;;  %10748 = vmatmul.msk.bf16.gmra.mxu3 %vm744_vm3, %v14620_v54 }
 0x822   : > { %v7770_v41 = vmax.f32 %v7738_v49, 0.0  ;;  %v14973_v11 = vpop.f32.mrf.mxu2 }
 0x823   : > { %16459 = vst [vmem:[#allocation39_spill] sm:$0xff] %v14973_v11  ;;  %v7590_v22 = vpop.f32.mrf.mxu3  ;;  %v7835_v38 = vld [vmem:[#allocation3 + $0x18] sm:$0xff] }
 0x824   : > { %7802 = vst.msk [vmem:[#allocation3 + $0x21] sm:$0xff] %vm744_vm3, %v7770_v41  ;;  %v7667_v20 = vadd.f32 %v7590_v22, %v14776_v1  ;;  %v7867_v10 = vld [vmem:[#allocation3 + $0x19] sm:$0xff] }
 0x826   : > { %v7703_v21 = vmul.f32 %v14949_v55, %v7667_v20 }
 0x828   : > { %v7739_v61 = vadd.f32 %v14959_v58, %v7703_v21 }
 0x82a   : > { %v7771_v62 = vmax.f32 %v7739_v61, 0.0  ;;  %v14981_v15 = vpop.f32.mrf.mxu2 }
 0x82b   : > { %v7592_v54 = vpop.f32.mrf.mxu3  ;;  %v7836_v49 = vld [vmem:[#allocation3 + $0x20] sm:$0xff] }
 0x82c   : > { %v7868_v3 = vld [vmem:[#allocation3 + $0x21] sm:$0xff]  ;;  %7803 = vst.msk [vmem:[#allocation3 + $0x31] sm:$0xff] %vm744_vm3, %v7771_v62  ;;  %v7668_v41 = vadd.f32 %v7592_v54, %v14786_v60  ;;  %v14985_v1 = vpack.c.bf16 %v7836_v49, %v7835_v38  ;;  %v14995_v60 = vpop.f32.mrf.mxu1 }
 0x82d   : > { %v7899_v11 = vld [vmem:[#allocation3 + $0x1a] sm:$0xff]  ;;  %v8327_v22 = vpack.c.bf16 %v7868_v3, %v7867_v10  ;;  %v7900_v20 = vld [vmem:[#allocation3 + $0x22] sm:$0xff]  ;;  %16461 = vst [vmem:[#allocation53_spill] sm:$0xff] %v14995_v60 }
 0x82e   : > { %v8529_v46 = vpack.c.bf16 %v7900_v20, %v7899_v11  ;;  %v7704_v21 = vmul.f32 %v14949_v55, %v7668_v41  ;;  %10764 = vmatmul.msk.bf16.gmra.mxu0 %vm744_vm3, %v14985_v1 }
 0x82f   : > { %10792 = vmatmul.msk.bf16.gmra.mxu1 %vm744_vm3, %v8327_v22 }
 0x830   : > { %10820 = vmatmul.msk.bf16.gmra.mxu2 %vm744_vm3, %v8529_v46  ;;  %v7740_v61 = vadd.f32 %v14959_v58, %v7704_v21  ;;  %10749 = vmatmul.msk.bf16.gmra.mxu3 %vm744_vm3, %v14644_v53 }
 0x832   : > { %v7772_v38 = vmax.f32 %v7740_v61, 0.0  ;;  %v14997_v3 = vpop.f32.mrf.mxu2 }
 0x833   : > { %v7595_v11 = vpop.f32.mrf.mxu3  ;;  %v7837_v49 = vld [vmem:[#allocation3 + $0x30] sm:$0xff] }
 0x834   : > { %7804 = vst.msk [vmem:[#allocation3 + $0x39] sm:$0xff] %vm744_vm3, %v7772_v38  ;;  %v7669_v62 = vadd.f32 %v7595_v11, %v14794_v8  ;;  %v7869_v41 = vld [vmem:[#allocation3 + $0x31] sm:$0xff]  ;;  %v15005_v60 = vpop.f32.mrf.mxu1 }
 0x835   : > { %16462 = vst [vmem:[#allocation40_spill] sm:$0xff] %v15005_v60 }
 0x836   : > { %v7705_v10 = vmul.f32 %v14949_v55, %v7669_v62 }
 0x838   : > { %v7741_v54 = vadd.f32 %v14959_v58, %v7705_v10 }
 0x83a   : > { %v7773_v46 = vmax.f32 %v7741_v54, 0.0  ;;  %v15003_v22 = vpop.f32.mrf.mxu2 }
 0x83b   : > { %v7597_v53 = vpop.f32.mrf.mxu3  ;;  %v7838_v20 = vld [vmem:[#allocation3 + $0x38] sm:$0xff] }
 0x83c   : > { %v7870_v21 = vld [vmem:[#allocation3 + $0x39] sm:$0xff]  ;;  %7805 = vst.msk [vmem:[#allocation3 + $0x49] sm:$0xff] %vm744_vm3, %v7773_v46  ;;  %v7670_v38 = vadd.f32 %v7597_v53, %v14806_v0  ;;  %v15009_v8 = vpack.c.bf16 %v7838_v20, %v7837_v49  ;;  %v15023_v53 = vpop.f32.mrf.mxu1 }
 0x83d   : > { %v7901_v61 = vld [vmem:[#allocation3 + $0x32] sm:$0xff]  ;;  %v8328_v11 = vpack.c.bf16 %v7870_v21, %v7869_v41  ;;  %v7902_v62 = vld [vmem:[#allocation3 + $0x3a] sm:$0xff]  ;;  %16463 = vst [vmem:[#allocation19_spill] sm:$0xff] %v15023_v53 }
 0x83e   : > { %v8530_v10 = vpack.c.bf16 %v7902_v62, %v7901_v61  ;;  %v7706_v54 = vmul.f32 %v14949_v55, %v7670_v38  ;;  %10765 = vmatmul.msk.bf16.gmra.mxu0 %vm744_vm3, %v15009_v8 }
 0x83f   : > { %10793 = vmatmul.msk.bf16.gmra.mxu1 %vm744_vm3, %v8328_v11 }
 0x840   : > { %10821 = vmatmul.msk.bf16.gmra.mxu2 %vm744_vm3, %v8530_v10  ;;  %v7742_v60 = vadd.f32 %v14959_v58, %v7706_v54  ;;  %10750 = vmatmul.msk.bf16.gmra.mxu3 %vm744_vm3, %v14668_v44 }
 0x842   : > { %v7774_v0 = vmax.f32 %v7742_v60, 0.0  ;;  %v15019_v46 = vpop.f32.mrf.mxu2 }
 0x843   : > { %v7600_v49 = vpop.f32.mrf.mxu3  ;;  %v7839_v38 = vld [vmem:[#allocation3 + $0x48] sm:$0xff] }
 0x844   : > { %7806 = vst.msk [vmem:[#allocation3 + $0x51] sm:$0xff] %vm744_vm3, %v7774_v0  ;;  %v7671_v41 = vadd.f32 %v7600_v49, %v14816_v52  ;;  %v7871_v11 = vld [vmem:[#allocation3 + $0x49] sm:$0xff] }
 0x846   : > { %v7707_v20 = vmul.f32 %v14949_v55, %v7671_v41 }
 0x848   : > { %v7743_v21 = vadd.f32 %v14959_v58, %v7707_v20 }
 0x84a   : > { %v7775_v61 = vmax.f32 %v7743_v21, 0.0  ;;  %v15027_v62 = vpop.f32.mrf.mxu2  ;;  %v15038_v21 = vpop.f32.mrf.mxu1 }
 0x84b   : > { %16464 = vst [vmem:[#allocation31_spill] sm:$0xff] %v15027_v62  ;;  %v7602_v44 = vpop.f32.mrf.mxu3  ;;  %v7840_v60 = vld [vmem:[#allocation3 + $0x50] sm:$0xff] }
 0x84c   : > { %v7872_v10 = vld [vmem:[#allocation3 + $0x51] sm:$0xff]  ;;  %7807 = vst.msk [vmem:[#allocation3 + $0x61] sm:$0xff] %vm744_vm3, %v7775_v61  ;;  %v7672_v0 = vadd.f32 %v7602_v44, %v14828_v35  ;;  %v15031_v52 = vpack.c.bf16 %v7840_v60, %v7839_v38 }
 0x84d   : > { %v7903_v54 = vld [vmem:[#allocation3 + $0x4a] sm:$0xff]  ;;  %v8329_v49 = vpack.c.bf16 %v7872_v10, %v7871_v11  ;;  %v7904_v53 = vld [vmem:[#allocation3 + $0x52] sm:$0xff]  ;;  %16465 = vst [vmem:[#allocation44_spill] sm:$0xff] %v15038_v21 }
 0x84e   : > { %v8531_v41 = vpack.c.bf16 %v7904_v53, %v7903_v54  ;;  %v7708_v20 = vmul.f32 %v14949_v55, %v7672_v0  ;;  %10766 = vmatmul.msk.bf16.gmra.mxu0 %vm744_vm3, %v15031_v52  ;;  %v5870_v10 = vld [vmem:[#allocation3 + $0x16a] sm:$0xff] }
 0x84f   : > { %10794 = vmatmul.msk.bf16.gmra.mxu1 %vm744_vm3, %v8329_v49 }
 0x850   : > { %10822 = vmatmul.msk.bf16.gmra.mxu2 %vm744_vm3, %v8531_v41  ;;  %v7744_v61 = vadd.f32 %v14959_v58, %v7708_v20  ;;  %10751 = vmatmul.msk.bf16.gmra.mxu3 %vm744_vm3, %v14696_v50  ;;  %v5871_v20 = vld [vmem:[#allocation3 + $0x172] sm:$0xff] }
 0x852   : > { %v7776_v35 = vmax.f32 %v7744_v61, 0.0  ;;  %v15043_v38 = vpop.f32.mrf.mxu2  ;;  %v15049_v54 = vpop.f32.mrf.mxu1 }
 0x853   : > { %16466 = vst [vmem:[#allocation51_spill] sm:$0xff] %v15043_v38  ;;  %v7605_v53 = vpop.f32.mrf.mxu3  ;;  %v7841_v49 = vld [vmem:[#allocation3 + $0x60] sm:$0xff] }
 0x854   : > { %7808 = vst.msk [vmem:[#allocation3 + $0x69] sm:$0xff] %vm744_vm3, %v7776_v35  ;;  %v7673_v11 = vadd.f32 %v7605_v53, %v14838_v23  ;;  %v7873_v41 = vld [vmem:[#allocation3 + $0x61] sm:$0xff] }
 0x855   : > { %16467 = vst [vmem:[#allocation55_spill] sm:$0xff] %v15049_v54  ;;  %v7508_v54 = vpack.c.bf16 %v5871_v20, %v5870_v10 }
 0x856   : > { %v7709_v44 = vmul.f32 %v14949_v55, %v7673_v11 }
 0x858   : > { %v7745_v60 = vadd.f32 %v14959_v58, %v7709_v44 }
 0x85a   : > { %v7777_v0 = vmax.f32 %v7745_v60, 0.0  ;;  %v15051_v50 = vpop.f32.mrf.mxu2  ;;  %v15072_v20 = vpop.f32.mrf.mxu1 }
 0x85b   : > { %v7607_v61 = vpop.f32.mrf.mxu3  ;;  %v7842_v21 = vld [vmem:[#allocation3 + $0x68] sm:$0xff] }
 0x85c   : > { %v7874_v38 = vld [vmem:[#allocation3 + $0x69] sm:$0xff]  ;;  %7809 = vst.msk [vmem:[#allocation3 + $0x79] sm:$0xff] %vm744_vm3, %v7777_v0  ;;  %v7674_v23 = vadd.f32 %v7607_v61, %v14849_v33  ;;  %v15055_v35 = vpack.c.bf16 %v7842_v21, %v7841_v49  ;;  %v7271_v0 = vadd.f32 %v14796_v51, %v14710_v30 }
 0x85d   : > { %v7905_v62 = vld [vmem:[#allocation3 + $0x62] sm:$0xff]  ;;  %v8330_v53 = vpack.c.bf16 %v7874_v38, %v7873_v41  ;;  %v7906_v11 = vld [vmem:[#allocation3 + $0x6a] sm:$0xff]  ;;  %v7070_v41 = vadd.f32 %v14712_v63, %v14718_v59 }
 0x85e   : > { %v8532_v44 = vpack.c.bf16 %v7906_v11, %v7905_v62  ;;  %v7710_v60 = vmul.f32 %v14949_v55, %v7674_v23  ;;  %10767 = vmatmul.msk.bf16.gmra.mxu0 %vm744_vm3, %v15055_v35  ;;  %v7473_v21 = vadd.f32 %v14856_v4, %v7271_v0 }
 0x85f   : > { %10795 = vmatmul.msk.bf16.gmra.mxu1 %vm744_vm3, %v8330_v53  ;;  %v7272_v51 = vadd.f32 %v14808_v36, %v7070_v41  ;;  %v11051_v41 = vld [vmem:[%s16072_s19 + $0x30] sm:$0xff] }
 0x860   : > { %10823 = vmatmul.msk.bf16.gmra.mxu2 %vm744_vm3, %v8532_v44  ;;  %v7746_v33 = vadd.f32 %v14959_v58, %v7710_v60  ;;  %10752 = vmatmul.msk.bf16.gmra.mxu3 %vm744_vm3, %v7508_v54 }
 0x861   : > { %v7474_v4 = vadd.f32 %v14865_v56, %v7272_v51  ;;  %8818 = vmatpush.bf16.msra.mxu3 %v11051_v41 }
 0x862   : > { %v7778_v62 = vmax.f32 %v7746_v33, 0.0  ;;  %v15067_v38 = vpop.f32.mrf.mxu2 }
 0x863   : > { %v7610_v49 = vpop.f32.mrf.mxu3  ;;  %v7843_v23 = vld [vmem:[#allocation3 + $0x78] sm:$0xff] }
 0x864   : > { %7810 = vst.msk [vmem:[#allocation3 + $0x81] sm:$0xff] %vm744_vm3, %v7778_v62  ;;  %v7675_v10 = vadd.f32 %v7610_v49, %v7473_v21  ;;  %v7875_v53 = vld [vmem:[#allocation3 + $0x79] sm:$0xff]  ;;  %v15083_v62 = vpop.f32.mrf.mxu1 }
 0x866   : > { %v7711_v30 = vmul.f32 %v14949_v55, %v7675_v10  ;;  %v7273_v10 = vadd.f32 %v14822_v45, %v14732_v7 }
 0x868   : > { %v7747_v54 = vadd.f32 %v14959_v58, %v7711_v30  ;;  %v7475_v51 = vadd.f32 %v14876_v48, %v7273_v10 }
 0x86a   : > { %v7779_v61 = vmax.f32 %v7747_v54, 0.0  ;;  %v15078_v11 = vpop.f32.mrf.mxu2 }
 0x86b   : > { %v7612_v44 = vpop.f32.mrf.mxu3  ;;  %v7844_v63 = vld [vmem:[#allocation3 + $0x80] sm:$0xff] }
 0x86c   : > { %v7876_v59 = vld [vmem:[#allocation3 + $0x81] sm:$0xff]  ;;  %7811 = vst.msk [vmem:[#allocation3 + $0x91] sm:$0xff] %vm744_vm3, %v7779_v61  ;;  %v7676_v0 = vadd.f32 %v7612_v44, %v7474_v4  ;;  %v15081_v33 = vpack.c.bf16 %v7844_v63, %v7843_v23  ;;  %v7072_v23 = vadd.f32 %v14734_v16, %v14740_v43  ;;  %v15104_v44 = vpop.f32.mrf.mxu0  ;;  %v15107_v45 = vpop.f32.mrf.mxu1 }
 0x86d   : > { %v7907_v60 = vld [vmem:[#allocation3 + $0x7a] sm:$0xff]  ;;  %v8331_v21 = vpack.c.bf16 %v7876_v59, %v7875_v53  ;;  %v7908_v36 = vld [vmem:[#allocation3 + $0x82] sm:$0xff] }
 0x86e   : > { %v8533_v49 = vpack.c.bf16 %v7908_v36, %v7907_v60  ;;  %v7712_v56 = vmul.f32 %v14949_v55, %v7676_v0  ;;  %10768 = vmatmul.msk.bf16.gmra.mxu0 %vm744_vm3, %v15081_v33  ;;  %v5874_v63 = vld [vmem:[#allocation3 + $0x19a] sm:$0xff]  ;;  %v5875_v59 = vld [vmem:[#allocation3 + $0x1a2] sm:$0xff] }
 0x86f   : > { %10796 = vmatmul.msk.bf16.gmra.mxu1 %vm744_vm3, %v8331_v21 }
 0x870   : > { %10824 = vmatmul.msk.bf16.gmra.mxu2 %vm744_vm3, %v8533_v49  ;;  %v7748_v30 = vadd.f32 %v14959_v58, %v7712_v56  ;;  %10753 = vmatmul.msk.bf16.gmra.mxu3 %vm744_vm3, %v14747_v42  ;;  %v7274_v42 = vadd.f32 %v14834_v32, %v7072_v23 }
 0x872   : > { %v7780_v54 = vmax.f32 %v7748_v30, 0.0  ;;  %v15099_v4 = vpop.f32.mrf.mxu2  ;;  %v7476_v60 = vadd.f32 %v14883_v28, %v7274_v42  ;;  %v15120_v28 = vld [vmem:[%s16073_s20] ss:$0 sm:$0xff] }
 0x873   : > { %v7615_v61 = vpop.f32.mrf.mxu3  ;;  %v7845_v21 = vld [vmem:[#allocation3 + $0x90] sm:$0xff] }
 0x874   : > { %7812 = vst.msk [vmem:[#allocation3 + $0x99] sm:$0xff] %vm744_vm3, %v7780_v54  ;;  %v7677_v53 = vadd.f32 %v7615_v61, %v7475_v51  ;;  %v7877_v16 = vld [vmem:[#allocation3 + $0x91] sm:$0xff]  ;;  %v7510_v54 = vpack.c.bf16 %v5875_v59, %v5874_v63  ;;  %v8214_v23 = vpop.f32.mrf.mxu0  ;;  %v8416_v42 = vpop.f32.mrf.mxu1 }
 0x876   : > { %v7713_v7 = vmul.f32 %v14949_v55, %v7677_v53 }
 0x878   : > { %v7749_v48 = vadd.f32 %v14959_v58, %v7713_v7  ;;  %v8294_v7 = vadd.f32 %v15120_v28, %v8214_v23 }
 0x87a   : > { %v7781_v0 = vmax.f32 %v7749_v48, 0.0  ;;  %v15112_v43 = vpop.f32.mrf.mxu2  ;;  %v7275_v48 = vadd.f32 %v14851_v2, %v14760_v9  ;;  %v8496_v59 = vadd.f32 %v8416_v42, %v8294_v7  ;;  %v11053_v9 = vld [vmem:[%s16072_s19 + $0x40] sm:$0xff] }
 0x87b   : > { %v7617_v36 = vpop.f32.mrf.mxu3  ;;  %v7846_v49 = vld [vmem:[#allocation3 + $0x98] sm:$0xff]  ;;  %9020 = vmatpush.bf16.msra.mxu0 %v11053_v9 }
 0x87c   : > { %v7878_v56 = vld [vmem:[#allocation3 + $0x99] sm:$0xff]  ;;  %7813 = vst.msk [vmem:[#allocation3 + $0xa9] sm:$0xff] %vm744_vm3, %v7781_v0  ;;  %v7678_v10 = vadd.f32 %v7617_v36, %v7476_v60  ;;  %v15115_v30 = vpack.c.bf16 %v7846_v49, %v7845_v21  ;;  %v7477_v60 = vadd.f32 %v14902_v24, %v7275_v48  ;;  %v7074_v36 = vadd.f32 %v14762_v25, %v14765_v5 }
 0x87d   : > { %v7909_v41 = vld [vmem:[#allocation3 + $0x92] sm:$0xff]  ;;  %v8332_v32 = vpack.c.bf16 %v7878_v56, %v7877_v16  ;;  %v7910_v51 = vld [vmem:[#allocation3 + $0x9a] sm:$0xff] }
 0x87e   : > { %v8534_v61 = vpack.c.bf16 %v7910_v51, %v7909_v41  ;;  %v7714_v53 = vmul.f32 %v14949_v55, %v7678_v10  ;;  %10769 = vmatmul.msk.bf16.gmra.mxu0 %vm744_vm3, %v15115_v30  ;;  %v7276_v24 = vadd.f32 %v14863_v37, %v7074_v36 }
 0x87f   : > { %10797 = vmatmul.msk.bf16.gmra.mxu1 %vm744_vm3, %v8332_v32 }
 0x880   : > { %10825 = vmatmul.msk.bf16.gmra.mxu2 %vm744_vm3, %v8534_v61  ;;  %v7750_v63 = vadd.f32 %v14959_v58, %v7714_v53  ;;  %10754 = vmatmul.msk.bf16.gmra.mxu3 %vm744_vm3, %v7510_v54  ;;  %v7478_v10 = vadd.f32 %v14915_v14, %v7276_v24  ;;  %v7277_v14 = vadd.f32 %v14874_v26, %v14778_v19 }
 0x882   : > { %v7782_v0 = vmax.f32 %v7750_v63, 0.0  ;;  %v8618_v16 = vpop.f32.mrf.mxu2 }
 0x883   : > { %v7620_v21 = vpop.f32.mrf.mxu3  ;;  %v15136_v56 = vadd.f32 %v8618_v16, %v8496_v59  ;;  %v7847_v25 = vld [vmem:[#allocation3 + $0xa8] sm:$0xff]  ;;  %v7076_v16 = vadd.f32 %v14780_v34, %v14783_v31 }
 0x884   : > { %7814 = vst.msk [vmem:[#allocation3 + $0xb1] sm:$0xff] %vm744_vm3, %v7782_v0  ;;  %v7679_v49 = vadd.f32 %v7620_v21, %v7477_v60  ;;  %v7879_v5 = vld [vmem:[#allocation3 + $0xa9] sm:$0xff]  ;;  %v7479_v60 = vadd.f32 %v14929_v29, %v7277_v14 }
 0x885   : > { %v7278_v9 = vadd.f32 %v14885_v13, %v7076_v16 }
 0x886   : > { %v7715_v2 = vmul.f32 %v14949_v55, %v7679_v49 }
 0x887   : > { %v7480_v26 = vadd.f32 %v14939_v12, %v7278_v9  ;;  %v7279_v12 = vadd.f32 %v14905_v47, %v14798_v18 }
 0x888   : > { %v7751_v41 = vadd.f32 %v14959_v58, %v7715_v2 }
 0x88a   : > { %v7783_v32 = vmax.f32 %v7751_v41, 0.0  ;;  %v15191_v14 = vpop.f32.mrf.mxu2 }
 0x88b   : > { %v7622_v51 = vpop.f32.mrf.mxu3  ;;  %v7848_v54 = vld [vmem:[#allocation3 + $0xb0] sm:$0xff] }
 0x88c   : > { %v7880_v61 = vld [vmem:[#allocation3 + $0xb1] sm:$0xff]  ;;  %7815 = vst.msk [vmem:[#allocation3 + $0xc1] sm:$0xff] %vm744_vm3, %v7783_v32  ;;  %v7680_v53 = vadd.f32 %v7622_v51, %v7478_v10  ;;  %v15146_v7 = vpack.c.bf16 %v7848_v54, %v7847_v25 }
 0x88d   : > { %v7911_v23 = vld [vmem:[#allocation3 + $0xaa] sm:$0xff]  ;;  %v8333_v42 = vpack.c.bf16 %v7880_v61, %v7879_v5  ;;  %v7912_v48 = vld [vmem:[#allocation3 + $0xb2] sm:$0xff]  ;;  %v7481_v61 = vadd.f32 %v14951_v40, %v7279_v12 }
 0x88e   : > { %v8535_v63 = vpack.c.bf16 %v7912_v48, %v7911_v23  ;;  %v7716_v37 = vmul.f32 %v14949_v55, %v7680_v53  ;;  %10770 = vmatmul.msk.bf16.gmra.mxu0 %vm744_vm3, %v15146_v7  ;;  %v15180_v53 = vpop.f32.mrf.mxu0  ;;  %v7078_v48 = vadd.f32 %v14800_v27, %v14803_v39 }
 0x88f   : > { %10798 = vmatmul.msk.bf16.gmra.mxu1 %vm744_vm3, %v8333_v42 }
 0x890   : > { %10826 = vmatmul.msk.bf16.gmra.mxu2 %vm744_vm3, %v8535_v63  ;;  %v7752_v59 = vadd.f32 %v14959_v58, %v7716_v37  ;;  %10847 = vmatmul.msk.bf16.vlgmr.msra.gmra.mxu3 %vm744_vm3, %v14985_v1  ;;  %v15185_v63 = vpop.f32.mrf.mxu1  ;;  %v7280_v47 = vadd.f32 %v14924_v17, %v7078_v48 }
 0x892   : > { %v7784_v0 = vmax.f32 %v7752_v59, 0.0  ;;  %v7482_v40 = vadd.f32 %v14963_v6, %v7280_v47 }
 0x893   : > { %v7625_v21 = vpop.f32.mrf.mxu3  ;;  %v7849_v1 = vld [vmem:[#allocation3 + $0xc0] sm:$0xff] }
 0x894   : > { %7816 = vst.msk [vmem:[#allocation3 + $0xc9] sm:$0xff] %vm744_vm3, %v7784_v0  ;;  %v7681_v36 = vadd.f32 %v7625_v21, %v7479_v60  ;;  %v7881_v24 = vld [vmem:[#allocation3 + $0xc1] sm:$0xff] }
 0x896   : > { %v7717_v49 = vmul.f32 %v14949_v55, %v7681_v36 }
 0x898   : > { %v7753_v19 = vadd.f32 %v14959_v58, %v7717_v49 }
 0x89a   : > { %v7785_v2 = vmax.f32 %v7753_v19, 0.0 }
 0x89b   : > { %v7627_v29 = vpop.f32.mrf.mxu3  ;;  %v7850_v41 = vld [vmem:[#allocation3 + $0xc8] sm:$0xff] }
 0x89c   : > { %v7882_v10 = vld [vmem:[#allocation3 + $0xc9] sm:$0xff]  ;;  %7817 = vst.msk [vmem:[#allocation3 + $0xd9] sm:$0xff] %vm744_vm3, %v7785_v2  ;;  %v7682_v34 = vadd.f32 %v7627_v29, %v7480_v26  ;;  %v15167_v31 = vpack.c.bf16 %v7850_v41, %v7849_v1 }
 0x89d   : > { %v7913_v32 = vld [vmem:[#allocation3 + $0xc2] sm:$0xff]  ;;  %v8334_v25 = vpack.c.bf16 %v7882_v10, %v7881_v24  ;;  %v7914_v5 = vld [vmem:[#allocation3 + $0xca] sm:$0xff] }
 0x89e   : > { %v8536_v51 = vpack.c.bf16 %v7914_v5, %v7913_v32  ;;  %v7718_v13 = vmul.f32 %v14949_v55, %v7682_v34  ;;  %10771 = vmatmul.msk.bf16.gmra.mxu0 %vm744_vm3, %v15167_v31  ;;  %v16468_v29 = vld [vmem:[#allocation17_spill] sm:$0xff]  ;;  %v16469_v32 = vld [vmem:[#allocation39_spill] sm:$0xff] }
 0x89f   : > { %10799 = vmatmul.msk.bf16.gmra.mxu1 %vm744_vm3, %v8334_v25  ;;  %v7281_v41 = vadd.f32 %v14937_v57, %v16468_v29 }
 0x8a0   : > { %10827 = vmatmul.msk.bf16.gmra.mxu2 %vm744_vm3, %v8536_v51  ;;  %v7754_v54 = vadd.f32 %v14959_v58, %v7718_v13  ;;  %10848 = vmatmul.msk.bf16.gmra.mxu3 %vm744_vm3, %v15009_v8 }
 0x8a1   : > { %v7483_v34 = vadd.f32 %v16469_v32, %v7281_v41  ;;  %v16474_v32 = vld [vmem:[#allocation27_spill] sm:$0xff] }
 0x8a2   : > { %v7786_v23 = vmax.f32 %v7754_v54, 0.0  ;;  %v16470_v54 = vld [vmem:[#allocation21_spill] sm:$0xff] }
 0x8a3   : > { %v7630_v42 = vpop.f32.mrf.mxu3  ;;  %v7851_v60 = vld [vmem:[#allocation3 + $0xd8] sm:$0xff] }
 0x8a4   : > { %7818 = vst.msk [vmem:[#allocation3 + $0xe1] sm:$0xff] %vm744_vm3, %v7786_v23  ;;  %v7683_v37 = vadd.f32 %v7630_v42, %v7481_v61  ;;  %v7883_v0 = vld [vmem:[#allocation3 + $0xd9] sm:$0xff] }
 0x8a5   : > { %v16471_v61 = vld [vmem:[#allocation71_spill] sm:$0xff] }
 0x8a6   : > { %v7719_v18 = vmul.f32 %v14949_v55, %v7683_v37  ;;  %v7080_v23 = vadd.f32 %v16471_v61, %v16470_v54 }
 0x8a8   : > { %v7755_v8 = vadd.f32 %v14959_v58, %v7719_v18  ;;  %v16472_v18 = vld [vmem:[#allocation45_spill] sm:$0xff] }
 0x8a9   : > { %v7282_v47 = vadd.f32 %v16472_v18, %v7080_v23 }
 0x8aa   : > { %v7787_v59 = vmax.f32 %v7755_v8, 0.0 }
 0x8ab   : > { %v7632_v21 = vpop.f32.mrf.mxu3  ;;  %v8219_v27 = vpop.f32.mrf.mxu0  ;;  %v7852_v39 = vld [vmem:[#allocation3 + $0xe0] sm:$0xff] }
 0x8ac   : > { %v7884_v16 = vld [vmem:[#allocation3 + $0xe1] sm:$0xff]  ;;  %7819 = vst.msk [vmem:[#allocation3 + $0xf1] sm:$0xff] %vm744_vm3, %v7787_v59  ;;  %v7684_v49 = vadd.f32 %v7632_v21, %v7482_v40  ;;  %v8296_v9 = vadd.f32 %v15120_v28, %v8219_v27  ;;  %v8421_v17 = vpop.f32.mrf.mxu1  ;;  %v15195_v19 = vpack.c.bf16 %v7852_v39, %v7851_v60  ;;  %v7484_v40 = vadd.f32 %v14981_v15, %v7282_v47 }
 0x8ad   : > { %v7915_v36 = vld [vmem:[#allocation3 + $0xda] sm:$0xff]  ;;  %v8335_v26 = vpack.c.bf16 %v7884_v16, %v7883_v0  ;;  %v7916_v6 = vld [vmem:[#allocation3 + $0xe2] sm:$0xff] }
 0x8ae   : > { %v8537_v2 = vpack.c.bf16 %v7916_v6, %v7915_v36  ;;  %v7720_v1 = vmul.f32 %v14949_v55, %v7684_v49  ;;  %v8498_v24 = vadd.f32 %v8421_v17, %v8296_v9  ;;  %10772 = vmatmul.msk.bf16.gmra.mxu0 %vm744_vm3, %v15195_v19 }
 0x8af   : > { %10800 = vmatmul.msk.bf16.gmra.mxu1 %vm744_vm3, %v8335_v26 }
 0x8b0   : > { %10828 = vmatmul.msk.bf16.gmra.mxu2 %vm744_vm3, %v8537_v2  ;;  %v7756_v10 = vadd.f32 %v14959_v58, %v7720_v1  ;;  %10849 = vmatmul.msk.bf16.gmra.mxu3 %vm744_vm3, %v15031_v52 }
 0x8b2   : > { %v7788_v25 = vmax.f32 %v7756_v10, 0.0  ;;  %v16473_v10 = vld [vmem:[#allocation56_spill] sm:$0xff] }
 0x8b3   : > { %v8623_v5 = vpop.f32.mrf.mxu2  ;;  %v7635_v13 = vpop.f32.mrf.mxu3  ;;  %v7853_v0 = vld [vmem:[#allocation3 + $0xf0] sm:$0xff] }
 0x8b4   : > { %v15208_v51 = vadd.f32 %v8623_v5, %v8498_v24  ;;  %v8221_v12 = vpop.f32.mrf.mxu0  ;;  %7820 = vst.msk [vmem:[#allocation3 + $0xf9] sm:$0xff] %vm744_vm3, %v7788_v25  ;;  %v7685_v42 = vadd.f32 %v7635_v13, %v7483_v34  ;;  %v8423_v48 = vpop.f32.mrf.mxu1  ;;  %v7885_v21 = vld [vmem:[#allocation3 + $0xf1] sm:$0xff]  ;;  %v7283_v34 = vadd.f32 %v16474_v32, %v16473_v10 }
 0x8b5   : > { %v8297_v57 = vadd.f32 %v15120_v28, %v8221_v12 }
 0x8b6   : > { %v7721_v37 = vmul.f32 %v14949_v55, %v7685_v42  ;;  %v7485_v5 = vadd.f32 %v14997_v3, %v7283_v34  ;;  %v16475_v42 = vld [vmem:[#allocation57_spill] sm:$0xff] }
 0x8b7   : > { %v8499_v52 = vadd.f32 %v8423_v48, %v8297_v57  ;;  %v16476_v57 = vld [vmem:[#allocation58_spill] sm:$0xff]  ;;  %v16478_v34 = vld [vmem:[#allocation25_spill] sm:$0xff] }
 0x8b8   : > { %v7757_v8 = vadd.f32 %v14959_v58, %v7721_v37  ;;  %v7082_v48 = vadd.f32 %v16476_v57, %v16475_v42 }
 0x8ba   : > { %v7789_v59 = vmax.f32 %v7757_v8, 0.0  ;;  %v16477_v8 = vld [vmem:[#allocation54_spill] sm:$0xff] }
 0x8bb   : > { %v8625_v60 = vpop.f32.mrf.mxu2  ;;  %v7637_v39 = vpop.f32.mrf.mxu3  ;;  %v7854_v36 = vld [vmem:[#allocation3 + $0xf8] sm:$0xff]  ;;  %v7284_v3 = vadd.f32 %v16477_v8, %v7082_v48 }
 0x8bc   : > { %v15218_v27 = vadd.f32 %v8625_v60, %v8499_v52  ;;  %v8224_v16 = vpop.f32.mrf.mxu0  ;;  %v7886_v49 = vld [vmem:[#allocation3 + $0xf9] sm:$0xff]  ;;  %7821 = vst.msk [vmem:[#allocation3 + $0x109] sm:$0xff] %vm744_vm3, %v7789_v59  ;;  %v7686_v17 = vadd.f32 %v7637_v39, %v7484_v40  ;;  %v8426_v6 = vpop.f32.mrf.mxu1  ;;  %v15222_v2 = vpack.c.bf16 %v7854_v36, %v7853_v0 }
 0x8bd   : > { %v7917_v9 = vld [vmem:[#allocation3 + $0xf2] sm:$0xff]  ;;  %v8298_v26 = vadd.f32 %v15120_v28, %v8224_v16  ;;  %v8336_v15 = vpack.c.bf16 %v7886_v49, %v7885_v21  ;;  %v7918_v1 = vld [vmem:[#allocation3 + $0xfa] sm:$0xff]  ;;  %v7486_v59 = vadd.f32 %v15003_v22, %v7284_v3 }
 0x8be   : > { %v8538_v24 = vpack.c.bf16 %v7918_v1, %v7917_v9  ;;  %v7722_v29 = vmul.f32 %v14949_v55, %v7686_v17  ;;  %10773 = vmatmul.msk.bf16.gmra.mxu0 %vm744_vm3, %v15222_v2 }
 0x8bf   : > { %v8500_v41 = vadd.f32 %v8426_v6, %v8298_v26  ;;  %10801 = vmatmul.msk.bf16.gmra.mxu1 %vm744_vm3, %v8336_v15 }
 0x8c0   : > { %10829 = vmatmul.msk.bf16.gmra.mxu2 %vm744_vm3, %v8538_v24  ;;  %v7758_v25 = vadd.f32 %v14959_v58, %v7722_v29  ;;  %10850 = vmatmul.msk.bf16.gmra.mxu3 %vm744_vm3, %v15055_v35 }
 0x8c2   : > { %v7790_v13 = vmax.f32 %v7758_v25, 0.0  ;;  %v16479_v25 = vld [vmem:[#allocation53_spill] sm:$0xff] }
 0x8c3   : > { %v8628_v12 = vpop.f32.mrf.mxu2  ;;  %v7640_v61 = vpop.f32.mrf.mxu3  ;;  %v7855_v21 = vld [vmem:[#allocation3 + $0x108] sm:$0xff] }
 0x8c4   : > { %v15235_v54 = vadd.f32 %v8628_v12, %v8500_v41  ;;  %v8226_v23 = vpop.f32.mrf.mxu0  ;;  %7822 = vst.msk [vmem:[#allocation3 + $0x111] sm:$0xff] %vm744_vm3, %v7790_v13  ;;  %v7687_v37 = vadd.f32 %v7640_v61, %v7485_v5  ;;  %v8428_v18 = vpop.f32.mrf.mxu1  ;;  %v7887_v39 = vld [vmem:[#allocation3 + $0x109] sm:$0xff]  ;;  %v7285_v5 = vadd.f32 %v16479_v25, %v16478_v34 }
 0x8c5   : > { %v8299_v52 = vadd.f32 %v15120_v28, %v8226_v23 }
 0x8c6   : > { %v7723_v47 = vmul.f32 %v14949_v55, %v7687_v37  ;;  %v7487_v12 = vadd.f32 %v15019_v46, %v7285_v5  ;;  %v16480_v37 = vld [vmem:[#allocation29_spill] sm:$0xff] }
 0x8c7   : > { %v8501_v35 = vadd.f32 %v8428_v18, %v8299_v52  ;;  %v16481_v52 = vld [vmem:[#allocation73_spill] sm:$0xff] }
 0x8c8   : > { %v7759_v40 = vadd.f32 %v14959_v58, %v7723_v47  ;;  %v7084_v18 = vadd.f32 %v16481_v52, %v16480_v37 }
 0x8ca   : > { %v7791_v60 = vmax.f32 %v7759_v40, 0.0  ;;  %v16482_v40 = vld [vmem:[#allocation40_spill] sm:$0xff] }
 0x8cb   : > { %v8630_v0 = vpop.f32.mrf.mxu2  ;;  %v7642_v36 = vpop.f32.mrf.mxu3  ;;  %v7856_v9 = vld [vmem:[#allocation3 + $0x110] sm:$0xff]  ;;  %v7286_v46 = vadd.f32 %v16482_v40, %v7084_v18 }
 0x8cc   : > { %v15245_v16 = vadd.f32 %v8630_v0, %v8501_v35  ;;  %v8229_v49 = vpop.f32.mrf.mxu0  ;;  %v7888_v17 = vld [vmem:[#allocation3 + $0x111] sm:$0xff]  ;;  %7823 = vst.msk [vmem:[#allocation3 + $0x121] sm:$0xff] %vm744_vm3, %v7791_v60  ;;  %v7688_v6 = vadd.f32 %v7642_v36, %v7486_v59  ;;  %v8431_v1 = vpop.f32.mrf.mxu1  ;;  %v15249_v24 = vpack.c.bf16 %v7856_v9, %v7855_v21 }
 0x8cd   : > { %v7919_v26 = vld [vmem:[#allocation3 + $0x10a] sm:$0xff]  ;;  %v8300_v15 = vadd.f32 %v15120_v28, %v8229_v49  ;;  %v8337_v22 = vpack.c.bf16 %v7888_v17, %v7887_v39  ;;  %v7920_v29 = vld [vmem:[#allocation3 + $0x112] sm:$0xff] }
 0x8ce   : > { %v8539_v41 = vpack.c.bf16 %v7920_v29, %v7919_v26  ;;  %v7724_v10 = vmul.f32 %v14949_v55, %v7688_v6  ;;  %10774 = vmatmul.msk.bf16.gmra.mxu0 %vm744_vm3, %v15249_v24  ;;  %v16483_v60 = vld [vmem:[#allocation31_spill] sm:$0xff] }
 0x8cf   : > { %v8502_v32 = vadd.f32 %v8431_v1, %v8300_v15  ;;  %10802 = vmatmul.msk.bf16.gmra.mxu1 %vm744_vm3, %v8337_v22  ;;  %v7488_v0 = vadd.f32 %v16483_v60, %v7286_v46 }
 0x8d0   : > { %10830 = vmatmul.msk.bf16.gmra.mxu2 %vm744_vm3, %v8539_v41  ;;  %v7760_v13 = vadd.f32 %v14959_v58, %v7724_v10  ;;  %10851 = vmatmul.msk.bf16.gmra.mxu3 %vm744_vm3, %v15081_v33 }
 0x8d2   : > { %v7792_v61 = vmax.f32 %v7760_v13, 0.0 }
 0x8d3   : > { %v8633_v23 = vpop.f32.mrf.mxu2  ;;  %v7645_v57 = vpop.f32.mrf.mxu3  ;;  %v7857_v36 = vld [vmem:[#allocation3 + $0x120] sm:$0xff] }
 0x8d4   : > { %v15262_v42 = vadd.f32 %v8633_v23, %v8502_v32  ;;  %v8231_v48 = vpop.f32.mrf.mxu0  ;;  %7824 = vst.msk [vmem:[#allocation3 + $0x129] sm:$0xff] %vm744_vm3, %v7792_v61  ;;  %v7689_v47 = vadd.f32 %v7645_v57, %v7487_v12  ;;  %v8433_v8 = vpop.f32.mrf.mxu1  ;;  %v7889_v49 = vld [vmem:[#allocation3 + $0x121] sm:$0xff]  ;;  %v16484_v12 = vld [vmem:[#allocation59_spill] sm:$0xff] }
 0x8d5   : > { %v8301_v35 = vadd.f32 %v15120_v28, %v8231_v48  ;;  %v16485_v61 = vld [vmem:[#allocation19_spill] sm:$0xff] }
 0x8d6   : > { %v7725_v3 = vmul.f32 %v14949_v55, %v7689_v47  ;;  %v7287_v23 = vadd.f32 %v16485_v61, %v16484_v12  ;;  %v16486_v48 = vld [vmem:[#allocation51_spill] sm:$0xff] }
 0x8d7   : > { %v8503_v33 = vadd.f32 %v8433_v8, %v8301_v35 }
 0x8d8   : > { %v7761_v59 = vadd.f32 %v14959_v58, %v7725_v3  ;;  %v7489_v37 = vadd.f32 %v16486_v48, %v7287_v23  ;;  %v16487_v3 = vld [vmem:[#allocation60_spill] sm:$0xff] }
 0x8da   : > { %v7793_v21 = vmax.f32 %v7761_v59, 0.0 }
 0x8db   : > { %v8635_v39 = vpop.f32.mrf.mxu2  ;;  %v7647_v17 = vpop.f32.mrf.mxu3  ;;  %v7858_v6 = vld [vmem:[#allocation3 + $0x128] sm:$0xff] }
 0x8dc   : > { %v15272_v9 = vadd.f32 %v8635_v39, %v8503_v33  ;;  %v8234_v26 = vpop.f32.mrf.mxu0  ;;  %v7890_v15 = vld [vmem:[#allocation3 + $0x129] sm:$0xff]  ;;  %7825 = vst.msk [vmem:[#allocation3 + $0x139] sm:$0xff] %vm744_vm3, %v7793_v21  ;;  %v7690_v22 = vadd.f32 %v7647_v17, %v7488_v0  ;;  %v8436_v41 = vpop.f32.mrf.mxu1  ;;  %v15276_v10 = vpack.c.bf16 %v7858_v6, %v7857_v36  ;;  %v16489_v21 = vld [vmem:[#allocation44_spill] sm:$0xff] }
 0x8dd   : > { %v7921_v1 = vld [vmem:[#allocation3 + $0x122] sm:$0xff]  ;;  %v8302_v29 = vadd.f32 %v15120_v28, %v8234_v26  ;;  %v8338_v32 = vpack.c.bf16 %v7890_v15, %v7889_v49  ;;  %v7922_v34 = vld [vmem:[#allocation3 + $0x12a] sm:$0xff] }
 0x8de   : > { %v8540_v25 = vpack.c.bf16 %v7922_v34, %v7921_v1  ;;  %v7726_v5 = vmul.f32 %v14949_v55, %v7690_v22  ;;  %10775 = vmatmul.msk.bf16.gmra.mxu0 %vm744_vm3, %v15276_v10  ;;  %v16488_v33 = vld [vmem:[#allocation61_spill] sm:$0xff] }
 0x8df   : > { %v8504_v13 = vadd.f32 %v8436_v41, %v8302_v29  ;;  %10803 = vmatmul.msk.bf16.gmra.mxu1 %vm744_vm3, %v8338_v32  ;;  %v7086_v40 = vadd.f32 %v16488_v33, %v16487_v3 }
 0x8e0   : > { %10831 = vmatmul.msk.bf16.gmra.mxu2 %vm744_vm3, %v8540_v25  ;;  %v7762_v57 = vadd.f32 %v14959_v58, %v7726_v5  ;;  %10852 = vmatmul.msk.bf16.gmra.mxu3 %vm744_vm3, %v15115_v30 }
 0x8e1   : > { %v7288_v39 = vadd.f32 %v16489_v21, %v7086_v40 }
 0x8e2   : > { %v7794_v52 = vmax.f32 %v7762_v57, 0.0 }
 0x8e3   : > { %v8638_v18 = vpop.f32.mrf.mxu2  ;;  %v7650_v35 = vpop.f32.mrf.mxu3  ;;  %v7490_v49 = vadd.f32 %v15051_v50, %v7288_v39  ;;  %v7859_v6 = vld [vmem:[#allocation3 + $0x138] sm:$0xff] }
 0x8e4   : > { %v15289_v47 = vadd.f32 %v8638_v18, %v8504_v13  ;;  %v8236_v8 = vpop.f32.mrf.mxu0  ;;  %7826 = vst.msk [vmem:[#allocation3 + $0x141] sm:$0xff] %vm744_vm3, %v7794_v52  ;;  %v7691_v46 = vadd.f32 %v7650_v35, %v7489_v37  ;;  %v8438_v60 = vpop.f32.mrf.mxu1  ;;  %v7891_v15 = vld [vmem:[#allocation3 + $0x139] sm:$0xff]  ;;  %v16490_v37 = vld [vmem:[#allocation33_spill] sm:$0xff] }
 0x8e5   : > { %v8303_v59 = vadd.f32 %v15120_v28, %v8236_v8  ;;  %v16491_v52 = vld [vmem:[#allocation55_spill] sm:$0xff] }
 0x8e6   : > { %v7727_v0 = vmul.f32 %v14949_v55, %v7691_v46  ;;  %v7289_v18 = vadd.f32 %v16491_v52, %v16490_v37  ;;  %v11055_v37 = vld [vmem:[%s16072_s19 + $0x50] sm:$0xff]  ;;  %v11057_v52 = vld [vmem:[%s16072_s19 + $0x60] sm:$0xff] }
 0x8e7   : > { %v8505_v30 = vadd.f32 %v8438_v60, %v8303_v59  ;;  %v16492_v60 = vld [vmem:[#allocation62_spill] sm:$0xff] }
 0x8e8   : > { %v7763_v36 = vadd.f32 %v14959_v58, %v7727_v0  ;;  %v7491_v8 = vadd.f32 %v15067_v38, %v7289_v18  ;;  %v16493_v0 = vld [vmem:[#allocation37_spill] sm:$0xff]  ;;  %v11058_v38 = vld [vmem:[%s16072_s19 + $0x68] sm:$0xff] }
 0x8e9   : > { %9423 = vmatpush.bf16.msrb.mxu2 %v11058_v38  ;;  %v16495_v38 = vld [vmem:[#allocation41_spill] sm:$0xff] }
 0x8ea   : > { %v7795_v17 = vmax.f32 %v7763_v36, 0.0 }
 0x8eb   : > { %v8640_v26 = vpop.f32.mrf.mxu2  ;;  %v7652_v22 = vpop.f32.mrf.mxu3  ;;  %v7860_v41 = vld [vmem:[#allocation3 + $0x140] sm:$0xff] }
 0x8ec   : > { %v15299_v1 = vadd.f32 %v8640_v26, %v8505_v30  ;;  %v8239_v29 = vpop.f32.mrf.mxu0  ;;  %v7892_v32 = vld [vmem:[#allocation3 + $0x141] sm:$0xff]  ;;  %7827 = vst.msk [vmem:[#allocation3 + $0x151] sm:$0xff] %vm744_vm3, %v7795_v17  ;;  %v7692_v25 = vadd.f32 %v7652_v22, %v7490_v49  ;;  %v8441_v13 = vpop.f32.mrf.mxu1  ;;  %v15303_v12 = vpack.c.bf16 %v7860_v41, %v7859_v6  ;;  %v7088_v30 = vadd.f32 %v16493_v0, %v16492_v60  ;;  %v11132_v60 = vld [vmem:[%s16071_s18] ss:$0 sm:$0xff] }
 0x8ed   : > { %v7923_v34 = vld [vmem:[#allocation3 + $0x13a] sm:$0xff]  ;;  %v8304_v5 = vadd.f32 %v15120_v28, %v8239_v29  ;;  %v8339_v50 = vpack.c.bf16 %v7892_v32, %v7891_v15  ;;  %v7924_v61 = vld [vmem:[#allocation3 + $0x142] sm:$0xff]  ;;  %9424 = vmatpush.bf16.msrb.mxu2 %v11057_v52 }
 0x8ee   : > { %v8541_v23 = vpack.c.bf16 %v7924_v61, %v7923_v34  ;;  %v7728_v57 = vmul.f32 %v14949_v55, %v7692_v25  ;;  %10776 = vmatmul.msk.bf16.gmra.mxu0 %vm744_vm3, %v15303_v12  ;;  %v11060_v17 = vld [vmem:[%s16072_s19 + $0x78] sm:$0xff]  ;;  %v7290_v6 = vadd.f32 %v15072_v20, %v7088_v30 }
 0x8ef   : > { %v8506_v48 = vadd.f32 %v8441_v13, %v8304_v5  ;;  %10804 = vmatmul.msk.bf16.gmra.mxu1 %vm744_vm3, %v8339_v50  ;;  %v11056_v26 = vld [vmem:[%s16072_s19 + $0x58] sm:$0xff]  ;;  %9625 = vmatpush.bf16.msrb.mxu3 %v11060_v17 }
 0x8f0   : > { %10832 = vmatmul.msk.bf16.gmra.mxu2 %vm744_vm3, %v8541_v23  ;;  %v7764_v35 = vadd.f32 %v14959_v58, %v7728_v57  ;;  %10853 = vmatmul.msk.bf16.gmra.mxu3 %vm744_vm3, %v15146_v7 }
 0x8f1   : > { %9221 = vmatpush.bf16.msrb.mxu1 %v11056_v26 }
 0x8f2   : > { %v7796_v3 = vmax.f32 %v7764_v35, 0.0  ;;  %v11131_v35 = vld [vmem:[%s16070_s17] ss:$0 sm:$0xff] }
 0x8f3   : > { %v8643_v33 = vpop.f32.mrf.mxu2  ;;  %v7655_v46 = vpop.f32.mrf.mxu3  ;;  %v7861_v41 = vld [vmem:[#allocation3 + $0x150] sm:$0xff] }
 0x8f4   : > { %v15316_v40 = vadd.f32 %v8643_v33, %v8506_v48  ;;  %v8241_v59 = vpop.f32.mrf.mxu0  ;;  %7828 = vst.msk [vmem:[#allocation3 + $0x159] sm:$0xff] %vm744_vm3, %v7796_v3  ;;  %v7693_v21 = vadd.f32 %v7655_v46, %v7491_v8  ;;  %v8443_v36 = vpop.f32.mrf.mxu1  ;;  %v7893_v32 = vld [vmem:[#allocation3 + $0x151] sm:$0xff] }
 0x8f5   : > { %v8305_v39 = vadd.f32 %v15120_v28, %v8241_v59  ;;  %9222 = vmatpush.bf16.msrb.mxu1 %v11055_v37  ;;  %v11062_v33 = vld [vmem:[%s16072_s19 + $0x88] sm:$0xff]  ;;  %v16494_v46 = vld [vmem:[#allocation46_spill] sm:$0xff] }
 0x8f6   : > { %v7729_v49 = vmul.f32 %v14949_v55, %v7693_v21  ;;  %v7492_v55 = vadd.f32 %v15078_v11, %v7290_v6  ;;  %v7291_v59 = vadd.f32 %v15083_v62, %v16494_v46  ;;  %9827 = vmatpush.bf16.msrb.mxu0 %v11062_v33  ;;  %v7090_v62 = vadd.f32 %v15104_v44, %v16495_v38 }
 0x8f7   : > { %v8507_v7 = vadd.f32 %v8443_v36, %v8305_v39 }
 0x8f8   : > { %v7765_v15 = vadd.f32 %v14959_v58, %v7729_v49  ;;  %v7493_v30 = vadd.f32 %v15099_v4, %v7291_v59 }
 0x8fa   : > { %v7797_v22 = vmax.f32 %v7765_v15, 0.0 }
 0x8fb   : > { %v8645_v29 = vpop.f32.mrf.mxu2  ;;  %v7657_v25 = vpop.f32.mrf.mxu3  ;;  %v7862_v13 = vld [vmem:[#allocation3 + $0x158] sm:$0xff] }
 0x8fc   : > { %v15335_v34 = vadd.f32 %v8645_v29, %v8507_v7  ;;  %v8244_v5 = vpop.f32.mrf.mxu0  ;;  %v7894_v50 = vld [vmem:[#allocation3 + $0x159] sm:$0xff]  ;;  %7829 = vst.msk [vmem:[#allocation3 + $0x169] sm:$0xff] %vm744_vm3, %v7797_v22  ;;  %v7694_v20 = vadd.f32 %v7657_v25, %v7492_v55  ;;  %v8446_v23 = vpop.f32.mrf.mxu1  ;;  %v15339_v57 = vpack.c.bf16 %v7862_v13, %v7861_v41  ;;  %v7292_v55 = vadd.f32 %v15107_v45, %v7090_v62 }
 0x8fd   : > { %v7925_v61 = vld [vmem:[#allocation3 + $0x152] sm:$0xff]  ;;  %v8306_v58 = vadd.f32 %v15120_v28, %v8244_v5  ;;  %v8340_v11 = vpack.c.bf16 %v7894_v50, %v7893_v32  ;;  %v7926_v48 = vld [vmem:[#allocation3 + $0x15a] sm:$0xff] }
 0x8fe   : > { %v8542_v18 = vpack.c.bf16 %v7926_v48, %v7925_v61  ;;  %v7730_v8 = vmul.f32 %v11131_v35, %v7694_v20  ;;  %10777 = vmatmul.msk.bf16.gmra.mxu0 %vm744_vm3, %v15339_v57  ;;  %v7494_v22 = vadd.f32 %v15112_v43, %v7292_v55 }
 0x8ff   : > { %v8508_v3 = vadd.f32 %v8446_v23, %v8306_v58  ;;  %10805 = vmatmul.msk.bf16.gmra.mxu1 %vm744_vm3, %v8340_v11 }
 0x900   : > { %10833 = vmatmul.msk.bf16.gmra.mxu2 %vm744_vm3, %v8542_v18  ;;  %v7766_v0 = vadd.f32 %v11132_v60, %v7730_v8  ;;  %10854 = vmatmul.msk.bf16.gmra.mxu3 %vm744_vm3, %v15167_v31 }
 0x902   : > { %v7798_v21 = vmax.f32 %v7766_v0, 0.0 }
 0x903   : > { %v8648_v39 = vpop.f32.mrf.mxu2  ;;  %v7660_v49 = vpop.f32.mrf.mxu3  ;;  %v7863_v32 = vld [vmem:[#allocation3 + $0x168] sm:$0xff] }
 0x904   : > { %v15365_v36 = vadd.f32 %v8648_v39, %v8508_v3  ;;  %v8246_v7 = vpop.f32.mrf.mxu0  ;;  %7830 = vst.msk [vmem:[#allocation3 + $0x171] sm:$0xff] %vm744_vm3, %v7798_v21  ;;  %v7695_v17 = vadd.f32 %v7660_v49, %v7493_v30  ;;  %v8448_v6 = vpop.f32.mrf.mxu1  ;;  %v7895_v25 = vld [vmem:[#allocation3 + $0x169] sm:$0xff]  ;;  %v7962_v49 = vld [vmem:[#allocation3 + $0x21] sm:$0xff] }
 0x905   : > { %v8307_v26 = vadd.f32 %v15120_v28, %v8246_v7  ;;  %v7994_v7 = vld [vmem:[#allocation3 + $0x22] sm:$0xff] }
 0x906   : > { %v7731_v31 = vmul.f32 %v11131_v35, %v7695_v17 }
 0x907   : > { %v8509_v15 = vadd.f32 %v8448_v6, %v8307_v26  ;;  %v7961_v6 = vld [vmem:[#allocation3 + $0x19] sm:$0xff] }
 0x908   : > { %v7767_v4 = vadd.f32 %v11132_v60, %v7731_v31  ;;  %v8932_v55 = vpack.c.bf16 %v7962_v49, %v7961_v6 }
 0x90a   : > { %v7799_v29 = vmax.f32 %v7767_v4, 0.0 }
 0x90b   : > { %v8650_v41 = vpop.f32.mrf.mxu2  ;;  %v7662_v44 = vpop.f32.mrf.mxu3  ;;  %v7864_v50 = vld [vmem:[#allocation3 + $0x170] sm:$0xff] }
 0x90c   : > { %v15373_v5 = vadd.f32 %v8650_v41, %v8509_v15  ;;  %v8249_v13 = vpop.f32.mrf.mxu0  ;;  %v7896_v61 = vld [vmem:[#allocation3 + $0x171] sm:$0xff]  ;;  %7831 = vst.msk [vmem:[#allocation3 + $0x181] sm:$0xff] %vm744_vm3, %v7799_v29  ;;  %v7696_v58 = vadd.f32 %v7662_v44, %v7494_v22  ;;  %v8451_v45 = vpop.f32.mrf.mxu1  ;;  %v15377_v11 = vpack.c.bf16 %v7864_v50, %v7863_v32 }
 0x90d   : > { %v7927_v20 = vld [vmem:[#allocation3 + $0x16a] sm:$0xff]  ;;  %v8308_v23 = vadd.f32 %v15120_v28, %v8249_v13  ;;  %v15379_v43 = vpack.c.bf16 %v7896_v61, %v7895_v25  ;;  %v7928_v48 = vld [vmem:[#allocation3 + $0x172] sm:$0xff] }
 0x90e   : > { %v15381_v37 = vpack.c.bf16 %v7928_v48, %v7927_v20  ;;  %v7732_v52 = vmul.f32 %v11131_v35, %v7696_v58  ;;  %10778 = vmatmul.msk.bf16.gmra.mxu0 %vm744_vm3, %v15377_v11  ;;  %v8025_v22 = vld [vmem:[#allocation3 + $0x30] sm:$0xff]  ;;  %v7964_v58 = vld [vmem:[#allocation3 + $0x39] sm:$0xff] }
 0x90f   : > { %v8510_v18 = vadd.f32 %v8451_v45, %v8308_v23  ;;  %10806 = vmatmul.msk.bf16.gmra.mxu1 %vm744_vm3, %v15379_v43  ;;  %v7995_v23 = vld [vmem:[#allocation3 + $0x32] sm:$0xff]  ;;  %v7996_v45 = vld [vmem:[#allocation3 + $0x3a] sm:$0xff] }
 0x910   : > { %10834 = vmatmul.msk.bf16.gmra.mxu2 %vm744_vm3, %v15381_v37  ;;  %v7768_v8 = vadd.f32 %v11132_v60, %v7732_v52  ;;  %10855 = vmatmul.msk.bf16.gmra.mxu3 %vm744_vm3, %v15195_v19  ;;  %v7993_v60 = vld [vmem:[#allocation3 + $0x1a] sm:$0xff]  ;;  %v8028_v52 = vld [vmem:[#allocation3 + $0x50] sm:$0xff] }
 0x911   : > { %v8026_v19 = vld [vmem:[#allocation3 + $0x38] sm:$0xff]  ;;  %v9134_v4 = vpack.c.bf16 %v7994_v7, %v7993_v60 }
 0x912   : > { %v7800_v3 = vmax.f32 %v7768_v8, 0.0 }
 0x913   : > { %v8653_v33 = vpop.f32.mrf.mxu2  ;;  %v8820_v35 = vpop.f32.mrf.mxu3 }
 0x914   : > { %v15391_v46 = vadd.f32 %v8653_v33, %v8510_v18  ;;  %v8251_v59 = vpop.f32.mrf.mxu0  ;;  %7832 = vst.msk [vmem:[#allocation3 + $0x189] sm:$0xff] %vm744_vm3, %v7800_v3  ;;  %v8453_v30 = vpop.f32.mrf.mxu1  ;;  %v15396_v21 = vadd.f32 %v8820_v35, %v15136_v56  ;;  %v9336_v56 = vpack.c.bf16 %v8026_v19, %v8025_v22  ;;  %v7963_v3 = vld [vmem:[#allocation3 + $0x31] sm:$0xff] }
 0x915   : > { %v8309_v0 = vadd.f32 %v15120_v28, %v8251_v59 }
 0x917   : > { %v8511_v39 = vadd.f32 %v8453_v30, %v8309_v0  ;;  %v15420_v0 = vpack.c.bf16 %v7964_v58, %v7963_v3  ;;  %v8027_v30 = vld [vmem:[#allocation3 + $0x48] sm:$0xff]  ;;  %v8029_v58 = vld [vmem:[#allocation3 + $0x60] sm:$0xff] }
 0x91b   : > { %v8655_v38 = vpop.f32.mrf.mxu2  ;;  %v15400_v26 = vpop.f32.mrf.mxu3 }
 0x91c   : > { %v15398_v62 = vadd.f32 %v8655_v38, %v8511_v39  ;;  %v8254_v17 = vpop.f32.mrf.mxu0  ;;  %v8456_v15 = vpop.f32.mrf.mxu1  ;;  %v9337_v39 = vpack.c.bf16 %v8028_v52, %v8027_v30  ;;  %v7968_v30 = vld [vmem:[#allocation3 + $0x69] sm:$0xff] }
 0x91d   : > { %v8310_v31 = vadd.f32 %v15120_v28, %v8254_v17 }
 0x91e   : > { %10875 = vmatmul.msk.bf16.vlgmr.msra.gmra.mxu0 %vm744_vm3, %v8932_v55  ;;  %v7997_v55 = vld [vmem:[#allocation3 + $0x4a] sm:$0xff] }
 0x91f   : > { %v8512_v29 = vadd.f32 %v8456_v15, %v8310_v31  ;;  %10903 = vmatmul.msk.bf16.vlgmr.msrb.gmra.mxu1 %vm744_vm3, %v9134_v4  ;;  %v7966_v15 = vld [vmem:[#allocation3 + $0x51] sm:$0xff] }
 0x920   : > { %10931 = vmatmul.msk.bf16.vlgmr.msrb.gmra.mxu2 %vm744_vm3, %v9336_v56  ;;  %10856 = vmatmul.msk.bf16.gmra.mxu3 %vm744_vm3, %v15222_v2  ;;  %v7998_v4 = vld [vmem:[#allocation3 + $0x52] sm:$0xff]  ;;  %v8030_v56 = vld [vmem:[#allocation3 + $0x68] sm:$0xff] }
 0x923   : > { %v8658_v41 = vpop.f32.mrf.mxu2  ;;  %v8825_v44 = vpop.f32.mrf.mxu3 }
 0x924   : > { %v15408_v32 = vadd.f32 %v8658_v41, %v8512_v29  ;;  %v8256_v25 = vpop.f32.mrf.mxu0  ;;  %v8458_v50 = vpop.f32.mrf.mxu1  ;;  %v15412_v61 = vadd.f32 %v8825_v44, %v15208_v51  ;;  %v15422_v51 = vpack.c.bf16 %v7996_v45, %v7995_v23  ;;  %v9338_v23 = vpack.c.bf16 %v8030_v56, %v8029_v58  ;;  %v8031_v56 = vld [vmem:[#allocation3 + $0x78] sm:$0xff] }
 0x925   : > { %v8311_v13 = vadd.f32 %v15120_v28, %v8256_v25  ;;  %v7965_v25 = vld [vmem:[#allocation3 + $0x49] sm:$0xff] }
 0x926   : > { %16496 = vst [vmem:[#allocation17_spill] sm:$0xff] %v15422_v51 }
 0x927   : > { %v8513_v20 = vadd.f32 %v8458_v50, %v8311_v13 }
 0x92b   : > { %v8660_v48 = vpop.f32.mrf.mxu2  ;;  %v8827_v8 = vpop.f32.mrf.mxu3 }
 0x92c   : > { %v15414_v18 = vadd.f32 %v8660_v48, %v8513_v20  ;;  %v8259_v2 = vpop.f32.mrf.mxu0  ;;  %v8461_v59 = vpop.f32.mrf.mxu1  ;;  %v15418_v35 = vadd.f32 %v8827_v8, %v15218_v27  ;;  %v15443_v20 = vpack.c.bf16 %v7966_v15, %v7965_v25 }
 0x92d   : > { %v8312_v33 = vadd.f32 %v15120_v28, %v8259_v2 }
 0x92e   : > { %10876 = vmatmul.msk.bf16.gmra.mxu0 %vm744_vm3, %v15420_v0 }
 0x92f   : > { %v8514_v49 = vadd.f32 %v8461_v59, %v8312_v33  ;;  %10904 = vmatmul.msk.bf16.gmra.mxu1 %vm744_vm3, %v15422_v51 }
 0x930   : > { %10932 = vmatmul.msk.bf16.gmra.mxu2 %vm744_vm3, %v9337_v39  ;;  %10857 = vmatmul.msk.bf16.gmra.mxu3 %vm744_vm3, %v15249_v24  ;;  %v7999_v39 = vld [vmem:[#allocation3 + $0x62] sm:$0xff] }
 0x933   : > { %v8663_v27 = vpop.f32.mrf.mxu2  ;;  %v8830_v38 = vpop.f32.mrf.mxu3 }
 0x934   : > { %v15431_v60 = vadd.f32 %v8663_v27, %v8514_v49  ;;  %v8261_v7 = vpop.f32.mrf.mxu0  ;;  %v8463_v17 = vpop.f32.mrf.mxu1  ;;  %v15435_v6 = vadd.f32 %v8830_v38, %v15235_v54  ;;  %v15445_v54 = vpack.c.bf16 %v7998_v4, %v7997_v55  ;;  %v8000_v49 = vld [vmem:[#allocation3 + $0x6a] sm:$0xff] }
 0x935   : > { %v8313_v19 = vadd.f32 %v15120_v28, %v8261_v7  ;;  %v8032_v7 = vld [vmem:[#allocation3 + $0x80] sm:$0xff] }
 0x936   : > { %16497 = vst [vmem:[#allocation39_spill] sm:$0xff] %v15445_v54 }
 0x937   : > { %v8515_v31 = vadd.f32 %v8463_v17, %v8313_v19 }
 0x93b   : > { %v8665_v22 = vpop.f32.mrf.mxu2  ;;  %v8832_v41 = vpop.f32.mrf.mxu3 }
 0x93c   : > { %v15437_v29 = vadd.f32 %v8665_v22, %v8515_v31  ;;  %v8264_v24 = vpop.f32.mrf.mxu0  ;;  %v8466_v13 = vpop.f32.mrf.mxu1  ;;  %v15441_v50 = vadd.f32 %v8832_v41, %v15245_v16  ;;  %v7967_v31 = vld [vmem:[#allocation3 + $0x61] sm:$0xff] }
 0x93d   : > { %v8314_v44 = vadd.f32 %v15120_v28, %v8264_v24  ;;  %v15466_v22 = vpack.c.bf16 %v7968_v30, %v7967_v31  ;;  %v9339_v24 = vpack.c.bf16 %v8032_v7, %v8031_v56 }
 0x93e   : > { %10877 = vmatmul.msk.bf16.gmra.mxu0 %vm744_vm3, %v15443_v20 }
 0x93f   : > { %v8516_v45 = vadd.f32 %v8466_v13, %v8314_v44  ;;  %10905 = vmatmul.msk.bf16.gmra.mxu1 %vm744_vm3, %v15445_v54 }
 0x940   : > { %10933 = vmatmul.msk.bf16.gmra.mxu2 %vm744_vm3, %v9338_v23  ;;  %10858 = vmatmul.msk.bf16.gmra.mxu3 %vm744_vm3, %v15276_v10 }
 0x943   : > { %v8668_v16 = vpop.f32.mrf.mxu2  ;;  %v8835_v2 = vpop.f32.mrf.mxu3 }
 0x944   : > { %v15454_v48 = vadd.f32 %v8668_v16, %v8516_v45  ;;  %v8266_v52 = vpop.f32.mrf.mxu0  ;;  %v8468_v3 = vpop.f32.mrf.mxu1  ;;  %v15458_v33 = vadd.f32 %v8835_v2, %v15262_v42  ;;  %v15468_v42 = vpack.c.bf16 %v8000_v49, %v7999_v39  ;;  %v8001_v2 = vld [vmem:[#allocation3 + $0x7a] sm:$0xff] }
 0x945   : > { %v8315_v8 = vadd.f32 %v15120_v28, %v8266_v52  ;;  %v7970_v52 = vld [vmem:[#allocation3 + $0x81] sm:$0xff] }
 0x946   : > { %16498 = vst [vmem:[#allocation21_spill] sm:$0xff] %v15468_v42 }
 0x947   : > { %v8517_v59 = vadd.f32 %v8468_v3, %v8315_v8  ;;  %v8002_v8 = vld [vmem:[#allocation3 + $0x82] sm:$0xff] }
 0x94b   : > { %v8670_v27 = vpop.f32.mrf.mxu2  ;;  %v8837_v17 = vpop.f32.mrf.mxu3 }
 0x94c   : > { %v15460_v38 = vadd.f32 %v8670_v27, %v8517_v59  ;;  %v8269_v19 = vpop.f32.mrf.mxu0  ;;  %v8471_v55 = vpop.f32.mrf.mxu1  ;;  %v15464_v4 = vadd.f32 %v8837_v17, %v15272_v9  ;;  %v8034_v59 = vld [vmem:[#allocation3 + $0x98] sm:$0xff] }
 0x94d   : > { %v8316_v15 = vadd.f32 %v15120_v28, %v8269_v19  ;;  %v7969_v27 = vld [vmem:[#allocation3 + $0x79] sm:$0xff] }
 0x94e   : > { %10878 = vmatmul.msk.bf16.gmra.mxu0 %vm744_vm3, %v15466_v22  ;;  %v15489_v31 = vpack.c.bf16 %v7970_v52, %v7969_v27  ;;  %v8003_v52 = vld [vmem:[#allocation3 + $0x92] sm:$0xff] }
 0x94f   : > { %v8518_v41 = vadd.f32 %v8471_v55, %v8316_v15  ;;  %10906 = vmatmul.msk.bf16.gmra.mxu1 %vm744_vm3, %v15468_v42  ;;  %v8033_v15 = vld [vmem:[#allocation3 + $0x90] sm:$0xff] }
 0x950   : > { %10934 = vmatmul.msk.bf16.gmra.mxu2 %vm744_vm3, %v9339_v24  ;;  %10859 = vmatmul.msk.bf16.gmra.mxu3 %vm744_vm3, %v15303_v12  ;;  %v9340_v55 = vpack.c.bf16 %v8034_v59, %v8033_v15  ;;  %v7971_v27 = vld [vmem:[#allocation3 + $0x91] sm:$0xff] }
 0x953   : > { %v8673_v9 = vpop.f32.mrf.mxu2  ;;  %v8840_v13 = vpop.f32.mrf.mxu3 }
 0x954   : > { %v15477_v25 = vadd.f32 %v8673_v9, %v8518_v41  ;;  %v8271_v44 = vpop.f32.mrf.mxu0  ;;  %v8473_v23 = vpop.f32.mrf.mxu1  ;;  %v15481_v45 = vadd.f32 %v8840_v13, %v15289_v47  ;;  %v15491_v47 = vpack.c.bf16 %v8002_v8, %v8001_v2  ;;  %v15505_v9 = vld [vmem:[%s16073_s20] ss:$0 sm:$0xff]  ;;  %v8004_v2 = vld [vmem:[#allocation3 + $0x9a] sm:$0xff] }
 0x955   : > { %v8317_v58 = vadd.f32 %v15120_v28, %v8271_v44 }
 0x956   : > { %16499 = vst [vmem:[#allocation71_spill] sm:$0xff] %v15491_v47 }
 0x957   : > { %v8519_v16 = vadd.f32 %v8473_v23, %v8317_v58 }
 0x95b   : > { %v8675_v3 = vpop.f32.mrf.mxu2  ;;  %v8842_v49 = vpop.f32.mrf.mxu3 }
 0x95c   : > { %v15483_v30 = vadd.f32 %v8675_v3, %v8519_v16  ;;  %v8274_v39 = vpop.f32.mrf.mxu0  ;;  %v8476_v19 = vpop.f32.mrf.mxu1  ;;  %v15487_v17 = vadd.f32 %v8842_v49, %v15299_v1  ;;  %v7972_v16 = vld [vmem:[#allocation3 + $0x99] sm:$0xff]  ;;  %v8036_v3 = vld [vmem:[#allocation3 + $0xb0] sm:$0xff] }
 0x95d   : > { %v8318_v7 = vadd.f32 %v15120_v28, %v8274_v39 }
 0x95e   : > { %10879 = vmatmul.msk.bf16.gmra.mxu0 %vm744_vm3, %v15489_v31 }
 0x95f   : > { %v8520_v56 = vadd.f32 %v8476_v19, %v8318_v7  ;;  %10907 = vmatmul.msk.bf16.gmra.mxu1 %vm744_vm3, %v15491_v47  ;;  %v7959_v47 = vld [vmem:[#allocation3 + $0x180] sm:$0xff] }
 0x960   : > { %10935 = vmatmul.msk.bf16.gmra.mxu2 %vm744_vm3, %v9340_v55  ;;  %10860 = vmatmul.msk.bf16.gmra.mxu3 %vm744_vm3, %v15339_v57  ;;  %v15517_v55 = vpack.c.bf16 %v7972_v16, %v7971_v27 }
 0x963   : > { %v8678_v28 = vpop.f32.mrf.mxu2  ;;  %v8845_v41 = vpop.f32.mrf.mxu3 }
 0x964   : > { %v15500_v1 = vadd.f32 %v8678_v28, %v8520_v56  ;;  %v8276_v24 = vpop.f32.mrf.mxu0  ;;  %v8478_v13 = vpop.f32.mrf.mxu1  ;;  %v15509_v58 = vadd.f32 %v8845_v41, %v15316_v40  ;;  %v15519_v40 = vpack.c.bf16 %v8004_v2, %v8003_v52  ;;  %v8035_v56 = vld [vmem:[#allocation3 + $0xa8] sm:$0xff]  ;;  %v11059_v41 = vld [vmem:[%s16072_s19 + $0x70] sm:$0xff] }
 0x965   : > { %v8319_v44 = vadd.f32 %v15505_v9, %v8276_v24  ;;  %v9341_v28 = vpack.c.bf16 %v8036_v3, %v8035_v56  ;;  %9626 = vmatpush.bf16.msrb.mxu3 %v11059_v41  ;;  %v7974_v3 = vld [vmem:[#allocation3 + $0xb1] sm:$0xff]  ;;  %v7960_v41 = vld [vmem:[#allocation3 + $0x188] sm:$0xff] }
 0x966   : > { %16500 = vst [vmem:[#allocation45_spill] sm:$0xff] %v15519_v40 }
 0x967   : > { %v8521_v23 = vadd.f32 %v8478_v13, %v8319_v44 }
 0x96b   : > { %v8680_v8 = vpop.f32.mrf.mxu2  ;;  %v8847_v49 = vpop.f32.mrf.mxu3 }
 0x96c   : > { %v15511_v59 = vadd.f32 %v8680_v8, %v8521_v23  ;;  %v8279_v39 = vpop.f32.mrf.mxu0  ;;  %v8481_v19 = vpop.f32.mrf.mxu1  ;;  %v15515_v15 = vadd.f32 %v8847_v49, %v15335_v34  ;;  %v8006_v49 = vld [vmem:[#allocation3 + $0xb2] sm:$0xff] }
 0x96d   : > { %v8320_v7 = vadd.f32 %v15505_v9, %v8279_v39  ;;  %v8005_v39 = vld [vmem:[#allocation3 + $0xaa] sm:$0xff] }
 0x96e   : > { %10880 = vmatmul.msk.bf16.gmra.mxu0 %vm744_vm3, %v15517_v55 }
 0x96f   : > { %v8522_v24 = vadd.f32 %v8481_v19, %v8320_v7  ;;  %10908 = vmatmul.msk.bf16.gmra.mxu1 %vm744_vm3, %v15519_v40  ;;  %v8038_v7 = vld [vmem:[#allocation3 + $0xc8] sm:$0xff] }
 0x970   : > { %10936 = vmatmul.msk.bf16.gmra.mxu2 %vm744_vm3, %v9341_v28  ;;  %10861 = vmatmul.msk.bf16.gmra.mxu3 %vm744_vm3, %v15377_v11 }
 0x973   : > { %v8683_v34 = vpop.f32.mrf.mxu2  ;;  %v8850_v23 = vpop.f32.mrf.mxu3 }
 0x974   : > { %v15531_v44 = vadd.f32 %v8683_v34, %v8522_v24  ;;  %v8281_v13 = vpop.f32.mrf.mxu0  ;;  %v8483_v52 = vpop.f32.mrf.mxu1  ;;  %v15535_v2 = vadd.f32 %v8850_v23, %v15365_v36  ;;  %v7973_v24 = vld [vmem:[#allocation3 + $0xa9] sm:$0xff]  ;;  %v15545_v23 = vpack.c.bf16 %v8006_v49, %v8005_v39 }
 0x975   : > { %v8321_v16 = vadd.f32 %v15505_v9, %v8281_v13  ;;  %v15543_v36 = vpack.c.bf16 %v7974_v3, %v7973_v24  ;;  %v8007_v24 = vld [vmem:[#allocation3 + $0xc2] sm:$0xff] }
 0x976   : > { %16501 = vst [vmem:[#allocation56_spill] sm:$0xff] %v15545_v23 }
 0x977   : > { %v8523_v8 = vadd.f32 %v8483_v52, %v8321_v16  ;;  %v8037_v16 = vld [vmem:[#allocation3 + $0xc0] sm:$0xff] }
 0x978   : > { %v9342_v52 = vpack.c.bf16 %v8038_v7, %v8037_v16  ;;  %v8040_v16 = vld [vmem:[#allocation3 + $0xe0] sm:$0xff] }
 0x97b   : > { %v8685_v27 = vpop.f32.mrf.mxu2  ;;  %v8852_v28 = vpop.f32.mrf.mxu3 }
 0x97c   : > { %v15537_v19 = vadd.f32 %v8685_v27, %v8523_v8  ;;  %v8284_v56 = vpop.f32.mrf.mxu0  ;;  %v8486_v40 = vpop.f32.mrf.mxu1  ;;  %v15541_v13 = vadd.f32 %v8852_v28, %v15373_v5  ;;  %v15551_v8 = vpack.c.bf16 %v7960_v41, %v7959_v47  ;;  %v11061_v5 = vld [vmem:[%s16072_s19 + $0x80] sm:$0xff] }
 0x97d   : > { %v8322_v34 = vadd.f32 %v15505_v9, %v8284_v56  ;;  %9828 = vmatpush.bf16.msrb.mxu0 %v11061_v5  ;;  %v7976_v28 = vld [vmem:[#allocation3 + $0xc9] sm:$0xff] }
 0x97e   : > { %10881 = vmatmul.msk.bf16.gmra.mxu0 %vm744_vm3, %v15543_v36  ;;  %v8008_v41 = vld [vmem:[#allocation3 + $0xca] sm:$0xff] }
 0x97f   : > { %v8524_v42 = vadd.f32 %v8486_v40, %v8322_v34  ;;  %10909 = vmatmul.msk.bf16.gmra.mxu1 %vm744_vm3, %v15545_v23 }
 0x980   : > { %10937 = vmatmul.msk.bf16.gmra.mxu2 %vm744_vm3, %v9342_v52  ;;  %10862 = vmatmul.msk.bf16.gmra.mxu3 %vm744_vm3, %v15551_v8 }
 0x983   : > { %v8688_v3 = vpop.f32.mrf.mxu2  ;;  %v8855_v49 = vpop.f32.mrf.mxu3 }
 0x984   : > { %v15559_v40 = vadd.f32 %v8688_v3, %v8524_v42  ;;  %v8286_v39 = vpop.f32.mrf.mxu0  ;;  %v8488_v7 = vpop.f32.mrf.mxu1  ;;  %v15563_v47 = vadd.f32 %v8855_v49, %v15391_v46  ;;  %v7975_v42 = vld [vmem:[#allocation3 + $0xc1] sm:$0xff]  ;;  %v15573_v46 = vpack.c.bf16 %v8008_v41, %v8007_v24  ;;  %v8039_v49 = vld [vmem:[#allocation3 + $0xd8] sm:$0xff] }
 0x985   : > { %v8323_v27 = vadd.f32 %v15505_v9, %v8286_v39  ;;  %v15571_v51 = vpack.c.bf16 %v7976_v28, %v7975_v42  ;;  %v8009_v42 = vld [vmem:[#allocation3 + $0xda] sm:$0xff] }
 0x986   : > { %16503 = vst [vmem:[#allocation57_spill] sm:$0xff] %v15573_v46 }
 0x987   : > { %v8525_v56 = vadd.f32 %v8488_v7, %v8323_v27  ;;  %v9343_v27 = vpack.c.bf16 %v8040_v16, %v8039_v49  ;;  %v8295_v16 = vadd.f32 %v15505_v9, %v15180_v53 }
 0x98b   : > { %v8690_v34 = vpop.f32.mrf.mxu2  ;;  %v8857_v23 = vpop.f32.mrf.mxu3 }
 0x98c   : > { %v15565_v52 = vadd.f32 %v8690_v34, %v8525_v56  ;;  %v8289_v5 = vpop.f32.mrf.mxu0  ;;  %v8491_v54 = vpop.f32.mrf.mxu1  ;;  %v15569_v39 = vadd.f32 %v8857_v23, %v15398_v62 }
 0x98d   : > { %v8324_v3 = vadd.f32 %v15505_v9, %v8289_v5  ;;  %v7978_v5 = vld [vmem:[#allocation3 + $0xe1] sm:$0xff] }
 0x98e   : > { %16502 = vst [vmem:[#allocation27_spill] sm:$0xff] %v15569_v39  ;;  %10882 = vmatmul.msk.bf16.gmra.mxu0 %vm744_vm3, %v15571_v51 }
 0x98f   : > { %v8526_v7 = vadd.f32 %v8491_v54, %v8324_v3  ;;  %10910 = vmatmul.msk.bf16.gmra.mxu1 %vm744_vm3, %v15573_v46  ;;  %v8010_v3 = vld [vmem:[#allocation3 + $0xe2] sm:$0xff] }
 0x990   : > { %10938 = vmatmul.msk.bf16.gmra.mxu2 %vm744_vm3, %v9343_v27  ;;  %10959 = vmatmul.msk.bf16.vlgmr.msrb.gmra.mxu3 %vm744_vm3, %v15420_v0  ;;  %v8042_v0 = vld [vmem:[#allocation3 + $0xf8] sm:$0xff]  ;;  %v8497_v27 = vadd.f32 %v15185_v63, %v8295_v16  ;;  %v15599_v53 = vpack.c.bf16 %v8010_v3, %v8009_v42 }
 0x992   : > { %v8699_v63 = vadd.f32 %v15191_v14, %v8497_v27  ;;  %v8044_v27 = vld [vmem:[#allocation3 + $0x110] sm:$0xff] }
 0x993   : > { %v8693_v62 = vpop.f32.mrf.mxu2  ;;  %v8860_v28 = vpop.f32.mrf.mxu3 }
 0x994   : > { %v15582_v23 = vadd.f32 %v8693_v62, %v8526_v7  ;;  %v8291_v56 = vpop.f32.mrf.mxu0  ;;  %v8493_v41 = vpop.f32.mrf.mxu1  ;;  %v15586_v54 = vadd.f32 %v8860_v28, %v15408_v32 }
 0x995   : > { %v8325_v24 = vadd.f32 %v15505_v9, %v8291_v56  ;;  %v7977_v56 = vld [vmem:[#allocation3 + $0xd9] sm:$0xff]  ;;  %v8041_v9 = vld [vmem:[#allocation3 + $0xf0] sm:$0xff] }
 0x996   : > { %16504 = vst [vmem:[#allocation58_spill] sm:$0xff] %v15586_v54 }
 0x997   : > { %v8527_v34 = vadd.f32 %v8493_v41, %v8325_v24  ;;  %v15597_v24 = vpack.c.bf16 %v7978_v5, %v7977_v56  ;;  %v9344_v41 = vpack.c.bf16 %v8042_v0, %v8041_v9  ;;  %v7980_v0 = vld [vmem:[#allocation3 + $0xf9] sm:$0xff] }
 0x998   : > { %v8012_v56 = vld [vmem:[#allocation3 + $0xfa] sm:$0xff] }
 0x99b   : > { %v8695_v49 = vpop.f32.mrf.mxu2  ;;  %v8862_v62 = vpop.f32.mrf.mxu3 }
 0x99c   : > { %v15591_v7 = vadd.f32 %v8695_v49, %v8527_v34  ;;  %v9022_v46 = vpop.f32.mrf.mxu0  ;;  %v15594_v39 = vadd.f32 %v8862_v62, %v15414_v18  ;;  %v9224_v28 = vpop.f32.mrf.mxu1  ;;  %v8011_v62 = vld [vmem:[#allocation3 + $0xf2] sm:$0xff] }
 0x99d   : > { %v9102_v32 = vadd.f32 %v9022_v46, %v15396_v21  ;;  %v8901_v21 = vadd.f32 %v15400_v26, %v8699_v63  ;;  %v15623_v63 = vpack.c.bf16 %v8012_v56, %v8011_v62  ;;  %v7982_v56 = vld [vmem:[#allocation3 + $0x111] sm:$0xff] }
 0x99e   : > { %10883 = vmatmul.msk.bf16.gmra.mxu0 %vm744_vm3, %v15597_v24 }
 0x99f   : > { %v9304_v54 = vadd.f32 %v9224_v28, %v9102_v32  ;;  %10911 = vmatmul.msk.bf16.gmra.mxu1 %vm744_vm3, %v15599_v53  ;;  %v7979_v28 = vld [vmem:[#allocation3 + $0xf1] sm:$0xff] }
 0x9a0   : > { %10939 = vmatmul.msk.bf16.gmra.mxu2 %vm744_vm3, %v9344_v41  ;;  %10960 = vmatmul.msk.bf16.gmra.mxu3 %vm744_vm3, %v15443_v20  ;;  %v15621_v41 = vpack.c.bf16 %v7980_v0, %v7979_v28 }
 0x9a3   : > { %v9426_v18 = vpop.f32.mrf.mxu2  ;;  %v8865_v34 = vpop.f32.mrf.mxu3 }
 0x9a4   : > { %v15610_v46 = vadd.f32 %v9426_v18, %v9304_v54  ;;  %v9024_v16 = vpop.f32.mrf.mxu0  ;;  %v15613_v5 = vadd.f32 %v8865_v34, %v15431_v60  ;;  %v9226_v3 = vpop.f32.mrf.mxu1 }
 0x9a5   : > { %v9103_v42 = vadd.f32 %v9024_v16, %v8901_v21  ;;  %v8043_v21 = vld [vmem:[#allocation3 + $0x108] sm:$0xff] }
 0x9a6   : > { %v9345_v18 = vpack.c.bf16 %v8044_v27, %v8043_v21  ;;  %v8014_v27 = vld [vmem:[#allocation3 + $0x112] sm:$0xff] }
 0x9a7   : > { %v9305_v49 = vadd.f32 %v9226_v3, %v9103_v42 }
 0x9ab   : > { %v9428_v14 = vpop.f32.mrf.mxu2  ;;  %v8867_v20 = vpop.f32.mrf.mxu3 }
 0x9ac   : > { %v15615_v32 = vadd.f32 %v9428_v14, %v9305_v49  ;;  %v9027_v26 = vpop.f32.mrf.mxu0  ;;  %v15618_v54 = vadd.f32 %v8867_v20, %v15437_v29  ;;  %v9229_v60 = vpop.f32.mrf.mxu1  ;;  %v8013_v14 = vld [vmem:[#allocation3 + $0x10a] sm:$0xff] }
 0x9ad   : > { %v9104_v9 = vadd.f32 %v9027_v26, %v15412_v61 }
 0x9ae   : > { %10884 = vmatmul.msk.bf16.gmra.mxu0 %vm744_vm3, %v15621_v41 }
 0x9af   : > { %v9306_v34 = vadd.f32 %v9229_v60, %v9104_v9  ;;  %10912 = vmatmul.msk.bf16.gmra.mxu1 %vm744_vm3, %v15623_v63  ;;  %v7981_v9 = vld [vmem:[#allocation3 + $0x109] sm:$0xff] }
 0x9b0   : > { %10940 = vmatmul.msk.bf16.gmra.mxu2 %vm744_vm3, %v9345_v18  ;;  %10961 = vmatmul.msk.bf16.gmra.mxu3 %vm744_vm3, %v15466_v22  ;;  %v15644_v18 = vpack.c.bf16 %v7982_v56, %v7981_v9  ;;  %v7984_v56 = vld [vmem:[#allocation3 + $0x129] sm:$0xff] }
 0x9b3   : > { %v9431_v61 = vpop.f32.mrf.mxu2  ;;  %v8870_v16 = vpop.f32.mrf.mxu3 }
 0x9b4   : > { %v15632_v29 = vadd.f32 %v9431_v61, %v9306_v34  ;;  %v9029_v42 = vpop.f32.mrf.mxu0  ;;  %v15635_v3 = vadd.f32 %v8870_v16, %v15454_v48  ;;  %v9231_v0 = vpop.f32.mrf.mxu1 }
 0x9b5   : > { %v9105_v49 = vadd.f32 %v9029_v42, %v15418_v35  ;;  %v15646_v35 = vpack.c.bf16 %v8014_v27, %v8013_v14  ;;  %v8015_v14 = vld [vmem:[#allocation3 + $0x122] sm:$0xff]  ;;  %v8016_v27 = vld [vmem:[#allocation3 + $0x12a] sm:$0xff] }
 0x9b7   : > { %v9307_v62 = vadd.f32 %v9231_v0, %v9105_v49 }
 0x9bb   : > { %v9433_v20 = vpop.f32.mrf.mxu2  ;;  %v8872_v28 = vpop.f32.mrf.mxu3 }
 0x9bc   : > { %v15638_v26 = vadd.f32 %v9433_v20, %v9307_v62  ;;  %v9032_v22 = vpop.f32.mrf.mxu0  ;;  %v15641_v60 = vadd.f32 %v8872_v28, %v15460_v38  ;;  %v9234_v48 = vpop.f32.mrf.mxu1 }
 0x9bd   : > { %v9106_v21 = vadd.f32 %v9032_v22, %v15435_v6  ;;  %v7983_v22 = vld [vmem:[#allocation3 + $0x121] sm:$0xff] }
 0x9be   : > { %10885 = vmatmul.msk.bf16.gmra.mxu0 %vm744_vm3, %v15644_v18 }
 0x9bf   : > { %v9308_v34 = vadd.f32 %v9234_v48, %v9106_v21  ;;  %10913 = vmatmul.msk.bf16.gmra.mxu1 %vm744_vm3, %v15646_v35  ;;  %v15668_v48 = vpack.c.bf16 %v7984_v56, %v7983_v22  ;;  %v7986_v56 = vld [vmem:[#allocation3 + $0x141] sm:$0xff] }
 0x9c0   : > { %10941 = vmatmul.msk.bf16.gmra.mxu2 %vm744_vm3, %v15276_v10  ;;  %10962 = vmatmul.msk.bf16.gmra.mxu3 %vm744_vm3, %v15489_v31 }
 0x9c3   : > { %v9436_v38 = vpop.f32.mrf.mxu2  ;;  %v8875_v61 = vpop.f32.mrf.mxu3 }
 0x9c4   : > { %v15656_v6 = vadd.f32 %v9436_v38, %v9308_v34  ;;  %v9034_v16 = vpop.f32.mrf.mxu0  ;;  %v15659_v42 = vadd.f32 %v8875_v61, %v15477_v25  ;;  %v9236_v0 = vpop.f32.mrf.mxu1 }
 0x9c5   : > { %v9107_v49 = vadd.f32 %v9034_v16, %v15441_v50  ;;  %v15670_v50 = vpack.c.bf16 %v8016_v27, %v8015_v14  ;;  %v8017_v14 = vld [vmem:[#allocation3 + $0x13a] sm:$0xff]  ;;  %v8018_v27 = vld [vmem:[#allocation3 + $0x142] sm:$0xff] }
 0x9c7   : > { %v9309_v62 = vadd.f32 %v9236_v0, %v9107_v49 }
 0x9cb   : > { %v9438_v20 = vpop.f32.mrf.mxu2  ;;  %v8877_v28 = vpop.f32.mrf.mxu3 }
 0x9cc   : > { %v15662_v10 = vadd.f32 %v9438_v20, %v9309_v62  ;;  %v9037_v31 = vpop.f32.mrf.mxu0  ;;  %v15665_v9 = vadd.f32 %v8877_v28, %v15483_v30  ;;  %v9239_v25 = vpop.f32.mrf.mxu1 }
 0x9cd   : > { %v9108_v21 = vadd.f32 %v9037_v31, %v15458_v33  ;;  %v7985_v31 = vld [vmem:[#allocation3 + $0x139] sm:$0xff] }
 0x9ce   : > { %10886 = vmatmul.msk.bf16.gmra.mxu0 %vm744_vm3, %v15668_v48 }
 0x9cf   : > { %v9310_v34 = vadd.f32 %v9239_v25, %v9108_v21  ;;  %10914 = vmatmul.msk.bf16.gmra.mxu1 %vm744_vm3, %v15670_v50 }
 0x9d0   : > { %10942 = vmatmul.msk.bf16.gmra.mxu2 %vm744_vm3, %v15303_v12  ;;  %10963 = vmatmul.msk.bf16.gmra.mxu3 %vm744_vm3, %v15517_v55 }
 0x9d3   : > { %v9441_v30 = vpop.f32.mrf.mxu2  ;;  %v8880_v38 = vpop.f32.mrf.mxu3 }
 0x9d4   : > { %v15680_v33 = vadd.f32 %v9441_v30, %v9310_v34  ;;  %v9039_v61 = vpop.f32.mrf.mxu0  ;;  %v15683_v16 = vadd.f32 %v8880_v38, %v15500_v1  ;;  %v9241_v0 = vpop.f32.mrf.mxu1  ;;  %v15694_v1 = vpack.c.bf16 %v7986_v56, %v7985_v31  ;;  %v7988_v30 = vld [vmem:[#allocation3 + $0x159] sm:$0xff]  ;;  %v8023_v31 = vld [vmem:[#allocation3 + $0x182] sm:$0xff] }
 0x9d5   : > { %v9109_v49 = vadd.f32 %v9039_v61, %v15464_v4  ;;  %v15696_v4 = vpack.c.bf16 %v8018_v27, %v8017_v14  ;;  %v8019_v38 = vld [vmem:[#allocation3 + $0x152] sm:$0xff]  ;;  %v8020_v61 = vld [vmem:[#allocation3 + $0x15a] sm:$0xff] }
 0x9d6   : > { %v15720_v14 = vpack.c.bf16 %v8020_v61, %v8019_v38 }
 0x9d7   : > { %v9311_v62 = vadd.f32 %v9241_v0, %v9109_v49 }
 0x9db   : > { %v9443_v20 = vpop.f32.mrf.mxu2  ;;  %v8882_v28 = vpop.f32.mrf.mxu3 }
 0x9dc   : > { %v15686_v12 = vadd.f32 %v9443_v20, %v9311_v62  ;;  %v9042_v55 = vpop.f32.mrf.mxu0  ;;  %v15689_v22 = vadd.f32 %v8882_v28, %v15511_v59  ;;  %v7987_v62 = vld [vmem:[#allocation3 + $0x151] sm:$0xff] }
 0x9dd   : > { %v15692_v21 = vadd.f32 %v9042_v55, %v15481_v45 }
 0x9de   : > { %10887 = vmatmul.msk.bf16.gmra.mxu0 %vm744_vm3, %v15694_v1 }
 0x9df   : > { %10915 = vmatmul.msk.bf16.gmra.mxu1 %vm744_vm3, %v15696_v4 }
 0x9e0   : > { %10943 = vmatmul.msk.bf16.gmra.mxu2 %vm744_vm3, %v15339_v57  ;;  %10964 = vmatmul.msk.bf16.gmra.mxu3 %vm744_vm3, %v15543_v36  ;;  %v15718_v36 = vpack.c.bf16 %v7988_v30, %v7987_v62  ;;  %v7991_v30 = vld [vmem:[#allocation3 + $0x181] sm:$0xff] }
 0x9e3   : > { %v8885_v59 = vpop.f32.mrf.mxu3 }
 0x9e4   : > { %v9044_v25 = vpop.f32.mrf.mxu0  ;;  %v15707_v45 = vadd.f32 %v8885_v59, %v15531_v44  ;;  %v8024_v59 = vld [vmem:[#allocation3 + $0x18a] sm:$0xff] }
 0x9e5   : > { %v15710_v34 = vadd.f32 %v9044_v25, %v15487_v17  ;;  %v15762_v61 = vpack.c.bf16 %v8024_v59, %v8023_v31  ;;  %v16508_v59 = vld [vmem:[#allocation39_spill] sm:$0xff] }
 0x9eb   : > { %v8887_v49 = vpop.f32.mrf.mxu3 }
 0x9ec   : > { %v9047_v0 = vpop.f32.mrf.mxu0  ;;  %v15713_v56 = vadd.f32 %v8887_v49, %v15537_v19 }
 0x9ed   : > { %v15716_v57 = vadd.f32 %v9047_v0, %v15509_v58 }
 0x9ee   : > { %10888 = vmatmul.msk.bf16.gmra.mxu0 %vm744_vm3, %v15718_v36 }
 0x9ef   : > { %10916 = vmatmul.msk.bf16.gmra.mxu1 %vm744_vm3, %v15720_v14 }
 0x9f0   : > { %10944 = vmatmul.msk.bf16.gmra.mxu2 %vm744_vm3, %v15377_v11  ;;  %10965 = vmatmul.msk.bf16.gmra.mxu3 %vm744_vm3, %v15571_v51 }
 0x9f3   : > { %v8890_v17 = vpop.f32.mrf.mxu3 }
 0x9f4   : > { %v9049_v44 = vpop.f32.mrf.mxu0  ;;  %v15731_v58 = vadd.f32 %v8890_v17, %v15559_v40  ;;  %v8055_v40 = vld [vmem:[#allocation3 + $0x198] sm:$0xff] }
 0x9f5   : > { %v15734_v19 = vadd.f32 %v9049_v44, %v15515_v15  ;;  %v16506_v44 = vld [vmem:[#allocation58_spill] sm:$0xff] }
 0x9fb   : > { %v8892_v27 = vpop.f32.mrf.mxu3 }
 0x9fc   : > { %v9052_v20 = vpop.f32.mrf.mxu0  ;;  %v15737_v28 = vadd.f32 %v8892_v27, %v15565_v52  ;;  %v8056_v52 = vld [vmem:[#allocation3 + $0x1a0] sm:$0xff] }
 0x9fd   : > { %v15740_v55 = vadd.f32 %v9052_v20, %v15535_v2 }
 0x9fe   : > { %10889 = vmatmul.msk.bf16.gmra.mxu0 %vm744_vm3, %v15379_v43  ;;  %v7992_v43 = vld [vmem:[#allocation3 + $0x189] sm:$0xff] }
 0x9ff   : > { %10917 = vmatmul.msk.bf16.gmra.mxu1 %vm744_vm3, %v15381_v37 }
 0xa00   : > { %10945 = vmatmul.msk.bf16.gmra.mxu2 %vm744_vm3, %v15551_v8  ;;  %10966 = vmatmul.msk.bf16.gmra.mxu3 %vm744_vm3, %v15597_v24  ;;  %v9351_v8 = vpack.c.bf16 %v8056_v52, %v8055_v40 }
 0xa03   : > { %v8895_v11 = vpop.f32.mrf.mxu3 }
 0xa04   : > { %v9054_v51 = vpop.f32.mrf.mxu0  ;;  %v15751_v15 = vadd.f32 %v8895_v11, %v15582_v23  ;;  %v8947_v23 = vpack.c.bf16 %v7992_v43, %v7991_v30  ;;  %v16507_v11 = vld [vmem:[#allocation17_spill] sm:$0xff] }
 0xa05   : > { %v15754_v2 = vadd.f32 %v9054_v51, %v15541_v13 }
 0xa0b   : > { %v8897_v37 = vpop.f32.mrf.mxu3 }
 0xa0c   : > { %v9057_v25 = vpop.f32.mrf.mxu0  ;;  %v15757_v38 = vadd.f32 %v8897_v37, %v15591_v7  ;;  %v16505_v7 = vld [vmem:[#allocation27_spill] sm:$0xff] }
 0xa0d   : > { %v15760_v24 = vadd.f32 %v9057_v25, %v15563_v47 }
 0xa0e   : > { %10890 = vmatmul.msk.bf16.gmra.mxu0 %vm744_vm3, %v8947_v23 }
 0xa0f   : > { %10918 = vmatmul.msk.bf16.gmra.mxu1 %vm744_vm3, %v15762_v61 }
 0xa10   : > { %10946 = vmatmul.msk.bf16.gmra.mxu2 %vm744_vm3, %v9351_v8  ;;  %10967 = vmatmul.msk.bf16.gmra.mxu3 %vm744_vm3, %v15621_v41  ;;  %v16509_v8 = vld [vmem:[#allocation21_spill] sm:$0xff] }
 0xa13   : > { %v9628_v49 = vpop.f32.mrf.mxu3 }
 0xa14   : > { %v9059_v13 = vpop.f32.mrf.mxu0  ;;  %v15774_v47 = vadd.f32 %v9628_v49, %v15610_v46 }
 0xa15   : > { %v15771_v0 = vadd.f32 %v9059_v13, %v16505_v7 }
 0xa1b   : > { %v9630_v17 = vpop.f32.mrf.mxu3 }
 0xa1c   : > { %v9062_v62 = vpop.f32.mrf.mxu0  ;;  %v15780_v20 = vadd.f32 %v9630_v17, %v15615_v32  ;;  %v8084_v17 = vld [vmem:[#allocation3 + $0x171] sm:$0xff] }
 0xa1d   : > { %v15777_v27 = vadd.f32 %v9062_v62, %v16506_v44  ;;  %v16510_v62 = vld [vmem:[#allocation71_spill] sm:$0xff] }
 0xa1e   : > { %10987 = vmatmul.msk.bf16.vlgmr.msrb.gmra.mxu0 %vm744_vm3, %v16507_v11  ;;  %v16511_v11 = vld [vmem:[#allocation45_spill] sm:$0xff] }
 0xa20   : > { %10968 = vmatmul.msk.bf16.gmra.mxu3 %vm744_vm3, %v15644_v18 }
 0xa23   : > { %v9633_v51 = vpop.f32.mrf.mxu3 }
 0xa24   : > { %v9064_v41 = vpop.f32.mrf.mxu0  ;;  %v15790_v46 = vadd.f32 %v9633_v51, %v15632_v29 }
 0xa25   : > { %v15787_v40 = vadd.f32 %v9064_v41, %v15594_v39 }
 0xa2b   : > { %v9635_v43 = vpop.f32.mrf.mxu3 }
 0xa2c   : > { %v9067_v52 = vpop.f32.mrf.mxu0  ;;  %v15796_v32 = vadd.f32 %v9635_v43, %v15638_v26 }
 0xa2d   : > { %v15793_v31 = vadd.f32 %v9067_v52, %v15613_v5  ;;  %v16512_v52 = vld [vmem:[#allocation56_spill] sm:$0xff] }
 0xa2e   : > { %10988 = vmatmul.msk.bf16.gmra.mxu0 %vm744_vm3, %v16508_v59  ;;  %v8087_v59 = vld [vmem:[#allocation3 + $0x199] sm:$0xff] }
 0xa30   : > { %10969 = vmatmul.msk.bf16.gmra.mxu3 %vm744_vm3, %v15668_v48 }
 0xa33   : > { %v9638_v39 = vpop.f32.mrf.mxu3 }
 0xa34   : > { %v9069_v18 = vpop.f32.mrf.mxu0  ;;  %v15806_v29 = vadd.f32 %v9638_v39, %v15656_v6 }
 0xa35   : > { %v15803_v37 = vadd.f32 %v9069_v18, %v15618_v54  ;;  %v8088_v18 = vld [vmem:[#allocation3 + $0x1a1] sm:$0xff] }
 0xa3b   : > { %v9640_v5 = vpop.f32.mrf.mxu3 }
 0xa3c   : > { %v9072_v25 = vpop.f32.mrf.mxu0  ;;  %v15812_v26 = vadd.f32 %v9640_v5, %v15662_v10 }
 0xa3d   : > { %v15809_v30 = vadd.f32 %v9072_v25, %v15635_v3  ;;  %v9553_v25 = vpack.c.bf16 %v8088_v18, %v8087_v59 }
 0xa3e   : > { %10989 = vmatmul.msk.bf16.gmra.mxu0 %vm744_vm3, %v16509_v8 }
 0xa40   : > { %10970 = vmatmul.msk.bf16.gmra.mxu3 %vm744_vm3, %v15694_v1 }
 0xa43   : > { %v9643_v54 = vpop.f32.mrf.mxu3 }
 0xa44   : > { %v9074_v48 = vpop.f32.mrf.mxu0  ;;  %v15822_v6 = vadd.f32 %v9643_v54, %v15680_v33 }
 0xa45   : > { %v15819_v13 = vadd.f32 %v9074_v48, %v15641_v60 }
 0xa4b   : > { %v9645_v3 = vpop.f32.mrf.mxu3 }
 0xa4c   : > { %v9077_v49 = vpop.f32.mrf.mxu0  ;;  %v15828_v10 = vadd.f32 %v9645_v3, %v15686_v12  ;;  %v16514_v3 = vld [vmem:[#allocation64_spill] sm:$0xff] }
 0xa4d   : > { %v15825_v7 = vadd.f32 %v9077_v49, %v15659_v42  ;;  %v8083_v42 = vld [vmem:[#allocation3 + $0x169] sm:$0xff] }
 0xa4e   : > { %10990 = vmatmul.msk.bf16.gmra.mxu0 %vm744_vm3, %v16510_v62  ;;  %v9551_v12 = vpack.c.bf16 %v8084_v17, %v8083_v42  ;;  %v16515_v62 = vld [vmem:[#allocation66_spill] sm:$0xff]  ;;  %v16516_v42 = vld [vmem:[#allocation49_spill] sm:$0xff] }
 0xa50   : > { %10971 = vmatmul.msk.bf16.gmra.mxu3 %vm744_vm3, %v15718_v36 }
 0xa54   : > { %v9079_v1 = vpop.f32.mrf.mxu0 }
 0xa55   : > { %v15835_v60 = vadd.f32 %v9079_v1, %v15665_v9 }
 0xa5c   : > { %v9082_v33 = vpop.f32.mrf.mxu0 }
 0xa5d   : > { %v15838_v44 = vadd.f32 %v9082_v33, %v15683_v16  ;;  %v9648_v33 = vpop.f32.mrf.mxu3 }
 0xa5e   : > { %10991 = vmatmul.msk.bf16.gmra.mxu0 %vm744_vm3, %v16511_v11 }
 0xa60   : > { %10972 = vmatmul.msk.bf16.gmra.mxu3 %vm744_vm3, %v9551_v12 }
 0xa64   : > { %v9084_v41 = vpop.f32.mrf.mxu0 }
 0xa65   : > { %v15844_v51 = vadd.f32 %v9084_v41, %v15689_v22  ;;  %v9650_v41 = vpop.f32.mrf.mxu3 }
 0xa6c   : > { %v9087_v36 = vpop.f32.mrf.mxu0 }
 0xa6d   : > { %v15847_v9 = vadd.f32 %v9087_v36, %v15707_v45  ;;  %v16513_v45 = vld [vmem:[#allocation57_spill] sm:$0xff] }
 0xa6e   : > { %10992 = vmatmul.msk.bf16.gmra.mxu0 %vm744_vm3, %v16512_v52 }
 0xa70   : > { %10973 = vmatmul.msk.bf16.gmra.mxu3 %vm744_vm3, %v8947_v23 }
 0xa74   : > { %v9089_v16 = vpop.f32.mrf.mxu0 }
 0xa75   : > { %v15853_v43 = vadd.f32 %v9089_v16, %v15713_v56  ;;  %v16517_v16 = vld [vmem:[#allocation15_spill] sm:$0xff] }
 0xa7c   : > { %v9092_v39 = vpop.f32.mrf.mxu0 }
 0xa7d   : > { %v15856_v22 = vadd.f32 %v9092_v39, %v15731_v58 }
 0xa7e   : > { %10993 = vmatmul.msk.bf16.gmra.mxu0 %vm744_vm3, %v16513_v45  ;;  %v16518_v45 = vld [vmem:[#allocation23_spill] sm:$0xff] }
 0xa80   : > { %10974 = vmatmul.msk.bf16.gmra.mxu3 %vm744_vm3, %v9553_v25 }
 0xa84   : > { %v9094_v5 = vpop.f32.mrf.mxu0 }
 0xa85   : > { %v15862_v23 = vadd.f32 %v9094_v5, %v15737_v28 }
 0xa8c   : > { %v9097_v8 = vpop.f32.mrf.mxu0 }
 0xa8d   : > { %v15865_v56 = vadd.f32 %v9097_v8, %v15751_v15 }
 0xa8e   : > { %10994 = vmatmul.msk.bf16.gmra.mxu0 %vm744_vm3, %v15599_v53 }
 0xa94   : > { %v9099_v48 = vpop.f32.mrf.mxu0 }
 0xa95   : > { %v15870_v58 = vadd.f32 %v9099_v48, %v15757_v38  ;;  %v9244_v38 = vpop.f32.mrf.mxu1 }
 0xa9c   : > { %v9830_v54 = vpop.f32.mrf.mxu0 }
 0xa9d   : > { %v9910_v49 = vadd.f32 %v9830_v54, %v15774_v47  ;;  %v9446_v47 = vpop.f32.mrf.mxu2  ;;  %v9246_v12 = vpop.f32.mrf.mxu1 }
 0xa9e   : > { %10995 = vmatmul.msk.bf16.gmra.mxu0 %vm744_vm3, %v15623_v63 }
 0xa9f   : > { %v9942_v28 = vadd.f32 %v9910_v49, %v16514_v3  ;;  %v16519_v49 = vld [vmem:[#allocation35_spill] sm:$0xff] }
 0xaa1   : > { %9974 = vst.msk [vmem:[%s15879_s2] sm:$0xff] %vm744_vm3, %v9942_v28 }
 0xaa4   : > { %v9832_v53 = vpop.f32.mrf.mxu0 }
 0xaa5   : > { %v9911_v15 = vadd.f32 %v9832_v53, %v15780_v20  ;;  %v9448_v20 = vpop.f32.mrf.mxu2 }
 0xaa7   : > { %v9943_v1 = vadd.f32 %v9911_v15, %v16515_v62  ;;  %v16520_v62 = vld [vmem:[#allocation72_spill] sm:$0xff] }
 0xaa9   : > { %9975 = vst.msk [vmem:[%s15879_s2 + $0x8] sm:$0xff] %vm744_vm3, %v9943_v1 }
 0xaac   : > { %v9835_v17 = vpop.f32.mrf.mxu0 }
 0xaad   : > { %v9912_v63 = vadd.f32 %v9835_v17, %v15790_v46  ;;  %v9249_v46 = vpop.f32.mrf.mxu1  ;;  %v9451_v18 = vpop.f32.mrf.mxu2 }
 0xaae   : > { %10996 = vmatmul.msk.bf16.gmra.mxu0 %vm744_vm3, %v15646_v35  ;;  %v9653_v35 = vpop.f32.mrf.mxu3 }
 0xaaf   : > { %v9944_v11 = vadd.f32 %v9912_v63, %v16516_v42  ;;  %v9312_v42 = vadd.f32 %v9244_v38, %v15692_v21 }
 0xab1   : > { %9976 = vst.msk [vmem:[%s15879_s2 + $0x10] sm:$0xff] %vm744_vm3, %v9944_v11  ;;  %v16521_v11 = vld [vmem:[#allocation43_spill] sm:$0xff] }
 0xab4   : > { %v9837_v36 = vpop.f32.mrf.mxu0 }
 0xab5   : > { %v9913_v52 = vadd.f32 %v9837_v36, %v15796_v32  ;;  %v9251_v8 = vpop.f32.mrf.mxu1  ;;  %v9453_v54 = vpop.f32.mrf.mxu2 }
 0xab6   : > { %v9655_v28 = vpop.f32.mrf.mxu3 }
 0xab7   : > { %v9945_v59 = vadd.f32 %v9913_v52, %v16517_v16  ;;  %v9514_v52 = vadd.f32 %v9446_v47, %v9312_v42  ;;  %v9315_v42 = vadd.f32 %v9251_v8, %v15734_v19 }
 0xab9   : > { %9977 = vst.msk [vmem:[%s15879_s2 + $0x18] sm:$0xff] %vm744_vm3, %v9945_v59  ;;  %v9716_v59 = vadd.f32 %v9648_v33, %v9514_v52 }
 0xabc   : > { %v9840_v39 = vpop.f32.mrf.mxu0 }
 0xabd   : > { %v9914_v25 = vadd.f32 %v9840_v39, %v15806_v29  ;;  %v9254_v15 = vpop.f32.mrf.mxu1 }
 0xabe   : > { %10997 = vmatmul.msk.bf16.gmra.mxu0 %vm744_vm3, %v15670_v50  ;;  %v9456_v50 = vpop.f32.mrf.mxu2 }
 0xabf   : > { %v9946_v5 = vadd.f32 %v9914_v25, %v16518_v45  ;;  %v9313_v45 = vadd.f32 %v9246_v12, %v15710_v34  ;;  %v8115_v12 = vld [vmem:[#allocation3 + $0x16a] sm:$0xff] }
 0xac1   : > { %9978 = vst.msk [vmem:[%s15879_s2 + $0x20] sm:$0xff] %vm744_vm3, %v9946_v5  ;;  %v16522_v5 = vld [vmem:[#allocation14_spill] sm:$0xff]  ;;  %v9515_v21 = vadd.f32 %v9448_v20, %v9313_v45 }
 0xac3   : > { %v9717_v38 = vadd.f32 %v9650_v41, %v9515_v21 }
 0xac4   : > { %v9842_v32 = vpop.f32.mrf.mxu0 }
 0xac5   : > { %v9915_v48 = vadd.f32 %v9842_v32, %v15812_v26  ;;  %v9658_v26 = vpop.f32.mrf.mxu3 }
 0xac6   : > { %v9458_v16 = vpop.f32.mrf.mxu2 }
 0xac7   : > { %v9947_v3 = vadd.f32 %v9915_v48, %v16519_v49 }
 0xac9   : > { %9979 = vst.msk [vmem:[%s15879_s2 + $0x28] sm:$0xff] %vm744_vm3, %v9947_v3  ;;  %v9314_v3 = vadd.f32 %v9249_v46, %v15716_v57  ;;  %v9517_v46 = vadd.f32 %v9453_v54, %v9315_v42 }
 0xacb   : > { %v9516_v34 = vadd.f32 %v9451_v18, %v9314_v3  ;;  %v9719_v18 = vadd.f32 %v9655_v28, %v9517_v46 }
 0xacc   : > { %v9845_v29 = vpop.f32.mrf.mxu0 }
 0xacd   : > { %v9916_v53 = vadd.f32 %v9845_v29, %v15822_v6  ;;  %v9256_v6 = vpop.f32.mrf.mxu1  ;;  %v9660_v39 = vpop.f32.mrf.mxu3  ;;  %v16523_v29 = vld [vmem:[#allocation18_spill] sm:$0xff] }
 0xace   : > { %10998 = vmatmul.msk.bf16.gmra.mxu0 %vm744_vm3, %v15696_v4  ;;  %v9461_v47 = vpop.f32.mrf.mxu2  ;;  %v9317_v54 = vadd.f32 %v9256_v6, %v15754_v2  ;;  %v8119_v2 = vld [vmem:[#allocation3 + $0x19a] sm:$0xff]  ;;  %v8120_v6 = vld [vmem:[#allocation3 + $0x1a2] sm:$0xff] }
 0xacf   : > { %v9948_v1 = vadd.f32 %v9916_v53, %v16520_v62  ;;  %v8116_v62 = vld [vmem:[#allocation3 + $0x172] sm:$0xff] }
 0xad1   : > { %9980 = vst.msk [vmem:[%s15879_s2 + $0x30] sm:$0xff] %vm744_vm3, %v9948_v1 }
 0xad4   : > { %v9847_v17 = vpop.f32.mrf.mxu0 }
 0xad5   : > { %v9917_v63 = vadd.f32 %v9847_v17, %v15828_v10  ;;  %v9259_v10 = vpop.f32.mrf.mxu1  ;;  %v9663_v33 = vpop.f32.mrf.mxu3 }
 0xad6   : > { %v9463_v41 = vpop.f32.mrf.mxu2 }
 0xad7   : > { %v9949_v36 = vadd.f32 %v9917_v63, %v16521_v11  ;;  %v9753_v63 = vpack.c.bf16 %v8116_v62, %v8115_v12  ;;  %v16524_v11 = vld [vmem:[#allocation22_spill] sm:$0xff] }
 0xad9   : > { %9981 = vst.msk [vmem:[%s15879_s2 + $0x38] sm:$0xff] %vm744_vm3, %v9949_v36 }
 0xadc   : > { %v9850_v4 = vpop.f32.mrf.mxu0 }
 0xadd   : > { %v9918_v25 = vadd.f32 %v9850_v4, %v9716_v59  ;;  %v9261_v1 = vpop.f32.mrf.mxu1  ;;  %v9665_v57 = vpop.f32.mrf.mxu3 }
 0xade   : > { %10999 = vmatmul.msk.bf16.gmra.mxu0 %vm744_vm3, %v15720_v14  ;;  %v9718_v14 = vadd.f32 %v9653_v35, %v9516_v34  ;;  %v9316_v35 = vadd.f32 %v9254_v15, %v15740_v55  ;;  %v9519_v55 = vadd.f32 %v9458_v16, %v9317_v54  ;;  %v16527_v34 = vld [vmem:[#allocation34_spill] sm:$0xff]  ;;  %v9319_v42 = vadd.f32 %v9261_v1, %v15771_v0 }
 0xadf   : > { %v9950_v32 = vadd.f32 %v9918_v25, %v16522_v5  ;;  %v16525_v25 = vld [vmem:[#allocation26_spill] sm:$0xff]  ;;  %v9466_v5 = vpop.f32.mrf.mxu2 }
 0xae1   : > { %9982 = vst.msk [vmem:[%s15879_s2 + $0x40] sm:$0xff] %vm744_vm3, %v9950_v32  ;;  %v9518_v32 = vadd.f32 %v9456_v50, %v9316_v35  ;;  %v9721_v50 = vadd.f32 %v9660_v39, %v9519_v55 }
 0xae3   : > { %v9720_v8 = vadd.f32 %v9658_v26, %v9518_v32  ;;  %v9318_v26 = vadd.f32 %v9259_v10, %v15760_v24  ;;  %v9521_v10 = vadd.f32 %v9463_v41, %v9319_v42 }
 0xae4   : > { %v9852_v48 = vpop.f32.mrf.mxu0 }
 0xae5   : > { %v9919_v49 = vadd.f32 %v9852_v48, %v9717_v38  ;;  %v9264_v4 = vpop.f32.mrf.mxu1  ;;  %v9668_v19 = vpop.f32.mrf.mxu3  ;;  %v16526_v48 = vld [vmem:[#allocation30_spill] sm:$0xff]  ;;  %v9520_v62 = vadd.f32 %v9461_v47, %v9318_v26  ;;  %v9723_v47 = vadd.f32 %v9665_v57, %v9521_v10 }
 0xae7   : > { %v9951_v53 = vadd.f32 %v9919_v49, %v16523_v29  ;;  %v9468_v49 = vpop.f32.mrf.mxu2  ;;  %v9722_v16 = vadd.f32 %v9663_v33, %v9520_v62 }
 0xae9   : > { %9983 = vst.msk [vmem:[%s15879_s2 + $0x48] sm:$0xff] %vm744_vm3, %v9951_v53 }
 0xaec   : > { %v9855_v20 = vpop.f32.mrf.mxu0 }
 0xaed   : > { %v9920_v17 = vadd.f32 %v9855_v20, %v9718_v14  ;;  %v9266_v15 = vpop.f32.mrf.mxu1  ;;  %v9670_v3 = vpop.f32.mrf.mxu3  ;;  %v9755_v14 = vpack.c.bf16 %v8120_v6, %v8119_v2 }
 0xaee   : > { %11000 = vmatmul.msk.bf16.gmra.mxu0 %vm744_vm3, %v9753_v63  ;;  %v9321_v32 = vadd.f32 %v9266_v15, %v15787_v40 }
 0xaef   : > { %v9952_v36 = vadd.f32 %v9920_v17, %v16524_v11  ;;  %v9471_v20 = vpop.f32.mrf.mxu2  ;;  %v16528_v11 = vld [vmem:[#allocation38_spill] sm:$0xff] }
 0xaf0   : > { %v9523_v54 = vadd.f32 %v9468_v49, %v9321_v32 }
 0xaf1   : > { %9984 = vst.msk [vmem:[%s15879_s2 + $0x50] sm:$0xff] %vm744_vm3, %v9952_v36 }
 0xaf4   : > { %v9857_v52 = vpop.f32.mrf.mxu0 }
 0xaf5   : > { %v9921_v59 = vadd.f32 %v9857_v52, %v9719_v18  ;;  %v9673_v39 = vpop.f32.mrf.mxu3  ;;  %v9320_v52 = vadd.f32 %v9264_v4, %v15777_v27  ;;  %v9725_v4 = vadd.f32 %v9670_v3, %v9523_v54  ;;  %v16532_v3 = vld [vmem:[#allocation24_spill] sm:$0xff] }
 0xaf7   : > { %v9953_v45 = vadd.f32 %v9921_v59, %v16525_v25  ;;  %v9473_v18 = vpop.f32.mrf.mxu2  ;;  %v16529_v59 = vld [vmem:[#allocation42_spill] sm:$0xff] }
 0xaf9   : > { %9985 = vst.msk [vmem:[%s15879_s2 + $0x58] sm:$0xff] %vm744_vm3, %v9953_v45  ;;  %v9522_v45 = vadd.f32 %v9466_v5, %v9320_v52 }
 0xafb   : > { %v9724_v0 = vadd.f32 %v9668_v19, %v9522_v45  ;;  %v16531_v19 = vld [vmem:[#allocation20_spill] sm:$0xff]  ;;  %v16535_v45 = vld [vmem:[#allocation69_spill] sm:$0xff] }
 0xafc   : > { %v9860_v21 = vpop.f32.mrf.mxu0 }
 0xafd   : > { %v9922_v38 = vadd.f32 %v9860_v21, %v9720_v8  ;;  %v9675_v25 = vpop.f32.mrf.mxu3  ;;  %v16530_v8 = vld [vmem:[#allocation16_spill] sm:$0xff] }
 0xafe   : > { %11001 = vmatmul.msk.bf16.gmra.mxu0 %vm744_vm3, %v15762_v61  ;;  %v9269_v61 = vpop.f32.mrf.mxu1 }
 0xaff   : > { %v9954_v28 = vadd.f32 %v9922_v38, %v16526_v48  ;;  %v9476_v38 = vpop.f32.mrf.mxu2 }
 0xb01   : > { %9986 = vst.msk [vmem:[%s15879_s2 + $0x60] sm:$0xff] %vm744_vm3, %v9954_v28  ;;  %v9322_v28 = vadd.f32 %v9269_v61, %v15793_v31 }
 0xb04   : > { %v9862_v29 = vpop.f32.mrf.mxu0 }
 0xb05   : > { %v9923_v53 = vadd.f32 %v9862_v29, %v9721_v50  ;;  %v9678_v27 = vpop.f32.mrf.mxu3  ;;  %v9524_v50 = vadd.f32 %v9471_v20, %v9322_v28 }
 0xb06   : > { %v9271_v46 = vpop.f32.mrf.mxu1 }
 0xb07   : > { %v9955_v12 = vadd.f32 %v9923_v53, %v16527_v34  ;;  %v9478_v40 = vpop.f32.mrf.mxu2  ;;  %v9726_v15 = vadd.f32 %v9673_v39, %v9524_v50  ;;  %v9323_v34 = vadd.f32 %v9271_v46, %v15803_v37  ;;  %v16537_v50 = vld [vmem:[#allocation65_spill] sm:$0xff] }
 0xb09   : > { %9987 = vst.msk [vmem:[%s15879_s2 + $0x68] sm:$0xff] %vm744_vm3, %v9955_v12  ;;  %v9525_v2 = vadd.f32 %v9473_v18, %v9323_v34 }
 0xb0b   : > { %v9727_v6 = vadd.f32 %v9675_v25, %v9525_v2 }
 0xb0c   : > { %v9865_v17 = vpop.f32.mrf.mxu0 }
 0xb0d   : > { %v9924_v63 = vadd.f32 %v9865_v17, %v9722_v16  ;;  %v9680_v53 = vpop.f32.mrf.mxu3  ;;  %v16533_v17 = vld [vmem:[#allocation63_spill] sm:$0xff] }
 0xb0e   : > { %11002 = vmatmul.msk.bf16.gmra.mxu0 %vm744_vm3, %v9755_v14  ;;  %v9274_v57 = vpop.f32.mrf.mxu1 }
 0xb0f   : > { %v9956_v24 = vadd.f32 %v9924_v63, %v16528_v11  ;;  %v9481_v62 = vpop.f32.mrf.mxu2  ;;  %v9324_v20 = vadd.f32 %v9274_v57, %v15809_v30 }
 0xb11   : > { %9988 = vst.msk [vmem:[%s15879_s2 + $0x70] sm:$0xff] %vm744_vm3, %v9956_v24  ;;  %v9526_v39 = vadd.f32 %v9476_v38, %v9324_v20  ;;  %v16536_v38 = vld [vmem:[#allocation67_spill] sm:$0xff]  ;;  %v16539_v20 = vld [vmem:[#allocation68_spill] sm:$0xff] }
 0xb13   : > { %v9728_v37 = vadd.f32 %v9678_v27, %v9526_v39 }
 0xb14   : > { %v9867_v36 = vpop.f32.mrf.mxu0 }
 0xb15   : > { %v9925_v33 = vadd.f32 %v9867_v36, %v9723_v47  ;;  %v9683_v14 = vpop.f32.mrf.mxu3  ;;  %v16534_v36 = vld [vmem:[#allocation28_spill] sm:$0xff] }
 0xb16   : > { %v9276_v29 = vpop.f32.mrf.mxu1 }
 0xb17   : > { %v9957_v35 = vadd.f32 %v9925_v33, %v16529_v59  ;;  %v9483_v10 = vpop.f32.mrf.mxu2  ;;  %v9325_v47 = vadd.f32 %v9276_v29, %v15819_v13 }
 0xb19   : > { %9989 = vst.msk [vmem:[%s15879_s2 + $0x78] sm:$0xff] %vm744_vm3, %v9957_v35  ;;  %v9527_v18 = vadd.f32 %v9478_v40, %v9325_v47 }
 0xb1b   : > { %v9729_v30 = vadd.f32 %v9680_v53, %v9527_v18 }
 0xb1c   : > { %v9870_v1 = vpop.f32.mrf.mxu0 }
 0xb1d   : > { %v9926_v41 = vadd.f32 %v9870_v1, %v9724_v0  ;;  %v9685_v33 = vpop.f32.mrf.mxu3 }
 0xb1e   : > { %v9279_v31 = vpop.f32.mrf.mxu1 }
 0xb1f   : > { %v9958_v21 = vadd.f32 %v9926_v41, %v16530_v8  ;;  %v9326_v35 = vadd.f32 %v9279_v31, %v15825_v7  ;;  %v9486_v1 = vpop.f32.mrf.mxu2 }
 0xb21   : > { %9990 = vst.msk [vmem:[%s15879_s2 + $0x80] sm:$0xff] %vm744_vm3, %v9958_v21  ;;  %v9528_v41 = vadd.f32 %v9481_v62, %v9326_v35 }
 0xb23   : > { %v9730_v32 = vadd.f32 %v9683_v14, %v9528_v41 }
 0xb24   : > { %v9872_v48 = vpop.f32.mrf.mxu0 }
 0xb25   : > { %v9927_v5 = vadd.f32 %v9872_v48, %v9725_v4  ;;  %v9688_v13 = vpop.f32.mrf.mxu3 }
 0xb26   : > { %v9281_v11 = vpop.f32.mrf.mxu1 }
 0xb27   : > { %v9959_v55 = vadd.f32 %v9927_v5, %v16531_v19  ;;  %v9327_v21 = vadd.f32 %v9281_v11, %v15835_v60  ;;  %v9488_v7 = vpop.f32.mrf.mxu2 }
 0xb29   : > { %9991 = vst.msk [vmem:[%s15879_s2 + $0x88] sm:$0xff] %vm744_vm3, %v9959_v55  ;;  %v9529_v27 = vadd.f32 %v9483_v10, %v9327_v21  ;;  %v16540_v10 = vld [vmem:[#allocation32_spill] sm:$0xff] }
 0xb2b   : > { %v9731_v48 = vadd.f32 %v9685_v33, %v9529_v27 }
 0xb2c   : > { %v9875_v49 = vpop.f32.mrf.mxu0 }
 0xb2d   : > { %v9928_v26 = vadd.f32 %v9875_v49, %v9726_v15  ;;  %v9690_v5 = vpop.f32.mrf.mxu3 }
 0xb2e   : > { %v9284_v25 = vpop.f32.mrf.mxu1 }
 0xb2f   : > { %v9960_v12 = vadd.f32 %v9928_v26, %v16532_v3  ;;  %v9328_v55 = vadd.f32 %v9284_v25, %v15838_v44  ;;  %v9491_v53 = vpop.f32.mrf.mxu2 }
 0xb31   : > { %9992 = vst.msk [vmem:[%s15879_s2 + $0x90] sm:$0xff] %vm744_vm3, %v9960_v12  ;;  %v9530_v40 = vadd.f32 %v9486_v1, %v9328_v55  ;;  %v16538_v12 = vld [vmem:[#allocation50_spill] sm:$0xff] }
 0xb33   : > { %v9732_v15 = vadd.f32 %v9688_v13, %v9530_v40 }
 0xb34   : > { %v9877_v61 = vpop.f32.mrf.mxu0 }
 0xb35   : > { %v9929_v16 = vadd.f32 %v9877_v61, %v9727_v6  ;;  %v9693_v34 = vpop.f32.mrf.mxu3 }
 0xb36   : > { %v9286_v4 = vpop.f32.mrf.mxu1 }
 0xb37   : > { %v9961_v63 = vadd.f32 %v9929_v16, %v16533_v17  ;;  %v9329_v3 = vadd.f32 %v9286_v4, %v15844_v51  ;;  %v9493_v16 = vpop.f32.mrf.mxu2 }
 0xb39   : > { %9993 = vst.msk [vmem:[%s15879_s2 + $0x98] sm:$0xff] %vm744_vm3, %v9961_v63  ;;  %v9531_v31 = vadd.f32 %v9488_v7, %v9329_v3 }
 0xb3b   : > { %v9733_v44 = vadd.f32 %v9690_v5, %v9531_v31  ;;  %v16543_v5 = vld [vmem:[#allocation52_spill] sm:$0xff] }
 0xb3c   : > { %v9880_v42 = vpop.f32.mrf.mxu0 }
 0xb3d   : > { %v9930_v24 = vadd.f32 %v9880_v42, %v9728_v37  ;;  %v9695_v63 = vpop.f32.mrf.mxu3 }
 0xb3e   : > { %v9289_v60 = vpop.f32.mrf.mxu1 }
 0xb3f   : > { %v9962_v46 = vadd.f32 %v9930_v24, %v16534_v36  ;;  %v9330_v14 = vadd.f32 %v9289_v60, %v15847_v9  ;;  %v9496_v36 = vpop.f32.mrf.mxu2 }
 0xb41   : > { %9994 = vst.msk [vmem:[%s15879_s2 + $0xa0] sm:$0xff] %vm744_vm3, %v9962_v46  ;;  %v9532_v39 = vadd.f32 %v9491_v53, %v9330_v14 }
 0xb43   : > { %v9734_v51 = vadd.f32 %v9693_v34, %v9532_v39 }
 0xb44   : > { %v9882_v52 = vpop.f32.mrf.mxu0 }
 0xb45   : > { %v9931_v59 = vadd.f32 %v9882_v52, %v9729_v30  ;;  %v9698_v9 = vpop.f32.mrf.mxu3 }
 0xb46   : > { %v9291_v62 = vpop.f32.mrf.mxu1 }
 0xb47   : > { %v9963_v0 = vadd.f32 %v9931_v59, %v16535_v45  ;;  %v9331_v11 = vadd.f32 %v9291_v62, %v15853_v43  ;;  %v16541_v59 = vld [vmem:[#allocation47_spill] sm:$0xff]  ;;  %v9498_v43 = vpop.f32.mrf.mxu2 }
 0xb49   : > { %9995 = vst.msk [vmem:[%s15879_s2 + $0xa8] sm:$0xff] %vm744_vm3, %v9963_v0  ;;  %v9533_v46 = vadd.f32 %v9493_v16, %v9331_v11 }
 0xb4b   : > { %v9735_v33 = vadd.f32 %v9695_v63, %v9533_v46 }
 0xb4c   : > { %v9885_v57 = vpop.f32.mrf.mxu0 }
 0xb4d   : > { %v9932_v8 = vadd.f32 %v9885_v57, %v9730_v32  ;;  %v9700_v1 = vpop.f32.mrf.mxu3  ;;  %v16542_v57 = vld [vmem:[#allocation36_spill] sm:$0xff] }
 0xb4e   : > { %v9294_v24 = vpop.f32.mrf.mxu1 }
 0xb4f   : > { %v9964_v54 = vadd.f32 %v9932_v8, %v16536_v38  ;;  %v9332_v52 = vadd.f32 %v9294_v24, %v15856_v22 }
 0xb51   : > { %9996 = vst.msk [vmem:[%s15879_s2 + $0xb0] sm:$0xff] %vm744_vm3, %v9964_v54  ;;  %v9534_v25 = vadd.f32 %v9496_v36, %v9332_v52  ;;  %v9501_v54 = vpop.f32.mrf.mxu2 }
 0xb53   : > { %v9736_v0 = vadd.f32 %v9698_v9, %v9534_v25 }
 0xb54   : > { %v9887_v28 = vpop.f32.mrf.mxu0 }
 0xb55   : > { %v9933_v19 = vadd.f32 %v9887_v28, %v9731_v48  ;;  %v9703_v7 = vpop.f32.mrf.mxu3 }
 0xb56   : > { %v9296_v45 = vpop.f32.mrf.mxu1 }
 0xb57   : > { %v9965_v29 = vadd.f32 %v9933_v19, %v16537_v50  ;;  %v9333_v32 = vadd.f32 %v9296_v45, %v15862_v23 }
 0xb59   : > { %9997 = vst.msk [vmem:[%s15879_s2 + $0xb8] sm:$0xff] %vm744_vm3, %v9965_v29  ;;  %v9535_v21 = vadd.f32 %v9498_v43, %v9333_v32  ;;  %v9503_v40 = vpop.f32.mrf.mxu2 }
 0xb5b   : > { %v9737_v38 = vadd.f32 %v9700_v1, %v9535_v21 }
 0xb5c   : > { %v9890_v49 = vpop.f32.mrf.mxu0 }
 0xb5d   : > { %v9934_v26 = vadd.f32 %v9890_v49, %v9732_v15  ;;  %v16544_v15 = vld [vmem:[#allocation48_spill] sm:$0xff]  ;;  %v9705_v49 = vpop.f32.mrf.mxu3 }
 0xb5e   : > { %v9299_v22 = vpop.f32.mrf.mxu1 }
 0xb5f   : > { %v9966_v2 = vadd.f32 %v9934_v26, %v16538_v12  ;;  %v9334_v48 = vadd.f32 %v9299_v22, %v15865_v56  ;;  %v16547_v12 = vld [vmem:[#allocation70_spill] sm:$0xff] }
 0xb61   : > { %9998 = vst.msk [vmem:[%s15879_s2 + $0xc0] sm:$0xff] %vm744_vm3, %v9966_v2  ;;  %v9536_v19 = vadd.f32 %v9501_v54, %v9334_v48 }
 0xb63   : > { %v9738_v23 = vadd.f32 %v9703_v7, %v9536_v19 }
 0xb64   : > { %v9892_v6 = vpop.f32.mrf.mxu0 }
 0xb65   : > { %v9935_v61 = vadd.f32 %v9892_v6, %v9733_v44 }
 0xb66   : > { %v9301_v29 = vpop.f32.mrf.mxu1 }
 0xb67   : > { %v9967_v17 = vadd.f32 %v9935_v61, %v16539_v20  ;;  %v9335_v60 = vadd.f32 %v9301_v29, %v15870_v58 }
 0xb69   : > { %9999 = vst.msk [vmem:[%s15879_s2 + $0xc8] sm:$0xff] %vm744_vm3, %v9967_v17  ;;  %v9537_v56 = vadd.f32 %v9503_v40, %v9335_v60 }
 0xb6b   : > { %v9739_v26 = vadd.f32 %v9705_v49, %v9537_v56 }
 0xb6c   : > { %v9895_v37 = vpop.f32.mrf.mxu0 }
 0xb6d   : > { %v9936_v42 = vadd.f32 %v9895_v37, %v9734_v51 }
 0xb6f   : > { %v9968_v47 = vadd.f32 %v9936_v42, %v16540_v10 }
 0xb71   : > { %10000 = vst.msk [vmem:[%s15879_s2 + $0xd0] sm:$0xff] %vm744_vm3, %v9968_v47 }
 0xb74   : > { %v9897_v18 = vpop.f32.mrf.mxu0 }
 0xb75   : > { %v9937_v30 = vadd.f32 %v9897_v18, %v9735_v33 }
 0xb77   : > { %v9969_v35 = vadd.f32 %v9937_v30, %v16541_v59 }
 0xb79   : > { %10001 = vst.msk [vmem:[%s15879_s2 + $0xd8] sm:$0xff] %vm744_vm3, %v9969_v35 }
 0xb7c   : > { %v9900_v41 = vpop.f32.mrf.mxu0 }
 0xb7d   : > { %v9938_v13 = vadd.f32 %v9900_v41, %v9736_v0 }
 0xb7f   : > { %v9970_v8 = vadd.f32 %v9938_v13, %v16542_v57 }
 0xb81   : > { %10002 = vst.msk [vmem:[%s15879_s2 + $0xe0] sm:$0xff] %vm744_vm3, %v9970_v8 }
 0xb84   : > { %v9902_v27 = vpop.f32.mrf.mxu0 }
 0xb85   : > { %v9939_v4 = vadd.f32 %v9902_v27, %v9737_v38 }
 0xb87   : > { %v9971_v28 = vadd.f32 %v9939_v4, %v16543_v5 }
 0xb89   : > { %10003 = vst.msk [vmem:[%s15879_s2 + $0xe8] sm:$0xff] %vm744_vm3, %v9971_v28 }
 0xb8c   : > { %v9905_v55 = vpop.f32.mrf.mxu0 }
 0xb8d   : > { %v9940_v50 = vadd.f32 %v9905_v55, %v9738_v23 }
 0xb8f   : > { %v9972_v53 = vadd.f32 %v9940_v50, %v16544_v15 }
 0xb91   : > { %10004 = vst.msk [vmem:[%s15879_s2 + $0xf0] sm:$0xff] %vm744_vm3, %v9972_v53 }
 0xb94   : > { %v9907_v34 = vpop.f32.mrf.mxu0 }
 0xb95   : > { %v9941_v3 = vadd.f32 %v9907_v34, %v9739_v26 }
 0xb97   : > { %v9973_v58 = vadd.f32 %v9941_v3, %v16547_v12 }
 0xb99   : > { %10005 = vst.msk [vmem:[%s15879_s2 + $0xf8] sm:$0xff] %vm744_vm3, %v9973_v58 }
 0xb9a   : > { %11161 = shalt.err (!%p11158_p3)
}
 0xb9b   : > { %s11199_s23 = smov 128   ;;  %s11200_s2 = smov 8  }
 0xb9c   : > { %11067 = dma.vmem_to_hbm [thread:$0]  (%p11349_p5), %s10020_s27, 4096, %s10022_s3, %s10007_s1, %s11199_s23, %s11199_s23, %s11200_s2  }
 0xb9d PF: > { %s16548_s4 = sld [smem:[#allocation9_spill]] }
 0xb9e   : > { %s16549_s6 = sld [smem:[#allocation7_spill]] }
 0xba3   : > { %p11073_p4 = scmp.ge.s32.totalorder %s16548_s4, 2 }
 0xba4   : > { %s10036_s21 = sand.u32 1, %s16549_s6  }
 0xba5   : > { %p11070_p7 = pnand %p11073_p4, %p11353_p6  ;;  %s10037_s26 = scalar_lea.sflag [#allocation5], %s10036_s21 }
 0xba7   : > { %p11071_p8 = pneg %p11070_p7 }
 0xba9   : > { %11179 = dma.done.wait (%p11071_p8), %s10037_s26, 4096  }
 0xbaa   : > { %11181 = vsyncadd (%p11071_p8), %s10037_s26, 4294963200  ;;  %s16551_s27 = sld [smem:[#allocation10_spill]]  ;;  %s16554_s2 = smov %s11188_s25 }
 0xbab   : > { %s16552_s24 = sld [smem:[#allocation8_spill]] }
 0xbac   : > { %s16553_s26 = sld [smem:[#allocation11_spill]] }
 0xbb0   : > { %p31_p9 = scmp.ge.s32.totalorder %s16551_s27, 4  }
 0xbb1   : > { %s16555_s25 = smov %s16552_s24 }
 0xbb2   :  { %33 = sbr.rel (!%p31_p9) target bundleno = 13 (0xd), region = 175 }
 0xbb7   :  { %10043 = vsyncpa [#allocation5], 1 }
 0xbb8   :  { %10045 = vsyncpa [#allocation5 + $0x1], 1 }

</bundles_post_ra>
